<compile_context>
chip_gen: v7x
topology: tpu7x:2x2x1
jax: 0.10.0
libtpu: 0.0.40
codegen_flags: <defaults>
</compile_context>

<pallas_src>
import jax
import jax.numpy as jnp
from jax import lax
from jax.experimental import pallas as pl
from jax.experimental.pallas import tpu as pltpu

NUM_FILTERS = 100
F_PAD = 128
KSIZES = (3, 4, 5)


def _round_up(x, m):
    return ((x + m - 1) // m) * m


def textcnn_kernel(c3_ref, c4_ref, c5_ref,
                   w3_ref, b3_ref, w4_ref, b4_ref, w5_ref, b5_ref,
                   f3_ref, f4_ref, f5_ref, fcb_ref, out_ref):
    B = out_ref.shape[0]

    def branch(cols_ref, w_ref, b_ref, wfc_ref):
        T, _, KE = cols_ref.shape
        # im2col conv as a single MXU matmul (merge of leading dims is free).
        cols = cols_ref[...].reshape(T * B, KE)                         # (T*B, k*E) bf16
        h = jnp.dot(cols, w_ref[...], preferred_element_type=jnp.float32)
        h = jnp.maximum(h + b_ref[...], 0.0).astype(jnp.bfloat16)       # (T*B, 128)
        h = h.reshape(T, B, F_PAD)                                      # free split
        # FC contribution on the MXU: t-batched matmul 'tbf,tfc->tbc', sum over t.
        a = lax.dot_general(h, wfc_ref[...],
                            dimension_numbers=(((2,), (1,)), ((0,), (0,))),
                            preferred_element_type=jnp.float32)         # (T, B, C)
        return jnp.sum(a, axis=0)                                       # (B, C)

    # TODO(synk): F.dropout(x, 0.5) is stochastic; applied as identity (inference mode).
    logits = (branch(c3_ref, w3_ref, b3_ref, f3_ref)
              + branch(c4_ref, w4_ref, b4_ref, f4_ref)
              + branch(c5_ref, w5_ref, b5_ref, f5_ref)
              + fcb_ref[...])                                           # (B, C)

    # softmax over classes (PyTorch dim=1)
    m = jnp.max(logits, axis=-1, keepdims=True)
    e = jnp.exp(logits - m)
    inv = pl.reciprocal(jnp.sum(e, axis=-1, keepdims=True), approx=True)
    out_ref[...] = (e * inv).astype(out_ref.dtype)


def textcnn_forward(x_nchw, params, block_b=128):
    """x_nchw: (N, 1, L, E) float32.  Returns softmax probs (N, C)."""
    N, _, L, E = x_nchw.shape
    F = NUM_FILTERS
    C = params["fc_b"].shape[0]
    T_list = [L - k + 1 for k in KSIZES]
    T_total = sum(T_list)
    assert params["fc_w"].shape == (C, F * T_total)

    # Batch tile (multiple of 8 for sublane alignment); pad N with zero samples.
    B = min(block_b, _round_up(N, 8))
    N_pad = _round_up(N, B)

    xs = x_nchw[:, 0].astype(jnp.float32)                                # (N, L, E)
    xs = jnp.pad(xs, ((0, N_pad - N), (0, 0), (0, 0)))

    # im2col columns per branch: (T_k, N_pad, k*E), bf16.
    cols = {}
    for k, T_k in zip(KSIZES, T_list):
        c = jnp.concatenate([xs[:, dk:dk + T_k, :] for dk in range(k)], axis=-1)
        cols[k] = jnp.transpose(c, (1, 0, 2)).astype(jnp.bfloat16)       # (T_k, N_pad, k*E)

    # Conv weights (F,1,k,E) -> (k*E, 128) zero-padded; biases -> (1, 128) f32.
    conv_w, conv_b = {}, {}
    for k in KSIZES:
        w = params[f"conv{k}_w"][:, 0].reshape(F, k * E).T               # (k*E, F)
        conv_w[k] = jnp.pad(w, ((0, 0), (0, F_PAD - F))).astype(jnp.bfloat16)
        conv_b[k] = jnp.pad(params[f"conv{k}_b"], (0, F_PAD - F)
                            ).reshape(1, F_PAD).astype(jnp.float32)

    # FC weight (C, F*T_total), PyTorch flatten index = f*T_total + t
    #   -> per-branch (T_k, 128, C) with the filter axis zero-padded.
    Wg = params["fc_w"].reshape(C, F, T_total)
    offs = [0, T_list[0], T_list[0] + T_list[1]]
    wfc = {}
    for k, T_k, o in zip(KSIZES, T_list, offs):
        w = jnp.transpose(Wg[:, :, o:o + T_k], (2, 1, 0))                # (T_k, F, C)
        wfc[k] = jnp.pad(w, ((0, 0), (0, F_PAD - F), (0, 0))).astype(jnp.bfloat16)
    fcb = params["fc_b"].reshape(1, C).astype(jnp.float32)

    grid = (N_pad // B,)
    in_specs = [
        pl.BlockSpec((T_list[0], B, 3 * E), lambda n: (0, n, 0)),
        pl.BlockSpec((T_list[1], B, 4 * E), lambda n: (0, n, 0)),
        pl.BlockSpec((T_list[2], B, 5 * E), lambda n: (0, n, 0)),
        pl.BlockSpec((3 * E, F_PAD), lambda n: (0, 0)),
        pl.BlockSpec((1, F_PAD), lambda n: (0, 0)),
        pl.BlockSpec((4 * E, F_PAD), lambda n: (0, 0)),
        pl.BlockSpec((1, F_PAD), lambda n: (0, 0)),
        pl.BlockSpec((5 * E, F_PAD), lambda n: (0, 0)),
        pl.BlockSpec((1, F_PAD), lambda n: (0, 0)),
        pl.BlockSpec((T_list[0], F_PAD, C), lambda n: (0, 0, 0)),
        pl.BlockSpec((T_list[1], F_PAD, C), lambda n: (0, 0, 0)),
        pl.BlockSpec((T_list[2], F_PAD, C), lambda n: (0, 0, 0)),
        pl.BlockSpec((1, C), lambda n: (0, 0)),
    ]

    out = pl.pallas_call(
        textcnn_kernel,
        out_shape=jax.ShapeDtypeStruct((N_pad, C), jnp.float32),
        grid=grid,
        in_specs=in_specs,
        out_specs=pl.BlockSpec((B, C), lambda n: (n, 0)),
        compiler_params=pltpu.CompilerParams(
            dimension_semantics=("parallel",),
            vmem_limit_bytes=48 * 1024 * 1024),
    )(cols[3], cols[4], cols[5],
      conv_w[3], conv_b[3], conv_w[4], conv_b[4], conv_w[5], conv_b[5],
      wfc[3], wfc[4], wfc[5], fcb)
    return out[:N]                                                       # (N, C)


def reference_forward(x_nchw, params):
    """Pure-JAX f32 reference matching the PyTorch forward (dropout in eval mode)."""
    N, _, L, E = x_nchw.shape
    xs = x_nchw[:, 0]
    feats = []
    for k in KSIZES:
        w = params[f"conv{k}_w"][:, 0]                                   # (F, k, E)
        b = params[f"conv{k}_b"]
        lk = L - k + 1
        cols = jnp.stack([xs[:, dk:dk + lk, :] for dk in range(k)], axis=2)  # (N, lk, k, E)
        conv = jnp.einsum("ntke,fke->nft", cols, w) + b[None, :, None]
        feats.append(jax.nn.relu(conv))
    feat = jnp.concatenate(feats, axis=2)                                # (N, F, T_total)
    flat = feat.reshape(N, -1)                                           # index = f*T + t
    logits = flat @ params["fc_w"].T + params["fc_b"]
    return jax.nn.softmax(logits, axis=1)


if __name__ == "__main__":
    # Linear(17100, C) implies 100 * (3L - 9) = 17100  ->  L = 60.
    # Small demo shapes: batch = 4, emb_size = 16, classes = 4.
    N, L, E, C = 4, 60, 16, 4
    F = NUM_FILTERS
    T = sum(L - k + 1 for k in KSIZES)
    assert F * T == 17100

    key = jax.random.PRNGKey(0)
    ks = jax.random.split(key, 9)
    x = jax.random.normal(ks[0], (N, 1, L, E), jnp.float32)

    params = {}
    for i, k in enumerate(KSIZES):
        fan_in = k * E
        params[f"conv{k}_w"] = (jax.random.normal(ks[1 + 2 * i], (F, 1, k, E), jnp.float32)
                                / jnp.sqrt(fan_in))
        params[f"conv{k}_b"] = jax.random.normal(ks[2 + 2 * i], (F,), jnp.float32) * 0.1
    params["fc_w"] = jax.random.normal(ks[7], (C, F * T), jnp.float32) / jnp.sqrt(F * T)
    params["fc_b"] = jax.random.normal(ks[8], (C,), jnp.float32) * 0.1

    out = jax.block_until_ready(textcnn_forward(x, params))
    ref = jax.block_until_ready(reference_forward(x, params))
    err = float(jnp.max(jnp.abs(out - ref)))
    assert out.shape == (N, C) and err < 1e-2, f"mismatch vs reference: {err}"
    print("KERNEL_OK")
</pallas_src>

<mosaic_0001>
module attributes {stable_mosaic.version = 11 : i64} {
  func.func @textcnn_kernel(%arg0: i32, %arg1: memref<58x8x48xbf16, #tpu.memory_space<vmem>>, %arg2: memref<57x8x64xbf16, #tpu.memory_space<vmem>>, %arg3: memref<56x8x80xbf16, #tpu.memory_space<vmem>>, %arg4: memref<48x128xbf16, #tpu.memory_space<vmem>>, %arg5: memref<1x128xf32, #tpu.memory_space<vmem>>, %arg6: memref<64x128xbf16, #tpu.memory_space<vmem>>, %arg7: memref<1x128xf32, #tpu.memory_space<vmem>>, %arg8: memref<80x128xbf16, #tpu.memory_space<vmem>>, %arg9: memref<1x128xf32, #tpu.memory_space<vmem>>, %arg10: memref<58x128x4xbf16, #tpu.memory_space<vmem>>, %arg11: memref<57x128x4xbf16, #tpu.memory_space<vmem>>, %arg12: memref<56x128x4xbf16, #tpu.memory_space<vmem>>, %arg13: memref<1x4xf32, #tpu.memory_space<vmem>>, %arg14: memref<8x4xf32, #tpu.memory_space<vmem>>) attributes {dimension_semantics = [#tpu.dimension_semantics<parallel>], iteration_bounds = array<i64: 1>, scalar_prefetch = 0 : i64, scratch_operands = 0 : i64, tpu.core_type = #tpu.core_type<tc>, window_params = [{transform_indices = @transform_0, window_bounds = array<i64: 58, 8, 48>}, {transform_indices = @transform_1, window_bounds = array<i64: 57, 8, 64>}, {transform_indices = @transform_2, window_bounds = array<i64: 56, 8, 80>}, {pipeline_mode = #tpu.pipeline_mode<synchronous>, transform_indices = @transform_3, window_bounds = array<i64: 48, 128>}, {pipeline_mode = #tpu.pipeline_mode<synchronous>, transform_indices = @transform_4, window_bounds = array<i64: 1, 128>}, {pipeline_mode = #tpu.pipeline_mode<synchronous>, transform_indices = @transform_5, window_bounds = array<i64: 64, 128>}, {pipeline_mode = #tpu.pipeline_mode<synchronous>, transform_indices = @transform_6, window_bounds = array<i64: 1, 128>}, {pipeline_mode = #tpu.pipeline_mode<synchronous>, transform_indices = @transform_7, window_bounds = array<i64: 80, 128>}, {pipeline_mode = #tpu.pipeline_mode<synchronous>, transform_indices = @transform_8, window_bounds = array<i64: 1, 128>}, {pipeline_mode = #tpu.pipeline_mode<synchronous>, transform_indices = @transform_9, window_bounds = array<i64: 58, 128, 4>}, {pipeline_mode = #tpu.pipeline_mode<synchronous>, transform_indices = @transform_10, window_bounds = array<i64: 57, 128, 4>}, {pipeline_mode = #tpu.pipeline_mode<synchronous>, transform_indices = @transform_11, window_bounds = array<i64: 56, 128, 4>}, {pipeline_mode = #tpu.pipeline_mode<synchronous>, transform_indices = @transform_12, window_bounds = array<i64: 1, 4>}, {transform_indices = @transform_13, window_bounds = array<i64: 8, 4>}]} {
    %c0 = arith.constant 0 : index
    %c0_0 = arith.constant 0 : index
    %c0_1 = arith.constant 0 : index
    %0 = vector.load %arg1[%c0, %c0_0, %c0_1] : memref<58x8x48xbf16, #tpu.memory_space<vmem>>, vector<58x8x48xbf16>
    %1 = vector.shape_cast %0 : vector<58x8x48xbf16> to vector<464x48xbf16>
    %c0_2 = arith.constant 0 : index
    %c0_3 = arith.constant 0 : index
    %2 = vector.load %arg4[%c0_2, %c0_3] : memref<48x128xbf16, #tpu.memory_space<vmem>>, vector<48x128xbf16>
    %cst = arith.constant dense<0.000000e+00> : vector<464x128xf32>
    %3 = tpu.matmul %1, %2, %cst {dimension_numbers = #tpu.dot_dimension_numbers<[1], [0], [0], [1], [0, 0, 1, 1], [], []>} : vector<464x48xbf16>, vector<48x128xbf16>, vector<464x128xf32> -> vector<464x128xf32>
    %c0_4 = arith.constant 0 : index
    %c0_5 = arith.constant 0 : index
    %4 = vector.load %arg5[%c0_4, %c0_5] : memref<1x128xf32, #tpu.memory_space<vmem>>, vector<1x128xf32>
    %5 = vector.broadcast %4 : vector<1x128xf32> to vector<464x128xf32>
    %6 = arith.addf %3, %5 : vector<464x128xf32>
    %cst_6 = arith.constant 0.000000e+00 : f32
    %7 = vector.broadcast %cst_6 : f32 to vector<464x128xf32>
    %8 = arith.maximumf %6, %7 : vector<464x128xf32>
    %9 = arith.truncf %8 : vector<464x128xf32> to vector<464x128xbf16>
    %10 = vector.shape_cast %9 : vector<464x128xbf16> to vector<58x8x128xbf16>
    %c0_7 = arith.constant 0 : index
    %c0_8 = arith.constant 0 : index
    %c0_9 = arith.constant 0 : index
    %11 = vector.load %arg10[%c0_7, %c0_8, %c0_9] : memref<58x128x4xbf16, #tpu.memory_space<vmem>>, vector<58x128x4xbf16>
    %cst_10 = arith.constant dense<0.000000e+00> : vector<58x8x4xf32>
    %12 = tpu.matmul %10, %11, %cst_10 {dimension_numbers = #tpu.dot_dimension_numbers<[2], [1], [1], [2], [0, 0, 0, 1, 1, 2], [0], [0]>} : vector<58x8x128xbf16>, vector<58x128x4xbf16>, vector<58x8x4xf32> -> vector<58x8x4xf32>
    %cst_11 = arith.constant dense<0.000000e+00> : vector<8x4xf32>
    %13 = vector.multi_reduction <add>, %12, %cst_11 [0] : vector<58x8x4xf32> to vector<8x4xf32>
    %c0_12 = arith.constant 0 : index
    %c0_13 = arith.constant 0 : index
    %c0_14 = arith.constant 0 : index
    %14 = vector.load %arg2[%c0_12, %c0_13, %c0_14] : memref<57x8x64xbf16, #tpu.memory_space<vmem>>, vector<57x8x64xbf16>
    %15 = vector.shape_cast %14 : vector<57x8x64xbf16> to vector<456x64xbf16>
    %c0_15 = arith.constant 0 : index
    %c0_16 = arith.constant 0 : index
    %16 = vector.load %arg6[%c0_15, %c0_16] : memref<64x128xbf16, #tpu.memory_space<vmem>>, vector<64x128xbf16>
    %cst_17 = arith.constant dense<0.000000e+00> : vector<456x128xf32>
    %17 = tpu.matmul %15, %16, %cst_17 {dimension_numbers = #tpu.dot_dimension_numbers<[1], [0], [0], [1], [0, 0, 1, 1], [], []>} : vector<456x64xbf16>, vector<64x128xbf16>, vector<456x128xf32> -> vector<456x128xf32>
    %c0_18 = arith.constant 0 : index
    %c0_19 = arith.constant 0 : index
    %18 = vector.load %arg7[%c0_18, %c0_19] : memref<1x128xf32, #tpu.memory_space<vmem>>, vector<1x128xf32>
    %19 = vector.broadcast %18 : vector<1x128xf32> to vector<456x128xf32>
    %20 = arith.addf %17, %19 : vector<456x128xf32>
    %cst_20 = arith.constant 0.000000e+00 : f32
    %21 = vector.broadcast %cst_20 : f32 to vector<456x128xf32>
    %22 = arith.maximumf %20, %21 : vector<456x128xf32>
    %23 = arith.truncf %22 : vector<456x128xf32> to vector<456x128xbf16>
    %24 = vector.shape_cast %23 : vector<456x128xbf16> to vector<57x8x128xbf16>
    %c0_21 = arith.constant 0 : index
    %c0_22 = arith.constant 0 : index
    %c0_23 = arith.constant 0 : index
    %25 = vector.load %arg11[%c0_21, %c0_22, %c0_23] : memref<57x128x4xbf16, #tpu.memory_space<vmem>>, vector<57x128x4xbf16>
    %cst_24 = arith.constant dense<0.000000e+00> : vector<57x8x4xf32>
    %26 = tpu.matmul %24, %25, %cst_24 {dimension_numbers = #tpu.dot_dimension_numbers<[2], [1], [1], [2], [0, 0, 0, 1, 1, 2], [0], [0]>} : vector<57x8x128xbf16>, vector<57x128x4xbf16>, vector<57x8x4xf32> -> vector<57x8x4xf32>
    %cst_25 = arith.constant dense<0.000000e+00> : vector<8x4xf32>
    %27 = vector.multi_reduction <add>, %26, %cst_25 [0] : vector<57x8x4xf32> to vector<8x4xf32>
    %28 = arith.addf %13, %27 : vector<8x4xf32>
    %c0_26 = arith.constant 0 : index
    %c0_27 = arith.constant 0 : index
    %c0_28 = arith.constant 0 : index
    %29 = vector.load %arg3[%c0_26, %c0_27, %c0_28] : memref<56x8x80xbf16, #tpu.memory_space<vmem>>, vector<56x8x80xbf16>
    %30 = vector.shape_cast %29 : vector<56x8x80xbf16> to vector<448x80xbf16>
    %c0_29 = arith.constant 0 : index
    %c0_30 = arith.constant 0 : index
    %31 = vector.load %arg8[%c0_29, %c0_30] : memref<80x128xbf16, #tpu.memory_space<vmem>>, vector<80x128xbf16>
    %cst_31 = arith.constant dense<0.000000e+00> : vector<448x128xf32>
    %32 = tpu.matmul %30, %31, %cst_31 {dimension_numbers = #tpu.dot_dimension_numbers<[1], [0], [0], [1], [0, 0, 1, 1], [], []>} : vector<448x80xbf16>, vector<80x128xbf16>, vector<448x128xf32> -> vector<448x128xf32>
    %c0_32 = arith.constant 0 : index
    %c0_33 = arith.constant 0 : index
    %33 = vector.load %arg9[%c0_32, %c0_33] : memref<1x128xf32, #tpu.memory_space<vmem>>, vector<1x128xf32>
    %34 = vector.broadcast %33 : vector<1x128xf32> to vector<448x128xf32>
    %35 = arith.addf %32, %34 : vector<448x128xf32>
    %cst_34 = arith.constant 0.000000e+00 : f32
    %36 = vector.broadcast %cst_34 : f32 to vector<448x128xf32>
    %37 = arith.maximumf %35, %36 : vector<448x128xf32>
    %38 = arith.truncf %37 : vector<448x128xf32> to vector<448x128xbf16>
    %39 = vector.shape_cast %38 : vector<448x128xbf16> to vector<56x8x128xbf16>
    %c0_35 = arith.constant 0 : index
    %c0_36 = arith.constant 0 : index
    %c0_37 = arith.constant 0 : index
    %40 = vector.load %arg12[%c0_35, %c0_36, %c0_37] : memref<56x128x4xbf16, #tpu.memory_space<vmem>>, vector<56x128x4xbf16>
    %cst_38 = arith.constant dense<0.000000e+00> : vector<56x8x4xf32>
    %41 = tpu.matmul %39, %40, %cst_38 {dimension_numbers = #tpu.dot_dimension_numbers<[2], [1], [1], [2], [0, 0, 0, 1, 1, 2], [0], [0]>} : vector<56x8x128xbf16>, vector<56x128x4xbf16>, vector<56x8x4xf32> -> vector<56x8x4xf32>
    %cst_39 = arith.constant dense<0.000000e+00> : vector<8x4xf32>
    %42 = vector.multi_reduction <add>, %41, %cst_39 [0] : vector<56x8x4xf32> to vector<8x4xf32>
    %43 = arith.addf %28, %42 : vector<8x4xf32>
    %c0_40 = arith.constant 0 : index
    %c0_41 = arith.constant 0 : index
    %44 = vector.load %arg13[%c0_40, %c0_41] : memref<1x4xf32, #tpu.memory_space<vmem>>, vector<1x4xf32>
    %45 = vector.broadcast %44 : vector<1x4xf32> to vector<8x4xf32>
    %46 = arith.addf %43, %45 : vector<8x4xf32>
    %cst_42 = arith.constant dense<0xFF800000> : vector<8xf32>
    %47 = vector.multi_reduction <maximumf>, %46, %cst_42 [1] : vector<8x4xf32> to vector<8xf32>
    %48 = vector.shape_cast %47 : vector<8xf32> to vector<8x1xf32>
    %49 = vector.broadcast %48 : vector<8x1xf32> to vector<8x4xf32>
    %50 = arith.subf %46, %49 : vector<8x4xf32>
    %51 = math.exp %50 : vector<8x4xf32>
    %cst_43 = arith.constant dense<0.000000e+00> : vector<8xf32>
    %52 = vector.multi_reduction <add>, %51, %cst_43 [1] : vector<8x4xf32> to vector<8xf32>
    %53 = vector.shape_cast %52 : vector<8xf32> to vector<8x1xf32>
    %54 = tpu.reciprocal %53 {approx = true} : vector<8x1xf32> -> vector<8x1xf32>
    %55 = vector.broadcast %54 : vector<8x1xf32> to vector<8x4xf32>
    %56 = arith.mulf %51, %55 : vector<8x4xf32>
    %c0_44 = arith.constant 0 : index
    %c0_45 = arith.constant 0 : index
    %57 = vector.load %arg14[%c0_44, %c0_45] : memref<8x4xf32, #tpu.memory_space<vmem>>, vector<8x4xf32>
    tpu.vector_store %arg14[%c0_44, %c0_45], %56 {strides = array<i32>} : memref<8x4xf32, #tpu.memory_space<vmem>>, vector<8x4xf32>,
    return
  }
  func.func @transform_0(%arg0: i32) -> (i32, i32, i32) {
    %c0_i32 = arith.constant 0 : i32
    %c0_i32_0 = arith.constant 0 : i32
    %c0_i32_1 = arith.constant 0 : i32
    return %c0_i32, %arg0, %c0_i32_0 : i32, i32, i32
  }
  func.func @transform_1(%arg0: i32) -> (i32, i32, i32) {
    %c0_i32 = arith.constant 0 : i32
    %c0_i32_0 = arith.constant 0 : i32
    %c0_i32_1 = arith.constant 0 : i32
    return %c0_i32, %arg0, %c0_i32_0 : i32, i32, i32
  }
  func.func @transform_2(%arg0: i32) -> (i32, i32, i32) {
    %c0_i32 = arith.constant 0 : i32
    %c0_i32_0 = arith.constant 0 : i32
    %c0_i32_1 = arith.constant 0 : i32
    return %c0_i32, %arg0, %c0_i32_0 : i32, i32, i32
  }
  func.func @transform_3(%arg0: i32) -> (i32, i32) {
    %c0_i32 = arith.constant 0 : i32
    %c0_i32_0 = arith.constant 0 : i32
    %c0_i32_1 = arith.constant 0 : i32
    return %c0_i32, %c0_i32_0 : i32, i32
  }
  func.func @transform_4(%arg0: i32) -> (i32, i32) {
    %c0_i32 = arith.constant 0 : i32
    %c0_i32_0 = arith.constant 0 : i32
    %c0_i32_1 = arith.constant 0 : i32
    return %c0_i32, %c0_i32_0 : i32, i32
  }
  func.func @transform_5(%arg0: i32) -> (i32, i32) {
    %c0_i32 = arith.constant 0 : i32
    %c0_i32_0 = arith.constant 0 : i32
    %c0_i32_1 = arith.constant 0 : i32
    return %c0_i32, %c0_i32_0 : i32, i32
  }
  func.func @transform_6(%arg0: i32) -> (i32, i32) {
    %c0_i32 = arith.constant 0 : i32
    %c0_i32_0 = arith.constant 0 : i32
    %c0_i32_1 = arith.constant 0 : i32
    return %c0_i32, %c0_i32_0 : i32, i32
  }
  func.func @transform_7(%arg0: i32) -> (i32, i32) {
    %c0_i32 = arith.constant 0 : i32
    %c0_i32_0 = arith.constant 0 : i32
    %c0_i32_1 = arith.constant 0 : i32
    return %c0_i32, %c0_i32_0 : i32, i32
  }
  func.func @transform_8(%arg0: i32) -> (i32, i32) {
    %c0_i32 = arith.constant 0 : i32
    %c0_i32_0 = arith.constant 0 : i32
    %c0_i32_1 = arith.constant 0 : i32
    return %c0_i32, %c0_i32_0 : i32, i32
  }
  func.func @transform_9(%arg0: i32) -> (i32, i32, i32) {
    %c0_i32 = arith.constant 0 : i32
    %c0_i32_0 = arith.constant 0 : i32
    %c0_i32_1 = arith.constant 0 : i32
    %c0_i32_2 = arith.constant 0 : i32
    return %c0_i32, %c0_i32_0, %c0_i32_1 : i32, i32, i32
  }
  func.func @transform_10(%arg0: i32) -> (i32, i32, i32) {
    %c0_i32 = arith.constant 0 : i32
    %c0_i32_0 = arith.constant 0 : i32
    %c0_i32_1 = arith.constant 0 : i32
    %c0_i32_2 = arith.constant 0 : i32
    return %c0_i32, %c0_i32_0, %c0_i32_1 : i32, i32, i32
  }
  func.func @transform_11(%arg0: i32) -> (i32, i32, i32) {
    %c0_i32 = arith.constant 0 : i32
    %c0_i32_0 = arith.constant 0 : i32
    %c0_i32_1 = arith.constant 0 : i32
    %c0_i32_2 = arith.constant 0 : i32
    return %c0_i32, %c0_i32_0, %c0_i32_1 : i32, i32, i32
  }
  func.func @transform_12(%arg0: i32) -> (i32, i32) {
    %c0_i32 = arith.constant 0 : i32
    %c0_i32_0 = arith.constant 0 : i32
    %c0_i32_1 = arith.constant 0 : i32
    return %c0_i32, %c0_i32_0 : i32, i32
  }
  func.func @transform_13(%arg0: i32) -> (i32, i32) {
    %c0_i32 = arith.constant 0 : i32
    %c0_i32_0 = arith.constant 0 : i32
    return %arg0, %c0_i32 : i32, i32
  }
}

</mosaic_0001>

<bundles_post_ra>
// kernel: tpu_custom_call.1
= control target key start
LH: loop header
LB: loop body
LE: loop exit
PB: predicated region body
PF: predicated region fallthrough
CT: control target
= control target key end

     0   :  { %v29566_v0 = vmov 0.0   ;;  %vm29567_vm0 = vmmov 0   ;;  %vm279_vm1 = vcmask 392192   ;;  %vm6954_vm2 = vcmask 31744   ;;  %s37136_s3 = inlined_call_operand.vmem [shape: bf16[48,128], index: 3, kind: input, shape index: {}]   ;;  %s37137_s0 = inlined_call_operand.vmem [shape: bf16[58,8,48], index: 0, kind: input, shape index: {}]   ;;  %s37138_s9 = inlined_call_operand.vmem [shape: bf16[58,128,4], index: 9, kind: input, shape index: {}]   ;;  %s37139_s4 = inlined_call_operand.vmem [shape: f32[1,128], index: 4, kind: input, shape index: {}]   ;;  %s37140_s5 = inlined_call_operand.vmem [shape: bf16[64,128], index: 5, kind: input, shape index: {}]   ;;  %s37141_s1 = inlined_call_operand.vmem [shape: bf16[57,8,64], index: 1, kind: input, shape index: {}]   ;;  %s37142_s10 = inlined_call_operand.vmem [shape: bf16[57,128,4], index: 10, kind: input, shape index: {}]   ;;  %s37143_s6 = inlined_call_operand.vmem [shape: f32[1,128], index: 6, kind: input, shape index: {}]   ;;  %s37144_s7 = inlined_call_operand.vmem [shape: bf16[80,128], index: 7, kind: input, shape index: {}]   ;;  %s37145_s2 = inlined_call_operand.vmem [shape: bf16[56,8,80], index: 2, kind: input, shape index: {}]   ;;  %s37146_s11 = inlined_call_operand.vmem [shape: bf16[56,128,4], index: 11, kind: input, shape index: {}]   ;;  %s37147_s8 = inlined_call_operand.vmem [shape: f32[1,128], index: 8, kind: input, shape index: {}]   ;;  %s37148_s12 = inlined_call_operand.vmem [shape: f32[1,4], index: 12, kind: input, shape index: {}]   ;;  %s37149_s13 = inlined_call_operand.vmem [shape: f32[8,4], index: 13, kind: output, shape index: {}]  }
   0x1   :  { %24349 = vmatprep.subr.bf16.mxu0 %v29566_v0  ;;  %v28083_v1 = vld [vmem:[%s37136_s3] sm:$0xff]   ;;  %24355 = vmatprep.mubr.msk.bf16.mxu0 %vm29567_vm0, %v29566_v0  ;;  %v28084_v2 = vld [vmem:[%s37136_s3 + $0x8] sm:$0xff]   ;;  %v28085_v3 = vld [vmem:[%s37136_s3 + $0x10] sm:$0xff]   ;;  %vm7309_vm3 = vcmask 523264   ;;  %vm14232_vm4 = vcmask 654336  }
   0x2   :  { %24471 = vmatprep.subr.bf16.mxu1 %v29566_v0  ;;  %24487 = vmatprep.mubr.msk.bf16.mxu1 %vm29567_vm0, %v29566_v0  ;;  %v28086_v4 = vld [vmem:[%s37137_s0] sm:$0xff]   ;;  %v28087_v5 = vld [vmem:[%s37137_s0 + $0x8] sm:$0xff]   ;;  %v28088_v6 = vld [vmem:[%s37137_s0 + $0x10] sm:$0xff]  }
   0x3   :  { %24350 = vmatpush3.bf16.msra.mxu0 %v28083_v1  ;;  %v28089_v7 = vld [vmem:[%s37137_s0 + $0x18] sm:$0xff]   ;;  %v28090_v8 = vld [vmem:[%s37137_s0 + $0x20] sm:$0xff]   ;;  %v28091_v9 = vld [vmem:[%s37137_s0 + $0x28] sm:$0xff]  }
   0x4   :  { %24351 = vmatprep.subr.bf16.mxu0 %v29566_v0  ;;  %v28108_v10 = vld [vmem:[%s37138_s9] sm:$0xff]   ;;  %v28092_v11 = vld [vmem:[%s37137_s0 + $0x30] sm:$0xff]   ;;  %v28110_v12 = vld [vmem:[%s37138_s9 + $0x8] sm:$0xff]  }
   0x5   :  { %24472 = vmatpush3.bf16.msra.mxu1 %v28108_v10  ;;  %v28111_v13 = vld [vmem:[%s37138_s9 + $0x10] sm:$0xff]   ;;  %v28093_v14 = vld [vmem:[%s37137_s0 + $0x38] sm:$0xff]   ;;  %v28114_v16 = vld [vmem:[%s37138_s9 + $0x20] sm:$0xff]  }
   0x6   :  { %24473 = vmatprep.subr.bf16.mxu1 %v29566_v0  ;;  %v28113_v15 = vld [vmem:[%s37138_s9 + $0x18] sm:$0xff]   ;;  %v28094_v17 = vld [vmem:[%s37137_s0 + $0x40] sm:$0xff]   ;;  %v28116_v18 = vld [vmem:[%s37138_s9 + $0x28] sm:$0xff]  }
   0x7   :  { %24352 = vmatpush3.bf16.msra.mxu0 %v28084_v2  ;;  %v28117_v19 = vld [vmem:[%s37138_s9 + $0x30] sm:$0xff]   ;;  %v28095_v20 = vld [vmem:[%s37137_s0 + $0x48] sm:$0xff]   ;;  %v28097_v22 = vld [vmem:[%s37137_s0 + $0x58] sm:$0xff]  }
   0x8   :  { %24353 = vmatprep.subr.bf16.mxu0 %v29566_v0  ;;  %v28096_v21 = vld [vmem:[%s37137_s0 + $0x50] sm:$0xff]   ;;  %v28119_v23 = vld [vmem:[%s37138_s9 + $0x1c0] sm:$0xff]   ;;  %v28120_v24 = vld [vmem:[%s37138_s9 + $0x38] sm:$0xff]  }
   0x9   :  { %24474 = vmatpush3.bf16.msra.mxu1 %v28110_v12  ;;  %v28121_v25 = vld [vmem:[%s37138_s9 + $0x1c8] sm:$0xff]   ;;  %v28124_v26 = vld [vmem:[%s37138_s9 + $0x1d0] sm:$0xff]   ;;  %v28098_v27 = vld [vmem:[%s37137_s0 + $0x60] sm:$0xff]  }
   0xa   :  { %24475 = vmatprep.subr.bf16.mxu1 %v29566_v0  ;;  %v28126_v28 = vld [vmem:[%s37138_s9 + $0x1d8] sm:$0xff]   ;;  %v28129_v29 = vld [vmem:[%s37138_s9 + $0x1e0] sm:$0xff]   ;;  %v28099_v30 = vld [vmem:[%s37137_s0 + $0x68] sm:$0xff]  }
   0xb   :  { %24354 = vmatpush3.bf16.msra.mxu0 %v28085_v3  ;;  %v28131_v31 = vld [vmem:[%s37138_s9 + $0x1e8] sm:$0xff]   ;;  %v28100_v32 = vld [vmem:[%s37137_s0 + $0x70] sm:$0xff]   ;;  %v28136_v34 = vld [vmem:[%s37138_s9 + $0x1f8] sm:$0xff]  }
   0xc   :  { %24611 = vmatprep.subr.bf16.mxu0 %v29566_v0  ;;  %v28134_v33 = vld [vmem:[%s37138_s9 + $0x1f0] sm:$0xff]   ;;  %v28101_v35 = vld [vmem:[%s37137_s0 + $0x78] sm:$0xff]   ;;  %v28102_v36 = vld [vmem:[%s37137_s0 + $0x80] sm:$0xff]  }
   0xd   :  { %24476 = vmatpush3.bf16.msra.mxu1 %v28111_v13  ;;  %v28103_v37 = vld [vmem:[%s37137_s0 + $0x88] sm:$0xff]   ;;  %v28104_v38 = vld [vmem:[%s37137_s0 + $0x90] sm:$0xff]   ;;  %v28105_v39 = vld [vmem:[%s37137_s0 + $0x98] sm:$0xff]  }
   0xe   :  { %24356 = vmatmul.mubr.msk.bf16.vlgmr.msra.gmra.mrb[0].mxu0 %vm279_vm1, %v28086_v4  ;;  %24477 = vmatprep.subr.bf16.mxu1 %v29566_v0  ;;  %v28106_v40 = vld [vmem:[%s37137_s0 + $0xa0] sm:$0xff]   ;;  %v28107_v41 = vld [vmem:[%s37137_s0 + $0xa8] sm:$0xff]   ;;  %v28109_v42 = vld [vmem:[%s37137_s0 + $0xb0] sm:$0xff]  }
   0xf   :  { %24359 = vmatprep.mubr.msk.bf16.mxu0 %vm29567_vm0, %v29566_v0  ;;  %24612 = vmatpush3.bf16.msra.mxu0 %v28119_v23  ;;  %v28112_v43 = vld [vmem:[%s37137_s0 + $0xb8] sm:$0xff]   ;;  %v28115_v44 = vld [vmem:[%s37137_s0 + $0xc0] sm:$0xff]   ;;  %v28118_v45 = vld [vmem:[%s37137_s0 + $0xc8] sm:$0xff]  }
  0x10   :  { %24613 = vmatprep.subr.bf16.mxu0 %v29566_v0  ;;  %v28123_v46 = vld [vmem:[%s37137_s0 + $0xd0] sm:$0xff]   ;;  %v29883_v47 = vld [vmem:[%s37139_s4] ss:$0 sm:$0xff]  ;;  %v28128_v51 = vld [vmem:[%s37137_s0 + $0xd8] sm:$0xff]  }
  0x11   :  { %24478 = vmatpush3.bf16.msra.mxu1 %v28113_v15  ;;  %v28122_v55 = vld [vmem:[%s37138_s9 + $0x40] sm:$0xff]   ;;  %v28125_v57 = vld [vmem:[%s37138_s9 + $0x48] sm:$0xff]   ;;  %v28127_v63 = vld [vmem:[%s37138_s9 + $0x50] sm:$0xff]  }
  0x12   :  { %24479 = vmatprep.subr.bf16.mxu1 %v29566_v0  ;;  %v28133_v60 = vld [vmem:[%s37137_s0 + $0xe0] sm:$0xff]   ;;  %v28130_v1 = vld [vmem:[%s37138_s9 + $0x58] sm:$0xff]   ;;  %v28137_v13 = vld [vmem:[%s37138_s9 + $0x70] sm:$0xff]  }
  0x13   :  { %24614 = vmatpush3.bf16.msra.mxu0 %v28121_v25  ;;  %v28141_v25 = vld [vmem:[%s37138_s9 + $0x80] sm:$0xff]  }
  0x14   :  { %24615 = vmatprep.subr.bf16.mxu0 %v29566_v0 }
  0x15   :  { %24480 = vmatpush3.bf16.msra.mxu1 %v28114_v16  ;;  %v28138_v16 = vld [vmem:[%s37138_s9 + $0x240] sm:$0xff]  }
  0x16   :  { %24360 = vmatmul.mubr.msk.bf16.gmra.mrb[4].mxu0 %vm279_vm1, %v28087_v5  ;;  %24481 = vmatprep.subr.bf16.mxu1 %v29566_v0 }
  0x17   :  { %24363 = vmatprep.mubr.msk.bf16.mxu0 %vm29567_vm0, %v29566_v0  ;;  %24616 = vmatpush3.bf16.msra.mxu0 %v28124_v26 }
  0x18   :  { %24617 = vmatprep.subr.bf16.mxu0 %v29566_v0 }
  0x19   :  { %24482 = vmatpush3.bf16.msra.mxu1 %v28116_v18  ;;  %v28139_v18 = vld [vmem:[%s37138_s9 + $0x78] sm:$0xff]  }
  0x1a   :  { %24483 = vmatprep.subr.bf16.mxu1 %v29566_v0 }
  0x1b   :  { %24618 = vmatpush3.bf16.msra.mxu0 %v28126_v28  ;;  %v28143_v28 = vld [vmem:[%s37138_s9 + $0x88] sm:$0xff]  }
  0x1c   :  { %24619 = vmatprep.subr.bf16.mxu0 %v29566_v0 }
  0x1d   :  { %24484 = vmatpush3.bf16.msra.mxu1 %v28117_v19 }
  0x1e   :  { %24364 = vmatmul.mubr.msk.bf16.gmra.mrb[8].mxu0 %vm279_vm1, %v28088_v6  ;;  %24485 = vmatprep.subr.bf16.mxu1 %v29566_v0  ;;  %v28132_v6 = vld [vmem:[%s37138_s9 + $0x60] sm:$0xff]  }
  0x1f   :  { %24367 = vmatprep.mubr.msk.bf16.mxu0 %vm29567_vm0, %v29566_v0  ;;  %24620 = vmatpush3.bf16.msra.mxu0 %v28129_v29 }
  0x20   :  { %24621 = vmatprep.subr.bf16.mxu0 %v29566_v0 }
  0x21   :  { %24486 = vmatpush3.bf16.msra.mxu1 %v28120_v24 }
  0x22   :  { %24491 = vmatprep.subr.bf16.mxu1 %v29566_v0 }
  0x23   :  { %24622 = vmatpush3.bf16.msra.mxu0 %v28131_v31  ;;  %v28144_v31 = vld [vmem:[%s37138_s9 + $0x258] sm:$0xff]  }
  0x24   :  { %24623 = vmatprep.subr.bf16.mxu0 %v29566_v0 }
  0x26   :  { %24368 = vmatmul.mubr.msk.bf16.gmra.mrb[12].mxu0 %vm279_vm1, %v28089_v7 }
  0x27   :  { %24371 = vmatprep.mubr.msk.bf16.mxu0 %vm29567_vm0, %v29566_v0  ;;  %24624 = vmatpush3.bf16.msra.mxu0 %v28134_v33 }
  0x28   :  { %24625 = vmatprep.subr.bf16.mxu0 %v29566_v0 }
  0x2b   :  { %24626 = vmatpush3.bf16.msra.mxu0 %v28136_v34  ;;  %v28145_v34 = vld [vmem:[%s37138_s9 + $0x90] sm:$0xff]  }
  0x2c   :  { %24651 = vmatprep.subr.bf16.mxu0 %v29566_v0 }
  0x2e   :  { %24372 = vmatmul.mubr.msk.bf16.gmra.mrb[16].mxu0 %vm279_vm1, %v28090_v8  ;;  %v28135_v8 = vld [vmem:[%s37138_s9 + $0x68] sm:$0xff]  }
  0x2f   :  { %24375 = vmatprep.mubr.msk.bf16.mxu0 %vm29567_vm0, %v29566_v0 }
  0x36   :  { %24376 = vmatmul.mubr.msk.bf16.gmra.mrb[20].mxu0 %vm279_vm1, %v28091_v9 }
  0x37   :  { %24379 = vmatprep.mubr.msk.bf16.mxu0 %vm29567_vm0, %v29566_v0 }
  0x3e   :  { %24380 = vmatmul.mubr.msk.bf16.gmra.mrb[24].mxu0 %vm279_vm1, %v28092_v11 }
  0x3f   :  { %24383 = vmatprep.mubr.msk.bf16.mxu0 %vm29567_vm0, %v29566_v0 }
  0x46   :  { %24384 = vmatmul.mubr.msk.bf16.gmra.mrb[28].mxu0 %vm279_vm1, %v28093_v14 }
  0x47   :  { %24387 = vmatprep.mubr.msk.bf16.mxu0 %vm29567_vm0, %v29566_v0 }
  0x4e   :  { %24388 = vmatmul.mubr.msk.bf16.gmra.mrb[32].mxu0 %vm279_vm1, %v28094_v17 }
  0x4f   :  { %24391 = vmatprep.mubr.msk.bf16.mxu0 %vm29567_vm0, %v29566_v0 }
  0x56   :  { %24392 = vmatmul.mubr.msk.bf16.gmra.mrb[36].mxu0 %vm279_vm1, %v28095_v20 }
  0x57   :  { %24395 = vmatprep.mubr.msk.bf16.mxu0 %vm29567_vm0, %v29566_v0 }
  0x5e   :  { %24396 = vmatmul.mubr.msk.bf16.gmra.mrb[40].mxu0 %vm279_vm1, %v28096_v21 }
  0x5f   :  { %24399 = vmatprep.mubr.msk.bf16.mxu0 %vm29567_vm0, %v29566_v0 }
  0x66   :  { %24400 = vmatmul.mubr.msk.bf16.gmra.mrb[44].mxu0 %vm279_vm1, %v28097_v22  ;;  %v28140_v22 = vld [vmem:[%s37138_s9 + $0x248] sm:$0xff]  }
  0x67   :  { %24403 = vmatprep.mubr.msk.bf16.mxu0 %vm29567_vm0, %v29566_v0 }
  0x6e   :  { %24404 = vmatmul.mubr.msk.bf16.gmra.mrb[48].mxu0 %vm279_vm1, %v28098_v27  ;;  %v28142_v27 = vld [vmem:[%s37138_s9 + $0x250] sm:$0xff]  }
  0x6f   :  { %24407 = vmatprep.mubr.msk.bf16.mxu0 %vm29567_vm0, %v29566_v0 }
  0x76   :  { %24408 = vmatmul.mubr.msk.bf16.gmra.mrb[52].mxu0 %vm279_vm1, %v28099_v30 }
  0x77   :  { %24411 = vmatprep.mubr.msk.bf16.mxu0 %vm29567_vm0, %v29566_v0 }
  0x7e   :  { %24412 = vmatmul.mubr.msk.bf16.gmra.mrb[56].mxu0 %vm279_vm1, %v28100_v32 }
  0x7f   :  { %24415 = vmatprep.mubr.msk.bf16.mxu0 %vm29567_vm0, %v29566_v0 }
  0x86   :  { %24416 = vmatmul.mubr.msk.bf16.gmra.mrb[60].mxu0 %vm279_vm1, %v28101_v35  ;;  %v28146_v35 = vld [vmem:[%s37138_s9 + $0x260] sm:$0xff]  }
  0x87   :  { %24419 = vmatprep.mubr.msk.bf16.mxu0 %vm29567_vm0, %v29566_v0 }
  0x8e   :  { %24420 = vmatmul.mubr.msk.bf16.gmra.mrb[64].mxu0 %vm279_vm1, %v28102_v36  ;;  %v28147_v36 = vld [vmem:[%s37138_s9 + $0x98] sm:$0xff]  }
  0x8f   :  { %24423 = vmatprep.mubr.msk.bf16.mxu0 %vm29567_vm0, %v29566_v0 }
  0x96   :  { %24424 = vmatmul.mubr.msk.bf16.gmra.mrb[68].mxu0 %vm279_vm1, %v28103_v37 }
  0x97   :  { %24427 = vmatprep.mubr.msk.bf16.mxu0 %vm29567_vm0, %v29566_v0 }
  0x9e   :  { %24428 = vmatmul.mubr.msk.bf16.gmra.mrb[72].mxu0 %vm279_vm1, %v28104_v38 }
  0x9f   :  { %24431 = vmatprep.mubr.msk.bf16.mxu0 %vm29567_vm0, %v29566_v0 }
  0xa6   :  { %24432 = vmatmul.mubr.msk.bf16.gmra.mrb[76].mxu0 %vm279_vm1, %v28105_v39  ;;  %v28148_v39 = vld [vmem:[%s37138_s9 + $0x268] sm:$0xff]  }
  0xa7   :  { %24435 = vmatprep.mubr.msk.bf16.mxu0 %vm29567_vm0, %v29566_v0 }
  0xae   :  { %24436 = vmatmul.mubr.msk.bf16.gmra.mrb[80].mxu0 %vm279_vm1, %v28106_v40 }
  0xaf   :  { %24439 = vmatprep.mubr.msk.bf16.mxu0 %vm29567_vm0, %v29566_v0 }
  0xb6   :  { %24440 = vmatmul.mubr.msk.bf16.gmra.mrb[84].mxu0 %vm279_vm1, %v28107_v41 }
  0xb7   :  { %24443 = vmatprep.mubr.msk.bf16.mxu0 %vm29567_vm0, %v29566_v0 }
  0xbe   :  { %24444 = vmatmul.mubr.msk.bf16.gmra.mrb[88].mxu0 %vm279_vm1, %v28109_v42  ;;  %v28149_v42 = vld [vmem:[%s37138_s9 + $0xa0] sm:$0xff]  }
  0xbf   :  { %24447 = vmatprep.mubr.msk.bf16.mxu0 %vm29567_vm0, %v29566_v0 }
  0xc6   :  { %24448 = vmatmul.mubr.msk.bf16.gmra.mrb[92].mxu0 %vm279_vm1, %v28112_v43 }
  0xc7   :  { %24451 = vmatprep.mubr.msk.bf16.mxu0 %vm29567_vm0, %v29566_v0 }
  0xce   :  { %24452 = vmatmul.mubr.msk.bf16.gmra.mrb[96].mxu0 %vm279_vm1, %v28115_v44  ;;  %v28150_v44 = vld [vmem:[%s37138_s9 + $0x270] sm:$0xff]  }
  0xcf   :  { %24455 = vmatprep.mubr.msk.bf16.mxu0 %vm29567_vm0, %v29566_v0 }
  0xd6   :  { %24456 = vmatmul.mubr.msk.bf16.gmra.mrb[100].mxu0 %vm279_vm1, %v28118_v45  ;;  %v28151_v45 = vld [vmem:[%s37138_s9 + $0xa8] sm:$0xff]  }
  0xd7   :  { %24459 = vmatprep.mubr.msk.bf16.mxu0 %vm29567_vm0, %v29566_v0 }
  0xde   :  { %24460 = vmatmul.mubr.msk.bf16.gmra.mrb[104].mxu0 %vm279_vm1, %v28123_v46 }
  0xdf   :  { %24463 = vmatprep.mubr.msk.bf16.mxu0 %vm29567_vm0, %v29566_v0 }
  0xe1   :  { %v401_v48 = vpop.f32.mrb[0].mxu0 }
  0xe2   :  { %v402_v49 = vadd.f32 %v29883_v47, %v401_v48  ;;  %v24357_v50 = vpop.f32.mrb[1].mxu0 }
  0xe3   :  { %v404_v52 = vpop.f32.mrb[2].mxu0 }
  0xe4   :  { %v632_v53 = vmax.f32 %v402_v49, 0.0  ;;  %v24358_v54 = vpop.f32.mrb[3].mxu0  ;;  %v405_v14 = vadd.f32 %v29883_v47, %v404_v52 }
  0xe5   :  { %v28153_v54 = vld [vmem:[%s37138_s9 + $0xb0] sm:$0xff]  }
  0xe6   :  { %v22541_v56 = vpack.c.bf16 %v632_v53, %v632_v53  ;;  %24464 = vmatmul.mubr.msk.bf16.gmra.mrb[108].mxu0 %vm279_vm1, %v28128_v51  ;;  %v633_v20 = vmax.f32 %v405_v14, 0.0  ;;  %v28152_v51 = vld [vmem:[%s37138_s9 + $0x278] sm:$0xff]   ;;  %v28165_v14 = vld [vmem:[%s37138_s9 + $0xe0] sm:$0xff]  }
  0xe7   :  { %24467 = vmatprep.mubr.msk.bf16.mxu0 %vm29567_vm0, %v29566_v0 }
  0xe8   :  { %24488 = vmatmul.mubr.bf16.vlgmr.msra.gmra.mrb[0].mxu1 %v22541_v56  ;;  %v22542_v26 = vpack.c.bf16 %v633_v20, %v633_v20 }
  0xe9   :  { %24492 = vmatpush3.bf16.msra.mxu1 %v28122_v55  ;;  %v29900_v58 = vpop.f32.mrb[4].mxu0  ;;  %24507 = vmatprep.mubr.msk.bf16.mxu1 %vm29567_vm0, %v29566_v0 }
  0xea   :  { %24493 = vmatprep.subr.bf16.mxu1 %v29566_v0  ;;  %v24361_v59 = vpop.f32.mrb[5].mxu0  ;;  %v410_v50 = vadd.f32 %v29883_v47, %v29900_v58  ;;  %v28155_v58 = vld [vmem:[%s37138_s9 + $0xb8] sm:$0xff]  }
  0xeb   :  { %v29908_v61 = vpop.f32.mrb[6].mxu0 }
  0xec   :  { %v24362_v62 = vpop.f32.mrb[7].mxu0  ;;  %v634_v56 = vmax.f32 %v410_v50, 0.0 }
  0xed   :  { %24494 = vmatpush3.bf16.msra.mxu1 %v28125_v57  ;;  %v28154_v57 = vld [vmem:[%s37138_s9 + $0x2c0] sm:$0xff]   ;;  %v28156_v62 = vld [vmem:[%s37138_s9 + $0x2c8] sm:$0xff]  }
  0xee   :  { %24495 = vmatprep.subr.bf16.mxu1 %v29566_v0  ;;  %24468 = vmatmul.mubr.msk.bf16.gmra.mrb[112].mxu0 %vm279_vm1, %v28133_v60 }
  0xef   :  { %24627 = vmatprep.mubr.msk.bf16.mxu0 %vm29567_vm0, %v29566_v0 }
  0xf1   :  { %24496 = vmatpush3.bf16.msra.mxu1 %v28127_v63  ;;  %v29920_v2 = vpop.f32.mrb[8].mxu0 }
  0xf2   :  { %24497 = vmatprep.subr.bf16.mxu1 %v29566_v0  ;;  %v24365_v3 = vpop.f32.mrb[9].mxu0 }
  0xf3   :  { %v29923_v4 = vpop.f32.mrb[10].mxu0 }
  0xf4   :  { %v24366_v5 = vpop.f32.mrb[11].mxu0 }
  0xf5   :  { %24498 = vmatpush3.bf16.msra.mxu1 %v28130_v1  ;;  %v22543_v1 = vpack.c.bf16 %v634_v56, %v634_v56  ;;  %v28157_v5 = vld [vmem:[%s37138_s9 + $0xc0] sm:$0xff]  }
  0xf6   :  { %24499 = vmatprep.subr.bf16.mxu1 %v29566_v0 }
  0xf9   :  { %24500 = vmatpush3.bf16.msra.mxu1 %v28132_v6  ;;  %v29929_v7 = vpop.f32.mrb[12].mxu0  ;;  %v28158_v6 = vld [vmem:[%s37138_s9 + $0x2d0] sm:$0xff]  }
  0xfa   :  { %v24369_v9 = vpop.f32.mrb[13].mxu0  ;;  %24501 = vmatprep.subr.bf16.mxu1 %v29566_v0 }
  0xfb   :  { %v428_v10 = vpop.f32.mrb[14].mxu0  ;;  %v28160_v9 = vld [vmem:[%s37138_s9 + $0x2d8] sm:$0xff]  }
  0xfc   :  { %v429_v11 = vadd.f32 %v29883_v47, %v428_v10  ;;  %v24370_v12 = vpop.f32.mrb[15].mxu0  ;;  %v28161_v10 = vld [vmem:[%s37138_s9 + $0xd0] sm:$0xff]  }
  0xfd   :  { %24502 = vmatpush3.bf16.msra.mxu1 %v28135_v8  ;;  %v28159_v8 = vld [vmem:[%s37138_s9 + $0xc8] sm:$0xff]   ;;  %v28163_v12 = vld [vmem:[%s37138_s9 + $0xd8] sm:$0xff]  }
  0xfe   :  { %v639_v15 = vmax.f32 %v429_v11, 0.0  ;;  %24503 = vmatprep.subr.bf16.mxu1 %v29566_v0  ;;  %v28162_v11 = vld [vmem:[%s37138_s9 + $0x2e0] sm:$0xff]  }
 0x100   :  { %v22548_v17 = vpack.c.bf16 %v639_v15, %v639_v15 }
 0x101   :  { %24504 = vmatpush3.bf16.msra.mxu1 %v28137_v13  ;;  %v29947_v19 = vpop.f32.mrb[16].mxu0  ;;  %v28164_v13 = vld [vmem:[%s37138_s9 + $0x2e8] sm:$0xff]  }
 0x102   :  { %24628 = vmatmul.mubr.bf16.vlgmr.msra.gmra.mrb[116].mxu0 %v22548_v17  ;;  %24505 = vmatprep.subr.bf16.mxu1 %v29566_v0  ;;  %v24373_v21 = vpop.f32.mrb[17].mxu0  ;;  %v28167_v17 = vld [vmem:[%s37138_s9 + $0xe8] sm:$0xff]  }
 0x103   :  { %24652 = vmatpush3.bf16.msra.mxu0 %v28138_v16  ;;  %v436_v23 = vpop.f32.mrb[18].mxu0  ;;  %24667 = vmatprep.mubr.msk.bf16.mxu0 %vm29567_vm0, %v29566_v0  ;;  %v28166_v16 = vld [vmem:[%s37138_s9 + $0x2f0] sm:$0xff]  }
 0x104   :  { %24653 = vmatprep.subr.bf16.mxu0 %v29566_v0  ;;  %v24374_v24 = vpop.f32.mrb[19].mxu0  ;;  %v437_v43 = vadd.f32 %v29883_v47, %v436_v23 }
 0x105   :  { %24506 = vmatpush3.bf16.msra.mxu1 %v28139_v18 }
 0x106   :  { %24511 = vmatprep.subr.bf16.mxu1 %v29566_v0  ;;  %v641_v48 = vmax.f32 %v437_v43, 0.0  ;;  %v28181_v43 = vld [vmem:[%s37138_s9 + $0x120] sm:$0xff]  }
 0x107   :  { %24654 = vmatpush3.bf16.msra.mxu0 %v28140_v22  ;;  %v28168_v22 = vld [vmem:[%s37138_s9 + $0x2f8] sm:$0xff]  }
 0x108   :  { %24508 = vmatmul.mubr.bf16.vlgmr.msra.gmra.mrb[4].mxu1 %v22542_v26  ;;  %24655 = vmatprep.subr.bf16.mxu0 %v29566_v0  ;;  %v22550_v55 = vpack.c.bf16 %v641_v48, %v641_v48  ;;  %v28169_v26 = vld [vmem:[%s37138_s9 + $0xf0] sm:$0xff]   ;;  %v28183_v48 = vld [vmem:[%s37138_s9 + $0x128] sm:$0xff]  }
 0x109   :  { %24512 = vmatpush3.bf16.msra.mxu1 %v28141_v25  ;;  %24527 = vmatprep.mubr.msk.bf16.mxu1 %vm29567_vm0, %v29566_v0  ;;  %v29969_v29 = vpop.f32.mrb[20].mxu0  ;;  %v413_v25 = vadd.f32 %v29883_v47, %v29908_v61  ;;  %v28171_v61 = vld [vmem:[%s37138_s9 + $0xf8] sm:$0xff]  }
 0x10a   :  { %24513 = vmatprep.subr.bf16.mxu1 %v29566_v0  ;;  %v24377_v30 = vpop.f32.mrb[21].mxu0 }
 0x10b   :  { %24656 = vmatpush3.bf16.msra.mxu0 %v28142_v27  ;;  %v29975_v32 = vpop.f32.mrb[22].mxu0  ;;  %v635_v30 = vmax.f32 %v413_v25, 0.0  ;;  %v28201_v25 = vld [vmem:[%s37138_s9 + $0x170] sm:$0xff]  }
 0x10c   :  { %24657 = vmatprep.subr.bf16.mxu0 %v29566_v0  ;;  %v24378_v33 = vpop.f32.mrb[23].mxu0  ;;  %v445_v15 = vadd.f32 %v29883_v47, %v29975_v32  ;;  %v28173_v32 = vld [vmem:[%s37138_s9 + $0x100] sm:$0xff]  }
 0x10d   :  { %24514 = vmatpush3.bf16.msra.mxu1 %v28143_v28  ;;  %v28170_v28 = vld [vmem:[%s37138_s9 + $0x340] sm:$0xff]   ;;  %v22544_v33 = vpack.c.bf16 %v635_v30, %v635_v30 }
 0x10e   :  { %24515 = vmatprep.subr.bf16.mxu1 %v29566_v0  ;;  %v643_v20 = vmax.f32 %v445_v15, 0.0  ;;  %v28198_v15 = vld [vmem:[%s37138_s9 + $0x3f0] sm:$0xff]  }
 0x10f   :  { %24658 = vmatpush3.bf16.msra.mxu0 %v28144_v31  ;;  %v28172_v31 = vld [vmem:[%s37138_s9 + $0x348] sm:$0xff]  }
 0x110   :  { %24659 = vmatprep.subr.bf16.mxu0 %v29566_v0  ;;  %v22552_v27 = vpack.c.bf16 %v643_v20, %v643_v20 }
 0x111   :  { %24516 = vmatpush3.bf16.msra.mxu1 %v28145_v34  ;;  %v29989_v37 = vpop.f32.mrb[24].mxu0  ;;  %v28174_v34 = vld [vmem:[%s37138_s9 + $0x350] sm:$0xff]  }
 0x112   :  { %24517 = vmatprep.subr.bf16.mxu1 %v29566_v0  ;;  %v24381_v38 = vpop.f32.mrb[25].mxu0 }
 0x113   :  { %24660 = vmatpush3.bf16.msra.mxu0 %v28146_v35  ;;  %v29995_v40 = vpop.f32.mrb[26].mxu0  ;;  %v28175_v35 = vld [vmem:[%s37138_s9 + $0x108] sm:$0xff]   ;;  %v28177_v38 = vld [vmem:[%s37138_s9 + $0x110] sm:$0xff]  }
 0x114   :  { %24661 = vmatprep.subr.bf16.mxu0 %v29566_v0  ;;  %v24382_v41 = vpop.f32.mrb[27].mxu0 }
 0x115   :  { %24518 = vmatpush3.bf16.msra.mxu1 %v28147_v36  ;;  %v28176_v36 = vld [vmem:[%s37138_s9 + $0x358] sm:$0xff]  }
 0x116   :  { %24519 = vmatprep.subr.bf16.mxu1 %v29566_v0  ;;  %v28179_v41 = vld [vmem:[%s37138_s9 + $0x118] sm:$0xff]  }
 0x117   :  { %24662 = vmatpush3.bf16.msra.mxu0 %v28148_v39  ;;  %v28178_v39 = vld [vmem:[%s37138_s9 + $0x360] sm:$0xff]  }
 0x118   :  { %24663 = vmatprep.subr.bf16.mxu0 %v29566_v0 }
 0x119   :  { %24520 = vmatpush3.bf16.msra.mxu1 %v28149_v42  ;;  %v30010_v46 = vpop.f32.mrb[28].mxu0  ;;  %v28180_v42 = vld [vmem:[%s37138_s9 + $0x368] sm:$0xff]  }
 0x11a   :  { %24521 = vmatprep.subr.bf16.mxu1 %v29566_v0  ;;  %v24385_v49 = vpop.f32.mrb[29].mxu0 }
 0x11b   :  { %24664 = vmatpush3.bf16.msra.mxu0 %v28150_v44  ;;  %v30018_v52 = vpop.f32.mrb[30].mxu0  ;;  %v453_v44 = vadd.f32 %v29883_v47, %v29995_v40  ;;  %v30172_v47 = vld [vmem:[%s37139_s4] ss:$0 sm:$0xff] }
 0x11c   :  { %24665 = vmatprep.subr.bf16.mxu0 %v29566_v0  ;;  %v24386_v53 = vpop.f32.mrb[31].mxu0  ;;  %v418_v40 = vadd.f32 %v30172_v47, %v29920_v2  ;;  %v28186_v2 = vld [vmem:[%s37138_s9 + $0x3c0] sm:$0xff]  }
 0x11d   :  { %24522 = vmatpush3.bf16.msra.mxu1 %v28151_v45  ;;  %v28182_v45 = vld [vmem:[%s37138_s9 + $0x370] sm:$0xff]   ;;  %v645_v50 = vmax.f32 %v453_v44, 0.0  ;;  %v28184_v53 = vld [vmem:[%s37138_s9 + $0x378] sm:$0xff]  }
 0x11e   :  { %24523 = vmatprep.subr.bf16.mxu1 %v29566_v0  ;;  %v28214_v44 = vld [vmem:[%s37138_s9 + $0x470] sm:$0xff]  }
 0x11f   :  { %24666 = vmatpush3.bf16.msra.mxu0 %v28152_v51 }
 0x120   :  { %24691 = vmatprep.subr.bf16.mxu0 %v29566_v0 }
 0x121   :  { %24524 = vmatpush3.bf16.msra.mxu1 %v28153_v54  ;;  %v30032_v59 = vpop.f32.mrb[32].mxu0 }
 0x122   :  { %24668 = vmatmul.mubr.bf16.vlgmr.msra.gmra.mrb[120].mxu0 %v22550_v55  ;;  %24525 = vmatprep.subr.bf16.mxu1 %v29566_v0  ;;  %v24389_v60 = vpop.f32.mrb[33].mxu0  ;;  %v28185_v55 = vld [vmem:[%s37138_s9 + $0x130] sm:$0xff]  }
 0x123   :  { %24692 = vmatpush3.bf16.msra.mxu0 %v28154_v57  ;;  %24707 = vmatprep.mubr.msk.bf16.mxu0 %vm29567_vm0, %v29566_v0  ;;  %v30040_v63 = vpop.f32.mrb[34].mxu0  ;;  %v22554_v57 = vpack.c.bf16 %v645_v50, %v645_v50  ;;  %v28187_v60 = vld [vmem:[%s37138_s9 + $0x138] sm:$0xff]  }
 0x124   :  { %24693 = vmatprep.subr.bf16.mxu0 %v29566_v0  ;;  %v24390_v3 = vpop.f32.mrb[35].mxu0 }
 0x125   :  { %24526 = vmatpush3.bf16.msra.mxu1 %v28155_v58  ;;  %v636_v58 = vmax.f32 %v418_v40, 0.0  ;;  %v28189_v3 = vld [vmem:[%s37138_s9 + $0x140] sm:$0xff]   ;;  %v28216_v40 = vld [vmem:[%s37138_s9 + $0x478] sm:$0xff]  }
 0x126   :  { %24531 = vmatprep.subr.bf16.mxu1 %v29566_v0 }
 0x127   :  { %24694 = vmatpush3.bf16.msra.mxu0 %v28156_v62  ;;  %v28188_v62 = vld [vmem:[%s37138_s9 + $0x3c8] sm:$0xff]  }
 0x128   :  { %24528 = vmatmul.mubr.bf16.vlgmr.msra.gmra.mrb[8].mxu1 %v22543_v1  ;;  %24695 = vmatprep.subr.bf16.mxu0 %v29566_v0  ;;  %v22545_v1 = vpack.c.bf16 %v636_v58, %v636_v58 }
 0x129   :  { %24532 = vmatpush3.bf16.msra.mxu1 %v28157_v5  ;;  %24547 = vmatprep.mubr.msk.bf16.mxu1 %vm29567_vm0, %v29566_v0  ;;  %v30090_v18 = vpop.f32.mrb[36].mxu0  ;;  %v28190_v5 = vld [vmem:[%s37138_s9 + $0x3d0] sm:$0xff]  }
 0x12a   :  { %24533 = vmatprep.subr.bf16.mxu1 %v29566_v0  ;;  %v24393_v21 = vpop.f32.mrb[37].mxu0 }
 0x12b   :  { %24696 = vmatpush3.bf16.msra.mxu0 %v28158_v6  ;;  %v30096_v23 = vpop.f32.mrb[38].mxu0  ;;  %v28191_v6 = vld [vmem:[%s37138_s9 + $0x148] sm:$0xff]  }
 0x12c   :  { %24697 = vmatprep.subr.bf16.mxu0 %v29566_v0  ;;  %v24394_v24 = vpop.f32.mrb[39].mxu0 }
 0x12d   :  { %24534 = vmatpush3.bf16.msra.mxu1 %v28159_v8  ;;  %v28192_v8 = vld [vmem:[%s37138_s9 + $0x3d8] sm:$0xff]   ;;  %v421_v24 = vadd.f32 %v30172_v47, %v29923_v4 }
 0x12e   :  { %24535 = vmatprep.subr.bf16.mxu1 %v29566_v0  ;;  %v28203_v4 = vld [vmem:[%s37138_s9 + $0x178] sm:$0xff]  }
 0x12f   :  { %24698 = vmatpush3.bf16.msra.mxu0 %v28160_v9  ;;  %v28193_v9 = vld [vmem:[%s37138_s9 + $0x150] sm:$0xff]   ;;  %v637_v30 = vmax.f32 %v421_v24, 0.0 }
 0x130   :  { %24699 = vmatprep.subr.bf16.mxu0 %v29566_v0 }
 0x131   :  { %24536 = vmatpush3.bf16.msra.mxu1 %v28161_v10  ;;  %v30166_v49 = vpop.f32.mrb[40].mxu0  ;;  %v28194_v10 = vld [vmem:[%s37138_s9 + $0x3e0] sm:$0xff]  }
 0x132   :  { %24537 = vmatprep.subr.bf16.mxu1 %v29566_v0  ;;  %v24397_v51 = vpop.f32.mrb[41].mxu0 }
 0x133   :  { %24700 = vmatpush3.bf16.msra.mxu0 %v28162_v11  ;;  %v30180_v54 = vpop.f32.mrb[42].mxu0  ;;  %v28195_v11 = vld [vmem:[%s37138_s9 + $0x158] sm:$0xff]  }
 0x134   :  { %24701 = vmatprep.subr.bf16.mxu0 %v29566_v0  ;;  %v24398_v56 = vpop.f32.mrb[43].mxu0 }
 0x135   :  { %24538 = vmatpush3.bf16.msra.mxu1 %v28163_v12  ;;  %v28196_v12 = vld [vmem:[%s37138_s9 + $0x3e8] sm:$0xff]  }
 0x136   :  { %24539 = vmatprep.subr.bf16.mxu1 %v29566_v0 }
 0x137   :  { %24702 = vmatpush3.bf16.msra.mxu0 %v28164_v13  ;;  %v28197_v13 = vld [vmem:[%s37138_s9 + $0x160] sm:$0xff]  }
 0x138   :  { %24703 = vmatprep.subr.bf16.mxu0 %v29566_v0 }
 0x139   :  { %24540 = vmatpush3.bf16.msra.mxu1 %v28165_v14  ;;  %v461_v14 = vadd.f32 %v30172_v47, %v30018_v52  ;;  %v28200_v52 = vld [vmem:[%s37138_s9 + $0x3f8] sm:$0xff]  }
 0x13a   :  { %24541 = vmatprep.subr.bf16.mxu1 %v29566_v0 }
 0x13b   :  { %24704 = vmatpush3.bf16.msra.mxu0 %v28166_v16  ;;  %v28199_v16 = vld [vmem:[%s37138_s9 + $0x168] sm:$0xff]   ;;  %v647_v20 = vmax.f32 %v461_v14, 0.0  ;;  %v28230_v14 = vld [vmem:[%s37138_s9 + $0x4f0] sm:$0xff]  }
 0x13c   :  { %24705 = vmatprep.subr.bf16.mxu0 %v29566_v0 }
 0x13d   :  { %24542 = vmatpush3.bf16.msra.mxu1 %v28167_v17  ;;  %v30247_v17 = vpop.f32.mrb[44].mxu0 }
 0x13e   :  { %24543 = vmatprep.subr.bf16.mxu1 %v29566_v0  ;;  %v24401_v21 = vpop.f32.mrb[45].mxu0 }
 0x13f   :  { %24706 = vmatpush3.bf16.msra.mxu0 %v28168_v22  ;;  %v30254_v22 = vpop.f32.mrb[46].mxu0 }
 0x140   :  { %24731 = vmatprep.subr.bf16.mxu0 %v29566_v0 }
 0x141   :  { %24544 = vmatpush3.bf16.msra.mxu1 %v28169_v26  ;;  %v24402_v26 = vpop.f32.mrb[47].mxu0 }
 0x142   :  { %24708 = vmatmul.mubr.bf16.vlgmr.msra.gmra.mrb[124].mxu0 %v22552_v27  ;;  %24545 = vmatprep.subr.bf16.mxu1 %v29566_v0  ;;  %v22556_v27 = vpack.c.bf16 %v647_v20, %v647_v20  ;;  %v28231_v20 = vld [vmem:[%s37138_s9 + $0x228] sm:$0xff]   ;;  %v434_v26 = vadd.f32 %v30172_v47, %v29947_v19  ;;  %v28234_v19 = vld [vmem:[%s37138_s9 + $0x540] sm:$0xff]  }
 0x143   :  { %24732 = vmatpush3.bf16.msra.mxu0 %v28170_v28  ;;  %24747 = vmatprep.mubr.msk.bf16.mxu0 %vm29567_vm0, %v29566_v0  ;;  %v28202_v28 = vld [vmem:[%s37138_s9 + $0x440] sm:$0xff]  }
 0x144   :  { %24733 = vmatprep.subr.bf16.mxu0 %v29566_v0 }
 0x145   :  { %24546 = vmatpush3.bf16.msra.mxu1 %v28171_v61  ;;  %v28204_v61 = vld [vmem:[%s37138_s9 + $0x448] sm:$0xff]  }
 0x146   :  { %24551 = vmatprep.subr.bf16.mxu1 %v29566_v0 }
 0x147   :  { %24734 = vmatpush3.bf16.msra.mxu0 %v28172_v31  ;;  %v28205_v31 = vld [vmem:[%s37138_s9 + $0x180] sm:$0xff]  }
 0x148   :  { %24548 = vmatmul.mubr.bf16.vlgmr.msra.gmra.mrb[12].mxu1 %v22544_v33  ;;  %24735 = vmatprep.subr.bf16.mxu0 %v29566_v0  ;;  %v28206_v33 = vld [vmem:[%s37138_s9 + $0x450] sm:$0xff]  }
 0x149   :  { %24552 = vmatpush3.bf16.msra.mxu1 %v28173_v32  ;;  %24567 = vmatprep.mubr.msk.bf16.mxu1 %vm29567_vm0, %v29566_v0  ;;  %v22546_v32 = vpack.c.bf16 %v637_v30, %v637_v30  ;;  %v28233_v30 = vld [vmem:[%s37138_s9 + $0x230] sm:$0xff]  }
 0x14a   :  { %24553 = vmatprep.subr.bf16.mxu1 %v29566_v0 }
 0x14b   :  { %24736 = vmatpush3.bf16.msra.mxu0 %v28174_v34  ;;  %v28207_v34 = vld [vmem:[%s37138_s9 + $0x188] sm:$0xff]  }
 0x14c   :  { %24737 = vmatprep.subr.bf16.mxu0 %v29566_v0 }
 0x14d   :  { %24554 = vmatpush3.bf16.msra.mxu1 %v28175_v35  ;;  %v28208_v35 = vld [vmem:[%s37138_s9 + $0x458] sm:$0xff]  }
 0x14e   :  { %24555 = vmatprep.subr.bf16.mxu1 %v29566_v0 }
 0x14f   :  { %24738 = vmatpush3.bf16.msra.mxu0 %v28176_v36  ;;  %v28209_v36 = vld [vmem:[%s37138_s9 + $0x190] sm:$0xff]  }
 0x150   :  { %24739 = vmatprep.subr.bf16.mxu0 %v29566_v0 }
 0x151   :  { %24556 = vmatpush3.bf16.msra.mxu1 %v28177_v38  ;;  %v28210_v38 = vld [vmem:[%s37138_s9 + $0x460] sm:$0xff]  }
 0x152   :  { %24557 = vmatprep.subr.bf16.mxu1 %v29566_v0 }
 0x153   :  { %24740 = vmatpush3.bf16.msra.mxu0 %v28178_v39  ;;  %v28211_v39 = vld [vmem:[%s37138_s9 + $0x198] sm:$0xff]  }
 0x154   :  { %24741 = vmatprep.subr.bf16.mxu0 %v29566_v0 }
 0x155   :  { %24558 = vmatpush3.bf16.msra.mxu1 %v28179_v41  ;;  %v28212_v41 = vld [vmem:[%s37138_s9 + $0x468] sm:$0xff]  }
 0x156   :  { %24559 = vmatprep.subr.bf16.mxu1 %v29566_v0 }
 0x157   :  { %24742 = vmatpush3.bf16.msra.mxu0 %v28180_v42  ;;  %v28213_v42 = vld [vmem:[%s37138_s9 + $0x1a0] sm:$0xff]  }
 0x158   :  { %24743 = vmatprep.subr.bf16.mxu0 %v29566_v0 }
 0x159   :  { %24560 = vmatpush3.bf16.msra.mxu1 %v28181_v43  ;;  %v469_v43 = vadd.f32 %v30172_v47, %v30040_v63  ;;  %v426_v63 = vadd.f32 %v30172_v47, %v29929_v7  ;;  %v28218_v7 = vld [vmem:[%s37138_s9 + $0x4c0] sm:$0xff]  }
 0x15a   :  { %24561 = vmatprep.subr.bf16.mxu1 %v29566_v0 }
 0x15b   :  { %24744 = vmatpush3.bf16.msra.mxu0 %v28182_v45  ;;  %v28215_v45 = vld [vmem:[%s37138_s9 + $0x1a8] sm:$0xff]   ;;  %v649_v50 = vmax.f32 %v469_v43, 0.0  ;;  %v638_v58 = vmax.f32 %v426_v63, 0.0  ;;  %v28238_v63 = vld [vmem:[%s37138_s9 + $0x550] sm:$0xff]  }
 0x15c   :  { %24745 = vmatprep.subr.bf16.mxu0 %v29566_v0 }
 0x15d   :  { %24562 = vmatpush3.bf16.msra.mxu1 %v28183_v48  ;;  %v30323_v48 = vpop.f32.mrb[48].mxu0 }
 0x15e   :  { %24563 = vmatprep.subr.bf16.mxu1 %v29566_v0  ;;  %v24405_v51 = vpop.f32.mrb[49].mxu0 }
 0x15f   :  { %24746 = vmatpush3.bf16.msra.mxu0 %v28184_v53  ;;  %v30332_v53 = vpop.f32.mrb[50].mxu0 }
 0x160   :  { %24771 = vmatprep.subr.bf16.mxu0 %v29566_v0  ;;  %v24406_v56 = vpop.f32.mrb[51].mxu0 }
 0x161   :  { %24564 = vmatpush3.bf16.msra.mxu1 %v28185_v55  ;;  %v28217_v55 = vld [vmem:[%s37138_s9 + $0x1b0] sm:$0xff]   ;;  %v28239_v56 = vld [vmem:[%s37138_s9 + $0x288] sm:$0xff]  }
 0x162   :  { %24748 = vmatmul.mubr.bf16.vlgmr.msra.gmra.mrb[128].mxu0 %v22554_v57  ;;  %24565 = vmatprep.subr.bf16.mxu1 %v29566_v0  ;;  %v22558_v57 = vpack.c.bf16 %v649_v50, %v649_v50 }
 0x163   :  { %24772 = vmatpush3.bf16.msra.mxu0 %v28186_v2  ;;  %24787 = vmatprep.mubr.msk.bf16.mxu0 %vm29567_vm0, %v29566_v0  ;;  %v28219_v2 = vld [vmem:[%s37138_s9 + $0x1b8] sm:$0xff]  }
 0x164   :  { %24773 = vmatprep.subr.bf16.mxu0 %v29566_v0 }
 0x165   :  { %24566 = vmatpush3.bf16.msra.mxu1 %v28187_v60  ;;  %v28220_v60 = vld [vmem:[%s37138_s9 + $0x4c8] sm:$0xff]  }
 0x166   :  { %24571 = vmatprep.subr.bf16.mxu1 %v29566_v0 }
 0x167   :  { %24774 = vmatpush3.bf16.msra.mxu0 %v28188_v62  ;;  %v22547_v62 = vpack.c.bf16 %v638_v58, %v638_v58 }
 0x168   :  { %24568 = vmatmul.mubr.bf16.vlgmr.msra.gmra.mrb[16].mxu1 %v22545_v1  ;;  %24775 = vmatprep.subr.bf16.mxu0 %v29566_v0  ;;  %v28221_v1 = vld [vmem:[%s37138_s9 + $0x200] sm:$0xff]  }
 0x169   :  { %24572 = vmatpush3.bf16.msra.mxu1 %v28189_v3  ;;  %24587 = vmatprep.mubr.msk.bf16.mxu1 %vm29567_vm0, %v29566_v0  ;;  %v28222_v3 = vld [vmem:[%s37138_s9 + $0x4d0] sm:$0xff]  }
 0x16a   :  { %24573 = vmatprep.subr.bf16.mxu1 %v29566_v0 }
 0x16b   :  { %24776 = vmatpush3.bf16.msra.mxu0 %v28190_v5  ;;  %v28223_v5 = vld [vmem:[%s37138_s9 + $0x208] sm:$0xff]  }
 0x16c   :  { %24777 = vmatprep.subr.bf16.mxu0 %v29566_v0 }
 0x16d   :  { %24574 = vmatpush3.bf16.msra.mxu1 %v28191_v6  ;;  %v28224_v6 = vld [vmem:[%s37138_s9 + $0x4d8] sm:$0xff]  }
 0x16e   :  { %24575 = vmatprep.subr.bf16.mxu1 %v29566_v0 }
 0x16f   :  { %24778 = vmatpush3.bf16.msra.mxu0 %v28192_v8  ;;  %v28225_v8 = vld [vmem:[%s37138_s9 + $0x210] sm:$0xff]  }
 0x170   :  { %24779 = vmatprep.subr.bf16.mxu0 %v29566_v0 }
 0x171   :  { %24576 = vmatpush3.bf16.msra.mxu1 %v28193_v9  ;;  %v28226_v9 = vld [vmem:[%s37138_s9 + $0x4e0] sm:$0xff]  }
 0x172   :  { %24577 = vmatprep.subr.bf16.mxu1 %v29566_v0 }
 0x173   :  { %24780 = vmatpush3.bf16.msra.mxu0 %v28194_v10  ;;  %v28227_v10 = vld [vmem:[%s37138_s9 + $0x218] sm:$0xff]  }
 0x174   :  { %24781 = vmatprep.subr.bf16.mxu0 %v29566_v0 }
 0x175   :  { %24578 = vmatpush3.bf16.msra.mxu1 %v28195_v11  ;;  %v28228_v11 = vld [vmem:[%s37138_s9 + $0x4e8] sm:$0xff]  }
 0x176   :  { %24579 = vmatprep.subr.bf16.mxu1 %v29566_v0 }
 0x177   :  { %24782 = vmatpush3.bf16.msra.mxu0 %v28196_v12  ;;  %v28229_v12 = vld [vmem:[%s37138_s9 + $0x220] sm:$0xff]  }
 0x178   :  { %24783 = vmatprep.subr.bf16.mxu0 %v29566_v0 }
 0x179   :  { %24580 = vmatpush3.bf16.msra.mxu1 %v28197_v13  ;;  %v477_v13 = vadd.f32 %v30172_v47, %v30096_v23 }
 0x17a   :  { %24581 = vmatprep.subr.bf16.mxu1 %v29566_v0 }
 0x17b   :  { %24784 = vmatpush3.bf16.msra.mxu0 %v28198_v15  ;;  %v30395_v15 = vpop.f32.mrb[52].mxu0 }
 0x17c   :  { %24785 = vmatprep.subr.bf16.mxu0 %v29566_v0 }
 0x17d   :  { %24582 = vmatpush3.bf16.msra.mxu1 %v28199_v16  ;;  %v24409_v16 = vpop.f32.mrb[53].mxu0 }
 0x17e   :  { %24583 = vmatprep.subr.bf16.mxu1 %v29566_v0  ;;  %v30401_v21 = vpop.f32.mrb[54].mxu0  ;;  %v28245_v16 = vld [vmem:[%s37138_s9 + $0x2a0] sm:$0xff]  }
 0x17f   :  { %24786 = vmatpush3.bf16.msra.mxu0 %v28200_v52  ;;  %v651_v52 = vmax.f32 %v477_v13, 0.0  ;;  %v24410_v23 = vpop.f32.mrb[55].mxu0 }
 0x180   :  { %24811 = vmatprep.subr.bf16.mxu0 %v29566_v0 }
 0x181   :  { %24584 = vmatpush3.bf16.msra.mxu1 %v28201_v25  ;;  %v28232_v25 = vld [vmem:[%s37138_s9 + $0x4f8] sm:$0xff]  }
 0x182   :  { %24788 = vmatmul.mubr.bf16.vlgmr.msra.gmra.mrb[132].mxu0 %v22556_v27  ;;  %24585 = vmatprep.subr.bf16.mxu1 %v29566_v0 }
 0x183   :  { %24812 = vmatpush3.bf16.msra.mxu0 %v28202_v28  ;;  %24827 = vmatprep.mubr.msk.bf16.mxu0 %vm29567_vm0, %v29566_v0 }
 0x184   :  { %24813 = vmatprep.subr.bf16.mxu0 %v29566_v0 }
 0x185   :  { %24586 = vmatpush3.bf16.msra.mxu1 %v28203_v4  ;;  %v30415_v4 = vpop.f32.mrb[56].mxu0 }
 0x186   :  { %24591 = vmatprep.subr.bf16.mxu1 %v29566_v0 }
 0x187   :  { %24814 = vmatpush3.bf16.msra.mxu0 %v28204_v61  ;;  %v22560_v61 = vpack.c.bf16 %v651_v52, %v651_v52  ;;  %v485_v52 = vadd.f32 %v30172_v47, %v30180_v54 }
 0x188   :  { %24588 = vmatmul.mubr.bf16.vlgmr.msra.gmra.mrb[20].mxu1 %v22546_v32  ;;  %24815 = vmatprep.subr.bf16.mxu0 %v29566_v0  ;;  %v24413_v32 = vpop.f32.mrb[57].mxu0 }
 0x189   :  { %24592 = vmatpush3.bf16.msra.mxu1 %v28205_v31  ;;  %24607 = vmatprep.mubr.msk.bf16.mxu1 %vm29567_vm0, %v29566_v0  ;;  %v653_v54 = vmax.f32 %v485_v52, 0.0  ;;  %v28248_v32 = vld [vmem:[%s37138_s9 + $0x578] sm:$0xff]  }
 0x18a   :  { %24593 = vmatprep.subr.bf16.mxu1 %v29566_v0 }
 0x18b   :  { %24816 = vmatpush3.bf16.msra.mxu0 %v28206_v33  ;;  %v30421_v33 = vpop.f32.mrb[58].mxu0 }
 0x18c   :  { %24817 = vmatprep.subr.bf16.mxu0 %v29566_v0 }
 0x18d   :  { %24594 = vmatpush3.bf16.msra.mxu1 %v28207_v34  ;;  %v640_v34 = vmax.f32 %v434_v26, 0.0 }
 0x18e   :  { %24595 = vmatprep.subr.bf16.mxu1 %v29566_v0 }
 0x18f   :  { %24818 = vmatpush3.bf16.msra.mxu0 %v28208_v35  ;;  %v24414_v35 = vpop.f32.mrb[59].mxu0  ;;  %v22549_v43 = vpack.c.bf16 %v640_v34, %v640_v34  ;;  %v442_v34 = vadd.f32 %v30172_v47, %v29969_v29  ;;  %v22562_v29 = vpack.c.bf16 %v653_v54, %v653_v54  ;;  %v28256_v54 = vld [vmem:[%s37138_s9 + $0x5d8] sm:$0xff]  }
 0x190   :  { %24819 = vmatprep.subr.bf16.mxu0 %v29566_v0 }
 0x191   :  { %24596 = vmatpush3.bf16.msra.mxu1 %v28209_v36  ;;  %v28235_v36 = vld [vmem:[%s37138_s9 + $0x238] sm:$0xff]  }
 0x192   :  { %24597 = vmatprep.subr.bf16.mxu1 %v29566_v0 }
 0x193   :  { %24820 = vmatpush3.bf16.msra.mxu0 %v28210_v38  ;;  %v30427_v38 = vpop.f32.mrb[60].mxu0 }
 0x194   :  { %24821 = vmatprep.subr.bf16.mxu0 %v29566_v0 }
 0x195   :  { %24598 = vmatpush3.bf16.msra.mxu1 %v28211_v39  ;;  %v24417_v39 = vpop.f32.mrb[61].mxu0 }
 0x196   :  { %24599 = vmatprep.subr.bf16.mxu1 %v29566_v0 }
 0x197   :  { %24822 = vmatpush3.bf16.msra.mxu0 %v28212_v41  ;;  %v28236_v41 = vld [vmem:[%s37138_s9 + $0x548] sm:$0xff]  }
 0x198   :  { %24823 = vmatprep.subr.bf16.mxu0 %v29566_v0 }
 0x199   :  { %24600 = vmatpush3.bf16.msra.mxu1 %v28213_v42  ;;  %v30435_v42 = vpop.f32.mrb[62].mxu0 }
 0x19a   :  { %24601 = vmatprep.subr.bf16.mxu1 %v29566_v0 }
 0x19b   :  { %24824 = vmatpush3.bf16.msra.mxu0 %v28214_v44  ;;  %v24418_v44 = vpop.f32.mrb[63].mxu0 }
 0x19c   :  { %24825 = vmatprep.subr.bf16.mxu0 %v29566_v0  ;;  %v30441_v50 = vpop.f32.mrb[64].mxu0 }
 0x19d   :  { %24602 = vmatpush3.bf16.msra.mxu1 %v28215_v45  ;;  %v28237_v45 = vld [vmem:[%s37138_s9 + $0x280] sm:$0xff]   ;;  %v24421_v51 = vpop.f32.mrb[65].mxu0 }
 0x19e   :  { %24603 = vmatprep.subr.bf16.mxu1 %v29566_v0 }
 0x19f   :  { %24826 = vmatpush3.bf16.msra.mxu0 %v28216_v40  ;;  %v30447_v40 = vpop.f32.mrb[66].mxu0 }
 0x1a0   :  { %24851 = vmatprep.subr.bf16.mxu0 %v29566_v0 }
 0x1a1   :  { %24604 = vmatpush3.bf16.msra.mxu1 %v28217_v55  ;;  %v24422_v55 = vpop.f32.mrb[67].mxu0 }
 0x1a2   :  { %24828 = vmatmul.mubr.bf16.vlgmr.msra.gmra.mrb[136].mxu0 %v22558_v57  ;;  %24605 = vmatprep.subr.bf16.mxu1 %v29566_v0  ;;  %v30455_v57 = vpop.f32.mrb[68].mxu0 }
 0x1a3   :  { %24852 = vmatpush3.bf16.msra.mxu0 %v28218_v7  ;;  %24867 = vmatprep.mubr.msk.bf16.mxu0 %vm29567_vm0, %v29566_v0  ;;  %v24425_v58 = vpop.f32.mrb[69].mxu0  ;;  %v28240_v7 = vld [vmem:[%s37138_s9 + $0x558] sm:$0xff]  }
 0x1a4   :  { %24853 = vmatprep.subr.bf16.mxu0 %v29566_v0 }
 0x1a5   :  { %24606 = vmatpush3.bf16.msra.mxu1 %v28219_v2  ;;  %v30461_v2 = vpop.f32.mrb[70].mxu0 }
 0x1a6   :  { %24631 = vmatprep.subr.bf16.mxu1 %v29566_v0 }
 0x1a7   :  { %24854 = vmatpush3.bf16.msra.mxu0 %v28220_v60  ;;  %v24426_v60 = vpop.f32.mrb[71].mxu0 }
 0x1a8   :  { %24608 = vmatmul.mubr.bf16.vlgmr.msra.gmra.mrb[24].mxu1 %v22547_v62  ;;  %24855 = vmatprep.subr.bf16.mxu0 %v29566_v0  ;;  %v28241_v62 = vld [vmem:[%s37138_s9 + $0x290] sm:$0xff]  }
 0x1a9   :  { %24632 = vmatpush3.bf16.msra.mxu1 %v28221_v1  ;;  %24647 = vmatprep.mubr.msk.bf16.mxu1 %vm29567_vm0, %v29566_v0  ;;  %v30467_v1 = vpop.f32.mrb[72].mxu0 }
 0x1aa   :  { %24633 = vmatprep.subr.bf16.mxu1 %v29566_v0 }
 0x1ab   :  { %24856 = vmatpush3.bf16.msra.mxu0 %v28222_v3  ;;  %v24429_v3 = vpop.f32.mrb[73].mxu0 }
 0x1ac   :  { %24857 = vmatprep.subr.bf16.mxu0 %v29566_v0  ;;  %v28252_v3 = vld [vmem:[%s37138_s9 + $0x5c8] sm:$0xff]  }
 0x1ad   :  { %24634 = vmatpush3.bf16.msra.mxu1 %v28223_v5  ;;  %v28242_v5 = vld [vmem:[%s37138_s9 + $0x560] sm:$0xff]  }
 0x1ae   :  { %24635 = vmatprep.subr.bf16.mxu1 %v29566_v0 }
 0x1af   :  { %24858 = vmatpush3.bf16.msra.mxu0 %v28224_v6  ;;  %v30473_v6 = vpop.f32.mrb[74].mxu0 }
 0x1b0   :  { %24859 = vmatprep.subr.bf16.mxu0 %v29566_v0 }
 0x1b1   :  { %24636 = vmatpush3.bf16.msra.mxu1 %v28225_v8  ;;  %v24430_v8 = vpop.f32.mrb[75].mxu0 }
 0x1b2   :  { %24637 = vmatprep.subr.bf16.mxu1 %v29566_v0 }
 0x1b3   :  { %24860 = vmatpush3.bf16.msra.mxu0 %v28226_v9  ;;  %v28243_v9 = vld [vmem:[%s37138_s9 + $0x298] sm:$0xff]  }
 0x1b4   :  { %24861 = vmatprep.subr.bf16.mxu0 %v29566_v0 }
 0x1b5   :  { %24638 = vmatpush3.bf16.msra.mxu1 %v28227_v10  ;;  %v30479_v10 = vpop.f32.mrb[76].mxu0 }
 0x1b6   :  { %24639 = vmatprep.subr.bf16.mxu1 %v29566_v0 }
 0x1b7   :  { %24862 = vmatpush3.bf16.msra.mxu0 %v28228_v11  ;;  %v24433_v11 = vpop.f32.mrb[77].mxu0 }
 0x1b8   :  { %24863 = vmatprep.subr.bf16.mxu0 %v29566_v0  ;;  %v30485_v13 = vpop.f32.mrb[78].mxu0  ;;  %v28253_v11 = vld [vmem:[%s37138_s9 + $0x300] sm:$0xff]  }
 0x1b9   :  { %24640 = vmatpush3.bf16.msra.mxu1 %v28229_v12  ;;  %v28244_v12 = vld [vmem:[%s37138_s9 + $0x568] sm:$0xff]  }
 0x1ba   :  { %24641 = vmatprep.subr.bf16.mxu1 %v29566_v0 }
 0x1bb   :  { %24864 = vmatpush3.bf16.msra.mxu0 %v28230_v14  ;;  %v30404_v24 = vpop.f32.mrb[0].mxu1  ;;  %v24434_v14 = vpop.f32.mrb[79].mxu0 }
 0x1bc   :  { %v24489_v27 = vpop.f32.mrb[1].mxu1  ;;  %24865 = vmatprep.subr.bf16.mxu0 %v29566_v0  ;;  %v6955_v35 = vsel %vm6954_vm2, %v30404_v24, 0.0 }
 0x1bd   :  { %24642 = vmatpush3.bf16.msra.mxu1 %v28231_v20  ;;  %v1935_v28 = vpop.f32.mrb[2].mxu1  ;;  %v30491_v20 = vpop.f32.mrb[80].mxu0 }
 0x1be   :  { %v24490_v31 = vpop.f32.mrb[3].mxu1  ;;  %24643 = vmatprep.subr.bf16.mxu1 %v29566_v0  ;;  %v24437_v23 = vpop.f32.mrb[81].mxu0  ;;  %v28247_v28 = vld [vmem:[%s37138_s9 + $0x2a8] sm:$0xff]  }
 0x1bf   :  { %24866 = vmatpush3.bf16.msra.mxu0 %v28232_v25  ;;  %v28246_v25 = vld [vmem:[%s37138_s9 + $0x570] sm:$0xff]   ;;  %v30499_v26 = vpop.f32.mrb[82].mxu0 }
 0x1c0   :  { %24891 = vmatprep.subr.bf16.mxu0 %v29566_v0  ;;  %v24438_v27 = vpop.f32.mrb[83].mxu0 }
 0x1c1   :  { %24644 = vmatpush3.bf16.msra.mxu1 %v28233_v30  ;;  %v30505_v30 = vpop.f32.mrb[84].mxu0 }
 0x1c2   :  { %24868 = vmatmul.mubr.bf16.vlgmr.msra.gmra.mrb[140].mxu0 %v22560_v61  ;;  %24645 = vmatprep.subr.bf16.mxu1 %v29566_v0  ;;  %v24441_v61 = vpop.f32.mrb[85].mxu0 }
 0x1c3   :  { %24892 = vmatpush3.bf16.msra.mxu0 %v28234_v19  ;;  %24907 = vmatprep.mubr.msk.bf16.mxu0 %vm29567_vm0, %v29566_v0  ;;  %v30511_v19 = vpop.f32.mrb[86].mxu0 }
 0x1c4   :  { %24893 = vmatprep.subr.bf16.mxu0 %v29566_v0 }
 0x1c5   :  { %24646 = vmatpush3.bf16.msra.mxu1 %v28235_v36 }
 0x1c6   :  { %24671 = vmatprep.subr.bf16.mxu1 %v29566_v0 }
 0x1c7   :  { %24894 = vmatpush3.bf16.msra.mxu0 %v28236_v41  ;;  %v24442_v41 = vpop.f32.mrb[87].mxu0 }
 0x1c8   :  { %24648 = vmatmul.mubr.bf16.vlgmr.msra.gmra.mrb[28].mxu1 %v22549_v43  ;;  %24895 = vmatprep.subr.bf16.mxu0 %v29566_v0  ;;  %v30524_v51 = vpop.f32.mrb[88].mxu0 }
 0x1c9   :  { %24672 = vmatpush3.bf16.msra.mxu1 %v28237_v45  ;;  %24687 = vmatprep.mubr.msk.bf16.mxu1 %vm29567_vm0, %v29566_v0  ;;  %v28249_v45 = vld [vmem:[%s37138_s9 + $0x2b0] sm:$0xff]   ;;  %v24445_v24 = vpop.f32.mrb[89].mxu0 }
 0x1ca   :  { %24673 = vmatprep.subr.bf16.mxu1 %v29566_v0  ;;  %v30530_v55 = vpop.f32.mrb[90].mxu0 }
 0x1cb   :  { %24896 = vmatpush3.bf16.msra.mxu0 %v28238_v63  ;;  %v28250_v63 = vld [vmem:[%s37138_s9 + $0x5c0] sm:$0xff]   ;;  %v24446_v58 = vpop.f32.mrb[91].mxu0 }
 0x1cc   :  { %24897 = vmatprep.subr.bf16.mxu0 %v29566_v0  ;;  %v30536_v60 = vpop.f32.mrb[92].mxu0 }
 0x1cd   :  { %24674 = vmatpush3.bf16.msra.mxu1 %v28239_v56  ;;  %v642_v56 = vmax.f32 %v442_v34, 0.0 }
 0x1ce   :  { %24675 = vmatprep.subr.bf16.mxu1 %v29566_v0 }
 0x1cf   :  { %24898 = vmatpush3.bf16.msra.mxu0 %v28240_v7  ;;  %v28251_v7 = vld [vmem:[%s37138_s9 + $0x2b8] sm:$0xff]   ;;  %v22551_v8 = vpack.c.bf16 %v642_v56, %v642_v56  ;;  %v28261_v56 = vld [vmem:[%s37138_s9 + $0x320] sm:$0xff]  }
 0x1d0   :  { %24899 = vmatprep.subr.bf16.mxu0 %v29566_v0 }
 0x1d1   :  { %24676 = vmatpush3.bf16.msra.mxu1 %v28241_v62  ;;  %v24449_v62 = vpop.f32.mrb[93].mxu0 }
 0x1d2   :  { %24677 = vmatprep.subr.bf16.mxu1 %v29566_v0 }
 0x1d3   :  { %24900 = vmatpush3.bf16.msra.mxu0 %v28242_v5  ;;  %v30544_v5 = vpop.f32.mrb[94].mxu0 }
 0x1d4   :  { %24901 = vmatprep.subr.bf16.mxu0 %v29566_v0 }
 0x1d5   :  { %24678 = vmatpush3.bf16.msra.mxu1 %v28243_v9  ;;  %v24450_v9 = vpop.f32.mrb[95].mxu0 }
 0x1d6   :  { %24679 = vmatprep.subr.bf16.mxu1 %v29566_v0 }
 0x1d7   :  { %24902 = vmatpush3.bf16.msra.mxu0 %v28244_v12  ;;  %v30550_v12 = vpop.f32.mrb[96].mxu0 }
 0x1d8   :  { %24903 = vmatprep.subr.bf16.mxu0 %v29566_v0  ;;  %v24453_v14 = vpop.f32.mrb[97].mxu0 }
 0x1d9   :  { %24680 = vmatpush3.bf16.msra.mxu1 %v28245_v16  ;;  %v28254_v16 = vld [vmem:[%s37138_s9 + $0x5d0] sm:$0xff]   ;;  %v30556_v52 = vpop.f32.mrb[98].mxu0  ;;  %v28263_v14 = vld [vmem:[%s37138_s9 + $0x328] sm:$0xff]  }
 0x1da   :  { %24681 = vmatprep.subr.bf16.mxu1 %v29566_v0  ;;  %v24454_v23 = vpop.f32.mrb[99].mxu0 }
 0x1db   :  { %v2020_v31 = vpop.f32.mrb[4].mxu1  ;;  %24904 = vmatpush3.bf16.msra.mxu0 %v28246_v25  ;;  %v28255_v25 = vld [vmem:[%s37138_s9 + $0x308] sm:$0xff]   ;;  %v30564_v27 = vpop.f32.mrb[100].mxu0 }
 0x1dc   :  { %v6956_v36 = vsel %vm6954_vm2, %v2020_v31, 0.0  ;;  %v24509_v39 = vpop.f32.mrb[5].mxu1  ;;  %24905 = vmatprep.subr.bf16.mxu0 %v29566_v0 }
 0x1dd   :  { %v30519_v43 = vadd.f32 %v6956_v36, %v6955_v35  ;;  %v2023_v44 = vpop.f32.mrb[6].mxu1  ;;  %24682 = vmatpush3.bf16.msra.mxu1 %v28247_v28  ;;  %v24457_v28 = vpop.f32.mrb[101].mxu0  ;;  %v28258_v36 = vld [vmem:[%s37138_s9 + $0x5e0] sm:$0xff]  }
 0x1de   :  { %v24510_v47 = vpop.f32.mrb[7].mxu1  ;;  %24683 = vmatprep.subr.bf16.mxu1 %v29566_v0  ;;  %v30570_v61 = vpop.f32.mrb[102].mxu0  ;;  %v28259_v44 = vld [vmem:[%s37138_s9 + $0x318] sm:$0xff]  }
 0x1df   :  { %24906 = vmatpush3.bf16.msra.mxu0 %v28248_v32  ;;  %v24458_v31 = vpop.f32.mrb[103].mxu0  ;;  %v28257_v32 = vld [vmem:[%s37138_s9 + $0x310] sm:$0xff]   ;;  %v28260_v47 = vld [vmem:[%s37138_s9 + $0x5e8] sm:$0xff]   ;;  %v28264_v28 = vld [vmem:[%s37138_s9 + $0x5f8] sm:$0xff]  }
 0x1e0   :  { %24931 = vmatprep.subr.bf16.mxu0 %v29566_v0  ;;  %v30576_v34 = vpop.f32.mrb[104].mxu0 }
 0x1e1   :  { %24684 = vmatpush3.bf16.msra.mxu1 %v28249_v45  ;;  %v24461_v35 = vpop.f32.mrb[105].mxu0 }
 0x1e2   :  { %24908 = vmatmul.mubr.bf16.vlgmr.msra.gmra.mrb[144].mxu0 %v22562_v29  ;;  %24685 = vmatprep.subr.bf16.mxu1 %v29566_v0  ;;  %v30582_v39 = vpop.f32.mrb[106].mxu0 }
 0x1e3   :  { %24932 = vmatpush3.bf16.msra.mxu0 %v28250_v63  ;;  %24947 = vmatprep.mubr.msk.bf16.mxu0 %vm29567_vm0, %v29566_v0  ;;  %v24462_v41 = vpop.f32.mrb[107].mxu0 }
 0x1e4   :  { %24933 = vmatprep.subr.bf16.mxu0 %v29566_v0  ;;  %v30588_v45 = vpop.f32.mrb[108].mxu0 }
 0x1e5   :  { %24686 = vmatpush3.bf16.msra.mxu1 %v28251_v7  ;;  %v24465_v29 = vpop.f32.mrb[109].mxu0  ;;  %v30606_v7 = vld [vmem:[%s37139_s4] ss:$0 sm:$0xff] }
 0x1e6   :  { %24711 = vmatprep.subr.bf16.mxu1 %v29566_v0  ;;  %v30594_v24 = vpop.f32.mrb[110].mxu0  ;;  %v493_v62 = vadd.f32 %v30606_v7, %v30254_v22  ;;  %v450_v31 = vadd.f32 %v30606_v7, %v29989_v37  ;;  %v28265_v29 = vld [vmem:[%s37138_s9 + $0x330] sm:$0xff]   ;;  %v28266_v37 = vld [vmem:[%s37138_s9 + $0x640] sm:$0xff]  }
 0x1e7   :  { %24934 = vmatpush3.bf16.msra.mxu0 %v28252_v3  ;;  %v24466_v63 = vpop.f32.mrb[111].mxu0 }
 0x1e8   :  { %24688 = vmatmul.mubr.bf16.vlgmr.msra.gmra.mrb[32].mxu1 %v22551_v8  ;;  %24935 = vmatprep.subr.bf16.mxu0 %v29566_v0  ;;  %v30600_v58 = vpop.f32.mrb[112].mxu0  ;;  %v28262_v8 = vld [vmem:[%s37138_s9 + $0x5f0] sm:$0xff]   ;;  %v655_v23 = vmax.f32 %v493_v62, 0.0  ;;  %v28268_v62 = vld [vmem:[%s37138_s9 + $0x648] sm:$0xff]  }
 0x1e9   :  { %24712 = vmatpush3.bf16.msra.mxu1 %v28253_v11  ;;  %24727 = vmatprep.mubr.msk.bf16.mxu1 %vm29567_vm0, %v29566_v0  ;;  %v24469_v3 = vpop.f32.mrb[113].mxu0 }
 0x1ea   :  { %24713 = vmatprep.subr.bf16.mxu1 %v29566_v0  ;;  %v30613_v9 = vpop.f32.mrb[114].mxu0 }
 0x1eb   :  { %24936 = vmatpush3.bf16.msra.mxu0 %v28254_v16  ;;  %v24470_v11 = vpop.f32.mrb[115].mxu0 }
 0x1ec   :  { %24937 = vmatprep.subr.bf16.mxu0 %v29566_v0  ;;  %v30619_v16 = vpop.f32.mrb[116].mxu0  ;;  %v28270_v11 = vld [vmem:[%s37138_s9 + $0x650] sm:$0xff]  }
 0x1ed   :  { %24714 = vmatpush3.bf16.msra.mxu1 %v28255_v25  ;;  %v24629_v22 = vpop.f32.mrb[117].mxu0 }
 0x1ee   :  { %24715 = vmatprep.subr.bf16.mxu1 %v29566_v0  ;;  %v28273_v22 = vld [vmem:[%s37138_s9 + $0x390] sm:$0xff]  }
 0x1ef   :  { %24938 = vmatpush3.bf16.msra.mxu0 %v28256_v54  ;;  %v2551_v54 = vpop.f32.mrb[118].mxu0 }
 0x1f0   :  { %24939 = vmatprep.subr.bf16.mxu0 %v29566_v0  ;;  %v28276_v54 = vld [vmem:[%s37138_s9 + $0x668] sm:$0xff]  }
 0x1f1   :  { %24716 = vmatpush3.bf16.msra.mxu1 %v28257_v32 }
 0x1f2   :  { %24717 = vmatprep.subr.bf16.mxu1 %v29566_v0 }
 0x1f3   :  { %24940 = vmatpush3.bf16.msra.mxu0 %v28258_v36  ;;  %v24630_v36 = vpop.f32.mrb[119].mxu0 }
 0x1f4   :  { %24941 = vmatprep.subr.bf16.mxu0 %v29566_v0 }
 0x1f5   :  { %24718 = vmatpush3.bf16.msra.mxu1 %v28259_v44  ;;  %v30693_v36 = vpop.f32.mrb[120].mxu0 }
 0x1f6   :  { %24719 = vmatprep.subr.bf16.mxu1 %v29566_v0 }
 0x1f7   :  { %24942 = vmatpush3.bf16.msra.mxu0 %v28260_v47  ;;  %v22564_v47 = vpack.c.bf16 %v655_v23, %v655_v23  ;;  %v28272_v23 = vld [vmem:[%s37138_s9 + $0x658] sm:$0xff]  }
 0x1f8   :  { %24943 = vmatprep.subr.bf16.mxu0 %v29566_v0 }
 0x1f9   :  { %24720 = vmatpush3.bf16.msra.mxu1 %v28261_v56  ;;  %v644_v56 = vmax.f32 %v450_v31, 0.0  ;;  %v28277_v31 = vld [vmem:[%s37138_s9 + $0x3a0] sm:$0xff]  }
 0x1fa   :  { %24721 = vmatprep.subr.bf16.mxu1 %v29566_v0 }
 0x1fb   :  { %v2108_v25 = vpop.f32.mrb[8].mxu1  ;;  %24944 = vmatpush3.bf16.msra.mxu0 %v28262_v8  ;;  %v22553_v3 = vpack.c.bf16 %v644_v56, %v644_v56  ;;  %v28269_v8 = vld [vmem:[%s37138_s9 + $0x380] sm:$0xff]   ;;  %v28280_v56 = vld [vmem:[%s37138_s9 + $0x678] sm:$0xff]  }
 0x1fc   :  { %v6958_v32 = vsel %vm6954_vm2, %v2108_v25, 0.0  ;;  %v24529_v35 = vpop.f32.mrb[9].mxu1  ;;  %24945 = vmatprep.subr.bf16.mxu0 %v29566_v0  ;;  %v28274_v25 = vld [vmem:[%s37138_s9 + $0x660] sm:$0xff]  }
 0x1fd   :  { %v30630_v41 = vadd.f32 %v6958_v32, %v30519_v43  ;;  %v2111_v44 = vpop.f32.mrb[10].mxu1  ;;  %24722 = vmatpush3.bf16.msra.mxu1 %v28263_v14  ;;  %v28267_v43 = vld [vmem:[%s37138_s9 + $0x338] sm:$0xff]   ;;  %v28271_v14 = vld [vmem:[%s37138_s9 + $0x388] sm:$0xff]   ;;  %v501_v32 = vadd.f32 %v30606_v7, %v30332_v53  ;;  %v28278_v35 = vld [vmem:[%s37138_s9 + $0x670] sm:$0xff]  }
 0x1fe   :  { %v24530_v63 = vpop.f32.mrb[11].mxu1  ;;  %24723 = vmatprep.subr.bf16.mxu1 %v29566_v0  ;;  %v24669_v44 = vpop.f32.mrb[121].mxu0 }
 0x1ff   :  { %24946 = vmatpush3.bf16.msra.mxu0 %v28264_v28  ;;  %v28275_v28 = vld [vmem:[%s37138_s9 + $0x398] sm:$0xff]   ;;  %v657_v63 = vmax.f32 %v501_v32, 0.0  ;;  %v28286_v32 = vld [vmem:[%s37138_s9 + $0x6d0] sm:$0xff]  }
 0x200   :  { %24971 = vmatprep.subr.bf16.mxu0 %v29566_v0  ;;  %v28288_v44 = vld [vmem:[%s37138_s9 + $0x6d8] sm:$0xff]  }
 0x201   :  { %24724 = vmatpush3.bf16.msra.mxu1 %v28265_v29  ;;  %v28279_v29 = vld [vmem:[%s37138_s9 + $0x3a8] sm:$0xff]  }
 0x202   :  { %24948 = vmatmul.mubr.bf16.vlgmr.msra.gmra.mrb[148].mxu0 %v22564_v47  ;;  %24725 = vmatprep.subr.bf16.mxu1 %v29566_v0  ;;  %v2727_v47 = vpop.f32.mrb[122].mxu0 }
 0x203   :  { %24972 = vmatpush3.bf16.msra.mxu0 %v28266_v37  ;;  %24987 = vmatprep.mubr.msk.bf16.mxu0 %vm29567_vm0, %v29566_v0  ;;  %v24670_v53 = vpop.f32.mrb[123].mxu0  ;;  %v28290_v47 = vld [vmem:[%s37138_s9 + $0x6e0] sm:$0xff]  }
 0x204   :  { %24973 = vmatprep.subr.bf16.mxu0 %v29566_v0  ;;  %v28292_v53 = vld [vmem:[%s37138_s9 + $0x6e8] sm:$0xff]  }
 0x205   :  { %24726 = vmatpush3.bf16.msra.mxu1 %v28267_v43  ;;  %v458_v43 = vadd.f32 %v30606_v7, %v30010_v46  ;;  %v28282_v46 = vld [vmem:[%s37138_s9 + $0x6c0] sm:$0xff]  }
 0x206   :  { %24751 = vmatprep.subr.bf16.mxu1 %v29566_v0 }
 0x207   :  { %24974 = vmatpush3.bf16.msra.mxu0 %v28268_v62 }
 0x208   :  { %24728 = vmatmul.mubr.bf16.vlgmr.msra.gmra.mrb[36].mxu1 %v22553_v3  ;;  %24975 = vmatprep.subr.bf16.mxu0 %v29566_v0 }
 0x209   :  { %24752 = vmatpush3.bf16.msra.mxu1 %v28269_v8  ;;  %24767 = vmatprep.mubr.msk.bf16.mxu1 %vm29567_vm0, %v29566_v0 }
 0x20a   :  { %24753 = vmatprep.subr.bf16.mxu1 %v29566_v0 }
 0x20b   :  { %24976 = vmatpush3.bf16.msra.mxu0 %v28270_v11 }
 0x20c   :  { %24977 = vmatprep.subr.bf16.mxu0 %v29566_v0 }
 0x20d   :  { %24754 = vmatpush3.bf16.msra.mxu1 %v28271_v14  ;;  %v28281_v14 = vld [vmem:[%s37138_s9 + $0x3b0] sm:$0xff]  }
 0x20e   :  { %24755 = vmatprep.subr.bf16.mxu1 %v29566_v0 }
 0x20f   :  { %24978 = vmatpush3.bf16.msra.mxu0 %v28272_v23  ;;  %v22566_v23 = vpack.c.bf16 %v657_v63, %v657_v63  ;;  %v28291_v63 = vld [vmem:[%s37138_s9 + $0x418] sm:$0xff]  }
 0x210   :  { %24979 = vmatprep.subr.bf16.mxu0 %v29566_v0 }
 0x211   :  { %24756 = vmatpush3.bf16.msra.mxu1 %v28273_v22 }
 0x212   :  { %24757 = vmatprep.subr.bf16.mxu1 %v29566_v0 }
 0x213   :  { %24980 = vmatpush3.bf16.msra.mxu0 %v28274_v25  ;;  %v646_v25 = vmax.f32 %v458_v43, 0.0  ;;  %v28294_v43 = vld [vmem:[%s37138_s9 + $0x6f0] sm:$0xff]  }
 0x214   :  { %24981 = vmatprep.subr.bf16.mxu0 %v29566_v0 }
 0x215   :  { %24758 = vmatpush3.bf16.msra.mxu1 %v28275_v28  ;;  %v28284_v28 = vld [vmem:[%s37138_s9 + $0x6c8] sm:$0xff]  }
 0x216   :  { %24759 = vmatprep.subr.bf16.mxu1 %v29566_v0 }
 0x217   :  { %24982 = vmatpush3.bf16.msra.mxu0 %v28276_v54  ;;  %v22555_v54 = vpack.c.bf16 %v646_v25, %v646_v25  ;;  %v466_v25 = vadd.f32 %v30606_v7, %v30032_v59  ;;  %v28298_v59 = vld [vmem:[%s37138_s9 + $0x740] sm:$0xff]  }
 0x218   :  { %24983 = vmatprep.subr.bf16.mxu0 %v29566_v0 }
 0x219   :  { %24760 = vmatpush3.bf16.msra.mxu1 %v28277_v31  ;;  %v28285_v31 = vld [vmem:[%s37138_s9 + $0x400] sm:$0xff]  }
 0x21a   :  { %24761 = vmatprep.subr.bf16.mxu1 %v29566_v0 }
 0x21b   :  { %v2196_v37 = vpop.f32.mrb[12].mxu1  ;;  %24984 = vmatpush3.bf16.msra.mxu0 %v28278_v35  ;;  %v28287_v35 = vld [vmem:[%s37138_s9 + $0x408] sm:$0xff]  }
 0x21c   :  { %v6960_v62 = vsel %vm6954_vm2, %v2196_v37, 0.0  ;;  %v24549_v3 = vpop.f32.mrb[13].mxu1  ;;  %24985 = vmatprep.subr.bf16.mxu0 %v29566_v0  ;;  %v28293_v37 = vld [vmem:[%s37138_s9 + $0x420] sm:$0xff]  }
 0x21d   :  { %v30708_v8 = vadd.f32 %v6960_v62, %v30630_v41  ;;  %v2199_v11 = vpop.f32.mrb[14].mxu1  ;;  %24762 = vmatpush3.bf16.msra.mxu1 %v28279_v29  ;;  %v28283_v41 = vld [vmem:[%s37138_s9 + $0x3b8] sm:$0xff]   ;;  %v28289_v29 = vld [vmem:[%s37138_s9 + $0x410] sm:$0xff]   ;;  %v30771_v62 = vpop.f32.mrb[124].mxu0 }
 0x21e   :  { %v24550_v22 = vpop.f32.mrb[15].mxu1  ;;  %24763 = vmatprep.subr.bf16.mxu1 %v29566_v0  ;;  %v24709_v3 = vpop.f32.mrb[125].mxu0  ;;  %v28295_v11 = vld [vmem:[%s37138_s9 + $0x428] sm:$0xff]  }
 0x21f   :  { %24986 = vmatpush3.bf16.msra.mxu0 %v28280_v56  ;;  %v509_v56 = vadd.f32 %v30606_v7, %v30401_v21  ;;  %v28305_v3 = vld [vmem:[%s37138_s9 + $0x490] sm:$0xff]  }
 0x220   :  { %25011 = vmatprep.subr.bf16.mxu0 %v29566_v0 }
 0x221   :  { %24764 = vmatpush3.bf16.msra.mxu1 %v28281_v14  ;;  %v2903_v14 = vpop.f32.mrb[126].mxu0 }
 0x222   :  { %24988 = vmatmul.mubr.bf16.vlgmr.msra.gmra.mrb[152].mxu0 %v22566_v23  ;;  %24765 = vmatprep.subr.bf16.mxu1 %v29566_v0  ;;  %v659_v23 = vmax.f32 %v509_v56, 0.0  ;;  %v24710_v21 = vpop.f32.mrb[127].mxu0  ;;  %v28303_v56 = vld [vmem:[%s37138_s9 + $0x488] sm:$0xff]   ;;  %v28307_v14 = vld [vmem:[%s37138_s9 + $0x498] sm:$0xff]  }
 0x223   :  { %25012 = vmatpush3.bf16.msra.mxu0 %v28282_v46  ;;  %25027 = vmatprep.mubr.msk.bf16.mxu0 %vm29567_vm0, %v29566_v0  ;;  %v28296_v46 = vld [vmem:[%s37138_s9 + $0x6f8] sm:$0xff]   ;;  %v28309_v21 = vld [vmem:[%s37138_s9 + $0x4a0] sm:$0xff]  }
 0x224   :  { %25013 = vmatprep.subr.bf16.mxu0 %v29566_v0 }
 0x225   :  { %24766 = vmatpush3.bf16.msra.mxu1 %v28283_v41 }
 0x226   :  { %24791 = vmatprep.subr.bf16.mxu1 %v29566_v0 }
 0x227   :  { %25014 = vmatpush3.bf16.msra.mxu0 %v28284_v28 }
 0x228   :  { %24768 = vmatmul.mubr.bf16.vlgmr.msra.gmra.mrb[40].mxu1 %v22555_v54  ;;  %25015 = vmatprep.subr.bf16.mxu0 %v29566_v0 }
 0x229   :  { %24792 = vmatpush3.bf16.msra.mxu1 %v28285_v31  ;;  %24807 = vmatprep.mubr.msk.bf16.mxu1 %vm29567_vm0, %v29566_v0 }
 0x22a   :  { %24793 = vmatprep.subr.bf16.mxu1 %v29566_v0 }
 0x22b   :  { %25016 = vmatpush3.bf16.msra.mxu0 %v28286_v32  ;;  %v28297_v32 = vld [vmem:[%s37138_s9 + $0x430] sm:$0xff]  }
 0x22c   :  { %25017 = vmatprep.subr.bf16.mxu0 %v29566_v0 }
 0x22d   :  { %24794 = vmatpush3.bf16.msra.mxu1 %v28287_v35  ;;  %v22568_v35 = vpack.c.bf16 %v659_v23, %v659_v23  ;;  %v28308_v23 = vld [vmem:[%s37138_s9 + $0x768] sm:$0xff]  }
 0x22e   :  { %24795 = vmatprep.subr.bf16.mxu1 %v29566_v0 }
 0x22f   :  { %25018 = vmatpush3.bf16.msra.mxu0 %v28288_v44 }
 0x230   :  { %25019 = vmatprep.subr.bf16.mxu0 %v29566_v0 }
 0x231   :  { %24796 = vmatpush3.bf16.msra.mxu1 %v28289_v29  ;;  %v648_v29 = vmax.f32 %v466_v25, 0.0 }
 0x232   :  { %24797 = vmatprep.subr.bf16.mxu1 %v29566_v0 }
 0x233   :  { %25020 = vmatpush3.bf16.msra.mxu0 %v28290_v47  ;;  %v28300_v47 = vld [vmem:[%s37138_s9 + $0x748] sm:$0xff]  }
 0x234   :  { %25021 = vmatprep.subr.bf16.mxu0 %v29566_v0 }
 0x235   :  { %24798 = vmatpush3.bf16.msra.mxu1 %v28291_v63  ;;  %v22557_v63 = vpack.c.bf16 %v648_v29, %v648_v29  ;;  %v30849_v25 = vpop.f32.mrb[128].mxu0 }
 0x236   :  { %24799 = vmatprep.subr.bf16.mxu1 %v29566_v0 }
 0x237   :  { %25022 = vmatpush3.bf16.msra.mxu0 %v28292_v53  ;;  %v28301_v53 = vld [vmem:[%s37138_s9 + $0x480] sm:$0xff]  }
 0x238   :  { %25023 = vmatprep.subr.bf16.mxu0 %v29566_v0 }
 0x239   :  { %24800 = vmatpush3.bf16.msra.mxu1 %v28293_v37  ;;  %v28302_v37 = vld [vmem:[%s37138_s9 + $0x750] sm:$0xff]  }
 0x23a   :  { %24801 = vmatprep.subr.bf16.mxu1 %v29566_v0 }
 0x23b   :  { %v2284_v22 = vpop.f32.mrb[16].mxu1  ;;  %25024 = vmatpush3.bf16.msra.mxu0 %v28294_v43  ;;  %v28304_v43 = vld [vmem:[%s37138_s9 + $0x758] sm:$0xff]  }
 0x23c   :  { %v6962_v41 = vsel %vm6954_vm2, %v2284_v22, 0.0  ;;  %v24569_v28 = vpop.f32.mrb[17].mxu1  ;;  %25025 = vmatprep.subr.bf16.mxu0 %v29566_v0  ;;  %v517_v22 = vadd.f32 %v30606_v7, %v30421_v33 }
 0x23d   :  { %v30786_v54 = vadd.f32 %v6962_v41, %v30708_v8  ;;  %v2287_v31 = vpop.f32.mrb[18].mxu1  ;;  %24802 = vmatpush3.bf16.msra.mxu1 %v28295_v11  ;;  %v28299_v8 = vld [vmem:[%s37138_s9 + $0x438] sm:$0xff]   ;;  %v28306_v11 = vld [vmem:[%s37138_s9 + $0x760] sm:$0xff]   ;;  %v24749_v41 = vpop.f32.mrb[129].mxu0  ;;  %v28311_v28 = vld [vmem:[%s37138_s9 + $0x4a8] sm:$0xff]  }
 0x23e   :  { %v24570_v44 = vpop.f32.mrb[19].mxu1  ;;  %24803 = vmatprep.subr.bf16.mxu1 %v29566_v0  ;;  %v3079_v31 = vpop.f32.mrb[130].mxu0  ;;  %v28322_v41 = vld [vmem:[%s37138_s9 + $0x7e0] sm:$0xff]  }
 0x23f   :  { %25026 = vmatpush3.bf16.msra.mxu0 %v28296_v46  ;;  %v28310_v46 = vld [vmem:[%s37138_s9 + $0x770] sm:$0xff]   ;;  %v24750_v33 = vpop.f32.mrb[131].mxu0  ;;  %v28312_v44 = vld [vmem:[%s37138_s9 + $0x778] sm:$0xff]   ;;  %v28324_v31 = vld [vmem:[%s37138_s9 + $0x7e8] sm:$0xff]  }
 0x240   :  { %25051 = vmatprep.subr.bf16.mxu0 %v29566_v0  ;;  %v525_v33 = vadd.f32 %v30606_v7, %v30435_v42 }
 0x241   :  { %24804 = vmatpush3.bf16.msra.mxu1 %v28297_v32  ;;  %v661_v32 = vmax.f32 %v517_v22, 0.0  ;;  %v28320_v22 = vld [vmem:[%s37138_s9 + $0x7d8] sm:$0xff]  }
 0x242   :  { %25028 = vmatmul.mubr.bf16.vlgmr.msra.gmra.mrb[156].mxu0 %v22568_v35  ;;  %24805 = vmatprep.subr.bf16.mxu1 %v29566_v0 }
 0x243   :  { %25052 = vmatpush3.bf16.msra.mxu0 %v28298_v59  ;;  %25067 = vmatprep.mubr.msk.bf16.mxu0 %vm29567_vm0, %v29566_v0  ;;  %v474_v59 = vadd.f32 %v30606_v7, %v30090_v18  ;;  %v28314_v18 = vld [vmem:[%s37138_s9 + $0x7c0] sm:$0xff]  }
 0x244   :  { %25053 = vmatprep.subr.bf16.mxu0 %v29566_v0 }
 0x245   :  { %24806 = vmatpush3.bf16.msra.mxu1 %v28299_v8 }
 0x246   :  { %24831 = vmatprep.subr.bf16.mxu1 %v29566_v0 }
 0x247   :  { %25054 = vmatpush3.bf16.msra.mxu0 %v28300_v47 }
 0x248   :  { %24808 = vmatmul.mubr.bf16.vlgmr.msra.gmra.mrb[44].mxu1 %v22557_v63  ;;  %25055 = vmatprep.subr.bf16.mxu0 %v29566_v0 }
 0x249   :  { %24832 = vmatpush3.bf16.msra.mxu1 %v28301_v53  ;;  %24847 = vmatprep.mubr.msk.bf16.mxu1 %vm29567_vm0, %v29566_v0  ;;  %v28313_v53 = vld [vmem:[%s37138_s9 + $0x4b0] sm:$0xff]  }
 0x24a   :  { %24833 = vmatprep.subr.bf16.mxu1 %v29566_v0 }
 0x24b   :  { %25056 = vmatpush3.bf16.msra.mxu0 %v28302_v37  ;;  %v22570_v37 = vpack.c.bf16 %v661_v32, %v661_v32  ;;  %v28325_v32 = vld [vmem:[%s37138_s9 + $0x520] sm:$0xff]  }
 0x24c   :  { %25057 = vmatprep.subr.bf16.mxu0 %v29566_v0 }
 0x24d   :  { %24834 = vmatpush3.bf16.msra.mxu1 %v28303_v56 }
 0x24e   :  { %24835 = vmatprep.subr.bf16.mxu1 %v29566_v0 }
 0x24f   :  { %25058 = vmatpush3.bf16.msra.mxu0 %v28304_v43  ;;  %v650_v43 = vmax.f32 %v474_v59, 0.0 }
 0x250   :  { %25059 = vmatprep.subr.bf16.mxu0 %v29566_v0 }
 0x251   :  { %24836 = vmatpush3.bf16.msra.mxu1 %v28305_v3  ;;  %v28316_v3 = vld [vmem:[%s37138_s9 + $0x7c8] sm:$0xff]  }
 0x252   :  { %24837 = vmatprep.subr.bf16.mxu1 %v29566_v0 }
 0x253   :  { %25060 = vmatpush3.bf16.msra.mxu0 %v28306_v11  ;;  %v22559_v11 = vpack.c.bf16 %v650_v43, %v650_v43 }
 0x254   :  { %25061 = vmatprep.subr.bf16.mxu0 %v29566_v0 }
 0x255   :  { %24838 = vmatpush3.bf16.msra.mxu1 %v28307_v14  ;;  %v28317_v14 = vld [vmem:[%s37138_s9 + $0x500] sm:$0xff]  }
 0x256   :  { %24839 = vmatprep.subr.bf16.mxu1 %v29566_v0 }
 0x257   :  { %25062 = vmatpush3.bf16.msra.mxu0 %v28308_v23  ;;  %v28318_v23 = vld [vmem:[%s37138_s9 + $0x7d0] sm:$0xff]  }
 0x258   :  { %25063 = vmatprep.subr.bf16.mxu0 %v29566_v0 }
 0x259   :  { %24840 = vmatpush3.bf16.msra.mxu1 %v28309_v21  ;;  %v28319_v21 = vld [vmem:[%s37138_s9 + $0x508] sm:$0xff]  }
 0x25a   :  { %24841 = vmatprep.subr.bf16.mxu1 %v29566_v0 }
 0x25b   :  { %v2372_v35 = vpop.f32.mrb[20].mxu1  ;;  %25064 = vmatpush3.bf16.msra.mxu0 %v28310_v46  ;;  %v28321_v46 = vld [vmem:[%s37138_s9 + $0x510] sm:$0xff]  }
 0x25c   :  { %v6964_v29 = vsel %vm6954_vm2, %v2372_v35, 0.0  ;;  %v24589_v8 = vpop.f32.mrb[21].mxu1  ;;  %25065 = vmatprep.subr.bf16.mxu0 %v29566_v0  ;;  %v28326_v35 = vld [vmem:[%s37138_s9 + $0x7f0] sm:$0xff]  }
 0x25d   :  { %v30864_v47 = vadd.f32 %v6964_v29, %v30786_v54  ;;  %v2375_v63 = vpop.f32.mrb[22].mxu1  ;;  %24842 = vmatpush3.bf16.msra.mxu1 %v28311_v28  ;;  %v28315_v54 = vld [vmem:[%s37138_s9 + $0x4b8] sm:$0xff]   ;;  %v28327_v29 = vld [vmem:[%s37138_s9 + $0x528] sm:$0xff]  }
 0x25e   :  { %v24590_v56 = vpop.f32.mrb[23].mxu1  ;;  %24843 = vmatprep.subr.bf16.mxu1 %v29566_v0  ;;  %v28323_v28 = vld [vmem:[%s37138_s9 + $0x518] sm:$0xff]   ;;  %v663_v63 = vmax.f32 %v525_v33, 0.0 }
 0x25f   :  { %25066 = vmatpush3.bf16.msra.mxu0 %v28312_v44  ;;  %v30927_v44 = vpop.f32.mrb[132].mxu0  ;;  %v482_v56 = vadd.f32 %v30606_v7, %v30166_v49  ;;  %v28330_v49 = vld [vmem:[%s37138_s9 + $0x840] sm:$0xff]   ;;  %v28336_v33 = vld [vmem:[%s37138_s9 + $0x858] sm:$0xff]  }
 0x260   :  { %25091 = vmatprep.subr.bf16.mxu0 %v29566_v0  ;;  %v24789_v59 = vpop.f32.mrb[133].mxu0 }
 0x261   :  { %24844 = vmatpush3.bf16.msra.mxu1 %v28313_v53  ;;  %v3255_v8 = vpop.f32.mrb[134].mxu0  ;;  %v28338_v59 = vld [vmem:[%s37138_s9 + $0x860] sm:$0xff]  }
 0x262   :  { %25068 = vmatmul.mubr.bf16.vlgmr.msra.gmra.mrb[160].mxu0 %v22570_v37  ;;  %24845 = vmatprep.subr.bf16.mxu1 %v29566_v0  ;;  %v24790_v42 = vpop.f32.mrb[135].mxu0  ;;  %v28328_v37 = vld [vmem:[%s37138_s9 + $0x7f8] sm:$0xff]   ;;  %v28340_v8 = vld [vmem:[%s37138_s9 + $0x868] sm:$0xff]  }
 0x263   :  { %25092 = vmatpush3.bf16.msra.mxu0 %v28314_v18  ;;  %25107 = vmatprep.mubr.msk.bf16.mxu0 %vm29567_vm0, %v29566_v0  ;;  %v6968_v18 = vsel %vm6954_vm2, %v30619_v16, 0.0  ;;  %v533_v42 = vadd.f32 %v30606_v7, %v30447_v40 }
 0x264   :  { %25093 = vmatprep.subr.bf16.mxu0 %v29566_v0 }
 0x265   :  { %24846 = vmatpush3.bf16.msra.mxu1 %v28315_v54 }
 0x266   :  { %24871 = vmatprep.subr.bf16.mxu1 %v29566_v0 }
 0x267   :  { %25094 = vmatpush3.bf16.msra.mxu0 %v28316_v3 }
 0x268   :  { %24848 = vmatmul.mubr.bf16.vlgmr.msra.gmra.mrb[48].mxu1 %v22559_v11  ;;  %25095 = vmatprep.subr.bf16.mxu0 %v29566_v0 }
 0x269   :  { %24872 = vmatpush3.bf16.msra.mxu1 %v28317_v14  ;;  %24887 = vmatprep.mubr.msk.bf16.mxu1 %vm29567_vm0, %v29566_v0  ;;  %v28329_v14 = vld [vmem:[%s37138_s9 + $0x530] sm:$0xff]  }
 0x26a   :  { %24873 = vmatprep.subr.bf16.mxu1 %v29566_v0 }
 0x26b   :  { %25096 = vmatpush3.bf16.msra.mxu0 %v28318_v23  ;;  %v22572_v23 = vpack.c.bf16 %v663_v63, %v663_v63  ;;  %v28341_v63 = vld [vmem:[%s37138_s9 + $0x5a0] sm:$0xff]  }
 0x26c   :  { %25097 = vmatprep.subr.bf16.mxu0 %v29566_v0 }
 0x26d   :  { %24874 = vmatpush3.bf16.msra.mxu1 %v28319_v21 }
 0x26e   :  { %24875 = vmatprep.subr.bf16.mxu1 %v29566_v0 }
 0x26f   :  { %25098 = vmatpush3.bf16.msra.mxu0 %v28320_v22  ;;  %v652_v22 = vmax.f32 %v482_v56, 0.0 }
 0x270   :  { %25099 = vmatprep.subr.bf16.mxu0 %v29566_v0 }
 0x271   :  { %24876 = vmatpush3.bf16.msra.mxu1 %v28321_v46  ;;  %v28332_v46 = vld [vmem:[%s37138_s9 + $0x848] sm:$0xff]  }
 0x272   :  { %24877 = vmatprep.subr.bf16.mxu1 %v29566_v0 }
 0x273   :  { %25100 = vmatpush3.bf16.msra.mxu0 %v28322_v41  ;;  %v22561_v41 = vpack.c.bf16 %v652_v22, %v652_v22 }
 0x274   :  { %25101 = vmatprep.subr.bf16.mxu0 %v29566_v0 }
 0x275   :  { %24878 = vmatpush3.bf16.msra.mxu1 %v28323_v28  ;;  %v28333_v28 = vld [vmem:[%s37138_s9 + $0x580] sm:$0xff]  }
 0x276   :  { %24879 = vmatprep.subr.bf16.mxu1 %v29566_v0 }
 0x277   :  { %25102 = vmatpush3.bf16.msra.mxu0 %v28324_v31  ;;  %v28334_v31 = vld [vmem:[%s37138_s9 + $0x850] sm:$0xff]  }
 0x278   :  { %25103 = vmatprep.subr.bf16.mxu0 %v29566_v0 }
 0x279   :  { %24880 = vmatpush3.bf16.msra.mxu1 %v28325_v32  ;;  %v28335_v32 = vld [vmem:[%s37138_s9 + $0x588] sm:$0xff]  }
 0x27a   :  { %24881 = vmatprep.subr.bf16.mxu1 %v29566_v0 }
 0x27b   :  { %v2460_v53 = vpop.f32.mrb[24].mxu1  ;;  %25104 = vmatpush3.bf16.msra.mxu0 %v28326_v35  ;;  %v28337_v35 = vld [vmem:[%s37138_s9 + $0x590] sm:$0xff]  }
 0x27c   :  { %v6966_v43 = vsel %vm6954_vm2, %v2460_v53, 0.0  ;;  %v24609_v54 = vpop.f32.mrb[25].mxu1  ;;  %25105 = vmatprep.subr.bf16.mxu0 %v29566_v0  ;;  %v28342_v53 = vld [vmem:[%s37138_s9 + $0x870] sm:$0xff]  }
 0x27d   :  { %v6967_v3 = vadd.f32 %v6966_v43, %v30864_v47  ;;  %v2463_v11 = vpop.f32.mrb[26].mxu1  ;;  %24882 = vmatpush3.bf16.msra.mxu1 %v28327_v29  ;;  %v28331_v47 = vld [vmem:[%s37138_s9 + $0x538] sm:$0xff]   ;;  %v665_v54 = vmax.f32 %v533_v42, 0.0  ;;  %v28354_v42 = vld [vmem:[%s37138_s9 + $0x8e0] sm:$0xff]  }
 0x27e   :  { %v24610_v21 = vpop.f32.mrb[27].mxu1  ;;  %24883 = vmatprep.subr.bf16.mxu1 %v29566_v0  ;;  %v28339_v29 = vld [vmem:[%s37138_s9 + $0x598] sm:$0xff]  }
 0x27f   :  { %25106 = vmatpush3.bf16.msra.mxu0 %v28328_v37  ;;  %v6969_v16 = vadd.f32 %v6968_v18, %v6967_v3  ;;  %v31005_v37 = vpop.f32.mrb[136].mxu0  ;;  %v28343_v18 = vld [vmem:[%s37138_s9 + $0x5a8] sm:$0xff]   ;;  %v28344_v11 = vld [vmem:[%s37138_s9 + $0x878] sm:$0xff]  }
 0x280   :  { %25131 = vmatprep.subr.bf16.mxu0 %v29566_v0  ;;  %v24829_v56 = vpop.f32.mrb[137].mxu0 }
 0x281   :  { %24884 = vmatpush3.bf16.msra.mxu1 %v28329_v14  ;;  %v3431_v43 = vpop.f32.mrb[138].mxu0  ;;  %v490_v14 = vadd.f32 %v30606_v7, %v30247_v17  ;;  %v28346_v17 = vld [vmem:[%s37138_s9 + $0x8c0] sm:$0xff]   ;;  %v28356_v56 = vld [vmem:[%s37138_s9 + $0x8e8] sm:$0xff]  }
 0x282   :  { %25108 = vmatmul.mubr.bf16.vlgmr.msra.gmra.mrb[164].mxu0 %v22572_v23  ;;  %24885 = vmatprep.subr.bf16.mxu1 %v29566_v0  ;;  %v24830_v40 = vpop.f32.mrb[139].mxu0  ;;  %v6972_v23 = vsel %vm6954_vm2, %v30693_v36, 0.0  ;;  %v541_v43 = vadd.f32 %v30606_v7, %v30461_v2 }
 0x283   :  { %25132 = vmatpush3.bf16.msra.mxu0 %v28330_v49  ;;  %25147 = vmatprep.mubr.msk.bf16.mxu0 %vm29567_vm0, %v29566_v0 }
 0x284   :  { %25133 = vmatprep.subr.bf16.mxu0 %v29566_v0 }
 0x285   :  { %24886 = vmatpush3.bf16.msra.mxu1 %v28331_v47 }
 0x286   :  { %24911 = vmatprep.subr.bf16.mxu1 %v29566_v0 }
 0x287   :  { %25134 = vmatpush3.bf16.msra.mxu0 %v28332_v46  ;;  %v28345_v46 = vld [vmem:[%s37138_s9 + $0x5b0] sm:$0xff]  }
 0x288   :  { %24888 = vmatmul.mubr.bf16.vlgmr.msra.gmra.mrb[52].mxu1 %v22561_v41  ;;  %25135 = vmatprep.subr.bf16.mxu0 %v29566_v0  ;;  %v22574_v41 = vpack.c.bf16 %v665_v54, %v665_v54  ;;  %v28358_v54 = vld [vmem:[%s37138_s9 + $0x8f0] sm:$0xff]  }
 0x289   :  { %24912 = vmatpush3.bf16.msra.mxu1 %v28333_v28  ;;  %24927 = vmatprep.mubr.msk.bf16.mxu1 %vm29567_vm0, %v29566_v0 }
 0x28a   :  { %24913 = vmatprep.subr.bf16.mxu1 %v29566_v0 }
 0x28b   :  { %25136 = vmatpush3.bf16.msra.mxu0 %v28334_v31  ;;  %v654_v31 = vmax.f32 %v490_v14, 0.0 }
 0x28c   :  { %25137 = vmatprep.subr.bf16.mxu0 %v29566_v0 }
 0x28d   :  { %24914 = vmatpush3.bf16.msra.mxu1 %v28335_v32  ;;  %v28348_v32 = vld [vmem:[%s37138_s9 + $0x8c8] sm:$0xff]  }
 0x28e   :  { %24915 = vmatprep.subr.bf16.mxu1 %v29566_v0 }
 0x28f   :  { %25138 = vmatpush3.bf16.msra.mxu0 %v28336_v33  ;;  %v22563_v33 = vpack.c.bf16 %v654_v31, %v654_v31  ;;  %v28361_v31 = vld [vmem:[%s37138_s9 + $0x630] sm:$0xff]  }
 0x290   :  { %25139 = vmatprep.subr.bf16.mxu0 %v29566_v0 }
 0x291   :  { %24916 = vmatpush3.bf16.msra.mxu1 %v28337_v35  ;;  %v28349_v35 = vld [vmem:[%s37138_s9 + $0x600] sm:$0xff]  }
 0x292   :  { %24917 = vmatprep.subr.bf16.mxu1 %v29566_v0 }
 0x293   :  { %25140 = vmatpush3.bf16.msra.mxu0 %v28338_v59  ;;  %v28350_v59 = vld [vmem:[%s37138_s9 + $0x8d0] sm:$0xff]  }
 0x294   :  { %25141 = vmatprep.subr.bf16.mxu0 %v29566_v0 }
 0x295   :  { %24918 = vmatpush3.bf16.msra.mxu1 %v28339_v29  ;;  %v28351_v29 = vld [vmem:[%s37138_s9 + $0x608] sm:$0xff]   ;;  %v31082_v40 = vpop.f32.mrb[140].mxu0 }
 0x296   :  { %24919 = vmatprep.subr.bf16.mxu1 %v29566_v0 }
 0x297   :  { %25142 = vmatpush3.bf16.msra.mxu0 %v28340_v8  ;;  %v28352_v8 = vld [vmem:[%s37138_s9 + $0x8d8] sm:$0xff]  }
 0x298   :  { %25143 = vmatprep.subr.bf16.mxu0 %v29566_v0 }
 0x299   :  { %24920 = vmatpush3.bf16.msra.mxu1 %v28341_v63  ;;  %v28353_v63 = vld [vmem:[%s37138_s9 + $0x610] sm:$0xff]  }
 0x29a   :  { %24921 = vmatprep.subr.bf16.mxu1 %v29566_v0 }
 0x29b   :  { %v2636_v3 = vpop.f32.mrb[28].mxu1  ;;  %25144 = vmatpush3.bf16.msra.mxu0 %v28342_v53  ;;  %v28355_v53 = vld [vmem:[%s37138_s9 + $0x618] sm:$0xff]  }
 0x29c   :  { %v6970_v21 = vsel %vm6954_vm2, %v2636_v3, 0.0  ;;  %v24649_v49 = vpop.f32.mrb[29].mxu1  ;;  %25145 = vmatprep.subr.bf16.mxu0 %v29566_v0  ;;  %v24869_v3 = vpop.f32.mrb[141].mxu0 }
 0x29d   :  { %v6971_v22 = vadd.f32 %v6970_v21, %v6969_v16  ;;  %v2639_v47 = vpop.f32.mrb[30].mxu1  ;;  %24922 = vmatpush3.bf16.msra.mxu1 %v28343_v18  ;;  %v28347_v16 = vld [vmem:[%s37138_s9 + $0x5b8] sm:$0xff]   ;;  %v28357_v18 = vld [vmem:[%s37138_s9 + $0x620] sm:$0xff]   ;;  %v3607_v14 = vpop.f32.mrb[142].mxu0  ;;  %v549_v3 = vadd.f32 %v30606_v7, %v30473_v6 }
 0x29e   :  { %v24650_v28 = vpop.f32.mrb[31].mxu1  ;;  %24923 = vmatprep.subr.bf16.mxu1 %v29566_v0  ;;  %v24870_v2 = vpop.f32.mrb[143].mxu0  ;;  %v28360_v49 = vld [vmem:[%s37138_s9 + $0x8f8] sm:$0xff]   ;;  %v6976_v47 = vsel %vm6954_vm2, %v30771_v62, 0.0 }
 0x29f   :  { %25146 = vmatpush3.bf16.msra.mxu0 %v28344_v11  ;;  %v6973_v36 = vadd.f32 %v6972_v23, %v6971_v22  ;;  %v28359_v11 = vld [vmem:[%s37138_s9 + $0x628] sm:$0xff]   ;;  %v667_v23 = vmax.f32 %v541_v43, 0.0  ;;  %v498_v22 = vadd.f32 %v30606_v7, %v30323_v48  ;;  %v28362_v48 = vld [vmem:[%s37138_s9 + $0x940] sm:$0xff]  }
 0x2a0   :  { %25171 = vmatprep.subr.bf16.mxu0 %v29566_v0  ;;  %v28372_v43 = vld [vmem:[%s37138_s9 + $0x968] sm:$0xff]  }
 0x2a1   :  { %24924 = vmatpush3.bf16.msra.mxu1 %v28345_v46  ;;  %v28375_v2 = vld [vmem:[%s37138_s9 + $0x6a8] sm:$0xff]  }
 0x2a2   :  { %25148 = vmatmul.mubr.bf16.vlgmr.msra.gmra.mrb[168].mxu0 %v22574_v41  ;;  %24925 = vmatprep.subr.bf16.mxu1 %v29566_v0 }
 0x2a3   :  { %25172 = vmatpush3.bf16.msra.mxu0 %v28346_v17  ;;  %25187 = vmatprep.mubr.msk.bf16.mxu0 %vm29567_vm0, %v29566_v0 }
 0x2a4   :  { %25173 = vmatprep.subr.bf16.mxu0 %v29566_v0 }
 0x2a5   :  { %24926 = vmatpush3.bf16.msra.mxu1 %v28347_v16  ;;  %v22576_v16 = vpack.c.bf16 %v667_v23, %v667_v23 }
 0x2a6   :  { %24951 = vmatprep.subr.bf16.mxu1 %v29566_v0 }
 0x2a7   :  { %25174 = vmatpush3.bf16.msra.mxu0 %v28348_v32 }
 0x2a8   :  { %24928 = vmatmul.mubr.bf16.vlgmr.msra.gmra.mrb[56].mxu1 %v22563_v33  ;;  %25175 = vmatprep.subr.bf16.mxu0 %v29566_v0  ;;  %v656_v33 = vmax.f32 %v498_v22, 0.0 }
 0x2a9   :  { %24952 = vmatpush3.bf16.msra.mxu1 %v28349_v35  ;;  %24967 = vmatprep.mubr.msk.bf16.mxu1 %vm29567_vm0, %v29566_v0  ;;  %v28364_v35 = vld [vmem:[%s37138_s9 + $0x948] sm:$0xff]  }
 0x2aa   :  { %24953 = vmatprep.subr.bf16.mxu1 %v29566_v0 }
 0x2ab   :  { %25176 = vmatpush3.bf16.msra.mxu0 %v28350_v59  ;;  %v22565_v59 = vpack.c.bf16 %v656_v33, %v656_v33 }
 0x2ac   :  { %25177 = vmatprep.subr.bf16.mxu0 %v29566_v0 }
 0x2ad   :  { %24954 = vmatpush3.bf16.msra.mxu1 %v28351_v29  ;;  %v28365_v29 = vld [vmem:[%s37138_s9 + $0x680] sm:$0xff]  }
 0x2ae   :  { %24955 = vmatprep.subr.bf16.mxu1 %v29566_v0 }
 0x2af   :  { %25178 = vmatpush3.bf16.msra.mxu0 %v28352_v8  ;;  %v28366_v8 = vld [vmem:[%s37138_s9 + $0x950] sm:$0xff]  }
 0x2b0   :  { %25179 = vmatprep.subr.bf16.mxu0 %v29566_v0 }
 0x2b1   :  { %24956 = vmatpush3.bf16.msra.mxu1 %v28353_v63  ;;  %v28367_v63 = vld [vmem:[%s37138_s9 + $0x688] sm:$0xff]  }
 0x2b2   :  { %24957 = vmatprep.subr.bf16.mxu1 %v29566_v0 }
 0x2b3   :  { %25180 = vmatpush3.bf16.msra.mxu0 %v28354_v42  ;;  %v28368_v42 = vld [vmem:[%s37138_s9 + $0x958] sm:$0xff]  }
 0x2b4   :  { %25181 = vmatprep.subr.bf16.mxu0 %v29566_v0 }
 0x2b5   :  { %24958 = vmatpush3.bf16.msra.mxu1 %v28355_v53  ;;  %v28369_v53 = vld [vmem:[%s37138_s9 + $0x690] sm:$0xff]   ;;  %v31159_v14 = vpop.f32.mrb[144].mxu0 }
 0x2b6   :  { %24959 = vmatprep.subr.bf16.mxu1 %v29566_v0  ;;  %v24909_v23 = vpop.f32.mrb[145].mxu0 }
 0x2b7   :  { %25182 = vmatpush3.bf16.msra.mxu0 %v28356_v56  ;;  %v28370_v56 = vld [vmem:[%s37138_s9 + $0x960] sm:$0xff]  }
 0x2b8   :  { %25183 = vmatprep.subr.bf16.mxu0 %v29566_v0 }
 0x2b9   :  { %24960 = vmatpush3.bf16.msra.mxu1 %v28357_v18  ;;  %v28371_v18 = vld [vmem:[%s37138_s9 + $0x698] sm:$0xff]  }
 0x2ba   :  { %24961 = vmatprep.subr.bf16.mxu1 %v29566_v0 }
 0x2bb   :  { %v2812_v21 = vpop.f32.mrb[32].mxu1  ;;  %25184 = vmatpush3.bf16.msra.mxu0 %v28358_v54  ;;  %v28373_v54 = vld [vmem:[%s37138_s9 + $0x6a0] sm:$0xff]  }
 0x2bc   :  { %v6974_v46 = vsel %vm6954_vm2, %v2812_v21, 0.0  ;;  %v24689_v41 = vpop.f32.mrb[33].mxu1  ;;  %25185 = vmatprep.subr.bf16.mxu0 %v29566_v0  ;;  %v3783_v21 = vpop.f32.mrb[146].mxu0 }
 0x2bd   :  { %v6975_v28 = vadd.f32 %v6974_v46, %v6973_v36  ;;  %v2815_v17 = vpop.f32.mrb[34].mxu1  ;;  %24962 = vmatpush3.bf16.msra.mxu1 %v28359_v11  ;;  %v28363_v36 = vld [vmem:[%s37138_s9 + $0x638] sm:$0xff]   ;;  %v28374_v11 = vld [vmem:[%s37138_s9 + $0x970] sm:$0xff]   ;;  %v24910_v6 = vpop.f32.mrb[147].mxu0  ;;  %v6980_v46 = vsel %vm6954_vm2, %v30849_v25, 0.0  ;;  %v28378_v25 = vld [vmem:[%s37138_s9 + $0x9c0] sm:$0xff]  }
 0x2be   :  { %v24690_v32 = vpop.f32.mrb[35].mxu1  ;;  %24963 = vmatprep.subr.bf16.mxu1 %v29566_v0  ;;  %v28391_v21 = vld [vmem:[%s37138_s9 + $0x728] sm:$0xff]  }
 0x2bf   :  { %25186 = vmatpush3.bf16.msra.mxu0 %v28360_v49  ;;  %v6977_v62 = vadd.f32 %v6976_v47, %v6975_v28  ;;  %v669_v49 = vmax.f32 %v549_v3, 0.0  ;;  %v28376_v47 = vld [vmem:[%s37138_s9 + $0x978] sm:$0xff]   ;;  %v506_v32 = vadd.f32 %v30606_v7, %v30395_v15  ;;  %v28380_v15 = vld [vmem:[%s37138_s9 + $0x9c8] sm:$0xff]   ;;  %v28381_v7 = vld [vmem:[%s37138_s9 + $0x700] sm:$0xff]  }
 0x2c0   :  { %25211 = vmatprep.subr.bf16.mxu0 %v29566_v0 }
 0x2c1   :  { %24964 = vmatpush3.bf16.msra.mxu1 %v28361_v31 }
 0x2c2   :  { %25188 = vmatmul.mubr.bf16.vlgmr.msra.gmra.mrb[172].mxu0 %v22576_v16  ;;  %24965 = vmatprep.subr.bf16.mxu1 %v29566_v0  ;;  %v28377_v16 = vld [vmem:[%s37138_s9 + $0x6b0] sm:$0xff]  }
 0x2c3   :  { %25212 = vmatpush3.bf16.msra.mxu0 %v28362_v48  ;;  %25227 = vmatprep.mubr.msk.bf16.mxu0 %vm29567_vm0, %v29566_v0  ;;  %v22578_v48 = vpack.c.bf16 %v669_v49, %v669_v49 }
 0x2c4   :  { %25213 = vmatprep.subr.bf16.mxu0 %v29566_v0 }
 0x2c5   :  { %24966 = vmatpush3.bf16.msra.mxu1 %v28363_v36 }
 0x2c6   :  { %24991 = vmatprep.subr.bf16.mxu1 %v29566_v0 }
 0x2c7   :  { %25214 = vmatpush3.bf16.msra.mxu0 %v28364_v35  ;;  %v658_v35 = vmax.f32 %v506_v32, 0.0 }
 0x2c8   :  { %24968 = vmatmul.mubr.bf16.vlgmr.msra.gmra.mrb[60].mxu1 %v22565_v59  ;;  %25215 = vmatprep.subr.bf16.mxu0 %v29566_v0 }
 0x2c9   :  { %24992 = vmatpush3.bf16.msra.mxu1 %v28365_v29  ;;  %25007 = vmatprep.mubr.msk.bf16.mxu1 %vm29567_vm0, %v29566_v0  ;;  %v22567_v59 = vpack.c.bf16 %v658_v35, %v658_v35  ;;  %v28382_v29 = vld [vmem:[%s37138_s9 + $0x9d0] sm:$0xff]   ;;  %v28397_v35 = vld [vmem:[%s37138_s9 + $0x780] sm:$0xff]  }
 0x2ca   :  { %24993 = vmatprep.subr.bf16.mxu1 %v29566_v0 }
 0x2cb   :  { %25216 = vmatpush3.bf16.msra.mxu0 %v28366_v8  ;;  %v28383_v8 = vld [vmem:[%s37138_s9 + $0x708] sm:$0xff]  }
 0x2cc   :  { %25217 = vmatprep.subr.bf16.mxu0 %v29566_v0 }
 0x2cd   :  { %24994 = vmatpush3.bf16.msra.mxu1 %v28367_v63  ;;  %v28384_v63 = vld [vmem:[%s37138_s9 + $0x9d8] sm:$0xff]  }
 0x2ce   :  { %24995 = vmatprep.subr.bf16.mxu1 %v29566_v0 }
 0x2cf   :  { %25218 = vmatpush3.bf16.msra.mxu0 %v28368_v42  ;;  %v28385_v42 = vld [vmem:[%s37138_s9 + $0x710] sm:$0xff]  }
 0x2d0   :  { %25219 = vmatprep.subr.bf16.mxu0 %v29566_v0 }
 0x2d1   :  { %24996 = vmatpush3.bf16.msra.mxu1 %v28369_v53  ;;  %v28386_v53 = vld [vmem:[%s37138_s9 + $0x9e0] sm:$0xff]  }
 0x2d2   :  { %24997 = vmatprep.subr.bf16.mxu1 %v29566_v0 }
 0x2d3   :  { %25220 = vmatpush3.bf16.msra.mxu0 %v28370_v56  ;;  %v28387_v56 = vld [vmem:[%s37138_s9 + $0x718] sm:$0xff]  }
 0x2d4   :  { %25221 = vmatprep.subr.bf16.mxu0 %v29566_v0 }
 0x2d5   :  { %24998 = vmatpush3.bf16.msra.mxu1 %v28371_v18  ;;  %v28388_v18 = vld [vmem:[%s37138_s9 + $0x9e8] sm:$0xff]   ;;  %v31241_v23 = vpop.f32.mrb[148].mxu0 }
 0x2d6   :  { %24999 = vmatprep.subr.bf16.mxu1 %v29566_v0 }
 0x2d7   :  { %25222 = vmatpush3.bf16.msra.mxu0 %v28372_v43  ;;  %v28389_v43 = vld [vmem:[%s37138_s9 + $0x720] sm:$0xff]  }
 0x2d8   :  { %25223 = vmatprep.subr.bf16.mxu0 %v29566_v0 }
 0x2d9   :  { %25000 = vmatpush3.bf16.msra.mxu1 %v28373_v54  ;;  %v31233_v54 = vld [vmem:[%s37139_s4] ss:$0 sm:$0xff] }
 0x2da   :  { %25001 = vmatprep.subr.bf16.mxu1 %v29566_v0  ;;  %v557_v3 = vadd.f32 %v31233_v54, %v30485_v13  ;;  %v514_v32 = vadd.f32 %v31233_v54, %v30415_v4  ;;  %v28396_v4 = vld [vmem:[%s37138_s9 + $0xa48] sm:$0xff]  }
 0x2db   :  { %v2988_v22 = vpop.f32.mrb[36].mxu1  ;;  %25224 = vmatpush3.bf16.msra.mxu0 %v28374_v11  ;;  %v28390_v11 = vld [vmem:[%s37138_s9 + $0x9f0] sm:$0xff]  }
 0x2dc   :  { %v6978_v41 = vsel %vm6954_vm2, %v2988_v22, 0.0  ;;  %v24729_v28 = vpop.f32.mrb[37].mxu1  ;;  %25225 = vmatprep.subr.bf16.mxu0 %v29566_v0  ;;  %v671_v6 = vmax.f32 %v557_v3, 0.0  ;;  %v565_v3 = vadd.f32 %v31233_v54, %v30499_v26  ;;  %v6988_v26 = vsel %vm6954_vm2, %v31005_v37, 0.0  ;;  %v28410_v37 = vld [vmem:[%s37138_s9 + $0xac0] sm:$0xff]  }
 0x2dd   :  { %v6979_v17 = vadd.f32 %v6978_v41, %v6977_v62  ;;  %v2991_v31 = vpop.f32.mrb[38].mxu1  ;;  %25002 = vmatpush3.bf16.msra.mxu1 %v28375_v2  ;;  %v28379_v62 = vld [vmem:[%s37138_s9 + $0x6b8] sm:$0xff]   ;;  %v24949_v2 = vpop.f32.mrb[149].mxu0 }
 0x2de   :  { %v24730_v33 = vpop.f32.mrb[39].mxu1  ;;  %25003 = vmatprep.subr.bf16.mxu1 %v29566_v0  ;;  %v3959_v49 = vpop.f32.mrb[150].mxu0  ;;  %v28407_v2 = vld [vmem:[%s37138_s9 + $0x7a8] sm:$0xff]  }
 0x2df   :  { %25226 = vmatpush3.bf16.msra.mxu0 %v28376_v47  ;;  %v6981_v36 = vadd.f32 %v6980_v46, %v6979_v17  ;;  %v24950_v13 = vpop.f32.mrb[151].mxu0  ;;  %v28392_v47 = vld [vmem:[%s37138_s9 + $0x9f8] sm:$0xff]   ;;  %v6984_v46 = vsel %vm6954_vm2, %v30927_v44, 0.0  ;;  %v28394_v44 = vld [vmem:[%s37138_s9 + $0xa40] sm:$0xff]  }
 0x2e0   :  { %25251 = vmatprep.subr.bf16.mxu0 %v29566_v0  ;;  %v28408_v13 = vld [vmem:[%s37138_s9 + $0xa78] sm:$0xff]  }
 0x2e1   :  { %25004 = vmatpush3.bf16.msra.mxu1 %v28377_v16  ;;  %v28393_v16 = vld [vmem:[%s37138_s9 + $0x730] sm:$0xff]  }
 0x2e2   :  { %25228 = vmatmul.mubr.bf16.vlgmr.msra.gmra.mrb[176].mxu0 %v22578_v48  ;;  %25005 = vmatprep.subr.bf16.mxu1 %v29566_v0  ;;  %v22580_v48 = vpack.c.bf16 %v671_v6, %v671_v6 }
 0x2e3   :  { %25252 = vmatpush3.bf16.msra.mxu0 %v28378_v25  ;;  %25267 = vmatprep.mubr.msk.bf16.mxu0 %vm29567_vm0, %v29566_v0 }
 0x2e4   :  { %25253 = vmatprep.subr.bf16.mxu0 %v29566_v0 }
 0x2e5   :  { %25006 = vmatpush3.bf16.msra.mxu1 %v28379_v62  ;;  %v660_v62 = vmax.f32 %v514_v32, 0.0 }
 0x2e6   :  { %25031 = vmatprep.subr.bf16.mxu1 %v29566_v0 }
 0x2e7   :  { %25254 = vmatpush3.bf16.msra.mxu0 %v28380_v15  ;;  %v22569_v15 = vpack.c.bf16 %v660_v62, %v660_v62  ;;  %v28413_v62 = vld [vmem:[%s37138_s9 + $0x800] sm:$0xff]  }
 0x2e8   :  { %25008 = vmatmul.mubr.bf16.vlgmr.msra.gmra.mrb[64].mxu1 %v22567_v59  ;;  %25255 = vmatprep.subr.bf16.mxu0 %v29566_v0  ;;  %v28399_v59 = vld [vmem:[%s37138_s9 + $0x788] sm:$0xff]  }
 0x2e9   :  { %25032 = vmatpush3.bf16.msra.mxu1 %v28381_v7  ;;  %25047 = vmatprep.mubr.msk.bf16.mxu1 %vm29567_vm0, %v29566_v0  ;;  %v28398_v7 = vld [vmem:[%s37138_s9 + $0xa50] sm:$0xff]  }
 0x2ea   :  { %25033 = vmatprep.subr.bf16.mxu1 %v29566_v0 }
 0x2eb   :  { %25256 = vmatpush3.bf16.msra.mxu0 %v28382_v29  ;;  %v28400_v29 = vld [vmem:[%s37138_s9 + $0xa58] sm:$0xff]  }
 0x2ec   :  { %25257 = vmatprep.subr.bf16.mxu0 %v29566_v0 }
 0x2ed   :  { %25034 = vmatpush3.bf16.msra.mxu1 %v28383_v8  ;;  %v28401_v8 = vld [vmem:[%s37138_s9 + $0x790] sm:$0xff]  }
 0x2ee   :  { %25035 = vmatprep.subr.bf16.mxu1 %v29566_v0 }
 0x2ef   :  { %25258 = vmatpush3.bf16.msra.mxu0 %v28384_v63  ;;  %v28402_v63 = vld [vmem:[%s37138_s9 + $0xa60] sm:$0xff]  }
 0x2f0   :  { %25259 = vmatprep.subr.bf16.mxu0 %v29566_v0 }
 0x2f1   :  { %25036 = vmatpush3.bf16.msra.mxu1 %v28385_v42  ;;  %v28403_v42 = vld [vmem:[%s37138_s9 + $0x798] sm:$0xff]  }
 0x2f2   :  { %25037 = vmatprep.subr.bf16.mxu1 %v29566_v0 }
 0x2f3   :  { %25260 = vmatpush3.bf16.msra.mxu0 %v28386_v53  ;;  %v28404_v53 = vld [vmem:[%s37138_s9 + $0xa68] sm:$0xff]  }
 0x2f4   :  { %25261 = vmatprep.subr.bf16.mxu0 %v29566_v0 }
 0x2f5   :  { %25038 = vmatpush3.bf16.msra.mxu1 %v28387_v56  ;;  %v28405_v56 = vld [vmem:[%s37138_s9 + $0x7a0] sm:$0xff]  }
 0x2f6   :  { %25039 = vmatprep.subr.bf16.mxu1 %v29566_v0 }
 0x2f7   :  { %25262 = vmatpush3.bf16.msra.mxu0 %v28388_v18  ;;  %v28406_v18 = vld [vmem:[%s37138_s9 + $0xa70] sm:$0xff]  }
 0x2f8   :  { %25263 = vmatprep.subr.bf16.mxu0 %v29566_v0 }
 0x2f9   :  { %25040 = vmatpush3.bf16.msra.mxu1 %v28389_v43  ;;  %v31316_v43 = vpop.f32.mrb[152].mxu0 }
 0x2fa   :  { %25041 = vmatprep.subr.bf16.mxu1 %v29566_v0 }
 0x2fb   :  { %v3164_v22 = vpop.f32.mrb[40].mxu1  ;;  %25264 = vmatpush3.bf16.msra.mxu0 %v28390_v11  ;;  %v24989_v11 = vpop.f32.mrb[153].mxu0 }
 0x2fc   :  { %v6982_v41 = vsel %vm6954_vm2, %v3164_v22, 0.0  ;;  %v24769_v28 = vpop.f32.mrb[41].mxu1  ;;  %25265 = vmatprep.subr.bf16.mxu0 %v29566_v0  ;;  %v673_v22 = vmax.f32 %v565_v3, 0.0  ;;  %v28422_v11 = vld [vmem:[%s37138_s9 + $0xaf0] sm:$0xff]  }
 0x2fd   :  { %v6983_v17 = vadd.f32 %v6982_v41, %v6981_v36  ;;  %v3167_v31 = vpop.f32.mrb[42].mxu1  ;;  %25042 = vmatpush3.bf16.msra.mxu1 %v28391_v21  ;;  %v28395_v36 = vld [vmem:[%s37138_s9 + $0x738] sm:$0xff]   ;;  %v4135_v21 = vpop.f32.mrb[154].mxu0 }
 0x2fe   :  { %v24770_v33 = vpop.f32.mrb[43].mxu1  ;;  %25043 = vmatprep.subr.bf16.mxu1 %v29566_v0  ;;  %v24990_v49 = vpop.f32.mrb[155].mxu0  ;;  %v522_v31 = vadd.f32 %v31233_v54, %v30427_v38  ;;  %v28412_v38 = vld [vmem:[%s37138_s9 + $0xac8] sm:$0xff]   ;;  %v573_v21 = vadd.f32 %v31233_v54, %v30511_v19  ;;  %v6992_v19 = vsel %vm6954_vm2, %v31082_v40, 0.0  ;;  %v28426_v40 = vld [vmem:[%s37138_s9 + $0xb40] sm:$0xff]  }
 0x2ff   :  { %25266 = vmatpush3.bf16.msra.mxu0 %v28392_v47  ;;  %v6985_v25 = vadd.f32 %v6984_v46, %v6983_v17  ;;  %v28409_v17 = vld [vmem:[%s37138_s9 + $0x7b0] sm:$0xff]   ;;  %v28411_v33 = vld [vmem:[%s37138_s9 + $0x7b8] sm:$0xff]  }
 0x300   :  { %25291 = vmatprep.subr.bf16.mxu0 %v29566_v0 }
 0x301   :  { %25044 = vmatpush3.bf16.msra.mxu1 %v28393_v16 }
 0x302   :  { %25268 = vmatmul.mubr.bf16.vlgmr.msra.gmra.mrb[180].mxu0 %v22580_v48  ;;  %25045 = vmatprep.subr.bf16.mxu1 %v29566_v0  ;;  %v22582_v48 = vpack.c.bf16 %v673_v22, %v673_v22  ;;  %v28424_v22 = vld [vmem:[%s37138_s9 + $0xaf8] sm:$0xff]  }
 0x303   :  { %25292 = vmatpush3.bf16.msra.mxu0 %v28394_v44  ;;  %25307 = vmatprep.mubr.msk.bf16.mxu0 %vm29567_vm0, %v29566_v0  ;;  %v662_v44 = vmax.f32 %v522_v31, 0.0  ;;  %v530_v31 = vadd.f32 %v31233_v54, %v30441_v50  ;;  %v28428_v50 = vld [vmem:[%s37138_s9 + $0xb48] sm:$0xff]  }
 0x304   :  { %25293 = vmatprep.subr.bf16.mxu0 %v29566_v0 }
 0x305   :  { %25046 = vmatpush3.bf16.msra.mxu1 %v28395_v36 }
 0x306   :  { %25071 = vmatprep.subr.bf16.mxu1 %v29566_v0 }
 0x307   :  { %25294 = vmatpush3.bf16.msra.mxu0 %v28396_v4 }
 0x308   :  { %25048 = vmatmul.mubr.bf16.vlgmr.msra.gmra.mrb[68].mxu1 %v22569_v15  ;;  %25295 = vmatprep.subr.bf16.mxu0 %v29566_v0 }
 0x309   :  { %25072 = vmatpush3.bf16.msra.mxu1 %v28397_v35  ;;  %25087 = vmatprep.mubr.msk.bf16.mxu1 %vm29567_vm0, %v29566_v0  ;;  %v22571_v35 = vpack.c.bf16 %v662_v44, %v662_v44  ;;  %v28429_v44 = vld [vmem:[%s37138_s9 + $0x880] sm:$0xff]  }
 0x30a   :  { %25073 = vmatprep.subr.bf16.mxu1 %v29566_v0 }
 0x30b   :  { %25296 = vmatpush3.bf16.msra.mxu0 %v28398_v7  ;;  %v28414_v7 = vld [vmem:[%s37138_s9 + $0xad0] sm:$0xff]  }
 0x30c   :  { %25297 = vmatprep.subr.bf16.mxu0 %v29566_v0 }
 0x30d   :  { %25074 = vmatpush3.bf16.msra.mxu1 %v28399_v59  ;;  %v28415_v59 = vld [vmem:[%s37138_s9 + $0x808] sm:$0xff]  }
 0x30e   :  { %25075 = vmatprep.subr.bf16.mxu1 %v29566_v0 }
 0x30f   :  { %25298 = vmatpush3.bf16.msra.mxu0 %v28400_v29  ;;  %v28416_v29 = vld [vmem:[%s37138_s9 + $0xad8] sm:$0xff]  }
 0x310   :  { %25299 = vmatprep.subr.bf16.mxu0 %v29566_v0 }
 0x311   :  { %25076 = vmatpush3.bf16.msra.mxu1 %v28401_v8  ;;  %v28417_v8 = vld [vmem:[%s37138_s9 + $0x810] sm:$0xff]  }
 0x312   :  { %25077 = vmatprep.subr.bf16.mxu1 %v29566_v0 }
 0x313   :  { %25300 = vmatpush3.bf16.msra.mxu0 %v28402_v63  ;;  %v28418_v63 = vld [vmem:[%s37138_s9 + $0xae0] sm:$0xff]  }
 0x314   :  { %25301 = vmatprep.subr.bf16.mxu0 %v29566_v0 }
 0x315   :  { %25078 = vmatpush3.bf16.msra.mxu1 %v28403_v42  ;;  %v28419_v42 = vld [vmem:[%s37138_s9 + $0x818] sm:$0xff]  }
 0x316   :  { %25079 = vmatprep.subr.bf16.mxu1 %v29566_v0 }
 0x317   :  { %25302 = vmatpush3.bf16.msra.mxu0 %v28404_v53  ;;  %v28420_v53 = vld [vmem:[%s37138_s9 + $0xae8] sm:$0xff]  }
 0x318   :  { %25303 = vmatprep.subr.bf16.mxu0 %v29566_v0 }
 0x319   :  { %25080 = vmatpush3.bf16.msra.mxu1 %v28405_v56  ;;  %v28421_v56 = vld [vmem:[%s37138_s9 + $0x820] sm:$0xff]  }
 0x31a   :  { %25081 = vmatprep.subr.bf16.mxu1 %v29566_v0 }
 0x31b   :  { %v3340_v6 = vpop.f32.mrb[44].mxu1  ;;  %25304 = vmatpush3.bf16.msra.mxu0 %v28406_v18 }
 0x31c   :  { %v6986_v47 = vsel %vm6954_vm2, %v3340_v6, 0.0  ;;  %v24809_v46 = vpop.f32.mrb[45].mxu1  ;;  %25305 = vmatprep.subr.bf16.mxu0 %v29566_v0  ;;  %v28423_v6 = vld [vmem:[%s37138_s9 + $0x828] sm:$0xff]  }
 0x31d   :  { %v6987_v41 = vadd.f32 %v6986_v47, %v6985_v25  ;;  %v3343_v28 = vpop.f32.mrb[46].mxu1  ;;  %25082 = vmatpush3.bf16.msra.mxu1 %v28407_v2  ;;  %v31353_v25 = vpop.f32.mrb[156].mxu0 }
 0x31e   :  { %v24810_v16 = vpop.f32.mrb[47].mxu1  ;;  %25083 = vmatprep.subr.bf16.mxu1 %v29566_v0  ;;  %v25029_v36 = vpop.f32.mrb[157].mxu0 }
 0x31f   :  { %25306 = vmatpush3.bf16.msra.mxu0 %v28408_v13  ;;  %v31341_v32 = vadd.f32 %v6988_v26, %v6987_v41  ;;  %v4311_v4 = vpop.f32.mrb[158].mxu0  ;;  %v675_v26 = vmax.f32 %v573_v21, 0.0  ;;  %v28430_v36 = vld [vmem:[%s37138_s9 + $0xb50] sm:$0xff]   ;;  %v28440_v21 = vld [vmem:[%s37138_s9 + $0xb78] sm:$0xff]  }
 0x320   :  { %25331 = vmatprep.subr.bf16.mxu0 %v29566_v0  ;;  %v25030_v15 = vpop.f32.mrb[159].mxu0  ;;  %v28432_v4 = vld [vmem:[%s37138_s9 + $0xb58] sm:$0xff]  }
 0x321   :  { %25084 = vmatpush3.bf16.msra.mxu1 %v28409_v17  ;;  %v28425_v17 = vld [vmem:[%s37138_s9 + $0x830] sm:$0xff]   ;;  %v28434_v15 = vld [vmem:[%s37138_s9 + $0xb60] sm:$0xff]  }
 0x322   :  { %25308 = vmatmul.mubr.bf16.vlgmr.msra.gmra.mrb[184].mxu0 %v22582_v48  ;;  %25085 = vmatprep.subr.bf16.mxu1 %v29566_v0  ;;  %v22584_v48 = vpack.c.bf16 %v675_v26, %v675_v26 }
 0x323   :  { %25332 = vmatpush3.bf16.msra.mxu0 %v28410_v37  ;;  %25347 = vmatprep.mubr.msk.bf16.mxu0 %vm29567_vm0, %v29566_v0 }
 0x324   :  { %25333 = vmatprep.subr.bf16.mxu0 %v29566_v0 }
 0x325   :  { %25086 = vmatpush3.bf16.msra.mxu1 %v28411_v33  ;;  %v664_v33 = vmax.f32 %v530_v31, 0.0 }
 0x326   :  { %25111 = vmatprep.subr.bf16.mxu1 %v29566_v0 }
 0x327   :  { %25334 = vmatpush3.bf16.msra.mxu0 %v28412_v38  ;;  %v22573_v38 = vpack.c.bf16 %v664_v33, %v664_v33  ;;  %v28449_v33 = vld [vmem:[%s37138_s9 + $0x910] sm:$0xff]  }
 0x328   :  { %25088 = vmatmul.mubr.bf16.vlgmr.msra.gmra.mrb[72].mxu1 %v22571_v35  ;;  %25335 = vmatprep.subr.bf16.mxu0 %v29566_v0  ;;  %v28433_v35 = vld [vmem:[%s37138_s9 + $0x890] sm:$0xff]  }
 0x329   :  { %25112 = vmatpush3.bf16.msra.mxu1 %v28413_v62  ;;  %25127 = vmatprep.mubr.msk.bf16.mxu1 %vm29567_vm0, %v29566_v0  ;;  %v28431_v62 = vld [vmem:[%s37138_s9 + $0x888] sm:$0xff]  }
 0x32a   :  { %25113 = vmatprep.subr.bf16.mxu1 %v29566_v0 }
 0x32b   :  { %25336 = vmatpush3.bf16.msra.mxu0 %v28414_v7  ;;  %v28435_v7 = vld [vmem:[%s37138_s9 + $0x898] sm:$0xff]  }
 0x32c   :  { %25337 = vmatprep.subr.bf16.mxu0 %v29566_v0 }
 0x32d   :  { %25114 = vmatpush3.bf16.msra.mxu1 %v28415_v59  ;;  %v28436_v59 = vld [vmem:[%s37138_s9 + $0xb68] sm:$0xff]  }
 0x32e   :  { %25115 = vmatprep.subr.bf16.mxu1 %v29566_v0 }
 0x32f   :  { %25338 = vmatpush3.bf16.msra.mxu0 %v28416_v29  ;;  %v28437_v29 = vld [vmem:[%s37138_s9 + $0x8a0] sm:$0xff]  }
 0x330   :  { %25339 = vmatprep.subr.bf16.mxu0 %v29566_v0 }
 0x331   :  { %25116 = vmatpush3.bf16.msra.mxu1 %v28417_v8 }
 0x332   :  { %25117 = vmatprep.subr.bf16.mxu1 %v29566_v0 }
 0x333   :  { %25340 = vmatpush3.bf16.msra.mxu0 %v28418_v63 }
 0x334   :  { %25341 = vmatprep.subr.bf16.mxu0 %v29566_v0 }
 0x335   :  { %25118 = vmatpush3.bf16.msra.mxu1 %v28419_v42  ;;  %v31393_v18 = vpop.f32.mrb[160].mxu0  ;;  %v28438_v42 = vld [vmem:[%s37138_s9 + $0xb70] sm:$0xff]  }
 0x336   :  { %25119 = vmatprep.subr.bf16.mxu1 %v29566_v0  ;;  %v25069_v3 = vpop.f32.mrb[161].mxu0 }
 0x337   :  { %25342 = vmatpush3.bf16.msra.mxu0 %v28420_v53  ;;  %v4487_v2 = vpop.f32.mrb[162].mxu0 }
 0x338   :  { %25343 = vmatprep.subr.bf16.mxu0 %v29566_v0  ;;  %v25070_v49 = vpop.f32.mrb[163].mxu0 }
 0x339   :  { %25120 = vmatpush3.bf16.msra.mxu1 %v28421_v56  ;;  %v581_v56 = vadd.f32 %v31233_v54, %v30530_v55  ;;  %v6996_v55 = vsel %vm6954_vm2, %v31159_v14, 0.0  ;;  %v28442_v14 = vld [vmem:[%s37138_s9 + $0xbc0] sm:$0xff]  }
 0x33a   :  { %25121 = vmatprep.subr.bf16.mxu1 %v29566_v0 }
 0x33b   :  { %v3516_v13 = vpop.f32.mrb[48].mxu1  ;;  %25344 = vmatpush3.bf16.msra.mxu0 %v28422_v11  ;;  %v28439_v11 = vld [vmem:[%s37138_s9 + $0x8a8] sm:$0xff]   ;;  %v677_v49 = vmax.f32 %v581_v56, 0.0 }
 0x33c   :  { %v6990_v47 = vsel %vm6954_vm2, %v3516_v13, 0.0  ;;  %v24849_v46 = vpop.f32.mrb[49].mxu1  ;;  %25345 = vmatprep.subr.bf16.mxu0 %v29566_v0 }
 0x33d   :  { %v6991_v41 = vadd.f32 %v6990_v47, %v31341_v32  ;;  %v3519_v28 = vpop.f32.mrb[50].mxu1  ;;  %25122 = vmatpush3.bf16.msra.mxu1 %v28423_v6  ;;  %v28427_v32 = vld [vmem:[%s37138_s9 + $0x838] sm:$0xff]   ;;  %v538_v47 = vadd.f32 %v31233_v54, %v30455_v57  ;;  %v28444_v57 = vld [vmem:[%s37138_s9 + $0xbc8] sm:$0xff]  }
 0x33e   :  { %v24850_v16 = vpop.f32.mrb[51].mxu1  ;;  %25123 = vmatprep.subr.bf16.mxu1 %v29566_v0  ;;  %v22586_v28 = vpack.c.bf16 %v677_v49, %v677_v49  ;;  %v546_v49 = vadd.f32 %v31233_v54, %v30467_v1  ;;  %v28460_v1 = vld [vmem:[%s37138_s9 + $0xc48] sm:$0xff]  }
 0x33f   :  { %25346 = vmatpush3.bf16.msra.mxu0 %v28424_v22  ;;  %v6993_v37 = vadd.f32 %v6992_v19, %v6991_v41  ;;  %v28441_v19 = vld [vmem:[%s37138_s9 + $0x8b0] sm:$0xff]   ;;  %v666_v31 = vmax.f32 %v538_v47, 0.0  ;;  %v28445_v16 = vld [vmem:[%s37138_s9 + $0x900] sm:$0xff]  }
 0x340   :  { %25371 = vmatprep.subr.bf16.mxu0 %v29566_v0 }
 0x341   :  { %25124 = vmatpush3.bf16.msra.mxu1 %v28425_v17  ;;  %v28443_v17 = vld [vmem:[%s37138_s9 + $0x8b8] sm:$0xff]  }
 0x342   :  { %25348 = vmatmul.mubr.bf16.vlgmr.msra.gmra.mrb[188].mxu0 %v22584_v48  ;;  %25125 = vmatprep.subr.bf16.mxu1 %v29566_v0  ;;  %v28447_v48 = vld [vmem:[%s37138_s9 + $0x908] sm:$0xff]  }
 0x343   :  { %25372 = vmatpush3.bf16.msra.mxu0 %v28426_v40  ;;  %25387 = vmatprep.mubr.msk.bf16.mxu0 %vm29567_vm0, %v29566_v0  ;;  %v22575_v40 = vpack.c.bf16 %v666_v31, %v666_v31  ;;  %v28467_v31 = vld [vmem:[%s37138_s9 + $0x998] sm:$0xff]  }
 0x344   :  { %25373 = vmatprep.subr.bf16.mxu0 %v29566_v0 }
 0x345   :  { %25126 = vmatpush3.bf16.msra.mxu1 %v28427_v32  ;;  %v28448_v32 = vld [vmem:[%s37138_s9 + $0xbd8] sm:$0xff]  }
 0x346   :  { %25151 = vmatprep.subr.bf16.mxu1 %v29566_v0 }
 0x347   :  { %25374 = vmatpush3.bf16.msra.mxu0 %v28428_v50  ;;  %v28450_v50 = vld [vmem:[%s37138_s9 + $0xbe0] sm:$0xff]  }
 0x348   :  { %25128 = vmatmul.mubr.bf16.vlgmr.msra.gmra.mrb[76].mxu1 %v22573_v38  ;;  %25375 = vmatprep.subr.bf16.mxu0 %v29566_v0  ;;  %v28452_v38 = vld [vmem:[%s37138_s9 + $0xbe8] sm:$0xff]  }
 0x349   :  { %25152 = vmatpush3.bf16.msra.mxu1 %v28429_v44  ;;  %25167 = vmatprep.mubr.msk.bf16.mxu1 %vm29567_vm0, %v29566_v0  ;;  %v28451_v44 = vld [vmem:[%s37138_s9 + $0x918] sm:$0xff]  }
 0x34a   :  { %25153 = vmatprep.subr.bf16.mxu1 %v29566_v0 }
 0x34b   :  { %25376 = vmatpush3.bf16.msra.mxu0 %v28430_v36  ;;  %v28453_v36 = vld [vmem:[%s37138_s9 + $0x920] sm:$0xff]  }
 0x34c   :  { %25377 = vmatprep.subr.bf16.mxu0 %v29566_v0 }
 0x34d   :  { %25154 = vmatpush3.bf16.msra.mxu1 %v28431_v62 }
 0x34e   :  { %25155 = vmatprep.subr.bf16.mxu1 %v29566_v0 }
 0x34f   :  { %25378 = vmatpush3.bf16.msra.mxu0 %v28432_v4 }
 0x350   :  { %25379 = vmatprep.subr.bf16.mxu0 %v29566_v0 }
 0x351   :  { %25156 = vmatpush3.bf16.msra.mxu1 %v28433_v35  ;;  %v28454_v35 = vld [vmem:[%s37138_s9 + $0xbf0] sm:$0xff]  }
 0x352   :  { %25157 = vmatprep.subr.bf16.mxu1 %v29566_v0 }
 0x353   :  { %25380 = vmatpush3.bf16.msra.mxu0 %v28434_v15 }
 0x354   :  { %25381 = vmatprep.subr.bf16.mxu0 %v29566_v0 }
 0x355   :  { %25158 = vmatpush3.bf16.msra.mxu1 %v28435_v7  ;;  %v31471_v8 = vpop.f32.mrb[164].mxu0  ;;  %v589_v7 = vadd.f32 %v31233_v54, %v30544_v5  ;;  %v7000_v5 = vsel %vm6954_vm2, %v31241_v23, 0.0  ;;  %v28458_v23 = vld [vmem:[%s37138_s9 + $0xc40] sm:$0xff]  }
 0x356   :  { %25159 = vmatprep.subr.bf16.mxu1 %v29566_v0  ;;  %v25109_v63 = vpop.f32.mrb[165].mxu0 }
 0x357   :  { %25382 = vmatpush3.bf16.msra.mxu0 %v28436_v59  ;;  %v4663_v53 = vpop.f32.mrb[166].mxu0 }
 0x358   :  { %25383 = vmatprep.subr.bf16.mxu0 %v29566_v0  ;;  %v25110_v3 = vpop.f32.mrb[167].mxu0  ;;  %v679_v53 = vmax.f32 %v589_v7, 0.0 }
 0x359   :  { %25160 = vmatpush3.bf16.msra.mxu1 %v28437_v29  ;;  %v28455_v29 = vld [vmem:[%s37138_s9 + $0x928] sm:$0xff]  }
 0x35a   :  { %25161 = vmatprep.subr.bf16.mxu1 %v29566_v0 }
 0x35b   :  { %v3692_v2 = vpop.f32.mrb[52].mxu1  ;;  %25384 = vmatpush3.bf16.msra.mxu0 %v28438_v42  ;;  %v28456_v42 = vld [vmem:[%s37138_s9 + $0xbf8] sm:$0xff]  }
 0x35c   :  { %v6994_v6 = vsel %vm6954_vm2, %v3692_v2, 0.0  ;;  %v24889_v13 = vpop.f32.mrb[53].mxu1  ;;  %25385 = vmatprep.subr.bf16.mxu0 %v29566_v0 }
 0x35d   :  { %v6995_v22 = vadd.f32 %v6994_v6, %v6993_v37  ;;  %v3695_v26 = vpop.f32.mrb[54].mxu1  ;;  %25162 = vmatpush3.bf16.msra.mxu1 %v28439_v11  ;;  %v28446_v37 = vld [vmem:[%s37138_s9 + $0xbd0] sm:$0xff]   ;;  %v22588_v13 = vpack.c.bf16 %v679_v53, %v679_v53 }
 0x35e   :  { %v24890_v46 = vpop.f32.mrb[55].mxu1  ;;  %25163 = vmatprep.subr.bf16.mxu1 %v29566_v0  ;;  %v668_v26 = vmax.f32 %v546_v49, 0.0  ;;  %v28479_v49 = vld [vmem:[%s37138_s9 + $0xa08] sm:$0xff]  }
 0x35f   :  { %25386 = vmatpush3.bf16.msra.mxu0 %v28440_v21  ;;  %v6997_v41 = vadd.f32 %v6996_v55, %v6995_v22  ;;  %v28457_v21 = vld [vmem:[%s37138_s9 + $0x930] sm:$0xff]   ;;  %v28459_v22 = vld [vmem:[%s37138_s9 + $0x938] sm:$0xff]  }
 0x360   :  { %25411 = vmatprep.subr.bf16.mxu0 %v29566_v0  ;;  %v22577_v47 = vpack.c.bf16 %v668_v26, %v668_v26  ;;  %v28462_v46 = vld [vmem:[%s37138_s9 + $0xc50] sm:$0xff]   ;;  %v28485_v26 = vld [vmem:[%s37138_s9 + $0xa20] sm:$0xff]  }
 0x361   :  { %25164 = vmatpush3.bf16.msra.mxu1 %v28441_v19  ;;  %v28461_v19 = vld [vmem:[%s37138_s9 + $0x980] sm:$0xff]  }
 0x362   :  { %25388 = vmatmul.mubr.bf16.vlgmr.msra.gmra.mrb[192].mxu0 %v22586_v28  ;;  %25165 = vmatprep.subr.bf16.mxu1 %v29566_v0  ;;  %v28465_v28 = vld [vmem:[%s37138_s9 + $0x990] sm:$0xff]  }
 0x363   :  { %25412 = vmatpush3.bf16.msra.mxu0 %v28442_v14  ;;  %25427 = vmatprep.mubr.msk.bf16.mxu0 %vm29567_vm0, %v29566_v0  ;;  %v28463_v14 = vld [vmem:[%s37138_s9 + $0x988] sm:$0xff]  }
 0x364   :  { %25413 = vmatprep.subr.bf16.mxu0 %v29566_v0 }
 0x365   :  { %25166 = vmatpush3.bf16.msra.mxu1 %v28443_v17  ;;  %v28466_v17 = vld [vmem:[%s37138_s9 + $0xc60] sm:$0xff]  }
 0x366   :  { %25191 = vmatprep.subr.bf16.mxu1 %v29566_v0 }
 0x367   :  { %25414 = vmatpush3.bf16.msra.mxu0 %v28444_v57  ;;  %v28468_v57 = vld [vmem:[%s37138_s9 + $0xc68] sm:$0xff]  }
 0x368   :  { %25168 = vmatmul.mubr.bf16.vlgmr.msra.gmra.mrb[80].mxu1 %v22575_v40  ;;  %25415 = vmatprep.subr.bf16.mxu0 %v29566_v0 }
 0x369   :  { %25192 = vmatpush3.bf16.msra.mxu1 %v28445_v16  ;;  %25207 = vmatprep.mubr.msk.bf16.mxu1 %vm29567_vm0, %v29566_v0  ;;  %v28469_v16 = vld [vmem:[%s37138_s9 + $0x9a0] sm:$0xff]  }
 0x36a   :  { %25193 = vmatprep.subr.bf16.mxu1 %v29566_v0 }
 0x36b   :  { %25416 = vmatpush3.bf16.msra.mxu0 %v28446_v37 }
 0x36c   :  { %25417 = vmatprep.subr.bf16.mxu0 %v29566_v0 }
 0x36d   :  { %25194 = vmatpush3.bf16.msra.mxu1 %v28447_v48  ;;  %v28470_v48 = vld [vmem:[%s37138_s9 + $0xc70] sm:$0xff]  }
 0x36e   :  { %25195 = vmatprep.subr.bf16.mxu1 %v29566_v0 }
 0x36f   :  { %25418 = vmatpush3.bf16.msra.mxu0 %v28448_v32 }
 0x370   :  { %25419 = vmatprep.subr.bf16.mxu0 %v29566_v0 }
 0x371   :  { %25196 = vmatpush3.bf16.msra.mxu1 %v28449_v33  ;;  %v597_v33 = vadd.f32 %v31233_v54, %v30556_v52  ;;  %v7004_v52 = vsel %vm6954_vm2, %v31316_v43, 0.0  ;;  %v28474_v43 = vld [vmem:[%s37138_s9 + $0xcc0] sm:$0xff]  }
 0x372   :  { %25197 = vmatprep.subr.bf16.mxu1 %v29566_v0 }
 0x373   :  { %25420 = vmatpush3.bf16.msra.mxu0 %v28450_v50 }
 0x374   :  { %25421 = vmatprep.subr.bf16.mxu0 %v29566_v0 }
 0x375   :  { %25198 = vmatpush3.bf16.msra.mxu1 %v28451_v44  ;;  %v31548_v62 = vpop.f32.mrb[168].mxu0  ;;  %v28471_v44 = vld [vmem:[%s37138_s9 + $0x9a8] sm:$0xff]  }
 0x376   :  { %25199 = vmatprep.subr.bf16.mxu1 %v29566_v0  ;;  %v25149_v4 = vpop.f32.mrb[169].mxu0 }
 0x377   :  { %25422 = vmatpush3.bf16.msra.mxu0 %v28452_v38  ;;  %v4839_v15 = vpop.f32.mrb[170].mxu0  ;;  %v681_v4 = vmax.f32 %v597_v33, 0.0  ;;  %v562_v33 = vadd.f32 %v31233_v54, %v30491_v20  ;;  %v28491_v20 = vld [vmem:[%s37138_s9 + $0xa38] sm:$0xff]  }
 0x378   :  { %25423 = vmatprep.subr.bf16.mxu0 %v29566_v0  ;;  %v25150_v59 = vpop.f32.mrb[171].mxu0 }
 0x379   :  { %25200 = vmatpush3.bf16.msra.mxu1 %v28453_v36  ;;  %v28472_v36 = vld [vmem:[%s37138_s9 + $0xc78] sm:$0xff]  }
 0x37a   :  { %25201 = vmatprep.subr.bf16.mxu1 %v29566_v0 }
 0x37b   :  { %v3868_v63 = vpop.f32.mrb[56].mxu1  ;;  %25424 = vmatpush3.bf16.msra.mxu0 %v28454_v35 }
 0x37c   :  { %v6998_v56 = vsel %vm6954_vm2, %v3868_v63, 0.0  ;;  %v24929_v3 = vpop.f32.mrb[57].mxu1  ;;  %25425 = vmatprep.subr.bf16.mxu0 %v29566_v0  ;;  %v554_v63 = vadd.f32 %v31233_v54, %v30479_v10  ;;  %v28476_v10 = vld [vmem:[%s37138_s9 + $0xcc8] sm:$0xff]  }
 0x37d   :  { %v6999_v11 = vadd.f32 %v6998_v56, %v6997_v41  ;;  %v3871_v2 = vpop.f32.mrb[58].mxu1  ;;  %25202 = vmatpush3.bf16.msra.mxu1 %v28455_v29  ;;  %v28464_v41 = vld [vmem:[%s37138_s9 + $0xc58] sm:$0xff]   ;;  %v28473_v29 = vld [vmem:[%s37138_s9 + $0x9b0] sm:$0xff]  }
 0x37e   :  { %v24930_v55 = vpop.f32.mrb[59].mxu1  ;;  %25203 = vmatprep.subr.bf16.mxu1 %v29566_v0  ;;  %v28475_v56 = vld [vmem:[%s37138_s9 + $0x9b8] sm:$0xff]   ;;  %v670_v3 = vmax.f32 %v554_v63, 0.0  ;;  %v28497_v63 = vld [vmem:[%s37138_s9 + $0xa90] sm:$0xff]  }
 0x37f   :  { %25426 = vmatpush3.bf16.msra.mxu0 %v28456_v42  ;;  %v7001_v6 = vadd.f32 %v7000_v5, %v6999_v11  ;;  %v22590_v5 = vpack.c.bf16 %v681_v4, %v681_v4  ;;  %v28477_v11 = vld [vmem:[%s37138_s9 + $0xa00] sm:$0xff]   ;;  %v28480_v55 = vld [vmem:[%s37138_s9 + $0xcd8] sm:$0xff]  }
 0x380   :  { %25451 = vmatprep.subr.bf16.mxu0 %v29566_v0  ;;  %v22579_v2 = vpack.c.bf16 %v670_v3, %v670_v3 }
 0x381   :  { %25204 = vmatpush3.bf16.msra.mxu1 %v28457_v21  ;;  %v28478_v21 = vld [vmem:[%s37138_s9 + $0xcd0] sm:$0xff]  }
 0x382   :  { %25428 = vmatmul.mubr.bf16.vlgmr.msra.gmra.mrb[196].mxu0 %v22588_v13  ;;  %25205 = vmatprep.subr.bf16.mxu1 %v29566_v0  ;;  %v28483_v13 = vld [vmem:[%s37138_s9 + $0xa18] sm:$0xff]  }
 0x383   :  { %25452 = vmatpush3.bf16.msra.mxu0 %v28458_v23  ;;  %25467 = vmatprep.mubr.msk.bf16.mxu0 %vm29567_vm0, %v29566_v0  ;;  %v28481_v23 = vld [vmem:[%s37138_s9 + $0xa10] sm:$0xff]  }
 0x384   :  { %25453 = vmatprep.subr.bf16.mxu0 %v29566_v0 }
 0x385   :  { %25206 = vmatpush3.bf16.msra.mxu1 %v28459_v22  ;;  %v28484_v22 = vld [vmem:[%s37138_s9 + $0xce8] sm:$0xff]  }
 0x386   :  { %25231 = vmatprep.subr.bf16.mxu1 %v29566_v0 }
 0x387   :  { %25454 = vmatpush3.bf16.msra.mxu0 %v28460_v1 }
 0x388   :  { %25208 = vmatmul.mubr.bf16.vlgmr.msra.gmra.mrb[84].mxu1 %v22577_v47  ;;  %25455 = vmatprep.subr.bf16.mxu0 %v29566_v0  ;;  %v28486_v47 = vld [vmem:[%s37138_s9 + $0xcf0] sm:$0xff]  }
 0x389   :  { %25232 = vmatpush3.bf16.msra.mxu1 %v28461_v19  ;;  %25247 = vmatprep.mubr.msk.bf16.mxu1 %vm29567_vm0, %v29566_v0 }
 0x38a   :  { %25233 = vmatprep.subr.bf16.mxu1 %v29566_v0 }
 0x38b   :  { %25456 = vmatpush3.bf16.msra.mxu0 %v28462_v46 }
 0x38c   :  { %25457 = vmatprep.subr.bf16.mxu0 %v29566_v0 }
 0x38d   :  { %25234 = vmatpush3.bf16.msra.mxu1 %v28463_v14  ;;  %v605_v14 = vadd.f32 %v31233_v54, %v30570_v61 }
 0x38e   :  { %25235 = vmatprep.subr.bf16.mxu1 %v29566_v0 }
 0x38f   :  { %25458 = vmatpush3.bf16.msra.mxu0 %v28464_v41 }
 0x390   :  { %25459 = vmatprep.subr.bf16.mxu0 %v29566_v0 }
 0x391   :  { %25236 = vmatpush3.bf16.msra.mxu1 %v28465_v28  ;;  %v28487_v28 = vld [vmem:[%s37138_s9 + $0xa28] sm:$0xff]  }
 0x392   :  { %25237 = vmatprep.subr.bf16.mxu1 %v29566_v0 }
 0x393   :  { %25460 = vmatpush3.bf16.msra.mxu0 %v28466_v17 }
 0x394   :  { %25461 = vmatprep.subr.bf16.mxu0 %v29566_v0 }
 0x395   :  { %25238 = vmatpush3.bf16.msra.mxu1 %v28467_v31  ;;  %v31625_v40 = vpop.f32.mrb[172].mxu0  ;;  %v28488_v31 = vld [vmem:[%s37138_s9 + $0xcf8] sm:$0xff]  }
 0x396   :  { %25239 = vmatprep.subr.bf16.mxu1 %v29566_v0  ;;  %v25189_v37 = vpop.f32.mrb[173].mxu0 }
 0x397   :  { %25462 = vmatpush3.bf16.msra.mxu0 %v28468_v57  ;;  %v5015_v32 = vpop.f32.mrb[174].mxu0  ;;  %v683_v57 = vmax.f32 %v605_v14, 0.0 }
 0x398   :  { %25463 = vmatprep.subr.bf16.mxu0 %v29566_v0  ;;  %v25190_v50 = vpop.f32.mrb[175].mxu0  ;;  %v28489_v32 = vld [vmem:[%s37138_s9 + $0xa30] sm:$0xff]  }
 0x399   :  { %25240 = vmatpush3.bf16.msra.mxu1 %v28469_v16  ;;  %v7008_v50 = vsel %vm6954_vm2, %v31353_v25, 0.0  ;;  %v22592_v4 = vpack.c.bf16 %v683_v57, %v683_v57  ;;  %v28492_v25 = vld [vmem:[%s37138_s9 + $0xd48] sm:$0xff]   ;;  %v28509_v57 = vld [vmem:[%s37138_s9 + $0xb00] sm:$0xff]  }
 0x39a   :  { %25241 = vmatprep.subr.bf16.mxu1 %v29566_v0 }
 0x39b   :  { %v4044_v38 = vpop.f32.mrb[60].mxu1  ;;  %25464 = vmatpush3.bf16.msra.mxu0 %v28470_v48 }
 0x39c   :  { %v7002_v35 = vsel %vm6954_vm2, %v4044_v38, 0.0  ;;  %v24969_v15 = vpop.f32.mrb[61].mxu1  ;;  %25465 = vmatprep.subr.bf16.mxu0 %v29566_v0  ;;  %v28490_v38 = vld [vmem:[%s37138_s9 + $0xd40] sm:$0xff]  }
 0x39d   :  { %v7003_v7 = vadd.f32 %v7002_v35, %v7001_v6  ;;  %v4047_v59 = vpop.f32.mrb[62].mxu1  ;;  %25242 = vmatpush3.bf16.msra.mxu1 %v28471_v44  ;;  %v28482_v6 = vld [vmem:[%s37138_s9 + $0xce0] sm:$0xff]  }
 0x39e   :  { %v24970_v42 = vpop.f32.mrb[63].mxu1  ;;  %25243 = vmatprep.subr.bf16.mxu1 %v29566_v0  ;;  %v28493_v35 = vld [vmem:[%s37138_s9 + $0xa80] sm:$0xff]   ;;  %v28495_v59 = vld [vmem:[%s37138_s9 + $0xa88] sm:$0xff]  }
 0x39f   :  { %25466 = vmatpush3.bf16.msra.mxu0 %v28472_v36  ;;  %v7005_v53 = vadd.f32 %v7004_v52, %v7003_v7  ;;  %v672_v52 = vmax.f32 %v562_v33, 0.0  ;;  %v28494_v7 = vld [vmem:[%s37138_s9 + $0xd50] sm:$0xff]   ;;  %v28498_v42 = vld [vmem:[%s37138_s9 + $0xd60] sm:$0xff]  }
 0x3a0   :  { %25491 = vmatprep.subr.bf16.mxu0 %v29566_v0  ;;  %v28514_v33 = vld [vmem:[%s37138_s9 + $0xde0] sm:$0xff]  }
 0x3a1   :  { %25244 = vmatpush3.bf16.msra.mxu1 %v28473_v29  ;;  %v22581_v15 = vpack.c.bf16 %v672_v52, %v672_v52  ;;  %v28496_v29 = vld [vmem:[%s37138_s9 + $0xd58] sm:$0xff]   ;;  %v28518_v52 = vld [vmem:[%s37138_s9 + $0xdf0] sm:$0xff]  }
 0x3a2   :  { %25468 = vmatmul.mubr.bf16.vlgmr.msra.gmra.mrb[200].mxu0 %v22590_v5  ;;  %25245 = vmatprep.subr.bf16.mxu1 %v29566_v0 }
 0x3a3   :  { %25492 = vmatpush3.bf16.msra.mxu0 %v28474_v43  ;;  %25507 = vmatprep.mubr.msk.bf16.mxu0 %vm29567_vm0, %v29566_v0  ;;  %v28499_v43 = vld [vmem:[%s37138_s9 + $0xa98] sm:$0xff]  }
 0x3a4   :  { %25493 = vmatprep.subr.bf16.mxu0 %v29566_v0 }
 0x3a5   :  { %25246 = vmatpush3.bf16.msra.mxu1 %v28475_v56  ;;  %v28501_v56 = vld [vmem:[%s37138_s9 + $0xaa0] sm:$0xff]  }
 0x3a6   :  { %25271 = vmatprep.subr.bf16.mxu1 %v29566_v0 }
 0x3a7   :  { %25494 = vmatpush3.bf16.msra.mxu0 %v28476_v10 }
 0x3a8   :  { %25248 = vmatmul.mubr.bf16.vlgmr.msra.gmra.mrb[88].mxu1 %v22579_v2  ;;  %25495 = vmatprep.subr.bf16.mxu0 %v29566_v0  ;;  %v613_v2 = vadd.f32 %v31233_v54, %v30582_v39 }
 0x3a9   :  { %25272 = vmatpush3.bf16.msra.mxu1 %v28477_v11  ;;  %25287 = vmatprep.mubr.msk.bf16.mxu1 %vm29567_vm0, %v29566_v0  ;;  %v28502_v11 = vld [vmem:[%s37138_s9 + $0xd70] sm:$0xff]  }
 0x3aa   :  { %25273 = vmatprep.subr.bf16.mxu1 %v29566_v0 }
 0x3ab   :  { %25496 = vmatpush3.bf16.msra.mxu0 %v28478_v21 }
 0x3ac   :  { %25497 = vmatprep.subr.bf16.mxu0 %v29566_v0 }
 0x3ad   :  { %25274 = vmatpush3.bf16.msra.mxu1 %v28479_v49  ;;  %v28503_v49 = vld [vmem:[%s37138_s9 + $0xaa8] sm:$0xff]  }
 0x3ae   :  { %25275 = vmatprep.subr.bf16.mxu1 %v29566_v0 }
 0x3af   :  { %25498 = vmatpush3.bf16.msra.mxu0 %v28480_v55 }
 0x3b0   :  { %25499 = vmatprep.subr.bf16.mxu0 %v29566_v0 }
 0x3b1   :  { %25276 = vmatpush3.bf16.msra.mxu1 %v28481_v23  ;;  %v28504_v23 = vld [vmem:[%s37138_s9 + $0xd78] sm:$0xff]  }
 0x3b2   :  { %25277 = vmatprep.subr.bf16.mxu1 %v29566_v0 }
 0x3b3   :  { %25500 = vmatpush3.bf16.msra.mxu0 %v28482_v6  ;;  %v685_v6 = vmax.f32 %v613_v2, 0.0 }
 0x3b4   :  { %25501 = vmatprep.subr.bf16.mxu0 %v29566_v0 }
 0x3b5   :  { %25278 = vmatpush3.bf16.msra.mxu1 %v28483_v13  ;;  %v31702_v1 = vpop.f32.mrb[176].mxu0 }
 0x3b6   :  { %25279 = vmatprep.subr.bf16.mxu1 %v29566_v0  ;;  %v25229_v19 = vpop.f32.mrb[177].mxu0 }
 0x3b7   :  { %25502 = vmatpush3.bf16.msra.mxu0 %v28484_v22  ;;  %v5191_v46 = vpop.f32.mrb[178].mxu0  ;;  %v31803_v19 = vld [vmem:[%s37139_s4] ss:$0 sm:$0xff] }
 0x3b8   :  { %25503 = vmatprep.subr.bf16.mxu0 %v29566_v0  ;;  %v25230_v41 = vpop.f32.mrb[179].mxu0  ;;  %v7012_v46 = vsel %vm6954_vm2, %v31393_v18, 0.0  ;;  %v28508_v18 = vld [vmem:[%s37138_s9 + $0xdc8] sm:$0xff]  }
 0x3b9   :  { %25280 = vmatpush3.bf16.msra.mxu1 %v28485_v26  ;;  %v28505_v26 = vld [vmem:[%s37138_s9 + $0xab0] sm:$0xff]   ;;  %v28506_v41 = vld [vmem:[%s37138_s9 + $0xdc0] sm:$0xff]  }
 0x3ba   :  { %25281 = vmatprep.subr.bf16.mxu1 %v29566_v0 }
 0x3bb   :  { %v4220_v17 = vpop.f32.mrb[64].mxu1  ;;  %25504 = vmatpush3.bf16.msra.mxu0 %v28486_v47  ;;  %v570_v47 = vadd.f32 %v31803_v19, %v30505_v30  ;;  %v28507_v30 = vld [vmem:[%s37138_s9 + $0xab8] sm:$0xff]  }
 0x3bc   :  { %v7006_v16 = vsel %vm6954_vm2, %v4220_v17, 0.0  ;;  %v25009_v61 = vpop.f32.mrb[65].mxu1  ;;  %25505 = vmatprep.subr.bf16.mxu0 %v29566_v0  ;;  %v22594_v17 = vpack.c.bf16 %v685_v6, %v685_v6  ;;  %v28526_v6 = vld [vmem:[%s37138_s9 + $0xe50] sm:$0xff]  }
 0x3bd   :  { %v7007_v37 = vadd.f32 %v7006_v16, %v7005_v53  ;;  %v4223_v48 = vpop.f32.mrb[66].mxu1  ;;  %25282 = vmatpush3.bf16.msra.mxu1 %v28487_v28  ;;  %v28500_v53 = vld [vmem:[%s37138_s9 + $0xd68] sm:$0xff]   ;;  %v28510_v61 = vld [vmem:[%s37138_s9 + $0xdd0] sm:$0xff]  }
 0x3be   :  { %v25010_v44 = vpop.f32.mrb[67].mxu1  ;;  %25283 = vmatprep.subr.bf16.mxu1 %v29566_v0  ;;  %v28512_v48 = vld [vmem:[%s37138_s9 + $0xdd8] sm:$0xff]  }
 0x3bf   :  { %25506 = vmatpush3.bf16.msra.mxu0 %v28488_v31  ;;  %v7009_v36 = vadd.f32 %v7008_v50, %v7007_v37  ;;  %v674_v31 = vmax.f32 %v570_v47, 0.0  ;;  %v28511_v37 = vld [vmem:[%s37138_s9 + $0xb08] sm:$0xff]   ;;  %v28515_v50 = vld [vmem:[%s37138_s9 + $0xb18] sm:$0xff]  }
 0x3c0   :  { %25531 = vmatprep.subr.bf16.mxu0 %v29566_v0  ;;  %v28516_v44 = vld [vmem:[%s37138_s9 + $0xde8] sm:$0xff]  }
 0x3c1   :  { %25284 = vmatpush3.bf16.msra.mxu1 %v28489_v32  ;;  %v22583_v16 = vpack.c.bf16 %v674_v31, %v674_v31  ;;  %v28513_v32 = vld [vmem:[%s37138_s9 + $0xb10] sm:$0xff]   ;;  %v28532_v47 = vld [vmem:[%s37138_s9 + $0xe68] sm:$0xff]  }
 0x3c2   :  { %25508 = vmatmul.mubr.bf16.vlgmr.msra.gmra.mrb[204].mxu0 %v22592_v4  ;;  %25285 = vmatprep.subr.bf16.mxu1 %v29566_v0 }
 0x3c3   :  { %25532 = vmatpush3.bf16.msra.mxu0 %v28490_v38  ;;  %25547 = vmatprep.mubr.msk.bf16.mxu0 %vm29567_vm0, %v29566_v0 }
 0x3c4   :  { %25533 = vmatprep.subr.bf16.mxu0 %v29566_v0 }
 0x3c5   :  { %25286 = vmatpush3.bf16.msra.mxu1 %v28491_v20 }
 0x3c6   :  { %25311 = vmatprep.subr.bf16.mxu1 %v29566_v0 }
 0x3c7   :  { %25534 = vmatpush3.bf16.msra.mxu0 %v28492_v25  ;;  %v621_v25 = vadd.f32 %v31803_v19, %v30594_v24 }
 0x3c8   :  { %25288 = vmatmul.mubr.bf16.vlgmr.msra.gmra.mrb[92].mxu1 %v22581_v15  ;;  %25535 = vmatprep.subr.bf16.mxu0 %v29566_v0  ;;  %v28519_v15 = vld [vmem:[%s37138_s9 + $0xb28] sm:$0xff]  }
 0x3c9   :  { %25312 = vmatpush3.bf16.msra.mxu1 %v28493_v35  ;;  %25327 = vmatprep.mubr.msk.bf16.mxu1 %vm29567_vm0, %v29566_v0 }
 0x3ca   :  { %25313 = vmatprep.subr.bf16.mxu1 %v29566_v0 }
 0x3cb   :  { %25536 = vmatpush3.bf16.msra.mxu0 %v28494_v7 }
 0x3cc   :  { %25537 = vmatprep.subr.bf16.mxu0 %v29566_v0 }
 0x3cd   :  { %25314 = vmatpush3.bf16.msra.mxu1 %v28495_v59  ;;  %v28520_v59 = vld [vmem:[%s37138_s9 + $0xdf8] sm:$0xff]  }
 0x3ce   :  { %25315 = vmatprep.subr.bf16.mxu1 %v29566_v0 }
 0x3cf   :  { %25538 = vmatpush3.bf16.msra.mxu0 %v28496_v29  ;;  %v687_v29 = vmax.f32 %v621_v25, 0.0 }
 0x3d0   :  { %25539 = vmatprep.subr.bf16.mxu0 %v29566_v0 }
 0x3d1   :  { %25316 = vmatpush3.bf16.msra.mxu1 %v28497_v63 }
 0x3d2   :  { %25317 = vmatprep.subr.bf16.mxu1 %v29566_v0 }
 0x3d3   :  { %25540 = vmatpush3.bf16.msra.mxu0 %v28498_v42 }
 0x3d4   :  { %25541 = vmatprep.subr.bf16.mxu0 %v29566_v0 }
 0x3d5   :  { %v31776_v5 = vpop.f32.mrb[180].mxu0  ;;  %25318 = vmatpush3.bf16.msra.mxu1 %v28499_v43 }
 0x3d6   :  { %v25269_v3 = vpop.f32.mrb[181].mxu0  ;;  %25319 = vmatprep.subr.bf16.mxu1 %v29566_v0 }
 0x3d7   :  { %v5367_v10 = vpop.f32.mrb[182].mxu0  ;;  %25542 = vmatpush3.bf16.msra.mxu0 %v28500_v53  ;;  %v28521_v53 = vld [vmem:[%s37138_s9 + $0xb30] sm:$0xff]   ;;  %v7016_v3 = vsel %vm6954_vm2, %v31471_v8, 0.0  ;;  %v28524_v8 = vld [vmem:[%s37138_s9 + $0xe48] sm:$0xff]  }
 0x3d8   :  { %v25270_v21 = vpop.f32.mrb[183].mxu0  ;;  %25543 = vmatprep.subr.bf16.mxu0 %v29566_v0 }
 0x3d9   :  { %25320 = vmatpush3.bf16.msra.mxu1 %v28501_v56  ;;  %v578_v56 = vadd.f32 %v31803_v19, %v30524_v51  ;;  %v22596_v21 = vpack.c.bf16 %v687_v29, %v687_v29  ;;  %v28523_v51 = vld [vmem:[%s37138_s9 + $0xb38] sm:$0xff]   ;;  %v28543_v29 = vld [vmem:[%s37138_s9 + $0xc20] sm:$0xff]  }
 0x3da   :  { %25321 = vmatprep.subr.bf16.mxu1 %v29566_v0 }
 0x3db   :  { %v4396_v55 = vpop.f32.mrb[68].mxu1  ;;  %25544 = vmatpush3.bf16.msra.mxu0 %v28502_v11  ;;  %v28522_v11 = vld [vmem:[%s37138_s9 + $0xe40] sm:$0xff]  }
 0x3dc   :  { %v7010_v13 = vsel %vm6954_vm2, %v4396_v55, 0.0  ;;  %v25049_v39 = vpop.f32.mrb[69].mxu1  ;;  %25545 = vmatprep.subr.bf16.mxu0 %v29566_v0  ;;  %v28525_v55 = vld [vmem:[%s37138_s9 + $0xb80] sm:$0xff]  }
 0x3dd   :  { %v7011_v54 = vadd.f32 %v7010_v13, %v7009_v36  ;;  %v4399_v22 = vpop.f32.mrb[70].mxu1  ;;  %25322 = vmatpush3.bf16.msra.mxu1 %v28503_v49  ;;  %v28517_v36 = vld [vmem:[%s37138_s9 + $0xb20] sm:$0xff]   ;;  %v676_v49 = vmax.f32 %v578_v56, 0.0  ;;  %v28527_v13 = vld [vmem:[%s37138_s9 + $0xb88] sm:$0xff]   ;;  %v28528_v39 = vld [vmem:[%s37138_s9 + $0xe58] sm:$0xff]  }
 0x3de   :  { %v25050_v14 = vpop.f32.mrb[71].mxu1  ;;  %25323 = vmatprep.subr.bf16.mxu1 %v29566_v0  ;;  %v28530_v22 = vld [vmem:[%s37138_s9 + $0xe60] sm:$0xff]  }
 0x3df   :  { %25546 = vmatpush3.bf16.msra.mxu0 %v28504_v23  ;;  %v7013_v28 = vadd.f32 %v7012_v46, %v7011_v54  ;;  %v22585_v23 = vpack.c.bf16 %v676_v49, %v676_v49  ;;  %v28529_v54 = vld [vmem:[%s37138_s9 + $0xb90] sm:$0xff]   ;;  %v28533_v14 = vld [vmem:[%s37138_s9 + $0xba0] sm:$0xff]  }
 0x3e0   :  { %25571 = vmatprep.subr.bf16.mxu0 %v29566_v0 }
 0x3e1   :  { %25324 = vmatpush3.bf16.msra.mxu1 %v28505_v26  ;;  %v28531_v26 = vld [vmem:[%s37138_s9 + $0xb98] sm:$0xff]  }
 0x3e2   :  { %25548 = vmatmul.mubr.bf16.vlgmr.msra.gmra.mrb[208].mxu0 %v22594_v17  ;;  %25325 = vmatprep.subr.bf16.mxu1 %v29566_v0  ;;  %v28534_v17 = vld [vmem:[%s37138_s9 + $0xe70] sm:$0xff]  }
 0x3e3   :  { %25572 = vmatpush3.bf16.msra.mxu0 %v28506_v41  ;;  %25587 = vmatprep.mubr.msk.bf16.mxu0 %vm29567_vm0, %v29566_v0 }
 0x3e4   :  { %25573 = vmatprep.subr.bf16.mxu0 %v29566_v0 }
 0x3e5   :  { %25326 = vmatpush3.bf16.msra.mxu1 %v28507_v30  ;;  %v629_v30 = vadd.f32 %v31803_v19, %v30613_v9 }
 0x3e6   :  { %25351 = vmatprep.subr.bf16.mxu1 %v29566_v0 }
 0x3e7   :  { %25574 = vmatpush3.bf16.msra.mxu0 %v28508_v18  ;;  %v28535_v18 = vld [vmem:[%s37138_s9 + $0xba8] sm:$0xff]  }
 0x3e8   :  { %25328 = vmatmul.mubr.bf16.vlgmr.msra.gmra.mrb[96].mxu1 %v22583_v16  ;;  %25575 = vmatprep.subr.bf16.mxu0 %v29566_v0  ;;  %v28536_v16 = vld [vmem:[%s37138_s9 + $0xe78] sm:$0xff]  }
 0x3e9   :  { %25352 = vmatpush3.bf16.msra.mxu1 %v28509_v57  ;;  %25367 = vmatprep.mubr.msk.bf16.mxu1 %vm29567_vm0, %v29566_v0 }
 0x3ea   :  { %25353 = vmatprep.subr.bf16.mxu1 %v29566_v0 }
 0x3eb   :  { %25576 = vmatpush3.bf16.msra.mxu0 %v28510_v61  ;;  %v689_v61 = vmax.f32 %v629_v30, 0.0 }
 0x3ec   :  { %25577 = vmatprep.subr.bf16.mxu0 %v29566_v0 }
 0x3ed   :  { %25354 = vmatpush3.bf16.msra.mxu1 %v28511_v37 }
 0x3ee   :  { %25355 = vmatprep.subr.bf16.mxu1 %v29566_v0 }
 0x3ef   :  { %25578 = vmatpush3.bf16.msra.mxu0 %v28512_v48 }
 0x3f0   :  { %25579 = vmatprep.subr.bf16.mxu0 %v29566_v0 }
 0x3f1   :  { %25356 = vmatpush3.bf16.msra.mxu1 %v28513_v32 }
 0x3f2   :  { %25357 = vmatprep.subr.bf16.mxu1 %v29566_v0 }
 0x3f3   :  { %25580 = vmatpush3.bf16.msra.mxu0 %v28514_v33  ;;  %v28537_v33 = vld [vmem:[%s37138_s9 + $0xbb0] sm:$0xff]  }
 0x3f4   :  { %25581 = vmatprep.subr.bf16.mxu0 %v29566_v0 }
 0x3f5   :  { %v31858_v38 = vpop.f32.mrb[184].mxu0  ;;  %25358 = vmatpush3.bf16.msra.mxu1 %v28515_v50  ;;  %v586_v50 = vadd.f32 %v31803_v19, %v30536_v60  ;;  %v28539_v60 = vld [vmem:[%s37138_s9 + $0xc00] sm:$0xff]  }
 0x3f6   :  { %v25309_v4 = vpop.f32.mrb[185].mxu0  ;;  %25359 = vmatprep.subr.bf16.mxu1 %v29566_v0 }
 0x3f7   :  { %v5543_v20 = vpop.f32.mrb[186].mxu0  ;;  %25582 = vmatpush3.bf16.msra.mxu0 %v28516_v44  ;;  %v7020_v44 = vsel %vm6954_vm2, %v31548_v62, 0.0  ;;  %v678_v25 = vmax.f32 %v586_v50, 0.0  ;;  %v28557_v50 = vld [vmem:[%s37138_s9 + $0xd10] sm:$0xff]  }
 0x3f8   :  { %v25310_v35 = vpop.f32.mrb[187].mxu0  ;;  %25583 = vmatprep.subr.bf16.mxu0 %v29566_v0  ;;  %v22598_v20 = vpack.c.bf16 %v689_v61, %v689_v61  ;;  %v7028_v61 = vsel %vm6954_vm2, %v31702_v1, 0.0  ;;  %v28556_v1 = vld [vmem:[%s37138_s9 + $0xd08] sm:$0xff]  }
 0x3f9   :  { %25360 = vmatpush3.bf16.msra.mxu1 %v28517_v36  ;;  %v22587_v62 = vpack.c.bf16 %v678_v25, %v678_v25  ;;  %v28540_v35 = vld [vmem:[%s37138_s9 + $0xc08] sm:$0xff]  }
 0x3fa   :  { %25361 = vmatprep.subr.bf16.mxu1 %v29566_v0 }
 0x3fb   :  { %v4572_v7 = vpop.f32.mrb[72].mxu1  ;;  %25584 = vmatpush3.bf16.msra.mxu0 %v28518_v52  ;;  %v28538_v52 = vld [vmem:[%s37138_s9 + $0xbb8] sm:$0xff]  }
 0x3fc   :  { %v7014_v63 = vsel %vm6954_vm2, %v4572_v7, 0.0  ;;  %v25089_v24 = vpop.f32.mrb[73].mxu1  ;;  %25585 = vmatprep.subr.bf16.mxu0 %v29566_v0  ;;  %v28542_v7 = vld [vmem:[%s37138_s9 + $0xc18] sm:$0xff]  }
 0x3fd   :  { %v7015_v42 = vadd.f32 %v7014_v63, %v7013_v28  ;;  %v4575_v43 = vpop.f32.mrb[74].mxu1  ;;  %25362 = vmatpush3.bf16.msra.mxu1 %v28519_v15  ;;  %v28541_v15 = vld [vmem:[%s37138_s9 + $0xc10] sm:$0xff]  }
 0x3fe   :  { %v25090_v10 = vpop.f32.mrb[75].mxu1  ;;  %25363 = vmatprep.subr.bf16.mxu1 %v29566_v0  ;;  %v28544_v43 = vld [vmem:[%s37138_s9 + $0xc28] sm:$0xff]  }
 0x3ff   :  { %25586 = vmatpush3.bf16.msra.mxu0 %v28520_v59  ;;  %v7017_v2 = vadd.f32 %v7016_v3, %v7015_v42 }
 0x400   :  { %25611 = vmatprep.subr.bf16.mxu0 %v29566_v0 }
 0x401   :  { %25364 = vmatpush3.bf16.msra.mxu1 %v28521_v53 }
 0x402   :  { %25588 = vmatmul.mubr.bf16.vlgmr.msra.gmra.mrb[212].mxu0 %v22596_v21  ;;  %25365 = vmatprep.subr.bf16.mxu1 %v29566_v0  ;;  %v594_v21 = vadd.f32 %v31803_v19, %v30550_v12  ;;  %v28547_v12 = vld [vmem:[%s37138_s9 + $0xc80] sm:$0xff]  }
 0x403   :  { %25612 = vmatpush3.bf16.msra.mxu0 %v28522_v11  ;;  %25627 = vmatprep.mubr.msk.bf16.mxu0 %vm29567_vm0, %v29566_v0 }
 0x404   :  { %25613 = vmatprep.subr.bf16.mxu0 %v29566_v0 }
 0x405   :  { %25366 = vmatpush3.bf16.msra.mxu1 %v28523_v51  ;;  %v7024_v51 = vsel %vm6954_vm2, %v31625_v40, 0.0  ;;  %v28548_v40 = vld [vmem:[%s37138_s9 + $0xc88] sm:$0xff]  }
 0x406   :  { %25391 = vmatprep.subr.bf16.mxu1 %v29566_v0 }
 0x407   :  { %25614 = vmatpush3.bf16.msra.mxu0 %v28524_v8 }
 0x408   :  { %25368 = vmatmul.mubr.bf16.vlgmr.msra.gmra.mrb[100].mxu1 %v22585_v23  ;;  %25615 = vmatprep.subr.bf16.mxu0 %v29566_v0  ;;  %v680_v23 = vmax.f32 %v594_v21, 0.0 }
 0x409   :  { %25392 = vmatpush3.bf16.msra.mxu1 %v28525_v55  ;;  %25407 = vmatprep.mubr.msk.bf16.mxu1 %vm29567_vm0, %v29566_v0  ;;  %v28546_v55 = vld [vmem:[%s37138_s9 + $0xc38] sm:$0xff]  }
 0x40a   :  { %25393 = vmatprep.subr.bf16.mxu1 %v29566_v0 }
 0x40b   :  { %25616 = vmatpush3.bf16.msra.mxu0 %v28526_v6  ;;  %v22589_v6 = vpack.c.bf16 %v680_v23, %v680_v23  ;;  %v28568_v23 = vld [vmem:[%s37138_s9 + $0xda8] sm:$0xff]  }
 0x40c   :  { %25617 = vmatprep.subr.bf16.mxu0 %v29566_v0 }
 0x40d   :  { %25394 = vmatpush3.bf16.msra.mxu1 %v28527_v13  ;;  %v28549_v13 = vld [vmem:[%s37138_s9 + $0xc90] sm:$0xff]  }
 0x40e   :  { %25395 = vmatprep.subr.bf16.mxu1 %v29566_v0 }
 0x40f   :  { %25618 = vmatpush3.bf16.msra.mxu0 %v28528_v39  ;;  %v28550_v39 = vld [vmem:[%s37138_s9 + $0xc98] sm:$0xff]  }
 0x410   :  { %25619 = vmatprep.subr.bf16.mxu0 %v29566_v0 }
 0x411   :  { %25396 = vmatpush3.bf16.msra.mxu1 %v28529_v54 }
 0x412   :  { %25397 = vmatprep.subr.bf16.mxu1 %v29566_v0 }
 0x413   :  { %25620 = vmatpush3.bf16.msra.mxu0 %v28530_v22  ;;  %v28551_v22 = vld [vmem:[%s37138_s9 + $0xca0] sm:$0xff]  }
 0x414   :  { %25621 = vmatprep.subr.bf16.mxu0 %v29566_v0 }
 0x415   :  { %v31935_v46 = vpop.f32.mrb[188].mxu0  ;;  %25398 = vmatpush3.bf16.msra.mxu1 %v28531_v26 }
 0x416   :  { %v25349_v41 = vpop.f32.mrb[189].mxu0  ;;  %25399 = vmatprep.subr.bf16.mxu1 %v29566_v0 }
 0x417   :  { %v5719_v28 = vpop.f32.mrb[190].mxu0  ;;  %25622 = vmatpush3.bf16.msra.mxu0 %v28532_v47  ;;  %v28552_v41 = vld [vmem:[%s37138_s9 + $0xca8] sm:$0xff]  }
 0x418   :  { %v25350_v31 = vpop.f32.mrb[191].mxu0  ;;  %25623 = vmatprep.subr.bf16.mxu0 %v29566_v0 }
 0x419   :  { %25400 = vmatpush3.bf16.msra.mxu1 %v28533_v14 }
 0x41a   :  { %25401 = vmatprep.subr.bf16.mxu1 %v29566_v0 }
 0x41b   :  { %v4748_v57 = vpop.f32.mrb[76].mxu1  ;;  %25624 = vmatpush3.bf16.msra.mxu0 %v28534_v17 }
 0x41c   :  { %v7018_v37 = vsel %vm6954_vm2, %v4748_v57, 0.0  ;;  %v25129_v9 = vpop.f32.mrb[77].mxu1  ;;  %25625 = vmatprep.subr.bf16.mxu0 %v29566_v0  ;;  %v28553_v57 = vld [vmem:[%s37138_s9 + $0xcb0] sm:$0xff]  }
 0x41d   :  { %v7019_v48 = vadd.f32 %v7018_v37, %v7017_v2  ;;  %v4751_v32 = vpop.f32.mrb[78].mxu1  ;;  %25402 = vmatpush3.bf16.msra.mxu1 %v28535_v18  ;;  %v28545_v2 = vld [vmem:[%s37138_s9 + $0xc30] sm:$0xff]  }
 0x41e   :  { %v25130_v36 = vpop.f32.mrb[79].mxu1  ;;  %25403 = vmatprep.subr.bf16.mxu1 %v29566_v0 }
 0x41f   :  { %25626 = vmatpush3.bf16.msra.mxu0 %v28536_v16  ;;  %v7021_v4 = vadd.f32 %v7020_v44, %v7019_v48  ;;  %v602_v16 = vadd.f32 %v31803_v19, %v30564_v27  ;;  %v28554_v48 = vld [vmem:[%s37138_s9 + $0xcb8] sm:$0xff]  }
 0x420   :  { %25755 = vmatprep.subr.bf16.mxu0 %v29566_v0  ;;  %v28558_v44 = vld [vmem:[%s37138_s9 + $0xd18] sm:$0xff]  }
 0x421   :  { %25404 = vmatpush3.bf16.msra.mxu1 %v28537_v33  ;;  %v682_v32 = vmax.f32 %v602_v16, 0.0  ;;  %v28555_v33 = vld [vmem:[%s37138_s9 + $0xd00] sm:$0xff]  }
 0x422   :  { %25628 = vmatmul.mubr.bf16.vlgmr.msra.gmra.mrb[216].mxu0 %v22598_v20  ;;  %25405 = vmatprep.subr.bf16.mxu1 %v29566_v0 }
 0x423   :  { %25771 = vmatprep.mubr.msk.bf16.mxu0 %vm29567_vm0, %v29566_v0  ;;  %v22591_v27 = vpack.c.bf16 %v682_v32, %v682_v32 }
 0x425   :  { %25406 = vmatpush3.bf16.msra.mxu1 %v28538_v52 }
 0x426   :  { %25431 = vmatprep.subr.bf16.mxu1 %v29566_v0 }
 0x428   :  { %25408 = vmatmul.mubr.bf16.vlgmr.msra.gmra.mrb[104].mxu1 %v22587_v62 }
 0x429   :  { %25432 = vmatpush3.bf16.msra.mxu1 %v28539_v60  ;;  %25447 = vmatprep.mubr.msk.bf16.mxu1 %vm29567_vm0, %v29566_v0  ;;  %v28560_v60 = vld [vmem:[%s37138_s9 + $0xd28] sm:$0xff]  }
 0x42a   :  { %25433 = vmatprep.subr.bf16.mxu1 %v29566_v0 }
 0x42d   :  { %25434 = vmatpush3.bf16.msra.mxu1 %v28540_v35 }
 0x42e   :  { %25435 = vmatprep.subr.bf16.mxu1 %v29566_v0 }
 0x431   :  { %25436 = vmatpush3.bf16.msra.mxu1 %v28541_v15 }
 0x432   :  { %25437 = vmatprep.subr.bf16.mxu1 %v29566_v0 }
 0x435   :  { %v31989_v59 = vpop.f32.mrb[192].mxu0  ;;  %25438 = vmatpush3.bf16.msra.mxu1 %v28542_v7  ;;  %v610_v7 = vadd.f32 %v31803_v19, %v30576_v34  ;;  %v28562_v34 = vld [vmem:[%s37138_s9 + $0xd38] sm:$0xff]  }
 0x436   :  { %v25389_v63 = vpop.f32.mrb[193].mxu0  ;;  %25439 = vmatprep.subr.bf16.mxu1 %v29566_v0 }
 0x437   :  { %v5895_v24 = vpop.f32.mrb[194].mxu0 }
 0x438   :  { %v25390_v42 = vpop.f32.mrb[195].mxu0  ;;  %v28561_v24 = vld [vmem:[%s37138_s9 + $0xd30] sm:$0xff]  }
 0x439   :  { %25440 = vmatpush3.bf16.msra.mxu1 %v28543_v29  ;;  %v7032_v42 = vsel %vm6954_vm2, %v31776_v5, 0.0  ;;  %v28564_v5 = vld [vmem:[%s37138_s9 + $0xd88] sm:$0xff]  }
 0x43a   :  { %25441 = vmatprep.subr.bf16.mxu1 %v29566_v0 }
 0x43b   :  { %v4924_v53 = vpop.f32.mrb[80].mxu1 }
 0x43c   :  { %v7022_v56 = vsel %vm6954_vm2, %v4924_v53, 0.0  ;;  %v25169_v3 = vpop.f32.mrb[81].mxu1 }
 0x43d   :  { %v7023_v10 = vadd.f32 %v7022_v56, %v7021_v4  ;;  %v4927_v11 = vpop.f32.mrb[82].mxu1  ;;  %25442 = vmatpush3.bf16.msra.mxu1 %v28544_v43  ;;  %v28559_v4 = vld [vmem:[%s37138_s9 + $0xd20] sm:$0xff]   ;;  %v684_v56 = vmax.f32 %v610_v7, 0.0  ;;  %v28582_v7 = vld [vmem:[%s37140_s5 + $0x18] sm:$0xff]  }
 0x43e   :  { %v25170_v49 = vpop.f32.mrb[83].mxu1  ;;  %25443 = vmatprep.subr.bf16.mxu1 %v29566_v0  ;;  %v28563_v3 = vld [vmem:[%s37138_s9 + $0xd80] sm:$0xff]   ;;  %v28565_v11 = vld [vmem:[%s37138_s9 + $0xd90] sm:$0xff]  }
 0x43f   :  { %v7025_v8 = vadd.f32 %v7024_v51, %v7023_v10  ;;  %v22593_v10 = vpack.c.bf16 %v684_v56, %v684_v56  ;;  %v28567_v51 = vld [vmem:[%s37138_s9 + $0xda0] sm:$0xff]   ;;  %v28589_v56 = vld [vmem:[%s37142_s10 + $0x1c8] sm:$0xff]  }
 0x441   :  { %25444 = vmatpush3.bf16.msra.mxu1 %v28545_v2  ;;  %v28566_v2 = vld [vmem:[%s37138_s9 + $0xd98] sm:$0xff]  }
 0x442   :  { %25445 = vmatprep.subr.bf16.mxu1 %v29566_v0 }
 0x445   :  { %25446 = vmatpush3.bf16.msra.mxu1 %v28546_v55 }
 0x446   :  { %25471 = vmatprep.subr.bf16.mxu1 %v29566_v0 }
 0x448   :  { %25448 = vmatmul.mubr.bf16.vlgmr.msra.gmra.mrb[108].mxu1 %v22589_v6 }
 0x449   :  { %25472 = vmatpush3.bf16.msra.mxu1 %v28547_v12  ;;  %25487 = vmatprep.mubr.msk.bf16.mxu1 %vm29567_vm0, %v29566_v0 }
 0x44a   :  { %25473 = vmatprep.subr.bf16.mxu1 %v29566_v0 }
 0x44d   :  { %25474 = vmatpush3.bf16.msra.mxu1 %v28548_v40 }
 0x44e   :  { %25475 = vmatprep.subr.bf16.mxu1 %v29566_v0 }
 0x451   :  { %25476 = vmatpush3.bf16.msra.mxu1 %v28549_v13  ;;  %v618_v13 = vadd.f32 %v31803_v19, %v30588_v45  ;;  %v28570_v45 = vld [vmem:[%s37138_s9 + $0xdb8] sm:$0xff]   ;;  %v28571_v19 = vld [vmem:[%s37138_s9 + $0xe00] sm:$0xff]  }
 0x452   :  { %25477 = vmatprep.subr.bf16.mxu1 %v29566_v0 }
 0x455   :  { %v32030_v54 = vpop.f32.mrb[196].mxu0  ;;  %25478 = vmatpush3.bf16.msra.mxu1 %v28550_v39 }
 0x456   :  { %v25429_v26 = vpop.f32.mrb[197].mxu0  ;;  %25479 = vmatprep.subr.bf16.mxu1 %v29566_v0 }
 0x457   :  { %v6071_v47 = vpop.f32.mrb[198].mxu0  ;;  %v28569_v26 = vld [vmem:[%s37138_s9 + $0xdb0] sm:$0xff]  }
 0x458   :  { %v25430_v14 = vpop.f32.mrb[199].mxu0  ;;  %v7036_v47 = vsel %vm6954_vm2, %v31858_v38, 0.0  ;;  %v28572_v38 = vld [vmem:[%s37138_s9 + $0xe08] sm:$0xff]  }
 0x459   :  { %25480 = vmatpush3.bf16.msra.mxu1 %v28551_v22 }
 0x45a   :  { %25481 = vmatprep.subr.bf16.mxu1 %v29566_v0 }
 0x45b   :  { %v5100_v28 = vpop.f32.mrb[84].mxu1 }
 0x45c   :  { %v7026_v17 = vsel %vm6954_vm2, %v5100_v28, 0.0  ;;  %v25209_v30 = vpop.f32.mrb[85].mxu1  ;;  %v686_v28 = vmax.f32 %v618_v13, 0.0  ;;  %v28588_v13 = vld [vmem:[%s37141_s1 + $0x20] sm:$0xff]  }
 0x45d   :  { %v7027_v31 = vadd.f32 %v7026_v17, %v7025_v8  ;;  %v5103_v18 = vpop.f32.mrb[86].mxu1  ;;  %25482 = vmatpush3.bf16.msra.mxu1 %v28552_v41  ;;  %v28573_v30 = vld [vmem:[%s37138_s9 + $0xe10] sm:$0xff]  }
 0x45e   :  { %v25210_v37 = vpop.f32.mrb[87].mxu1  ;;  %25483 = vmatprep.subr.bf16.mxu1 %v29566_v0  ;;  %v22595_v17 = vpack.c.bf16 %v686_v28, %v686_v28 }
 0x45f   :  { %v7029_v9 = vadd.f32 %v7028_v61, %v7027_v31  ;;  %v28574_v31 = vld [vmem:[%s37138_s9 + $0xe18] sm:$0xff]  }
 0x461   :  { %25484 = vmatpush3.bf16.msra.mxu1 %v28553_v57  ;;  %v28575_v57 = vld [vmem:[%s37138_s9 + $0xe20] sm:$0xff]  }
 0x462   :  { %25485 = vmatprep.subr.bf16.mxu1 %v29566_v0 }
 0x465   :  { %25486 = vmatpush3.bf16.msra.mxu1 %v28554_v48 }
 0x466   :  { %25511 = vmatprep.subr.bf16.mxu1 %v29566_v0 }
 0x468   :  { %25488 = vmatmul.mubr.bf16.vlgmr.msra.gmra.mrb[112].mxu1 %v22591_v27  ;;  %v29557_v27 = vld [vmem:[%s37139_s4] ss:$0 sm:$0xff] }
 0x469   :  { %25512 = vmatpush3.bf16.msra.mxu1 %v28555_v33  ;;  %25527 = vmatprep.mubr.msk.bf16.mxu1 %vm29567_vm0, %v29566_v0 }
 0x46a   :  { %25513 = vmatprep.subr.bf16.mxu1 %v29566_v0 }
 0x46d   :  { %25514 = vmatpush3.bf16.msra.mxu1 %v28556_v1  ;;  %v626_v1 = vadd.f32 %v29557_v27, %v30600_v58  ;;  %v28578_v58 = vld [vmem:[%s37138_s9 + $0xe38] sm:$0xff]  }
 0x46e   :  { %25515 = vmatprep.subr.bf16.mxu1 %v29566_v0 }
 0x471   :  { %25516 = vmatpush3.bf16.msra.mxu1 %v28557_v50 }
 0x472   :  { %25517 = vmatprep.subr.bf16.mxu1 %v29566_v0 }
 0x475   :  { %v32071_v36 = vpop.f32.mrb[200].mxu0  ;;  %25518 = vmatpush3.bf16.msra.mxu1 %v28558_v44 }
 0x476   :  { %v25469_v20 = vpop.f32.mrb[201].mxu0  ;;  %25519 = vmatprep.subr.bf16.mxu1 %v29566_v0 }
 0x477   :  { %v6247_v52 = vpop.f32.mrb[202].mxu0  ;;  %v7040_v20 = vsel %vm6954_vm2, %v31935_v46, 0.0  ;;  %v28580_v46 = vld [vmem:[%s37140_s5 + $0x8] sm:$0xff]  }
 0x478   :  { %v25470_v25 = vpop.f32.mrb[203].mxu0 }
 0x479   :  { %25520 = vmatpush3.bf16.msra.mxu1 %v28559_v4  ;;  %v28577_v4 = vld [vmem:[%s37138_s9 + $0xe30] sm:$0xff]  }
 0x47a   :  { %25521 = vmatprep.subr.bf16.mxu1 %v29566_v0 }
 0x47b   :  { %v5276_v62 = vpop.f32.mrb[88].mxu1 }
 0x47c   :  { %v7030_v35 = vsel %vm6954_vm2, %v5276_v62, 0.0  ;;  %v25249_v15 = vpop.f32.mrb[89].mxu1  ;;  %v28579_v62 = vld [vmem:[%s37140_s5] sm:$0xff]  }
 0x47d   :  { %v7031_v29 = vadd.f32 %v7030_v35, %v7029_v9  ;;  %v5279_v63 = vpop.f32.mrb[90].mxu1  ;;  %25522 = vmatpush3.bf16.msra.mxu1 %v28560_v60  ;;  %v28576_v9 = vld [vmem:[%s37138_s9 + $0xe28] sm:$0xff]   ;;  %v688_v60 = vmax.f32 %v626_v1, 0.0  ;;  %v28581_v15 = vld [vmem:[%s37140_s5 + $0x10] sm:$0xff]  }
 0x47e   :  { %v25250_v43 = vpop.f32.mrb[91].mxu1  ;;  %25523 = vmatprep.subr.bf16.mxu1 %v29566_v0  ;;  %v28595_v1 = vld [vmem:[%s37141_s1 + $0x48] sm:$0xff]  }
 0x47f   :  { %v7033_v53 = vadd.f32 %v7032_v42, %v7031_v29  ;;  %v22597_v35 = vpack.c.bf16 %v688_v60, %v688_v60  ;;  %v28583_v29 = vld [vmem:[%s37141_s1] sm:$0xff]  }
 0x481   :  { %25524 = vmatpush3.bf16.msra.mxu1 %v28561_v24  ;;  %v28585_v24 = vld [vmem:[%s37142_s10 + $0x1c0] sm:$0xff]  }
 0x482   :  { %25525 = vmatprep.subr.bf16.mxu1 %v29566_v0 }
 0x485   :  { %25526 = vmatpush3.bf16.msra.mxu1 %v28562_v34 }
 0x486   :  { %25551 = vmatprep.subr.bf16.mxu1 %v29566_v0 }
 0x488   :  { %25528 = vmatmul.mubr.bf16.vlgmr.msra.gmra.mrb[116].mxu1 %v22593_v10 }
 0x489   :  { %25552 = vmatpush3.bf16.msra.mxu1 %v28563_v3  ;;  %25567 = vmatprep.mubr.msk.bf16.mxu1 %vm29567_vm0, %v29566_v0  ;;  %v28584_v3 = vld [vmem:[%s37141_s1 + $0x8] sm:$0xff]  }
 0x48a   :  { %25553 = vmatprep.subr.bf16.mxu1 %v29566_v0 }
 0x48d   :  { %25554 = vmatpush3.bf16.msra.mxu1 %v28564_v5 }
 0x48e   :  { %25555 = vmatprep.subr.bf16.mxu1 %v29566_v0 }
 0x491   :  { %25556 = vmatpush3.bf16.msra.mxu1 %v28565_v11 }
 0x492   :  { %25557 = vmatprep.subr.bf16.mxu1 %v29566_v0 }
 0x495   :  { %v32112_v21 = vpop.f32.mrb[204].mxu0  ;;  %25558 = vmatpush3.bf16.msra.mxu1 %v28566_v2 }
 0x496   :  { %v25509_v49 = vpop.f32.mrb[205].mxu0  ;;  %25559 = vmatprep.subr.bf16.mxu1 %v29566_v0 }
 0x497   :  { %v6423_v8 = vpop.f32.mrb[206].mxu0  ;;  %v7044_v49 = vsel %vm6954_vm2, %v31989_v59, 0.0  ;;  %v28602_v59 = vld [vmem:[%s37142_s10 + $0x1e0] sm:$0xff]  }
 0x498   :  { %v25510_v55 = vpop.f32.mrb[207].mxu0 }
 0x499   :  { %25560 = vmatpush3.bf16.msra.mxu1 %v28567_v51  ;;  %v28593_v51 = vld [vmem:[%s37142_s10 + $0x1d0] sm:$0xff]  }
 0x49a   :  { %25561 = vmatprep.subr.bf16.mxu1 %v29566_v0 }
 0x49b   :  { %v5452_v12 = vpop.f32.mrb[92].mxu1 }
 0x49c   :  { %v7034_v6 = vsel %vm6954_vm2, %v5452_v12, 0.0  ;;  %v25289_v40 = vpop.f32.mrb[93].mxu1  ;;  %v28586_v12 = vld [vmem:[%s37141_s1 + $0x10] sm:$0xff]  }
 0x49d   :  { %v7035_v39 = vadd.f32 %v7034_v6, %v7033_v53  ;;  %v5455_v22 = vpop.f32.mrb[94].mxu1  ;;  %25562 = vmatpush3.bf16.msra.mxu1 %v28568_v23  ;;  %v28598_v23 = vld [vmem:[%s37142_s10 + $0x1d8] sm:$0xff]   ;;  %v28607_v6 = vld [vmem:[%s37142_s10 + $0x1e8] sm:$0xff]  }
 0x49e   :  { %v25290_v14 = vpop.f32.mrb[95].mxu1  ;;  %25563 = vmatprep.subr.bf16.mxu1 %v29566_v0  ;;  %v28587_v40 = vld [vmem:[%s37141_s1 + $0x18] sm:$0xff]  }
 0x49f   :  { %v7037_v41 = vadd.f32 %v7036_v47, %v7035_v39 }
 0x4a1   :  { %25564 = vmatpush3.bf16.msra.mxu1 %v28569_v26 }
 0x4a2   :  { %25565 = vmatprep.subr.bf16.mxu1 %v29566_v0 }
 0x4a5   :  { %25566 = vmatpush3.bf16.msra.mxu1 %v28570_v45 }
 0x4a6   :  { %25591 = vmatprep.subr.bf16.mxu1 %v29566_v0 }
 0x4a8   :  { %25568 = vmatmul.mubr.bf16.vlgmr.msra.gmra.mrb[120].mxu1 %v22595_v17 }
 0x4a9   :  { %25592 = vmatpush3.bf16.msra.mxu1 %v28571_v19  ;;  %25607 = vmatprep.mubr.msk.bf16.mxu1 %vm29567_vm0, %v29566_v0 }
 0x4aa   :  { %25593 = vmatprep.subr.bf16.mxu1 %v29566_v0 }
 0x4ad   :  { %25594 = vmatpush3.bf16.msra.mxu1 %v28572_v38  ;;  %v7048_v38 = vsel %vm6954_vm2, %v32030_v54, 0.0  ;;  %v28613_v54 = vld [vmem:[%s37142_s10 + $0x1f0] sm:$0xff]  }
 0x4ae   :  { %25595 = vmatprep.subr.bf16.mxu1 %v29566_v0 }
 0x4b1   :  { %25596 = vmatpush3.bf16.msra.mxu1 %v28573_v30 }
 0x4b2   :  { %25597 = vmatprep.subr.bf16.mxu1 %v29566_v0 }
 0x4b5   :  { %v32153_v18 = vpop.f32.mrb[208].mxu0  ;;  %25598 = vmatpush3.bf16.msra.mxu1 %v28574_v31 }
 0x4b6   :  { %v25549_v16 = vpop.f32.mrb[209].mxu0  ;;  %25599 = vmatprep.subr.bf16.mxu1 %v29566_v0 }
 0x4b7   :  { %v6599_v61 = vpop.f32.mrb[210].mxu0  ;;  %v28612_v16 = vld [vmem:[%s37142_s10] sm:$0xff]  }
 0x4b8   :  { %v25550_v37 = vpop.f32.mrb[211].mxu0  ;;  %v28614_v61 = vld [vmem:[%s37142_s10 + $0x8] sm:$0xff]   ;;  %25756 = vmatpush3.bf16.msra.mxu0 %v28612_v16 }
 0x4b9   :  { %25600 = vmatpush3.bf16.msra.mxu1 %v28575_v57  ;;  %v28591_v57 = vld [vmem:[%s37141_s1 + $0x30] sm:$0xff]   ;;  %v28592_v37 = vld [vmem:[%s37141_s1 + $0x38] sm:$0xff]   ;;  %25757 = vmatprep.subr.bf16.mxu0 %v29566_v0 }
 0x4ba   :  { %25601 = vmatprep.subr.bf16.mxu1 %v29566_v0 }
 0x4bb   :  { %v5628_v48 = vpop.f32.mrb[96].mxu1 }
 0x4bc   :  { %v7038_v32 = vsel %vm6954_vm2, %v5628_v48, 0.0  ;;  %v25329_v33 = vpop.f32.mrb[97].mxu1  ;;  %25758 = vmatpush3.bf16.msra.mxu0 %v28614_v61  ;;  %v28594_v48 = vld [vmem:[%s37141_s1 + $0x40] sm:$0xff]  }
 0x4bd   :  { %v7039_v50 = vadd.f32 %v7038_v32, %v7037_v41  ;;  %v5631_v44 = vpop.f32.mrb[98].mxu1  ;;  %25602 = vmatpush3.bf16.msra.mxu1 %v28576_v9  ;;  %v28590_v41 = vld [vmem:[%s37141_s1 + $0x28] sm:$0xff]   ;;  %25759 = vmatprep.subr.bf16.mxu0 %v29566_v0  ;;  %v28616_v9 = vld [vmem:[%s37142_s10 + $0x10] sm:$0xff]  }
 0x4be   :  { %v25330_v52 = vpop.f32.mrb[99].mxu1  ;;  %25603 = vmatprep.subr.bf16.mxu1 %v29566_v0 }
 0x4bf   :  { %v7041_v25 = vadd.f32 %v7040_v20, %v7039_v50  ;;  %v28617_v50 = vld [vmem:[%s37142_s10 + $0x18] sm:$0xff]   ;;  %v7052_v20 = vsel %vm6954_vm2, %v32071_v36, 0.0  ;;  %v28596_v36 = vld [vmem:[%s37141_s1 + $0x50] sm:$0xff]  }
 0x4c0   :  { %25760 = vmatpush3.bf16.msra.mxu0 %v28616_v9 }
 0x4c1   :  { %25604 = vmatpush3.bf16.msra.mxu1 %v28577_v4  ;;  %25761 = vmatprep.subr.bf16.mxu0 %v29566_v0 }
 0x4c2   :  { %25605 = vmatprep.subr.bf16.mxu1 %v29566_v0 }
 0x4c4   :  { %25762 = vmatpush3.bf16.msra.mxu0 %v28617_v50 }
 0x4c5   :  { %25606 = vmatpush3.bf16.msra.mxu1 %v28578_v58  ;;  %25763 = vmatprep.subr.bf16.mxu0 %v29566_v0  ;;  %v28620_v58 = vld [vmem:[%s37142_s10 + $0x28] sm:$0xff]  }
 0x4c6   :  { %25631 = vmatprep.subr.bf16.mxu1 %v29566_v0 }
 0x4c8   :  { %25608 = vmatmul.mubr.bf16.vlgmr.msra.gmra.mrb[124].mxu1 %v22597_v35  ;;  %v28597_v35 = vld [vmem:[%s37141_s1 + $0x58] sm:$0xff]  }
 0x4c9   :  { %25632 = vmatpush3.bf16.msra.mxu1 %v28579_v62  ;;  %25639 = vmatprep.mubr.msk.bf16.mxu1 %vm29567_vm0, %v29566_v0  ;;  %v28622_v62 = vld [vmem:[%s37142_s10 + $0x30] sm:$0xff]  }
 0x4ca   :  { %25633 = vmatprep.subr.bf16.mxu1 %v29566_v0 }
 0x4cd   :  { %25634 = vmatpush3.bf16.msra.mxu1 %v28580_v46  ;;  %v28623_v46 = vld [vmem:[%s37142_s10 + $0x38] sm:$0xff]  }
 0x4ce   :  { %25635 = vmatprep.subr.bf16.mxu1 %v29566_v0 }
 0x4d1   :  { %25636 = vmatpush3.bf16.msra.mxu1 %v28581_v15  ;;  %v28599_v15 = vld [vmem:[%s37141_s1 + $0x60] sm:$0xff]  }
 0x4d2   :  { %25637 = vmatprep.subr.bf16.mxu1 %v29566_v0 }
 0x4d5   :  { %v32199_v63 = vpop.f32.mrb[212].mxu0  ;;  %25638 = vmatpush3.bf16.msra.mxu1 %v28582_v7  ;;  %v28624_v7 = vld [vmem:[%s37142_s10 + $0x1f8] sm:$0xff]  }
 0x4d6   :  { %v25589_v42 = vpop.f32.mrb[213].mxu0  ;;  %25895 = vmatprep.subr.bf16.mxu1 %v29566_v0 }
 0x4d7   :  { %v6775_v43 = vpop.f32.mrb[214].mxu0 }
 0x4d8   :  { %v25590_v53 = vpop.f32.mrb[215].mxu0  ;;  %25640 = vmatmul.mubr.msk.bf16.vlgmr.msra.gmra.mrb[128].mxu1 %vm7309_vm3, %v28583_v29 }
 0x4d9   :  { %25643 = vmatprep.mubr.msk.bf16.mxu1 %vm29567_vm0, %v29566_v0  ;;  %25896 = vmatpush3.bf16.msra.mxu1 %v28585_v24  ;;  %v28600_v24 = vld [vmem:[%s37141_s1 + $0x68] sm:$0xff]  }
 0x4da   :  { %25897 = vmatprep.subr.bf16.mxu1 %v29566_v0 }
 0x4db   :  { %v5804_v34 = vpop.f32.mrb[100].mxu1 }
 0x4dc   :  { %v7042_v10 = vsel %vm6954_vm2, %v5804_v34, 0.0  ;;  %v25369_v5 = vpop.f32.mrb[101].mxu1  ;;  %v7056_v34 = vsel %vm6954_vm2, %v32112_v21, 0.0  ;;  %v28603_v21 = vld [vmem:[%s37141_s1 + $0x78] sm:$0xff]  }
 0x4dd   :  { %v7043_v11 = vadd.f32 %v7042_v10, %v7041_v25  ;;  %v5807_v2 = vpop.f32.mrb[102].mxu1  ;;  %25898 = vmatpush3.bf16.msra.mxu1 %v28589_v56  ;;  %v28619_v25 = vld [vmem:[%s37142_s10 + $0x20] sm:$0xff]   ;;  %v28601_v5 = vld [vmem:[%s37141_s1 + $0x70] sm:$0xff]  }
 0x4de   :  { %v25370_v8 = vpop.f32.mrb[103].mxu1  ;;  %25899 = vmatprep.subr.bf16.mxu1 %v29566_v0  ;;  %25764 = vmatpush3.bf16.msra.mxu0 %v28619_v25  ;;  %v28626_v25 = vld [vmem:[%s37142_s10 + $0x40] sm:$0xff]  }
 0x4df   :  { %v7045_v55 = vadd.f32 %v7044_v49, %v7043_v11  ;;  %25765 = vmatprep.subr.bf16.mxu0 %v29566_v0  ;;  %v28604_v11 = vld [vmem:[%s37141_s1 + $0x80] sm:$0xff]  }
 0x4e0   :  { %25644 = vmatmul.mubr.msk.bf16.gmra.mrb[132].mxu1 %vm7309_vm3, %v28584_v3 }
 0x4e1   :  { %25647 = vmatprep.mubr.msk.bf16.mxu1 %vm29567_vm0, %v29566_v0  ;;  %25900 = vmatpush3.bf16.msra.mxu1 %v28593_v51  ;;  %v28605_v51 = vld [vmem:[%s37141_s1 + $0x88] sm:$0xff]  }
 0x4e2   :  { %25901 = vmatprep.subr.bf16.mxu1 %v29566_v0  ;;  %25766 = vmatpush3.bf16.msra.mxu0 %v28620_v58  ;;  %v28631_v58 = vld [vmem:[%s37141_s1 + $0xe0] ss:$0 sps:$4 sm:$0xff]  }
 0x4e3   :  { %25767 = vmatprep.subr.bf16.mxu0 %v29566_v0 }
 0x4e5   :  { %25902 = vmatpush3.bf16.msra.mxu1 %v28598_v23 }
 0x4e6   :  { %25903 = vmatprep.subr.bf16.mxu1 %v29566_v0  ;;  %25768 = vmatpush3.bf16.msra.mxu0 %v28622_v62  ;;  %v28627_v62 = vld [vmem:[%s37142_s10 + $0x48] sm:$0xff]  }
 0x4e7   :  { %25769 = vmatprep.subr.bf16.mxu0 %v29566_v0 }
 0x4e8   :  { %25648 = vmatmul.mubr.msk.bf16.gmra.mrb[136].mxu1 %vm7309_vm3, %v28586_v12  ;;  %v7060_v12 = vsel %vm6954_vm2, %v32153_v18, 0.0  ;;  %v28608_v18 = vld [vmem:[%s37141_s1 + $0x98] sm:$0xff]  }
 0x4e9   :  { %25651 = vmatprep.mubr.msk.bf16.mxu1 %vm29567_vm0, %v29566_v0  ;;  %25904 = vmatpush3.bf16.msra.mxu1 %v28602_v59 }
 0x4ea   :  { %25905 = vmatprep.subr.bf16.mxu1 %v29566_v0  ;;  %25770 = vmatpush3.bf16.msra.mxu0 %v28623_v46 }
 0x4eb   :  { %25775 = vmatprep.subr.bf16.mxu0 %v29566_v0 }
 0x4ed   :  { %25906 = vmatpush3.bf16.msra.mxu1 %v28607_v6 }
 0x4ee   :  { %25907 = vmatprep.subr.bf16.mxu1 %v29566_v0 }
 0x4f0   :  { %25652 = vmatmul.mubr.msk.bf16.gmra.mrb[140].mxu1 %vm7309_vm3, %v28587_v40  ;;  %v28606_v40 = vld [vmem:[%s37141_s1 + $0x90] sm:$0xff]  }
 0x4f1   :  { %25655 = vmatprep.mubr.msk.bf16.mxu1 %vm29567_vm0, %v29566_v0  ;;  %25908 = vmatpush3.bf16.msra.mxu1 %v28613_v54 }
 0x4f2   :  { %25909 = vmatprep.subr.bf16.mxu1 %v29566_v0 }
 0x4f5   :  { %v32253_v39 = vpop.f32.mrb[216].mxu0  ;;  %25910 = vmatpush3.bf16.msra.mxu1 %v28624_v7  ;;  %v28629_v7 = vld [vmem:[%s37142_s10 + $0x50] sm:$0xff]  }
 0x4f6   :  { %v25629_v22 = vpop.f32.mrb[217].mxu0  ;;  %25935 = vmatprep.subr.bf16.mxu1 %v29566_v0  ;;  %v7068_v9 = vsel %vm6954_vm2, %v32253_v39, 0.0 }
 0x4f7   :  { %v6951_v26 = vpop.f32.mrb[218].mxu0 }
 0x4f8   :  { %v25630_v47 = vpop.f32.mrb[219].mxu0  ;;  %25656 = vmatmul.mubr.msk.bf16.gmra.mrb[144].mxu1 %vm7309_vm3, %v28588_v13  ;;  %v28609_v13 = vld [vmem:[%s37141_s1 + $0xa0] sm:$0xff]   ;;  %v28610_v26 = vld [vmem:[%s37141_s1 + $0xa8] sm:$0xff]  }
 0x4f9   :  { %25659 = vmatprep.mubr.msk.bf16.mxu1 %vm29567_vm0, %v29566_v0 }
 0x4fb   :  { %v5980_v14 = vpop.f32.mrb[104].mxu1 }
 0x4fc   :  { %v7046_v28 = vsel %vm6954_vm2, %v5980_v14, 0.0  ;;  %v25409_v45 = vpop.f32.mrb[105].mxu1 }
 0x4fd   :  { %v7047_v19 = vadd.f32 %v7046_v28, %v7045_v55  ;;  %v5983_v17 = vpop.f32.mrb[106].mxu1  ;;  %v7064_v45 = vsel %vm6954_vm2, %v32199_v63, 0.0  ;;  %v28615_v63 = vld [vmem:[%s37141_s1 + $0xb8] sm:$0xff]  }
 0x4fe   :  { %v25410_v30 = vpop.f32.mrb[107].mxu1 }
 0x4ff   :  { %v7049_v31 = vadd.f32 %v7048_v38, %v7047_v19  ;;  %v28611_v38 = vld [vmem:[%s37141_s1 + $0xb0] sm:$0xff]   ;;  %v28618_v30 = vld [vmem:[%s37141_s1 + $0xc0] sm:$0xff]  }
 0x500   :  { %25660 = vmatmul.mubr.msk.bf16.gmra.mrb[148].mxu1 %vm7309_vm3, %v28590_v41 }
 0x501   :  { %25663 = vmatprep.mubr.msk.bf16.mxu1 %vm29567_vm0, %v29566_v0 }
 0x508   :  { %25664 = vmatmul.mubr.msk.bf16.gmra.mrb[152].mxu1 %vm7309_vm3, %v28591_v57  ;;  %v28621_v57 = vld [vmem:[%s37141_s1 + $0xc8] sm:$0xff]  }
 0x509   :  { %25667 = vmatprep.mubr.msk.bf16.mxu1 %vm29567_vm0, %v29566_v0 }
 0x510   :  { %25668 = vmatmul.mubr.msk.bf16.gmra.mrb[156].mxu1 %vm7309_vm3, %v28592_v37 }
 0x511   :  { %25671 = vmatprep.mubr.msk.bf16.mxu1 %vm29567_vm0, %v29566_v0 }
 0x518   :  { %25672 = vmatmul.mubr.msk.bf16.gmra.mrb[160].mxu1 %vm7309_vm3, %v28594_v48 }
 0x519   :  { %25675 = vmatprep.mubr.msk.bf16.mxu1 %vm29567_vm0, %v29566_v0 }
 0x51b   :  { %v6156_v32 = vpop.f32.mrb[108].mxu1 }
 0x51c   :  { %v7050_v33 = vsel %vm6954_vm2, %v6156_v32, 0.0  ;;  %v25449_v27 = vpop.f32.mrb[109].mxu1 }
 0x51d   :  { %v7051_v44 = vadd.f32 %v7050_v33, %v7049_v31  ;;  %v6159_v4 = vpop.f32.mrb[110].mxu1  ;;  %v28625_v33 = vld [vmem:[%s37141_s1 + $0xd0] sm:$0xff]   ;;  %v32451_v27 = vld [vmem:[%s37143_s6] ss:$0 sm:$0xff] }
 0x51e   :  { %v25450_v52 = vpop.f32.mrb[111].mxu1 }
 0x51f   :  { %v7053_v60 = vadd.f32 %v7052_v20, %v7051_v44  ;;  %v28628_v44 = vld [vmem:[%s37141_s1 + $0xd8] sm:$0xff]  }
 0x520   :  { %25676 = vmatmul.mubr.msk.bf16.gmra.mrb[164].mxu1 %vm7309_vm3, %v28595_v1 }
 0x521   :  { %25679 = vmatprep.mubr.msk.bf16.mxu1 %vm29567_vm0, %v29566_v0 }
 0x528   :  { %25680 = vmatmul.mubr.msk.bf16.gmra.mrb[168].mxu1 %vm7309_vm3, %v28596_v36 }
 0x529   :  { %25683 = vmatprep.mubr.msk.bf16.mxu1 %vm29567_vm0, %v29566_v0 }
 0x530   :  { %25684 = vmatmul.mubr.msk.bf16.gmra.mrb[172].mxu1 %vm7309_vm3, %v28597_v35 }
 0x531   :  { %25687 = vmatprep.mubr.msk.bf16.mxu1 %vm29567_vm0, %v29566_v0 }
 0x538   :  { %25688 = vmatmul.mubr.msk.bf16.gmra.mrb[176].mxu1 %vm7309_vm3, %v28599_v15 }
 0x539   :  { %25691 = vmatprep.mubr.msk.bf16.mxu1 %vm29567_vm0, %v29566_v0 }
 0x53b   :  { %v6332_v29 = vpop.f32.mrb[112].mxu1 }
 0x53c   :  { %v7054_v42 = vsel %vm6954_vm2, %v6332_v29, 0.0  ;;  %v25489_v43 = vpop.f32.mrb[113].mxu1 }
 0x53d   :  { %v7055_v53 = vadd.f32 %v7054_v42, %v7053_v60  ;;  %v6335_v56 = vpop.f32.mrb[114].mxu1 }
 0x53e   :  { %v25490_v3 = vpop.f32.mrb[115].mxu1  ;;  %v28632_v56 = vld [vmem:[%s37142_s10 + $0x60] sm:$0xff]  }
 0x53f   :  { %v7057_v10 = vadd.f32 %v7056_v34, %v7055_v53  ;;  %v28633_v3 = vld [vmem:[%s37142_s10 + $0x68] sm:$0xff]  }
 0x540   :  { %25692 = vmatmul.mubr.msk.bf16.gmra.mrb[180].mxu1 %vm7309_vm3, %v28600_v24  ;;  %v28630_v24 = vld [vmem:[%s37142_s10 + $0x58] sm:$0xff]  }
 0x541   :  { %25695 = vmatprep.mubr.msk.bf16.mxu1 %vm29567_vm0, %v29566_v0 }
 0x548   :  { %25696 = vmatmul.mubr.msk.bf16.gmra.mrb[184].mxu1 %vm7309_vm3, %v28601_v5 }
 0x549   :  { %25699 = vmatprep.mubr.msk.bf16.mxu1 %vm29567_vm0, %v29566_v0 }
 0x550   :  { %25700 = vmatmul.mubr.msk.bf16.gmra.mrb[188].mxu1 %vm7309_vm3, %v28603_v21 }
 0x551   :  { %25703 = vmatprep.mubr.msk.bf16.mxu1 %vm29567_vm0, %v29566_v0 }
 0x558   :  { %25704 = vmatmul.mubr.msk.bf16.gmra.mrb[192].mxu1 %vm7309_vm3, %v28604_v11 }
 0x559   :  { %25707 = vmatprep.mubr.msk.bf16.mxu1 %vm29567_vm0, %v29566_v0 }
 0x55b   :  { %v6508_v2 = vpop.f32.mrb[116].mxu1 }
 0x55c   :  { %v7058_v49 = vsel %vm6954_vm2, %v6508_v2, 0.0  ;;  %v25529_v8 = vpop.f32.mrb[117].mxu1  ;;  %v28634_v2 = vld [vmem:[%s37142_s10 + $0x70] sm:$0xff]  }
 0x55d   :  { %v7059_v55 = vadd.f32 %v7058_v49, %v7057_v10  ;;  %v6511_v23 = vpop.f32.mrb[118].mxu1  ;;  %v28635_v8 = vld [vmem:[%s37142_s10 + $0x240] sm:$0xff]  }
 0x55e   :  { %v25530_v59 = vpop.f32.mrb[119].mxu1  ;;  %v28636_v23 = vld [vmem:[%s37142_s10 + $0x78] sm:$0xff]  }
 0x55f   :  { %v7061_v6 = vadd.f32 %v7060_v12, %v7059_v55 }
 0x560   :  { %25708 = vmatmul.mubr.msk.bf16.gmra.mrb[196].mxu1 %vm7309_vm3, %v28605_v51 }
 0x561   :  { %25711 = vmatprep.mubr.msk.bf16.mxu1 %vm29567_vm0, %v29566_v0 }
 0x568   :  { %25712 = vmatmul.mubr.msk.bf16.gmra.mrb[200].mxu1 %vm7309_vm3, %v28606_v40  ;;  %v28637_v40 = vld [vmem:[%s37142_s10 + $0x248] sm:$0xff]  }
 0x569   :  { %25715 = vmatprep.mubr.msk.bf16.mxu1 %vm29567_vm0, %v29566_v0 }
 0x570   :  { %25716 = vmatmul.mubr.msk.bf16.gmra.mrb[204].mxu1 %vm7309_vm3, %v28608_v18 }
 0x571   :  { %25719 = vmatprep.mubr.msk.bf16.mxu1 %vm29567_vm0, %v29566_v0 }
 0x578   :  { %25720 = vmatmul.mubr.msk.bf16.gmra.mrb[208].mxu1 %vm7309_vm3, %v28609_v13 }
 0x579   :  { %25723 = vmatprep.mubr.msk.bf16.mxu1 %vm29567_vm0, %v29566_v0 }
 0x57b   :  { %v6684_v22 = vpop.f32.mrb[120].mxu1 }
 0x57c   :  { %v7062_v47 = vsel %vm6954_vm2, %v6684_v22, 0.0  ;;  %v25569_v14 = vpop.f32.mrb[121].mxu1  ;;  %v28638_v22 = vld [vmem:[%s37142_s10 + $0x80] sm:$0xff]  }
 0x57d   :  { %v7063_v41 = vadd.f32 %v7062_v47, %v7061_v6  ;;  %v6687_v28 = vpop.f32.mrb[122].mxu1  ;;  %v28639_v47 = vld [vmem:[%s37142_s10 + $0x250] sm:$0xff]   ;;  %v28640_v14 = vld [vmem:[%s37142_s10 + $0x88] sm:$0xff]  }
 0x57e   :  { %v25570_v19 = vpop.f32.mrb[123].mxu1 }
 0x57f   :  { %v7065_v17 = vadd.f32 %v7064_v45, %v7063_v41  ;;  %v28641_v45 = vld [vmem:[%s37142_s10 + $0x258] sm:$0xff]  }
 0x580   :  { %25724 = vmatmul.mubr.msk.bf16.gmra.mrb[212].mxu1 %vm7309_vm3, %v28610_v26 }
 0x581   :  { %25727 = vmatprep.mubr.msk.bf16.mxu1 %vm29567_vm0, %v29566_v0 }
 0x588   :  { %25728 = vmatmul.mubr.msk.bf16.gmra.mrb[216].mxu1 %vm7309_vm3, %v28611_v38  ;;  %v28642_v38 = vld [vmem:[%s37142_s10 + $0x90] sm:$0xff]  }
 0x589   :  { %25731 = vmatprep.mubr.msk.bf16.mxu1 %vm29567_vm0, %v29566_v0 }
 0x590   :  { %25732 = vmatmul.mubr.msk.bf16.gmra.mrb[220].mxu1 %vm7309_vm3, %v28615_v63  ;;  %v28643_v63 = vld [vmem:[%s37142_s10 + $0x260] sm:$0xff]  }
 0x591   :  { %25735 = vmatprep.mubr.msk.bf16.mxu1 %vm29567_vm0, %v29566_v0 }
 0x598   :  { %25736 = vmatmul.mubr.msk.bf16.gmra.mrb[224].mxu1 %vm7309_vm3, %v28618_v30  ;;  %v28644_v30 = vld [vmem:[%s37142_s10 + $0x98] sm:$0xff]  }
 0x599   :  { %25739 = vmatprep.mubr.msk.bf16.mxu1 %vm29567_vm0, %v29566_v0 }
 0x59b   :  { %v6860_v31 = vpop.f32.mrb[124].mxu1 }
 0x59c   :  { %v7066_v16 = vsel %vm6954_vm2, %v6860_v31, 0.0  ;;  %v25609_v54 = vpop.f32.mrb[125].mxu1 }
 0x59d   :  { %v7067_v61 = vadd.f32 %v7066_v16, %v7065_v17  ;;  %v6863_v37 = vpop.f32.mrb[126].mxu1  ;;  %v28645_v16 = vld [vmem:[%s37142_s10 + $0x268] sm:$0xff]  }
 0x59e   :  { %v25610_v48 = vpop.f32.mrb[127].mxu1  ;;  %v28646_v37 = vld [vmem:[%s37142_s10 + $0xa0] sm:$0xff]  }
 0x59f   :  { %v32439_v32 = vadd.f32 %v7068_v9, %v7067_v61  ;;  %v28647_v9 = vld [vmem:[%s37142_s10 + $0x270] sm:$0xff]  }
 0x5a0   :  { %25740 = vmatmul.mubr.msk.bf16.gmra.mrb[228].mxu1 %vm7309_vm3, %v28621_v57 }
 0x5a1   :  { %25743 = vmatprep.mubr.msk.bf16.mxu1 %vm29567_vm0, %v29566_v0 }
 0x5a8   :  { %25744 = vmatmul.mubr.msk.bf16.gmra.mrb[232].mxu1 %vm7309_vm3, %v28625_v33  ;;  %v28648_v33 = vld [vmem:[%s37142_s10 + $0xa8] sm:$0xff]  }
 0x5a9   :  { %25747 = vmatprep.mubr.msk.bf16.mxu1 %vm29567_vm0, %v29566_v0 }
 0x5ab   :  { %v7431_v39 = vpop.f32.mrb[128].mxu1 }
 0x5ac   :  { %v7432_v1 = vadd.f32 %v32451_v27, %v7431_v39  ;;  %v25641_v50 = vpop.f32.mrb[129].mxu1 }
 0x5ad   :  { %v7434_v4 = vpop.f32.mrb[130].mxu1  ;;  %v28649_v50 = vld [vmem:[%s37142_s10 + $0x278] sm:$0xff]  }
 0x5ae   :  { %v7661_v20 = vmax.f32 %v7432_v1, 0.0  ;;  %v25642_v52 = vpop.f32.mrb[131].mxu1  ;;  %v7435_v51 = vadd.f32 %v32451_v27, %v7434_v4 }
 0x5af   :  { %v28650_v52 = vld [vmem:[%s37142_s10 + $0xb0] sm:$0xff]  }
 0x5b0   :  { %v22599_v60 = vpack.c.bf16 %v7661_v20, %v7661_v20  ;;  %25748 = vmatmul.mubr.msk.bf16.gmra.mrb[236].mxu1 %vm7309_vm3, %v28628_v44  ;;  %v7662_v59 = vmax.f32 %v7435_v51, 0.0 }
 0x5b1   :  { %25751 = vmatprep.mubr.msk.bf16.mxu1 %vm29567_vm0, %v29566_v0 }
 0x5b2   :  { %25772 = vmatmul.mubr.bf16.vlgmr.msra.gmra.mrb[220].mxu0 %v22599_v60  ;;  %v22600_v26 = vpack.c.bf16 %v7662_v59, %v7662_v59  ;;  %v28651_v60 = vld [vmem:[%s37142_s10 + $0x2c0] sm:$0xff]  }
 0x5b3   :  { %25776 = vmatpush3.bf16.msra.mxu0 %v28626_v25  ;;  %v32468_v36 = vpop.f32.mrb[132].mxu1  ;;  %25791 = vmatprep.mubr.msk.bf16.mxu0 %vm29567_vm0, %v29566_v0 }
 0x5b4   :  { %v25645_v35 = vpop.f32.mrb[133].mxu1  ;;  %25777 = vmatprep.subr.bf16.mxu0 %v29566_v0  ;;  %v7440_v25 = vadd.f32 %v32451_v27, %v32468_v36 }
 0x5b5   :  { %v32476_v46 = vpop.f32.mrb[134].mxu1 }
 0x5b6   :  { %v25646_v15 = vpop.f32.mrb[135].mxu1 }
 0x5b7   :  { %25778 = vmatpush3.bf16.msra.mxu0 %v28627_v62  ;;  %v28652_v62 = vld [vmem:[%s37142_s10 + $0xb8] sm:$0xff]   ;;  %v7663_v15 = vmax.f32 %v7440_v25, 0.0 }
 0x5b8   :  { %25779 = vmatprep.subr.bf16.mxu0 %v29566_v0  ;;  %25752 = vmatmul.mubr.msk.bf16.gmra.mrb[240].mxu1 %vm7309_vm3, %v28631_v58 }
 0x5b9   :  { %25911 = vmatprep.mubr.msk.bf16.mxu1 %vm29567_vm0, %v29566_v0 }
 0x5bb   :  { %25780 = vmatpush3.bf16.msra.mxu0 %v28629_v7  ;;  %v32485_v29 = vpop.f32.mrb[136].mxu1  ;;  %v28653_v7 = vld [vmem:[%s37142_s10 + $0x2c8] sm:$0xff]  }
 0x5bc   :  { %v25649_v42 = vpop.f32.mrb[137].mxu1  ;;  %25781 = vmatprep.subr.bf16.mxu0 %v29566_v0 }
 0x5bd   :  { %v32491_v43 = vpop.f32.mrb[138].mxu1 }
 0x5be   :  { %v25650_v53 = vpop.f32.mrb[139].mxu1 }
 0x5bf   :  { %25782 = vmatpush3.bf16.msra.mxu0 %v28630_v24  ;;  %v28654_v53 = vld [vmem:[%s37142_s10 + $0xc0] sm:$0xff]  }
 0x5c0   :  { %25783 = vmatprep.subr.bf16.mxu0 %v29566_v0 }
 0x5c3   :  { %25784 = vmatpush3.bf16.msra.mxu0 %v28632_v56  ;;  %v32497_v34 = vpop.f32.mrb[140].mxu1  ;;  %v22601_v56 = vpack.c.bf16 %v7663_v15, %v7663_v15 }
 0x5c4   :  { %v25653_v10 = vpop.f32.mrb[141].mxu1  ;;  %25785 = vmatprep.subr.bf16.mxu0 %v29566_v0 }
 0x5c5   :  { %v7458_v5 = vpop.f32.mrb[142].mxu1  ;;  %v28656_v10 = vld [vmem:[%s37142_s10 + $0xc8] sm:$0xff]  }
 0x5c6   :  { %v7459_v21 = vadd.f32 %v32451_v27, %v7458_v5  ;;  %v25654_v11 = vpop.f32.mrb[143].mxu1 }
 0x5c7   :  { %25786 = vmatpush3.bf16.msra.mxu0 %v28633_v3  ;;  %v28655_v3 = vld [vmem:[%s37142_s10 + $0x2d0] sm:$0xff]   ;;  %v28657_v11 = vld [vmem:[%s37142_s10 + $0x2d8] sm:$0xff]  }
 0x5c8   :  { %v7668_v49 = vmax.f32 %v7459_v21, 0.0  ;;  %25787 = vmatprep.subr.bf16.mxu0 %v29566_v0 }
 0x5ca   :  { %v22606_v55 = vpack.c.bf16 %v7668_v49, %v7668_v49  ;;  %v28658_v49 = vld [vmem:[%s37142_s10 + $0xd0] sm:$0xff]  }
 0x5cb   :  { %25788 = vmatpush3.bf16.msra.mxu0 %v28634_v2  ;;  %v32515_v12 = vpop.f32.mrb[144].mxu1 }
 0x5cc   :  { %25912 = vmatmul.mubr.bf16.vlgmr.msra.gmra.mrb[244].mxu1 %v22606_v55  ;;  %25789 = vmatprep.subr.bf16.mxu0 %v29566_v0  ;;  %v25657_v6 = vpop.f32.mrb[145].mxu1  ;;  %v28660_v55 = vld [vmem:[%s37142_s10 + $0xd8] sm:$0xff]  }
 0x5cd   :  { %25936 = vmatpush3.bf16.msra.mxu1 %v28635_v8  ;;  %v7466_v18 = vpop.f32.mrb[146].mxu1  ;;  %25951 = vmatprep.mubr.msk.bf16.mxu1 %vm29567_vm0, %v29566_v0  ;;  %v28659_v8 = vld [vmem:[%s37142_s10 + $0x2e0] sm:$0xff]   ;;  %v28661_v6 = vld [vmem:[%s37142_s10 + $0x2e8] sm:$0xff]  }
 0x5ce   :  { %25937 = vmatprep.subr.bf16.mxu1 %v29566_v0  ;;  %v25658_v13 = vpop.f32.mrb[147].mxu1  ;;  %v7467_v48 = vadd.f32 %v32451_v27, %v7466_v18 }
 0x5cf   :  { %25790 = vmatpush3.bf16.msra.mxu0 %v28636_v23  ;;  %v28662_v13 = vld [vmem:[%s37142_s10 + $0xe0] sm:$0xff]  }
 0x5d0   :  { %25795 = vmatprep.subr.bf16.mxu0 %v29566_v0  ;;  %v7670_v4 = vmax.f32 %v7467_v48, 0.0  ;;  %v28669_v48 = vld [vmem:[%s37142_s10 + $0x348] sm:$0xff]  }
 0x5d1   :  { %25938 = vmatpush3.bf16.msra.mxu1 %v28637_v40 }
 0x5d2   :  { %25792 = vmatmul.mubr.bf16.vlgmr.msra.gmra.mrb[224].mxu0 %v22600_v26  ;;  %25939 = vmatprep.subr.bf16.mxu1 %v29566_v0  ;;  %v22608_v58 = vpack.c.bf16 %v7670_v4, %v7670_v4 }
 0x5d3   :  { %25796 = vmatpush3.bf16.msra.mxu0 %v28638_v22  ;;  %v32535_v41 = vpop.f32.mrb[148].mxu1  ;;  %25811 = vmatprep.mubr.msk.bf16.mxu0 %vm29567_vm0, %v29566_v0  ;;  %v28663_v22 = vld [vmem:[%s37142_s10 + $0x2f0] sm:$0xff]  }
 0x5d4   :  { %25797 = vmatprep.subr.bf16.mxu0 %v29566_v0  ;;  %v25661_v28 = vpop.f32.mrb[149].mxu1 }
 0x5d5   :  { %25940 = vmatpush3.bf16.msra.mxu1 %v28639_v47  ;;  %v32543_v19 = vpop.f32.mrb[150].mxu1  ;;  %v28664_v47 = vld [vmem:[%s37142_s10 + $0xe8] sm:$0xff]  }
 0x5d6   :  { %25941 = vmatprep.subr.bf16.mxu1 %v29566_v0  ;;  %v25662_v17 = vpop.f32.mrb[151].mxu1  ;;  %v7475_v26 = vadd.f32 %v32451_v27, %v32543_v19 }
 0x5d7   :  { %25798 = vmatpush3.bf16.msra.mxu0 %v28640_v14 }
 0x5d8   :  { %25799 = vmatprep.subr.bf16.mxu0 %v29566_v0  ;;  %v7672_v19 = vmax.f32 %v7475_v26, 0.0  ;;  %v7448_v26 = vadd.f32 %v32451_v27, %v32485_v29 }
 0x5d9   :  { %25942 = vmatpush3.bf16.msra.mxu1 %v28641_v45  ;;  %v28665_v45 = vld [vmem:[%s37142_s10 + $0x2f8] sm:$0xff]  }
 0x5da   :  { %25943 = vmatprep.subr.bf16.mxu1 %v29566_v0 }
 0x5db   :  { %25800 = vmatpush3.bf16.msra.mxu0 %v28642_v38  ;;  %v32557_v31 = vpop.f32.mrb[152].mxu1 }
 0x5dc   :  { %25801 = vmatprep.subr.bf16.mxu0 %v29566_v0  ;;  %v25665_v57 = vpop.f32.mrb[153].mxu1 }
 0x5dd   :  { %25944 = vmatpush3.bf16.msra.mxu1 %v28643_v63  ;;  %v32563_v54 = vpop.f32.mrb[154].mxu1  ;;  %v28666_v63 = vld [vmem:[%s37142_s10 + $0xf0] sm:$0xff]   ;;  %v28667_v57 = vld [vmem:[%s37142_s10 + $0x340] sm:$0xff]  }
 0x5de   :  { %25945 = vmatprep.subr.bf16.mxu1 %v29566_v0  ;;  %v25666_v61 = vpop.f32.mrb[155].mxu1 }
 0x5df   :  { %25802 = vmatpush3.bf16.msra.mxu0 %v28644_v30  ;;  %v7443_v30 = vadd.f32 %v32451_v27, %v32476_v46  ;;  %v28668_v61 = vld [vmem:[%s37142_s10 + $0xf8] sm:$0xff]  }
 0x5e0   :  { %25803 = vmatprep.subr.bf16.mxu0 %v29566_v0 }
 0x5e1   :  { %25946 = vmatpush3.bf16.msra.mxu1 %v28645_v16  ;;  %v22610_v16 = vpack.c.bf16 %v7672_v19, %v7672_v19 }
 0x5e2   :  { %25947 = vmatprep.subr.bf16.mxu1 %v29566_v0 }
 0x5e3   :  { %25804 = vmatpush3.bf16.msra.mxu0 %v28646_v37  ;;  %v32578_v39 = vpop.f32.mrb[156].mxu1 }
 0x5e4   :  { %25805 = vmatprep.subr.bf16.mxu0 %v29566_v0  ;;  %v25669_v1 = vpop.f32.mrb[157].mxu1 }
 0x5e5   :  { %25948 = vmatpush3.bf16.msra.mxu1 %v28647_v9  ;;  %v32584_v44 = vpop.f32.mrb[158].mxu1  ;;  %v7664_v9 = vmax.f32 %v7443_v30, 0.0 }
 0x5e6   :  { %25949 = vmatprep.subr.bf16.mxu1 %v29566_v0  ;;  %v25670_v20 = vpop.f32.mrb[159].mxu1 }
 0x5e7   :  { %25806 = vmatpush3.bf16.msra.mxu0 %v28648_v33  ;;  %v22602_v4 = vpack.c.bf16 %v7664_v9, %v7664_v9  ;;  %v28671_v20 = vld [vmem:[%s37142_s10 + $0x350] sm:$0xff]  }
 0x5e8   :  { %25807 = vmatprep.subr.bf16.mxu0 %v29566_v0  ;;  %v28687_v9 = vld [vmem:[%s37142_s10 + $0x3d0] sm:$0xff]  }
 0x5e9   :  { %25950 = vmatpush3.bf16.msra.mxu1 %v28649_v50  ;;  %v28670_v50 = vld [vmem:[%s37142_s10 + $0x100] sm:$0xff]  }
 0x5ea   :  { %25975 = vmatprep.subr.bf16.mxu1 %v29566_v0 }
 0x5eb   :  { %25808 = vmatpush3.bf16.msra.mxu0 %v28650_v52  ;;  %v32600_v35 = vpop.f32.mrb[160].mxu1  ;;  %v28672_v52 = vld [vmem:[%s37142_s10 + $0x108] sm:$0xff]  }
 0x5ec   :  { %25952 = vmatmul.mubr.bf16.vlgmr.msra.gmra.mrb[248].mxu1 %v22608_v58  ;;  %25809 = vmatprep.subr.bf16.mxu0 %v29566_v0  ;;  %v25673_v36 = vpop.f32.mrb[161].mxu1  ;;  %v28673_v58 = vld [vmem:[%s37142_s10 + $0x358] sm:$0xff]  }
 0x5ed   :  { %25976 = vmatpush3.bf16.msra.mxu1 %v28651_v60  ;;  %v32606_v24 = vpop.f32.mrb[162].mxu1  ;;  %25991 = vmatprep.mubr.msk.bf16.mxu1 %vm29567_vm0, %v29566_v0  ;;  %v28674_v36 = vld [vmem:[%s37142_s10 + $0x110] sm:$0xff]  }
 0x5ee   :  { %25977 = vmatprep.subr.bf16.mxu1 %v29566_v0  ;;  %v25674_v42 = vpop.f32.mrb[163].mxu1 }
 0x5ef   :  { %25810 = vmatpush3.bf16.msra.mxu0 %v28652_v62  ;;  %v28676_v42 = vld [vmem:[%s37142_s10 + $0x118] sm:$0xff]  }
 0x5f0   :  { %25815 = vmatprep.subr.bf16.mxu0 %v29566_v0 }
 0x5f1   :  { %25978 = vmatpush3.bf16.msra.mxu1 %v28653_v7  ;;  %v28675_v7 = vld [vmem:[%s37142_s10 + $0x360] sm:$0xff]  }
 0x5f2   :  { %25812 = vmatmul.mubr.bf16.vlgmr.msra.gmra.mrb[228].mxu0 %v22601_v56  ;;  %25979 = vmatprep.subr.bf16.mxu1 %v29566_v0 }
 0x5f3   :  { %25816 = vmatpush3.bf16.msra.mxu0 %v28654_v53  ;;  %v32622_v5 = vpop.f32.mrb[164].mxu1  ;;  %25831 = vmatprep.mubr.msk.bf16.mxu0 %vm29567_vm0, %v29566_v0 }
 0x5f4   :  { %25817 = vmatprep.subr.bf16.mxu0 %v29566_v0  ;;  %v25677_v21 = vpop.f32.mrb[165].mxu1 }
 0x5f5   :  { %25980 = vmatpush3.bf16.msra.mxu1 %v28655_v3  ;;  %v32630_v2 = vpop.f32.mrb[166].mxu1  ;;  %v28677_v3 = vld [vmem:[%s37142_s10 + $0x368] sm:$0xff]  }
 0x5f6   :  { %25981 = vmatprep.subr.bf16.mxu1 %v29566_v0  ;;  %v25678_v51 = vpop.f32.mrb[167].mxu1 }
 0x5f7   :  { %25818 = vmatpush3.bf16.msra.mxu0 %v28656_v10  ;;  %v28679_v51 = vld [vmem:[%s37142_s10 + $0x370] sm:$0xff]  }
 0x5f8   :  { %25819 = vmatprep.subr.bf16.mxu0 %v29566_v0 }
 0x5f9   :  { %25982 = vmatpush3.bf16.msra.mxu1 %v28657_v11  ;;  %v28678_v11 = vld [vmem:[%s37142_s10 + $0x120] sm:$0xff]  }
 0x5fa   :  { %25983 = vmatprep.subr.bf16.mxu1 %v29566_v0 }
 0x5fb   :  { %25820 = vmatpush3.bf16.msra.mxu0 %v28658_v49  ;;  %v32644_v23 = vpop.f32.mrb[168].mxu1  ;;  %v7483_v49 = vadd.f32 %v32451_v27, %v32563_v54 }
 0x5fc   :  { %25821 = vmatprep.subr.bf16.mxu0 %v29566_v0  ;;  %v25681_v59 = vpop.f32.mrb[169].mxu1 }
 0x5fd   :  { %25984 = vmatpush3.bf16.msra.mxu1 %v28659_v8  ;;  %v32650_v40 = vpop.f32.mrb[170].mxu1  ;;  %v28680_v8 = vld [vmem:[%s37142_s10 + $0x128] sm:$0xff]   ;;  %v7674_v54 = vmax.f32 %v7483_v49, 0.0 }
 0x5fe   :  { %25985 = vmatprep.subr.bf16.mxu1 %v29566_v0  ;;  %v25682_v18 = vpop.f32.mrb[171].mxu1 }
 0x5ff   :  { %25822 = vmatpush3.bf16.msra.mxu0 %v28660_v55 }
 0x600   :  { %25823 = vmatprep.subr.bf16.mxu0 %v29566_v0 }
 0x601   :  { %25986 = vmatpush3.bf16.msra.mxu1 %v28661_v6  ;;  %v28681_v6 = vld [vmem:[%s37142_s10 + $0x378] sm:$0xff]  }
 0x602   :  { %25987 = vmatprep.subr.bf16.mxu1 %v29566_v0 }
 0x603   :  { %25824 = vmatpush3.bf16.msra.mxu0 %v28662_v13  ;;  %v32666_v14 = vpop.f32.mrb[172].mxu1 }
 0x604   :  { %25825 = vmatprep.subr.bf16.mxu0 %v29566_v0  ;;  %v25685_v28 = vpop.f32.mrb[173].mxu1 }
 0x605   :  { %25988 = vmatpush3.bf16.msra.mxu1 %v28663_v22  ;;  %v32672_v17 = vpop.f32.mrb[174].mxu1  ;;  %v28682_v22 = vld [vmem:[%s37142_s10 + $0x130] sm:$0xff]   ;;  %v22612_v28 = vpack.c.bf16 %v7674_v54, %v7674_v54 }
 0x606   :  { %25989 = vmatprep.subr.bf16.mxu1 %v29566_v0  ;;  %v25686_v38 = vpop.f32.mrb[175].mxu1 }
 0x607   :  { %25826 = vmatpush3.bf16.msra.mxu0 %v28664_v47  ;;  %v28683_v47 = vld [vmem:[%s37142_s10 + $0x3c0] sm:$0xff]   ;;  %v7665_v38 = vmax.f32 %v7448_v26, 0.0 }
 0x608   :  { %25827 = vmatprep.subr.bf16.mxu0 %v29566_v0  ;;  %v28699_v26 = vld [vmem:[%s37142_s10 + $0x440] sm:$0xff]  }
 0x609   :  { %25990 = vmatpush3.bf16.msra.mxu1 %v28665_v45  ;;  %v28684_v45 = vld [vmem:[%s37142_s10 + $0x138] sm:$0xff]  }
 0x60a   :  { %26015 = vmatprep.subr.bf16.mxu1 %v29566_v0 }
 0x60b   :  { %25828 = vmatpush3.bf16.msra.mxu0 %v28666_v63  ;;  %v32688_v37 = vpop.f32.mrb[176].mxu1  ;;  %v28685_v63 = vld [vmem:[%s37142_s10 + $0x3c8] sm:$0xff]  }
 0x60c   :  { %25992 = vmatmul.mubr.bf16.vlgmr.msra.gmra.mrb[252].mxu1 %v22610_v16  ;;  %25829 = vmatprep.subr.bf16.mxu0 %v29566_v0  ;;  %v25689_v46 = vpop.f32.mrb[177].mxu1  ;;  %v28686_v16 = vld [vmem:[%s37142_s10 + $0x140] sm:$0xff]  }
 0x60d   :  { %26016 = vmatpush3.bf16.msra.mxu1 %v28667_v57  ;;  %v32694_v33 = vpop.f32.mrb[178].mxu1  ;;  %26031 = vmatprep.mubr.msk.bf16.mxu1 %vm29567_vm0, %v29566_v0  ;;  %v28688_v46 = vld [vmem:[%s37142_s10 + $0x148] sm:$0xff]  }
 0x60e   :  { %26017 = vmatprep.subr.bf16.mxu1 %v29566_v0  ;;  %v25690_v1 = vpop.f32.mrb[179].mxu1 }
 0x60f   :  { %25830 = vmatpush3.bf16.msra.mxu0 %v28668_v61  ;;  %v22603_v61 = vpack.c.bf16 %v7665_v38, %v7665_v38 }
 0x610   :  { %25835 = vmatprep.subr.bf16.mxu0 %v29566_v0 }
 0x611   :  { %26018 = vmatpush3.bf16.msra.mxu1 %v28669_v48 }
 0x612   :  { %25832 = vmatmul.mubr.bf16.vlgmr.msra.gmra.mrb[232].mxu0 %v22602_v4  ;;  %26019 = vmatprep.subr.bf16.mxu1 %v29566_v0 }
 0x613   :  { %25836 = vmatpush3.bf16.msra.mxu0 %v28670_v50  ;;  %v32710_v25 = vpop.f32.mrb[180].mxu1  ;;  %25851 = vmatprep.mubr.msk.bf16.mxu0 %vm29567_vm0, %v29566_v0  ;;  %v28689_v50 = vld [vmem:[%s37142_s10 + $0x3d8] sm:$0xff]  }
 0x614   :  { %25837 = vmatprep.subr.bf16.mxu0 %v29566_v0  ;;  %v25693_v60 = vpop.f32.mrb[181].mxu1 }
 0x615   :  { %26020 = vmatpush3.bf16.msra.mxu1 %v28671_v20  ;;  %v32718_v62 = vpop.f32.mrb[182].mxu1  ;;  %v28691_v60 = vld [vmem:[%s37142_s10 + $0x3e0] sm:$0xff]  }
 0x616   :  { %26021 = vmatprep.subr.bf16.mxu1 %v29566_v0  ;;  %v25694_v15 = vpop.f32.mrb[183].mxu1 }
 0x617   :  { %25838 = vmatpush3.bf16.msra.mxu0 %v28672_v52  ;;  %v28690_v52 = vld [vmem:[%s37142_s10 + $0x150] sm:$0xff]  }
 0x618   :  { %25839 = vmatprep.subr.bf16.mxu0 %v29566_v0 }
 0x619   :  { %26022 = vmatpush3.bf16.msra.mxu1 %v28673_v58  ;;  %v28692_v58 = vld [vmem:[%s37142_s10 + $0x158] sm:$0xff]  }
 0x61a   :  { %26023 = vmatprep.subr.bf16.mxu1 %v29566_v0 }
 0x61b   :  { %25840 = vmatpush3.bf16.msra.mxu0 %v28674_v36  ;;  %v32732_v53 = vpop.f32.mrb[184].mxu1 }
 0x61c   :  { %25841 = vmatprep.subr.bf16.mxu0 %v29566_v0  ;;  %v25697_v56 = vpop.f32.mrb[185].mxu1 }
 0x61d   :  { %26024 = vmatpush3.bf16.msra.mxu1 %v28675_v7  ;;  %v32738_v10 = vpop.f32.mrb[186].mxu1  ;;  %v28693_v7 = vld [vmem:[%s37142_s10 + $0x3e8] sm:$0xff]  }
 0x61e   :  { %26025 = vmatprep.subr.bf16.mxu1 %v29566_v0  ;;  %v25698_v21 = vpop.f32.mrb[187].mxu1 }
 0x61f   :  { %25842 = vmatpush3.bf16.msra.mxu0 %v28676_v42  ;;  %v28695_v21 = vld [vmem:[%s37142_s10 + $0x3f0] sm:$0xff]  }
 0x620   :  { %25843 = vmatprep.subr.bf16.mxu0 %v29566_v0 }
 0x621   :  { %26026 = vmatpush3.bf16.msra.mxu1 %v28677_v3  ;;  %v28694_v3 = vld [vmem:[%s37142_s10 + $0x160] sm:$0xff]  }
 0x622   :  { %26027 = vmatprep.subr.bf16.mxu1 %v29566_v0 }
 0x623   :  { %25844 = vmatpush3.bf16.msra.mxu0 %v28678_v11  ;;  %v32754_v55 = vpop.f32.mrb[188].mxu1  ;;  %v7491_v11 = vadd.f32 %v32451_v27, %v32584_v44 }
 0x624   :  { %25845 = vmatprep.subr.bf16.mxu0 %v29566_v0  ;;  %v25701_v59 = vpop.f32.mrb[189].mxu1 }
 0x625   :  { %26028 = vmatpush3.bf16.msra.mxu1 %v28679_v51  ;;  %v32760_v18 = vpop.f32.mrb[190].mxu1  ;;  %v28696_v51 = vld [vmem:[%s37142_s10 + $0x168] sm:$0xff]   ;;  %v28697_v59 = vld [vmem:[%s37142_s10 + $0x3f8] sm:$0xff]   ;;  %v7676_v44 = vmax.f32 %v7491_v11, 0.0 }
 0x626   :  { %26029 = vmatprep.subr.bf16.mxu1 %v29566_v0  ;;  %v25702_v13 = vpop.f32.mrb[191].mxu1 }
 0x627   :  { %25846 = vmatpush3.bf16.msra.mxu0 %v28680_v8  ;;  %v28698_v13 = vld [vmem:[%s37142_s10 + $0x170] sm:$0xff]  }
 0x628   :  { %25847 = vmatprep.subr.bf16.mxu0 %v29566_v0 }
 0x629   :  { %26030 = vmatpush3.bf16.msra.mxu1 %v28681_v6 }
 0x62a   :  { %26055 = vmatprep.subr.bf16.mxu1 %v29566_v0 }
 0x62b   :  { %25848 = vmatpush3.bf16.msra.mxu0 %v28682_v22  ;;  %v32776_v19 = vpop.f32.mrb[192].mxu1  ;;  %v7451_v22 = vadd.f32 %v32451_v27, %v32491_v43 }
 0x62c   :  { %26032 = vmatmul.mubr.bf16.vlgmr.msra.gmra.mrb[0].mxu1 %v22612_v28  ;;  %25849 = vmatprep.subr.bf16.mxu0 %v29566_v0  ;;  %v25705_v29 = vpop.f32.mrb[193].mxu1  ;;  %v28700_v28 = vld [vmem:[%s37142_s10 + $0x178] sm:$0xff]  }
 0x62d   :  { %26056 = vmatpush3.bf16.msra.mxu1 %v28683_v47  ;;  %v32782_v30 = vpop.f32.mrb[194].mxu1  ;;  %26071 = vmatprep.mubr.msk.bf16.mxu1 %vm29567_vm0, %v29566_v0  ;;  %v22614_v47 = vpack.c.bf16 %v7676_v44, %v7676_v44  ;;  %v7666_v38 = vmax.f32 %v7451_v22, 0.0  ;;  %v28701_v29 = vld [vmem:[%s37142_s10 + $0x448] sm:$0xff]   ;;  %v7499_v44 = vadd.f32 %v32451_v27, %v32606_v24 }
 0x62e   :  { %26057 = vmatprep.subr.bf16.mxu1 %v29566_v0  ;;  %v25706_v57 = vpop.f32.mrb[195].mxu1 }
 0x62f   :  { %25850 = vmatpush3.bf16.msra.mxu0 %v28684_v45  ;;  %v7678_v27 = vmax.f32 %v7499_v44, 0.0  ;;  %v28722_v44 = vld [vmem:[%s37142_s10 + $0x210] sm:$0xff]  }
 0x630   :  { %25855 = vmatprep.subr.bf16.mxu0 %v29566_v0 }
 0x631   :  { %26058 = vmatpush3.bf16.msra.mxu1 %v28685_v63 }
 0x632   :  { %25852 = vmatmul.mubr.bf16.vlgmr.msra.gmra.mrb[236].mxu0 %v22603_v61  ;;  %26059 = vmatprep.subr.bf16.mxu1 %v29566_v0  ;;  %v22604_v61 = vpack.c.bf16 %v7666_v38, %v7666_v38  ;;  %v32945_v38 = vld [vmem:[%s37143_s6] ss:$0 sm:$0xff] }
 0x633   :  { %25856 = vmatpush3.bf16.msra.mxu0 %v28686_v16  ;;  %v32798_v48 = vpop.f32.mrb[196].mxu1  ;;  %25871 = vmatprep.mubr.msk.bf16.mxu0 %vm29567_vm0, %v29566_v0  ;;  %v28702_v16 = vld [vmem:[%s37142_s10 + $0x180] sm:$0xff]  }
 0x634   :  { %25857 = vmatprep.subr.bf16.mxu0 %v29566_v0  ;;  %v25709_v1 = vpop.f32.mrb[197].mxu1 }
 0x635   :  { %26060 = vmatpush3.bf16.msra.mxu1 %v28687_v9  ;;  %v32806_v4 = vpop.f32.mrb[198].mxu1  ;;  %v28703_v9 = vld [vmem:[%s37142_s10 + $0x450] sm:$0xff]  }
 0x636   :  { %26061 = vmatprep.subr.bf16.mxu1 %v29566_v0  ;;  %v25710_v20 = vpop.f32.mrb[199].mxu1 }
 0x637   :  { %25858 = vmatpush3.bf16.msra.mxu0 %v28688_v46  ;;  %v28704_v46 = vld [vmem:[%s37142_s10 + $0x188] sm:$0xff]   ;;  %v28705_v20 = vld [vmem:[%s37142_s10 + $0x458] sm:$0xff]  }
 0x638   :  { %25859 = vmatprep.subr.bf16.mxu0 %v29566_v0 }
 0x639   :  { %26062 = vmatpush3.bf16.msra.mxu1 %v28689_v50 }
 0x63a   :  { %26063 = vmatprep.subr.bf16.mxu1 %v29566_v0 }
 0x63b   :  { %25860 = vmatpush3.bf16.msra.mxu0 %v28690_v52  ;;  %v32820_v15 = vpop.f32.mrb[200].mxu1 }
 0x63c   :  { %25861 = vmatprep.subr.bf16.mxu0 %v29566_v0  ;;  %v25713_v36 = vpop.f32.mrb[201].mxu1 }
 0x63d   :  { %26064 = vmatpush3.bf16.msra.mxu1 %v28691_v60  ;;  %v32826_v42 = vpop.f32.mrb[202].mxu1  ;;  %v28707_v36 = vld [vmem:[%s37142_s10 + $0x460] sm:$0xff]  }
 0x63e   :  { %26065 = vmatprep.subr.bf16.mxu1 %v29566_v0  ;;  %v25714_v56 = vpop.f32.mrb[203].mxu1 }
 0x63f   :  { %25862 = vmatpush3.bf16.msra.mxu0 %v28692_v58  ;;  %v28706_v58 = vld [vmem:[%s37142_s10 + $0x190] sm:$0xff]  }
 0x640   :  { %25863 = vmatprep.subr.bf16.mxu0 %v29566_v0 }
 0x641   :  { %26066 = vmatpush3.bf16.msra.mxu1 %v28693_v7  ;;  %v28708_v7 = vld [vmem:[%s37142_s10 + $0x198] sm:$0xff]  }
 0x642   :  { %26067 = vmatprep.subr.bf16.mxu1 %v29566_v0 }
 0x643   :  { %25864 = vmatpush3.bf16.msra.mxu0 %v28694_v3  ;;  %v32842_v49 = vpop.f32.mrb[204].mxu1 }
 0x644   :  { %25865 = vmatprep.subr.bf16.mxu0 %v29566_v0  ;;  %v25717_v8 = vpop.f32.mrb[205].mxu1 }
 0x645   :  { %26068 = vmatpush3.bf16.msra.mxu1 %v28695_v21  ;;  %v32848_v6 = vpop.f32.mrb[206].mxu1  ;;  %v28709_v21 = vld [vmem:[%s37142_s10 + $0x468] sm:$0xff]   ;;  %v28710_v8 = vld [vmem:[%s37142_s10 + $0x1a0] sm:$0xff]  }
 0x646   :  { %26069 = vmatprep.subr.bf16.mxu1 %v29566_v0  ;;  %v25718_v54 = vpop.f32.mrb[207].mxu1 }
 0x647   :  { %25866 = vmatpush3.bf16.msra.mxu0 %v28696_v51  ;;  %v28712_v54 = vld [vmem:[%s37142_s10 + $0x1a8] sm:$0xff]  }
 0x648   :  { %25867 = vmatprep.subr.bf16.mxu0 %v29566_v0 }
 0x649   :  { %26070 = vmatpush3.bf16.msra.mxu1 %v28697_v59  ;;  %v28711_v59 = vld [vmem:[%s37142_s10 + $0x470] sm:$0xff]  }
 0x64a   :  { %26095 = vmatprep.subr.bf16.mxu1 %v29566_v0 }
 0x64b   :  { %25868 = vmatpush3.bf16.msra.mxu0 %v28698_v13  ;;  %v32864_v45 = vpop.f32.mrb[208].mxu1 }
 0x64c   :  { %26072 = vmatmul.mubr.bf16.vlgmr.msra.gmra.mrb[4].mxu1 %v22614_v47  ;;  %25869 = vmatprep.subr.bf16.mxu0 %v29566_v0  ;;  %v25721_v43 = vpop.f32.mrb[209].mxu1 }
 0x64d   :  { %26096 = vmatpush3.bf16.msra.mxu1 %v28699_v26  ;;  %v32870_v63 = vpop.f32.mrb[210].mxu1  ;;  %26111 = vmatprep.mubr.msk.bf16.mxu1 %vm29567_vm0, %v29566_v0  ;;  %v28713_v26 = vld [vmem:[%s37142_s10 + $0x478] sm:$0xff]   ;;  %v7456_v43 = vadd.f32 %v32945_v38, %v32497_v34 }
 0x64e   :  { %26097 = vmatprep.subr.bf16.mxu1 %v29566_v0  ;;  %v25722_v57 = vpop.f32.mrb[211].mxu1 }
 0x64f   :  { %25870 = vmatpush3.bf16.msra.mxu0 %v28700_v28  ;;  %v28714_v28 = vld [vmem:[%s37142_s10 + $0x1b0] sm:$0xff]   ;;  %v22616_v57 = vpack.c.bf16 %v7678_v27, %v7678_v27 }
 0x650   :  { %25875 = vmatprep.subr.bf16.mxu0 %v29566_v0 }
 0x651   :  { %26098 = vmatpush3.bf16.msra.mxu1 %v28701_v29  ;;  %v28715_v29 = vld [vmem:[%s37142_s10 + $0x4c0] sm:$0xff]  }
 0x652   :  { %25872 = vmatmul.mubr.bf16.vlgmr.msra.gmra.mrb[240].mxu0 %v22604_v61  ;;  %26099 = vmatprep.subr.bf16.mxu1 %v29566_v0 }
 0x653   :  { %25876 = vmatpush3.bf16.msra.mxu0 %v28702_v16  ;;  %v32886_v1 = vpop.f32.mrb[212].mxu1  ;;  %25891 = vmatprep.mubr.msk.bf16.mxu0 %vm29567_vm0, %v29566_v0  ;;  %v28716_v16 = vld [vmem:[%s37142_s10 + $0x1b8] sm:$0xff]  }
 0x654   :  { %25877 = vmatprep.subr.bf16.mxu0 %v29566_v0  ;;  %v25725_v50 = vpop.f32.mrb[213].mxu1 }
 0x655   :  { %26100 = vmatpush3.bf16.msra.mxu1 %v28703_v9  ;;  %v32894_v52 = vpop.f32.mrb[214].mxu1  ;;  %v7667_v9 = vmax.f32 %v7456_v43, 0.0 }
 0x656   :  { %26101 = vmatprep.subr.bf16.mxu1 %v29566_v0  ;;  %v25726_v60 = vpop.f32.mrb[215].mxu1 }
 0x657   :  { %25878 = vmatpush3.bf16.msra.mxu0 %v28704_v46  ;;  %v28717_v46 = vld [vmem:[%s37142_s10 + $0x4c8] sm:$0xff]   ;;  %v28718_v60 = vld [vmem:[%s37142_s10 + $0x200] sm:$0xff]  }
 0x658   :  { %25879 = vmatprep.subr.bf16.mxu0 %v29566_v0 }
 0x659   :  { %26102 = vmatpush3.bf16.msra.mxu1 %v28705_v20 }
 0x65a   :  { %26103 = vmatprep.subr.bf16.mxu1 %v29566_v0 }
 0x65b   :  { %25880 = vmatpush3.bf16.msra.mxu0 %v28706_v58  ;;  %v32908_v56 = vpop.f32.mrb[216].mxu1  ;;  %v22605_v58 = vpack.c.bf16 %v7667_v9, %v7667_v9  ;;  %v28728_v9 = vld [vmem:[%s37142_s10 + $0x228] sm:$0xff]  }
 0x65c   :  { %25881 = vmatprep.subr.bf16.mxu0 %v29566_v0  ;;  %v25729_v3 = vpop.f32.mrb[217].mxu1 }
 0x65d   :  { %26104 = vmatpush3.bf16.msra.mxu1 %v28707_v36  ;;  %v32914_v11 = vpop.f32.mrb[218].mxu1  ;;  %v28719_v36 = vld [vmem:[%s37142_s10 + $0x4d0] sm:$0xff]  }
 0x65e   :  { %26105 = vmatprep.subr.bf16.mxu1 %v29566_v0  ;;  %v25730_v51 = vpop.f32.mrb[219].mxu1 }
 0x65f   :  { %25882 = vmatpush3.bf16.msra.mxu0 %v28708_v7  ;;  %v28720_v7 = vld [vmem:[%s37142_s10 + $0x208] sm:$0xff]   ;;  %v28721_v51 = vld [vmem:[%s37142_s10 + $0x4d8] sm:$0xff]  }
 0x660   :  { %25883 = vmatprep.subr.bf16.mxu0 %v29566_v0 }
 0x661   :  { %26106 = vmatpush3.bf16.msra.mxu1 %v28709_v21 }
 0x662   :  { %26107 = vmatprep.subr.bf16.mxu1 %v29566_v0 }
 0x663   :  { %25884 = vmatpush3.bf16.msra.mxu0 %v28710_v8  ;;  %v32930_v13 = vpop.f32.mrb[220].mxu1 }
 0x664   :  { %25885 = vmatprep.subr.bf16.mxu0 %v29566_v0  ;;  %v25733_v22 = vpop.f32.mrb[221].mxu1 }
 0x665   :  { %26108 = vmatpush3.bf16.msra.mxu1 %v28711_v59  ;;  %v32936_v47 = vpop.f32.mrb[222].mxu1  ;;  %v28724_v22 = vld [vmem:[%s37142_s10 + $0x218] sm:$0xff]  }
 0x666   :  { %26109 = vmatprep.subr.bf16.mxu1 %v29566_v0  ;;  %v25734_v24 = vpop.f32.mrb[223].mxu1 }
 0x667   :  { %25886 = vmatpush3.bf16.msra.mxu0 %v28712_v54  ;;  %v28723_v54 = vld [vmem:[%s37142_s10 + $0x4e0] sm:$0xff]   ;;  %v28725_v24 = vld [vmem:[%s37142_s10 + $0x4e8] sm:$0xff]  }
 0x668   :  { %25887 = vmatprep.subr.bf16.mxu0 %v29566_v0 }
 0x669   :  { %26110 = vmatpush3.bf16.msra.mxu1 %v28713_v26 }
 0x66a   :  { %26135 = vmatprep.subr.bf16.mxu1 %v29566_v0 }
 0x66b   :  { %25888 = vmatpush3.bf16.msra.mxu0 %v28714_v28  ;;  %v32957_v61 = vpop.f32.mrb[224].mxu1 }
 0x66c   :  { %26112 = vmatmul.mubr.bf16.vlgmr.msra.gmra.mrb[8].mxu1 %v22616_v57  ;;  %25889 = vmatprep.subr.bf16.mxu0 %v29566_v0  ;;  %v25737_v34 = vpop.f32.mrb[225].mxu1  ;;  %v28727_v57 = vld [vmem:[%s37142_s10 + $0x4f0] sm:$0xff]  }
 0x66d   :  { %26136 = vmatpush3.bf16.msra.mxu1 %v28715_v29  ;;  %v32963_v50 = vpop.f32.mrb[226].mxu1  ;;  %26151 = vmatprep.mubr.msk.bf16.mxu1 %vm29567_vm0, %v29566_v0  ;;  %v28726_v29 = vld [vmem:[%s37142_s10 + $0x220] sm:$0xff]  }
 0x66e   :  { %26137 = vmatprep.subr.bf16.mxu1 %v29566_v0  ;;  %v25738_v20 = vpop.f32.mrb[227].mxu1 }
 0x66f   :  { %25890 = vmatpush3.bf16.msra.mxu0 %v28716_v16  ;;  %v7507_v16 = vadd.f32 %v32945_v38, %v32630_v2 }
 0x670   :  { %25915 = vmatprep.subr.bf16.mxu0 %v29566_v0 }
 0x671   :  { %26138 = vmatpush3.bf16.msra.mxu1 %v28717_v46 }
 0x672   :  { %25892 = vmatmul.mubr.bf16.vlgmr.msra.gmra.mrb[244].mxu0 %v22605_v58  ;;  %26139 = vmatprep.subr.bf16.mxu1 %v29566_v0  ;;  %v7680_v58 = vmax.f32 %v7507_v16, 0.0 }
 0x673   :  { %25916 = vmatpush3.bf16.msra.mxu0 %v28718_v60  ;;  %v32979_v3 = vpop.f32.mrb[228].mxu1  ;;  %25931 = vmatprep.mubr.msk.bf16.mxu0 %vm29567_vm0, %v29566_v0  ;;  %v28729_v60 = vld [vmem:[%s37142_s10 + $0x4f8] sm:$0xff]  }
 0x674   :  { %25917 = vmatprep.subr.bf16.mxu0 %v29566_v0  ;;  %v25741_v21 = vpop.f32.mrb[229].mxu1 }
 0x675   :  { %26140 = vmatpush3.bf16.msra.mxu1 %v28719_v36  ;;  %v32987_v8 = vpop.f32.mrb[230].mxu1 }
 0x676   :  { %26141 = vmatprep.subr.bf16.mxu1 %v29566_v0  ;;  %v25742_v59 = vpop.f32.mrb[231].mxu1 }
 0x677   :  { %25918 = vmatpush3.bf16.msra.mxu0 %v28720_v7  ;;  %v7464_v59 = vadd.f32 %v32945_v38, %v32515_v12 }
 0x678   :  { %25919 = vmatprep.subr.bf16.mxu0 %v29566_v0 }
 0x679   :  { %26142 = vmatpush3.bf16.msra.mxu1 %v28721_v51  ;;  %v28730_v51 = vld [vmem:[%s37142_s10 + $0x230] sm:$0xff]  }
 0x67a   :  { %26143 = vmatprep.subr.bf16.mxu1 %v29566_v0 }
 0x67b   :  { %25920 = vmatpush3.bf16.msra.mxu0 %v28722_v44  ;;  %v33001_v26 = vpop.f32.mrb[232].mxu1 }
 0x67c   :  { %25921 = vmatprep.subr.bf16.mxu0 %v29566_v0  ;;  %v25745_v27 = vpop.f32.mrb[233].mxu1 }
 0x67d   :  { %26144 = vmatpush3.bf16.msra.mxu1 %v28723_v54  ;;  %v33007_v28 = vpop.f32.mrb[234].mxu1  ;;  %v28731_v54 = vld [vmem:[%s37142_s10 + $0x540] sm:$0xff]   ;;  %v28732_v27 = vld [vmem:[%s37142_s10 + $0x238] sm:$0xff]  }
 0x67e   :  { %26145 = vmatprep.subr.bf16.mxu1 %v29566_v0  ;;  %v25746_v43 = vpop.f32.mrb[235].mxu1 }
 0x67f   :  { %25922 = vmatpush3.bf16.msra.mxu0 %v28724_v22  ;;  %v22618_v22 = vpack.c.bf16 %v7680_v58, %v7680_v58  ;;  %v7669_v43 = vmax.f32 %v7464_v59, 0.0  ;;  %v28736_v58 = vld [vmem:[%s37142_s10 + $0x288] sm:$0xff]  }
 0x680   :  { %25923 = vmatprep.subr.bf16.mxu0 %v29566_v0  ;;  %v28741_v59 = vld [vmem:[%s37142_s10 + $0x568] sm:$0xff]  }
 0x681   :  { %26146 = vmatpush3.bf16.msra.mxu1 %v28725_v24 }
 0x682   :  { %26147 = vmatprep.subr.bf16.mxu1 %v29566_v0 }
 0x683   :  { %25924 = vmatpush3.bf16.msra.mxu0 %v28726_v29  ;;  %v33023_v34 = vpop.f32.mrb[236].mxu1  ;;  %v28733_v29 = vld [vmem:[%s37142_s10 + $0x548] sm:$0xff]  }
 0x684   :  { %25925 = vmatprep.subr.bf16.mxu0 %v29566_v0  ;;  %v25749_v46 = vpop.f32.mrb[237].mxu1 }
 0x685   :  { %26148 = vmatpush3.bf16.msra.mxu1 %v28727_v57  ;;  %v33026_v20 = vpop.f32.mrb[220].mxu0  ;;  %v33031_v2 = vpop.f32.mrb[238].mxu1  ;;  %v22607_v46 = vpack.c.bf16 %v7669_v43, %v7669_v43  ;;  %v28743_v43 = vld [vmem:[%s37142_s10 + $0x570] sm:$0xff]  }
 0x686   :  { %v25773_v36 = vpop.f32.mrb[221].mxu0  ;;  %26149 = vmatprep.subr.bf16.mxu1 %v29566_v0  ;;  %v25750_v7 = vpop.f32.mrb[239].mxu1 }
 0x687   :  { %25926 = vmatpush3.bf16.msra.mxu0 %v28728_v9  ;;  %v8944_v21 = vpop.f32.mrb[222].mxu0  ;;  %v28734_v9 = vld [vmem:[%s37142_s10 + $0x280] sm:$0xff]   ;;  %v28737_v36 = vld [vmem:[%s37142_s10 + $0x558] sm:$0xff]   ;;  %v28738_v7 = vld [vmem:[%s37142_s10 + $0x290] sm:$0xff]  }
 0x688   :  { %v25774_v44 = vpop.f32.mrb[223].mxu0  ;;  %25927 = vmatprep.subr.bf16.mxu0 %v29566_v0  ;;  %v28739_v21 = vld [vmem:[%s37142_s10 + $0x560] sm:$0xff]  }
 0x689   :  { %26150 = vmatpush3.bf16.msra.mxu1 %v28729_v60  ;;  %v28735_v60 = vld [vmem:[%s37142_s10 + $0x550] sm:$0xff]  }
 0x68a   :  { %26175 = vmatprep.subr.bf16.mxu1 %v29566_v0 }
 0x68b   :  { %25928 = vmatpush3.bf16.msra.mxu0 %v28730_v51  ;;  %v33047_v24 = vpop.f32.mrb[240].mxu1  ;;  %v28740_v51 = vld [vmem:[%s37142_s10 + $0x298] sm:$0xff]  }
 0x68c   :  { %26152 = vmatmul.mubr.bf16.vlgmr.msra.gmra.mrb[12].mxu1 %v22618_v22  ;;  %25929 = vmatprep.subr.bf16.mxu0 %v29566_v0  ;;  %v25753_v12 = vpop.f32.mrb[241].mxu1 }
 0x68d   :  { %26176 = vmatpush3.bf16.msra.mxu1 %v28731_v54  ;;  %v7658_v57 = vpop.f32.mrb[242].mxu1  ;;  %26191 = vmatprep.mubr.msk.bf16.mxu1 %vm29567_vm0, %v29566_v0  ;;  %v28742_v54 = vld [vmem:[%s37142_s10 + $0x2a0] sm:$0xff]   ;;  %v7515_v12 = vadd.f32 %v32945_v38, %v32650_v40  ;;  %v13875_v40 = vsel %vm6954_vm2, %v33026_v20, 0.0 }
 0x68e   :  { %26177 = vmatprep.subr.bf16.mxu1 %v29566_v0  ;;  %v25754_v16 = vpop.f32.mrb[243].mxu1  ;;  %v28744_v57 = vld [vmem:[%s37142_s10 + $0x2a8] sm:$0xff]   ;;  %v28747_v20 = vld [vmem:[%s37142_s10 + $0x5c0] sm:$0xff]  }
 0x68f   :  { %25930 = vmatpush3.bf16.msra.mxu0 %v28732_v27 }
 0x690   :  { %25955 = vmatprep.subr.bf16.mxu0 %v29566_v0 }
 0x691   :  { %26178 = vmatpush3.bf16.msra.mxu1 %v28733_v29 }
 0x692   :  { %25932 = vmatmul.mubr.bf16.vlgmr.msra.gmra.mrb[248].mxu0 %v22607_v46  ;;  %26179 = vmatprep.subr.bf16.mxu1 %v29566_v0  ;;  %v7682_v46 = vmax.f32 %v7515_v12, 0.0 }
 0x693   :  { %25956 = vmatpush3.bf16.msra.mxu0 %v28734_v9  ;;  %25971 = vmatprep.mubr.msk.bf16.mxu0 %vm29567_vm0, %v29566_v0  ;;  %v28745_v9 = vld [vmem:[%s37142_s10 + $0x578] sm:$0xff]  }
 0x694   :  { %25957 = vmatprep.subr.bf16.mxu0 %v29566_v0 }
 0x695   :  { %26180 = vmatpush3.bf16.msra.mxu1 %v28735_v60 }
 0x696   :  { %26181 = vmatprep.subr.bf16.mxu1 %v29566_v0 }
 0x697   :  { %25958 = vmatpush3.bf16.msra.mxu0 %v28736_v58 }
 0x698   :  { %25959 = vmatprep.subr.bf16.mxu0 %v29566_v0 }
 0x699   :  { %26182 = vmatpush3.bf16.msra.mxu1 %v28737_v36 }
 0x69a   :  { %26183 = vmatprep.subr.bf16.mxu1 %v29566_v0 }
 0x69b   :  { %25960 = vmatpush3.bf16.msra.mxu0 %v28738_v7 }
 0x69c   :  { %25961 = vmatprep.subr.bf16.mxu0 %v29566_v0 }
 0x69d   :  { %26184 = vmatpush3.bf16.msra.mxu1 %v28739_v21  ;;  %v28746_v21 = vld [vmem:[%s37142_s10 + $0x2b0] sm:$0xff]  }
 0x69e   :  { %26185 = vmatprep.subr.bf16.mxu1 %v29566_v0 }
 0x69f   :  { %25962 = vmatpush3.bf16.msra.mxu0 %v28740_v51  ;;  %v33090_v44 = vpop.f32.mrb[244].mxu1  ;;  %v7472_v51 = vadd.f32 %v32945_v38, %v32535_v41  ;;  %v28749_v41 = vld [vmem:[%s37142_s10 + $0x5c8] sm:$0xff]  }
 0x6a0   :  { %v25913_v22 = vpop.f32.mrb[245].mxu1  ;;  %25963 = vmatprep.subr.bf16.mxu0 %v29566_v0 }
 0x6a1   :  { %26186 = vmatpush3.bf16.msra.mxu1 %v28741_v59  ;;  %v9560_v27 = vpop.f32.mrb[246].mxu1  ;;  %v28748_v22 = vld [vmem:[%s37142_s10 + $0x2b8] sm:$0xff]  }
 0x6a2   :  { %v25914_v29 = vpop.f32.mrb[247].mxu1  ;;  %26187 = vmatprep.subr.bf16.mxu1 %v29566_v0  ;;  %v7671_v27 = vmax.f32 %v7472_v51, 0.0 }
 0x6a3   :  { %25964 = vmatpush3.bf16.msra.mxu0 %v28742_v54  ;;  %v22620_v54 = vpack.c.bf16 %v7682_v46, %v7682_v46  ;;  %v28751_v29 = vld [vmem:[%s37142_s10 + $0x5d0] sm:$0xff]   ;;  %v28755_v46 = vld [vmem:[%s37142_s10 + $0x5e0] sm:$0xff]  }
 0x6a4   :  { %25965 = vmatprep.subr.bf16.mxu0 %v29566_v0  ;;  %v22609_v12 = vpack.c.bf16 %v7671_v27, %v7671_v27 }
 0x6a5   :  { %v9029_v16 = vpop.f32.mrb[224].mxu0  ;;  %26188 = vmatpush3.bf16.msra.mxu1 %v28743_v43  ;;  %v28750_v43 = vld [vmem:[%s37142_s10 + $0x300] sm:$0xff]  }
 0x6a6   :  { %v13876_v60 = vsel %vm6954_vm2, %v9029_v16, 0.0  ;;  %v25793_v58 = vpop.f32.mrb[225].mxu0  ;;  %26189 = vmatprep.subr.bf16.mxu1 %v29566_v0  ;;  %v28753_v16 = vld [vmem:[%s37142_s10 + $0x5d8] sm:$0xff]  }
 0x6a7   :  { %v33113_v36 = vadd.f32 %v13876_v60, %v13875_v40  ;;  %v9032_v7 = vpop.f32.mrb[226].mxu0  ;;  %25966 = vmatpush3.bf16.msra.mxu0 %v28744_v57  ;;  %v28752_v57 = vld [vmem:[%s37142_s10 + $0x308] sm:$0xff]   ;;  %v28756_v40 = vld [vmem:[%s37142_s10 + $0x318] sm:$0xff]  }
 0x6a8   :  { %v25794_v59 = vpop.f32.mrb[227].mxu0  ;;  %25967 = vmatprep.subr.bf16.mxu0 %v29566_v0  ;;  %v28757_v60 = vld [vmem:[%s37142_s10 + $0x5e8] sm:$0xff]   ;;  %v28758_v7 = vld [vmem:[%s37142_s10 + $0x320] sm:$0xff]  }
 0x6a9   :  { %26190 = vmatpush3.bf16.msra.mxu1 %v28745_v9  ;;  %v28754_v9 = vld [vmem:[%s37142_s10 + $0x310] sm:$0xff]  }
 0x6aa   :  { %26215 = vmatprep.subr.bf16.mxu1 %v29566_v0  ;;  %v28759_v59 = vld [vmem:[%s37142_s10 + $0x5f0] sm:$0xff]  }
 0x6ab   :  { %25968 = vmatpush3.bf16.msra.mxu0 %v28746_v21 }
 0x6ac   :  { %26192 = vmatmul.mubr.bf16.vlgmr.msra.gmra.mrb[16].mxu1 %v22620_v54  ;;  %25969 = vmatprep.subr.bf16.mxu0 %v29566_v0 }
 0x6ad   :  { %26216 = vmatpush3.bf16.msra.mxu1 %v28747_v20  ;;  %26231 = vmatprep.mubr.msk.bf16.mxu1 %vm29567_vm0, %v29566_v0  ;;  %v7523_v20 = vadd.f32 %v32945_v38, %v32672_v17 }
 0x6ae   :  { %26217 = vmatprep.subr.bf16.mxu1 %v29566_v0 }
 0x6af   :  { %25970 = vmatpush3.bf16.msra.mxu0 %v28748_v22  ;;  %v28760_v22 = vld [vmem:[%s37142_s10 + $0x328] sm:$0xff]  }
 0x6b0   :  { %25995 = vmatprep.subr.bf16.mxu0 %v29566_v0 }
 0x6b1   :  { %26218 = vmatpush3.bf16.msra.mxu1 %v28749_v41  ;;  %v28761_v41 = vld [vmem:[%s37142_s10 + $0x5f8] sm:$0xff]  }
 0x6b2   :  { %25972 = vmatmul.mubr.bf16.vlgmr.msra.gmra.mrb[252].mxu0 %v22609_v12  ;;  %26219 = vmatprep.subr.bf16.mxu1 %v29566_v0 }
 0x6b3   :  { %25996 = vmatpush3.bf16.msra.mxu0 %v28750_v43  ;;  %26011 = vmatprep.mubr.msk.bf16.mxu0 %vm29567_vm0, %v29566_v0  ;;  %v7684_v43 = vmax.f32 %v7523_v20, 0.0  ;;  %v28768_v20 = vld [vmem:[%s37142_s10 + $0x388] sm:$0xff]  }
 0x6b4   :  { %25997 = vmatprep.subr.bf16.mxu0 %v29566_v0 }
 0x6b5   :  { %26220 = vmatpush3.bf16.msra.mxu1 %v28751_v29 }
 0x6b6   :  { %26221 = vmatprep.subr.bf16.mxu1 %v29566_v0 }
 0x6b7   :  { %25998 = vmatpush3.bf16.msra.mxu0 %v28752_v57 }
 0x6b8   :  { %25999 = vmatprep.subr.bf16.mxu0 %v29566_v0 }
 0x6b9   :  { %26222 = vmatpush3.bf16.msra.mxu1 %v28753_v16  ;;  %v28762_v16 = vld [vmem:[%s37142_s10 + $0x330] sm:$0xff]  }
 0x6ba   :  { %26223 = vmatprep.subr.bf16.mxu1 %v29566_v0 }
 0x6bb   :  { %26000 = vmatpush3.bf16.msra.mxu0 %v28754_v9  ;;  %v7480_v9 = vadd.f32 %v32945_v38, %v32557_v31  ;;  %v28765_v31 = vld [vmem:[%s37142_s10 + $0x648] sm:$0xff]  }
 0x6bc   :  { %26001 = vmatprep.subr.bf16.mxu0 %v29566_v0 }
 0x6bd   :  { %26224 = vmatpush3.bf16.msra.mxu1 %v28755_v46 }
 0x6be   :  { %26225 = vmatprep.subr.bf16.mxu1 %v29566_v0 }
 0x6bf   :  { %v33169_v58 = vpop.f32.mrb[248].mxu1  ;;  %26002 = vmatpush3.bf16.msra.mxu0 %v28756_v40  ;;  %v28763_v40 = vld [vmem:[%s37142_s10 + $0x640] sm:$0xff]  }
 0x6c0   :  { %v25953_v21 = vpop.f32.mrb[249].mxu1  ;;  %26003 = vmatprep.subr.bf16.mxu0 %v29566_v0 }
 0x6c1   :  { %v9736_v51 = vpop.f32.mrb[250].mxu1  ;;  %26226 = vmatpush3.bf16.msra.mxu1 %v28757_v60  ;;  %v22622_v60 = vpack.c.bf16 %v7684_v43, %v7684_v43  ;;  %v28766_v21 = vld [vmem:[%s37142_s10 + $0x380] sm:$0xff]   ;;  %v28773_v43 = vld [vmem:[%s37142_s10 + $0x668] sm:$0xff]  }
 0x6c2   :  { %v25954_v54 = vpop.f32.mrb[251].mxu1  ;;  %26227 = vmatprep.subr.bf16.mxu1 %v29566_v0 }
 0x6c3   :  { %26004 = vmatpush3.bf16.msra.mxu0 %v28758_v7  ;;  %v7673_v7 = vmax.f32 %v7480_v9, 0.0  ;;  %v28769_v54 = vld [vmem:[%s37142_s10 + $0x658] sm:$0xff]   ;;  %v28775_v9 = vld [vmem:[%s37142_s10 + $0x670] sm:$0xff]  }
 0x6c4   :  { %26005 = vmatprep.subr.bf16.mxu0 %v29566_v0 }
 0x6c5   :  { %v9117_v27 = vpop.f32.mrb[228].mxu0  ;;  %26228 = vmatpush3.bf16.msra.mxu1 %v28759_v59  ;;  %v22611_v51 = vpack.c.bf16 %v7673_v7, %v7673_v7  ;;  %v28767_v59 = vld [vmem:[%s37142_s10 + $0x650] sm:$0xff]   ;;  %v28777_v7 = vld [vmem:[%s37142_s10 + $0x678] sm:$0xff]  }
 0x6c6   :  { %v13878_v12 = vsel %vm6954_vm2, %v9117_v27, 0.0  ;;  %v25813_v17 = vpop.f32.mrb[229].mxu0  ;;  %26229 = vmatprep.subr.bf16.mxu1 %v29566_v0  ;;  %v28771_v27 = vld [vmem:[%s37142_s10 + $0x660] sm:$0xff]  }
 0x6c7   :  { %v33191_v29 = vadd.f32 %v13878_v12, %v33113_v36  ;;  %v9120_v57 = vpop.f32.mrb[230].mxu0  ;;  %26006 = vmatpush3.bf16.msra.mxu0 %v28760_v22  ;;  %v28764_v36 = vld [vmem:[%s37142_s10 + $0x338] sm:$0xff]   ;;  %v28770_v22 = vld [vmem:[%s37142_s10 + $0x390] sm:$0xff]   ;;  %v28774_v17 = vld [vmem:[%s37142_s10 + $0x3a0] sm:$0xff]  }
 0x6c8   :  { %v25814_v46 = vpop.f32.mrb[231].mxu0  ;;  %26007 = vmatprep.subr.bf16.mxu0 %v29566_v0 }
 0x6c9   :  { %26230 = vmatpush3.bf16.msra.mxu1 %v28761_v41  ;;  %v28772_v41 = vld [vmem:[%s37142_s10 + $0x398] sm:$0xff]   ;;  %v7531_v46 = vadd.f32 %v32945_v38, %v32694_v33 }
 0x6ca   :  { %26255 = vmatprep.subr.bf16.mxu1 %v29566_v0 }
 0x6cb   :  { %26008 = vmatpush3.bf16.msra.mxu0 %v28762_v16 }
 0x6cc   :  { %26232 = vmatmul.mubr.bf16.vlgmr.msra.gmra.mrb[20].mxu1 %v22622_v60  ;;  %26009 = vmatprep.subr.bf16.mxu0 %v29566_v0  ;;  %v28776_v60 = vld [vmem:[%s37142_s10 + $0x3a8] sm:$0xff]  }
 0x6cd   :  { %26256 = vmatpush3.bf16.msra.mxu1 %v28763_v40  ;;  %26271 = vmatprep.mubr.msk.bf16.mxu1 %vm29567_vm0, %v29566_v0 }
 0x6ce   :  { %26257 = vmatprep.subr.bf16.mxu1 %v29566_v0 }
 0x6cf   :  { %26010 = vmatpush3.bf16.msra.mxu0 %v28764_v36 }
 0x6d0   :  { %26035 = vmatprep.subr.bf16.mxu0 %v29566_v0 }
 0x6d1   :  { %26258 = vmatpush3.bf16.msra.mxu1 %v28765_v31  ;;  %v7686_v31 = vmax.f32 %v7531_v46, 0.0  ;;  %v28785_v46 = vld [vmem:[%s37142_s10 + $0x6d8] sm:$0xff]  }
 0x6d2   :  { %26012 = vmatmul.mubr.bf16.vlgmr.msra.gmra.mrb[0].mxu0 %v22611_v51  ;;  %26259 = vmatprep.subr.bf16.mxu1 %v29566_v0 }
 0x6d3   :  { %26036 = vmatpush3.bf16.msra.mxu0 %v28766_v21  ;;  %26051 = vmatprep.mubr.msk.bf16.mxu0 %vm29567_vm0, %v29566_v0 }
 0x6d4   :  { %26037 = vmatprep.subr.bf16.mxu0 %v29566_v0 }
 0x6d5   :  { %26260 = vmatpush3.bf16.msra.mxu1 %v28767_v59 }
 0x6d6   :  { %26261 = vmatprep.subr.bf16.mxu1 %v29566_v0 }
 0x6d7   :  { %26038 = vmatpush3.bf16.msra.mxu0 %v28768_v20  ;;  %v28778_v20 = vld [vmem:[%s37142_s10 + $0x3b0] sm:$0xff]  }
 0x6d8   :  { %26039 = vmatprep.subr.bf16.mxu0 %v29566_v0 }
 0x6d9   :  { %26262 = vmatpush3.bf16.msra.mxu1 %v28769_v54  ;;  %v7488_v54 = vadd.f32 %v32945_v38, %v32578_v39  ;;  %v28781_v39 = vld [vmem:[%s37142_s10 + $0x6c8] sm:$0xff]  }
 0x6da   :  { %26263 = vmatprep.subr.bf16.mxu1 %v29566_v0 }
 0x6db   :  { %26040 = vmatpush3.bf16.msra.mxu0 %v28770_v22 }
 0x6dc   :  { %26041 = vmatprep.subr.bf16.mxu0 %v29566_v0 }
 0x6dd   :  { %26264 = vmatpush3.bf16.msra.mxu1 %v28771_v27  ;;  %v28779_v27 = vld [vmem:[%s37142_s10 + $0x6c0] sm:$0xff]  }
 0x6de   :  { %26265 = vmatprep.subr.bf16.mxu1 %v29566_v0 }
 0x6df   :  { %v33247_v12 = vpop.f32.mrb[252].mxu1  ;;  %26042 = vmatpush3.bf16.msra.mxu0 %v28772_v41  ;;  %v22624_v41 = vpack.c.bf16 %v7686_v31, %v7686_v31 }
 0x6e0   :  { %v25993_v57 = vpop.f32.mrb[253].mxu1  ;;  %26043 = vmatprep.subr.bf16.mxu0 %v29566_v0 }
 0x6e1   :  { %v9912_v16 = vpop.f32.mrb[254].mxu1  ;;  %26266 = vmatpush3.bf16.msra.mxu1 %v28773_v43  ;;  %v7675_v43 = vmax.f32 %v7488_v54, 0.0  ;;  %v7539_v54 = vadd.f32 %v32945_v38, %v32718_v62 }
 0x6e2   :  { %v25994_v40 = vpop.f32.mrb[255].mxu1  ;;  %26267 = vmatprep.subr.bf16.mxu1 %v29566_v0  ;;  %v28783_v16 = vld [vmem:[%s37142_s10 + $0x6d0] sm:$0xff]  }
 0x6e3   :  { %26044 = vmatpush3.bf16.msra.mxu0 %v28774_v17  ;;  %v28782_v17 = vld [vmem:[%s37142_s10 + $0x400] sm:$0xff]   ;;  %v22613_v57 = vpack.c.bf16 %v7675_v43, %v7675_v43  ;;  %v28786_v40 = vld [vmem:[%s37142_s10 + $0x410] sm:$0xff]   ;;  %v7688_v43 = vmax.f32 %v7539_v54, 0.0 }
 0x6e4   :  { %26045 = vmatprep.subr.bf16.mxu0 %v29566_v0  ;;  %v28802_v54 = vld [vmem:[%s37142_s10 + $0x490] sm:$0xff]  }
 0x6e5   :  { %v9205_v36 = vpop.f32.mrb[232].mxu0  ;;  %26268 = vmatpush3.bf16.msra.mxu1 %v28775_v9  ;;  %v28784_v9 = vld [vmem:[%s37142_s10 + $0x408] sm:$0xff]  }
 0x6e6   :  { %v13880_v21 = vsel %vm6954_vm2, %v9205_v36, 0.0  ;;  %v25833_v33 = vpop.f32.mrb[233].mxu0  ;;  %26269 = vmatprep.subr.bf16.mxu1 %v29566_v0  ;;  %v28788_v36 = vld [vmem:[%s37142_s10 + $0x418] sm:$0xff]  }
 0x6e7   :  { %v33269_v51 = vadd.f32 %v13880_v21, %v33191_v29  ;;  %v9208_v59 = vpop.f32.mrb[234].mxu0  ;;  %26046 = vmatpush3.bf16.msra.mxu0 %v28776_v60  ;;  %v28780_v29 = vld [vmem:[%s37142_s10 + $0x3b8] sm:$0xff]   ;;  %v28787_v60 = vld [vmem:[%s37142_s10 + $0x6e0] sm:$0xff]  }
 0x6e8   :  { %v25834_v22 = vpop.f32.mrb[235].mxu0  ;;  %26047 = vmatprep.subr.bf16.mxu0 %v29566_v0  ;;  %v28790_v21 = vld [vmem:[%s37142_s10 + $0x420] sm:$0xff]  }
 0x6e9   :  { %26270 = vmatpush3.bf16.msra.mxu1 %v28777_v7  ;;  %v28789_v7 = vld [vmem:[%s37142_s10 + $0x6e8] sm:$0xff]  }
 0x6ea   :  { %26295 = vmatprep.subr.bf16.mxu1 %v29566_v0 }
 0x6eb   :  { %26048 = vmatpush3.bf16.msra.mxu0 %v28778_v20  ;;  %v28791_v20 = vld [vmem:[%s37142_s10 + $0x6f0] sm:$0xff]  }
 0x6ec   :  { %26272 = vmatmul.mubr.bf16.vlgmr.msra.gmra.mrb[24].mxu1 %v22624_v41  ;;  %26049 = vmatprep.subr.bf16.mxu0 %v29566_v0 }
 0x6ed   :  { %26296 = vmatpush3.bf16.msra.mxu1 %v28779_v27  ;;  %26311 = vmatprep.mubr.msk.bf16.mxu1 %vm29567_vm0, %v29566_v0  ;;  %v28792_v27 = vld [vmem:[%s37142_s10 + $0x428] sm:$0xff]  }
 0x6ee   :  { %26297 = vmatprep.subr.bf16.mxu1 %v29566_v0 }
 0x6ef   :  { %26050 = vmatpush3.bf16.msra.mxu0 %v28780_v29  ;;  %v28793_v29 = vld [vmem:[%s37142_s10 + $0x6f8] sm:$0xff]  }
 0x6f0   :  { %26075 = vmatprep.subr.bf16.mxu0 %v29566_v0 }
 0x6f1   :  { %26298 = vmatpush3.bf16.msra.mxu1 %v28781_v39 }
 0x6f2   :  { %26052 = vmatmul.mubr.bf16.vlgmr.msra.gmra.mrb[4].mxu0 %v22613_v57  ;;  %26299 = vmatprep.subr.bf16.mxu1 %v29566_v0 }
 0x6f3   :  { %26076 = vmatpush3.bf16.msra.mxu0 %v28782_v17  ;;  %26091 = vmatprep.mubr.msk.bf16.mxu0 %vm29567_vm0, %v29566_v0 }
 0x6f4   :  { %26077 = vmatprep.subr.bf16.mxu0 %v29566_v0 }
 0x6f5   :  { %26300 = vmatpush3.bf16.msra.mxu1 %v28783_v16  ;;  %v28794_v16 = vld [vmem:[%s37142_s10 + $0x430] sm:$0xff]  }
 0x6f6   :  { %26301 = vmatprep.subr.bf16.mxu1 %v29566_v0 }
 0x6f7   :  { %26078 = vmatpush3.bf16.msra.mxu0 %v28784_v9  ;;  %v7496_v9 = vadd.f32 %v32945_v38, %v32600_v35  ;;  %v28797_v35 = vld [vmem:[%s37142_s10 + $0x748] sm:$0xff]  }
 0x6f8   :  { %26079 = vmatprep.subr.bf16.mxu0 %v29566_v0 }
 0x6f9   :  { %26302 = vmatpush3.bf16.msra.mxu1 %v28785_v46 }
 0x6fa   :  { %26303 = vmatprep.subr.bf16.mxu1 %v29566_v0 }
 0x6fb   :  { %26080 = vmatpush3.bf16.msra.mxu0 %v28786_v40  ;;  %v28795_v40 = vld [vmem:[%s37142_s10 + $0x740] sm:$0xff]  }
 0x6fc   :  { %26081 = vmatprep.subr.bf16.mxu0 %v29566_v0 }
 0x6fd   :  { %26304 = vmatpush3.bf16.msra.mxu1 %v28787_v60  ;;  %v22626_v60 = vpack.c.bf16 %v7688_v43, %v7688_v43  ;;  %v28806_v43 = vld [vmem:[%s37142_s10 + $0x4a0] sm:$0xff]  }
 0x6fe   :  { %26305 = vmatprep.subr.bf16.mxu1 %v29566_v0 }
 0x6ff   :  { %v33325_v31 = vpop.f32.mrb[0].mxu1  ;;  %26082 = vmatpush3.bf16.msra.mxu0 %v28788_v36  ;;  %v7677_v36 = vmax.f32 %v7496_v9, 0.0 }
 0x700   :  { %v26033_v33 = vpop.f32.mrb[1].mxu1  ;;  %26083 = vmatprep.subr.bf16.mxu0 %v29566_v0 }
 0x701   :  { %v10088_v59 = vpop.f32.mrb[2].mxu1  ;;  %26306 = vmatpush3.bf16.msra.mxu1 %v28789_v7  ;;  %v28798_v7 = vld [vmem:[%s37142_s10 + $0x480] sm:$0xff]   ;;  %v28799_v33 = vld [vmem:[%s37142_s10 + $0x750] sm:$0xff]  }
 0x702   :  { %v26034_v22 = vpop.f32.mrb[3].mxu1  ;;  %26307 = vmatprep.subr.bf16.mxu1 %v29566_v0  ;;  %v28800_v59 = vld [vmem:[%s37142_s10 + $0x488] sm:$0xff]  }
 0x703   :  { %26084 = vmatpush3.bf16.msra.mxu0 %v28790_v21  ;;  %v22615_v21 = vpack.c.bf16 %v7677_v36, %v7677_v36  ;;  %v28803_v22 = vld [vmem:[%s37142_s10 + $0x760] sm:$0xff]  }
 0x704   :  { %26085 = vmatprep.subr.bf16.mxu0 %v29566_v0 }
 0x705   :  { %v9293_v41 = vpop.f32.mrb[236].mxu0  ;;  %26308 = vmatpush3.bf16.msra.mxu1 %v28791_v20  ;;  %v28801_v20 = vld [vmem:[%s37142_s10 + $0x758] sm:$0xff]  }
 0x706   :  { %v13882_v39 = vsel %vm6954_vm2, %v9293_v41, 0.0  ;;  %v25853_v62 = vpop.f32.mrb[237].mxu0  ;;  %26309 = vmatprep.subr.bf16.mxu1 %v29566_v0  ;;  %v28805_v41 = vld [vmem:[%s37142_s10 + $0x768] sm:$0xff]  }
 0x707   :  { %v33347_v17 = vadd.f32 %v13882_v39, %v33269_v51  ;;  %v9296_v57 = vpop.f32.mrb[238].mxu0  ;;  %26086 = vmatpush3.bf16.msra.mxu0 %v28792_v27  ;;  %v28796_v51 = vld [vmem:[%s37142_s10 + $0x438] sm:$0xff]  }
 0x708   :  { %v25854_v46 = vpop.f32.mrb[239].mxu0  ;;  %26087 = vmatprep.subr.bf16.mxu0 %v29566_v0  ;;  %v28804_v27 = vld [vmem:[%s37142_s10 + $0x498] sm:$0xff]   ;;  %v28807_v57 = vld [vmem:[%s37142_s10 + $0x770] sm:$0xff]  }
 0x709   :  { %26310 = vmatpush3.bf16.msra.mxu1 %v28793_v29  ;;  %v28808_v46 = vld [vmem:[%s37142_s10 + $0x4a8] sm:$0xff]  }
 0x70a   :  { %26335 = vmatprep.subr.bf16.mxu1 %v29566_v0 }
 0x70b   :  { %26088 = vmatpush3.bf16.msra.mxu0 %v28794_v16  ;;  %v7547_v16 = vadd.f32 %v32945_v38, %v32738_v10 }
 0x70c   :  { %26312 = vmatmul.mubr.bf16.vlgmr.msra.gmra.mrb[28].mxu1 %v22626_v60  ;;  %26089 = vmatprep.subr.bf16.mxu0 %v29566_v0  ;;  %v28809_v60 = vld [vmem:[%s37142_s10 + $0x778] sm:$0xff]  }
 0x70d   :  { %26336 = vmatpush3.bf16.msra.mxu1 %v28795_v40  ;;  %26351 = vmatprep.mubr.msk.bf16.mxu1 %vm29567_vm0, %v29566_v0 }
 0x70e   :  { %26337 = vmatprep.subr.bf16.mxu1 %v29566_v0 }
 0x70f   :  { %26090 = vmatpush3.bf16.msra.mxu0 %v28796_v51  ;;  %v7690_v51 = vmax.f32 %v7547_v16, 0.0  ;;  %v28819_v16 = vld [vmem:[%s37142_s10 + $0x7e0] sm:$0xff]  }
 0x710   :  { %26115 = vmatprep.subr.bf16.mxu0 %v29566_v0 }
 0x711   :  { %26338 = vmatpush3.bf16.msra.mxu1 %v28797_v35 }
 0x712   :  { %26092 = vmatmul.mubr.bf16.vlgmr.msra.gmra.mrb[8].mxu0 %v22615_v21  ;;  %26339 = vmatprep.subr.bf16.mxu1 %v29566_v0  ;;  %v28810_v21 = vld [vmem:[%s37142_s10 + $0x4b0] sm:$0xff]  }
 0x713   :  { %26116 = vmatpush3.bf16.msra.mxu0 %v28798_v7  ;;  %26131 = vmatprep.mubr.msk.bf16.mxu0 %vm29567_vm0, %v29566_v0 }
 0x714   :  { %26117 = vmatprep.subr.bf16.mxu0 %v29566_v0 }
 0x715   :  { %26340 = vmatpush3.bf16.msra.mxu1 %v28799_v33  ;;  %v7504_v33 = vadd.f32 %v32945_v38, %v32622_v5  ;;  %v28813_v5 = vld [vmem:[%s37142_s10 + $0x7c8] sm:$0xff]  }
 0x716   :  { %26341 = vmatprep.subr.bf16.mxu1 %v29566_v0 }
 0x717   :  { %26118 = vmatpush3.bf16.msra.mxu0 %v28800_v59 }
 0x718   :  { %26119 = vmatprep.subr.bf16.mxu0 %v29566_v0 }
 0x719   :  { %26342 = vmatpush3.bf16.msra.mxu1 %v28801_v20  ;;  %v28811_v20 = vld [vmem:[%s37142_s10 + $0x7c0] sm:$0xff]  }
 0x71a   :  { %26343 = vmatprep.subr.bf16.mxu1 %v29566_v0 }
 0x71b   :  { %26120 = vmatpush3.bf16.msra.mxu0 %v28802_v54  ;;  %v22628_v54 = vpack.c.bf16 %v7690_v51, %v7690_v51 }
 0x71c   :  { %26121 = vmatprep.subr.bf16.mxu0 %v29566_v0 }
 0x71d   :  { %26344 = vmatpush3.bf16.msra.mxu1 %v28803_v22  ;;  %v7679_v22 = vmax.f32 %v7504_v33, 0.0  ;;  %v28824_v33 = vld [vmem:[%s37142_s10 + $0x528] sm:$0xff]  }
 0x71e   :  { %26345 = vmatprep.subr.bf16.mxu1 %v29566_v0 }
 0x71f   :  { %v33403_v29 = vpop.f32.mrb[4].mxu1  ;;  %26122 = vmatpush3.bf16.msra.mxu0 %v28804_v27  ;;  %v28814_v27 = vld [vmem:[%s37142_s10 + $0x500] sm:$0xff]  }
 0x720   :  { %v26073_v39 = vpop.f32.mrb[5].mxu1  ;;  %26123 = vmatprep.subr.bf16.mxu0 %v29566_v0 }
 0x721   :  { %v10264_v62 = vpop.f32.mrb[6].mxu1  ;;  %26346 = vmatpush3.bf16.msra.mxu1 %v28805_v41  ;;  %v22617_v41 = vpack.c.bf16 %v7679_v22, %v7679_v22  ;;  %v28816_v39 = vld [vmem:[%s37142_s10 + $0x508] sm:$0xff]  }
 0x722   :  { %v26074_v9 = vpop.f32.mrb[7].mxu1  ;;  %26347 = vmatprep.subr.bf16.mxu1 %v29566_v0  ;;  %v28817_v62 = vld [vmem:[%s37142_s10 + $0x7d8] sm:$0xff]  }
 0x723   :  { %26124 = vmatpush3.bf16.msra.mxu0 %v28806_v43  ;;  %v28815_v43 = vld [vmem:[%s37142_s10 + $0x7d0] sm:$0xff]   ;;  %v28820_v9 = vld [vmem:[%s37142_s10 + $0x518] sm:$0xff]  }
 0x724   :  { %26125 = vmatprep.subr.bf16.mxu0 %v29566_v0 }
 0x725   :  { %v9381_v40 = vpop.f32.mrb[240].mxu0  ;;  %26348 = vmatpush3.bf16.msra.mxu1 %v28807_v57  ;;  %v28818_v57 = vld [vmem:[%s37142_s10 + $0x510] sm:$0xff]  }
 0x726   :  { %v13884_v36 = vsel %vm6954_vm2, %v9381_v40, 0.0  ;;  %v25873_v10 = vpop.f32.mrb[241].mxu0  ;;  %26349 = vmatprep.subr.bf16.mxu1 %v29566_v0 }
 0x727   :  { %v33425_v35 = vadd.f32 %v13884_v36, %v33347_v17  ;;  %v9384_v7 = vpop.f32.mrb[242].mxu0  ;;  %26126 = vmatpush3.bf16.msra.mxu0 %v28808_v46  ;;  %v28812_v17 = vld [vmem:[%s37142_s10 + $0x4b8] sm:$0xff]   ;;  %v28821_v46 = vld [vmem:[%s37142_s10 + $0x7e8] sm:$0xff]   ;;  %v28823_v10 = vld [vmem:[%s37142_s10 + $0x7f0] sm:$0xff]  }
 0x728   :  { %v25874_v59 = vpop.f32.mrb[243].mxu0  ;;  %26127 = vmatprep.subr.bf16.mxu0 %v29566_v0  ;;  %v7555_v7 = vadd.f32 %v32945_v38, %v32760_v18 }
 0x729   :  { %26350 = vmatpush3.bf16.msra.mxu1 %v28809_v60  ;;  %v28822_v60 = vld [vmem:[%s37142_s10 + $0x520] sm:$0xff]  }
 0x72a   :  { %26375 = vmatprep.subr.bf16.mxu1 %v29566_v0 }
 0x72b   :  { %26128 = vmatpush3.bf16.msra.mxu0 %v28810_v21 }
 0x72c   :  { %26352 = vmatmul.mubr.bf16.vlgmr.msra.gmra.mrb[32].mxu1 %v22628_v54  ;;  %26129 = vmatprep.subr.bf16.mxu0 %v29566_v0  ;;  %v7692_v54 = vmax.f32 %v7555_v7, 0.0  ;;  %v28836_v7 = vld [vmem:[%s37142_s10 + $0x598] sm:$0xff]  }
 0x72d   :  { %26376 = vmatpush3.bf16.msra.mxu1 %v28811_v20  ;;  %26391 = vmatprep.mubr.msk.bf16.mxu1 %vm29567_vm0, %v29566_v0  ;;  %v28825_v20 = vld [vmem:[%s37142_s10 + $0x7f8] sm:$0xff]  }
 0x72e   :  { %26377 = vmatprep.subr.bf16.mxu1 %v29566_v0 }
 0x72f   :  { %26130 = vmatpush3.bf16.msra.mxu0 %v28812_v17 }
 0x730   :  { %26155 = vmatprep.subr.bf16.mxu0 %v29566_v0 }
 0x731   :  { %26378 = vmatpush3.bf16.msra.mxu1 %v28813_v5 }
 0x732   :  { %26132 = vmatmul.mubr.bf16.vlgmr.msra.gmra.mrb[12].mxu0 %v22617_v41  ;;  %26379 = vmatprep.subr.bf16.mxu1 %v29566_v0  ;;  %v7512_v41 = vadd.f32 %v32945_v38, %v32644_v23  ;;  %v28828_v23 = vld [vmem:[%s37142_s10 + $0x538] sm:$0xff]  }
 0x733   :  { %26156 = vmatpush3.bf16.msra.mxu0 %v28814_v27  ;;  %26171 = vmatprep.mubr.msk.bf16.mxu0 %vm29567_vm0, %v29566_v0  ;;  %v28826_v27 = vld [vmem:[%s37142_s10 + $0x530] sm:$0xff]  }
 0x734   :  { %26157 = vmatprep.subr.bf16.mxu0 %v29566_v0  ;;  %v7681_v38 = vmax.f32 %v7512_v41, 0.0 }
 0x735   :  { %26380 = vmatpush3.bf16.msra.mxu1 %v28815_v43  ;;  %v13888_v43 = vsel %vm6954_vm2, %v33090_v44, 0.0  ;;  %v28829_v44 = vld [vmem:[%s37142_s10 + $0x848] sm:$0xff]  }
 0x736   :  { %26381 = vmatprep.subr.bf16.mxu1 %v29566_v0 }
 0x737   :  { %26158 = vmatpush3.bf16.msra.mxu0 %v28816_v39 }
 0x738   :  { %26159 = vmatprep.subr.bf16.mxu0 %v29566_v0 }
 0x739   :  { %26382 = vmatpush3.bf16.msra.mxu1 %v28817_v62 }
 0x73a   :  { %26383 = vmatprep.subr.bf16.mxu1 %v29566_v0 }
 0x73b   :  { %26160 = vmatpush3.bf16.msra.mxu0 %v28818_v57  ;;  %v22630_v57 = vpack.c.bf16 %v7692_v54, %v7692_v54 }
 0x73c   :  { %26161 = vmatprep.subr.bf16.mxu0 %v29566_v0 }
 0x73d   :  { %26384 = vmatpush3.bf16.msra.mxu1 %v28819_v16  ;;  %v28830_v16 = vld [vmem:[%s37142_s10 + $0x580] sm:$0xff]  }
 0x73e   :  { %26385 = vmatprep.subr.bf16.mxu1 %v29566_v0 }
 0x73f   :  { %v33481_v40 = vpop.f32.mrb[8].mxu1  ;;  %26162 = vmatpush3.bf16.msra.mxu0 %v28820_v9  ;;  %v22619_v9 = vpack.c.bf16 %v7681_v38, %v7681_v38  ;;  %v28842_v38 = vld [vmem:[%s37142_s10 + $0x5b0] sm:$0xff]  }
 0x740   :  { %v26113_v51 = vpop.f32.mrb[9].mxu1  ;;  %26163 = vmatprep.subr.bf16.mxu0 %v29566_v0 }
 0x741   :  { %v10440_v36 = vpop.f32.mrb[10].mxu1  ;;  %26386 = vmatpush3.bf16.msra.mxu1 %v28821_v46  ;;  %v28831_v46 = vld [vmem:[%s37142_s10 + $0x850] sm:$0xff]   ;;  %v28833_v51 = vld [vmem:[%s37142_s10 + $0x858] sm:$0xff]  }
 0x742   :  { %v26114_v21 = vpop.f32.mrb[11].mxu1  ;;  %26387 = vmatprep.subr.bf16.mxu1 %v29566_v0  ;;  %v28834_v36 = vld [vmem:[%s37142_s10 + $0x590] sm:$0xff]  }
 0x743   :  { %26164 = vmatpush3.bf16.msra.mxu0 %v28822_v60  ;;  %v28832_v60 = vld [vmem:[%s37142_s10 + $0x588] sm:$0xff]  }
 0x744   :  { %26165 = vmatprep.subr.bf16.mxu0 %v29566_v0  ;;  %v28837_v21 = vld [vmem:[%s37142_s10 + $0x868] sm:$0xff]  }
 0x745   :  { %v9469_v59 = vpop.f32.mrb[244].mxu0  ;;  %26388 = vmatpush3.bf16.msra.mxu1 %v28823_v10  ;;  %v28835_v10 = vld [vmem:[%s37142_s10 + $0x860] sm:$0xff]  }
 0x746   :  { %v13886_v17 = vsel %vm6954_vm2, %v9469_v59, 0.0  ;;  %v25893_v18 = vpop.f32.mrb[245].mxu0  ;;  %26389 = vmatprep.subr.bf16.mxu1 %v29566_v0  ;;  %v28838_v59 = vld [vmem:[%s37142_s10 + $0x5a0] sm:$0xff]  }
 0x747   :  { %v13887_v22 = vadd.f32 %v13886_v17, %v33425_v35  ;;  %v9472_v5 = vpop.f32.mrb[246].mxu0  ;;  %26166 = vmatpush3.bf16.msra.mxu0 %v28824_v33  ;;  %v28827_v35 = vld [vmem:[%s37142_s10 + $0x840] sm:$0xff]   ;;  %v28839_v17 = vld [vmem:[%s37142_s10 + $0x870] sm:$0xff]  }
 0x748   :  { %v25894_v39 = vpop.f32.mrb[247].mxu0  ;;  %26167 = vmatprep.subr.bf16.mxu0 %v29566_v0  ;;  %v33571_v18 = vld [vmem:[%s37143_s6] ss:$0 sm:$0xff] }
 0x749   :  { %26390 = vmatpush3.bf16.msra.mxu1 %v28825_v20  ;;  %v13889_v62 = vadd.f32 %v13888_v43, %v13887_v22  ;;  %v7563_v22 = vadd.f32 %v33571_v18, %v32782_v30  ;;  %v28841_v43 = vld [vmem:[%s37142_s10 + $0x878] sm:$0xff]  }
 0x74a   :  { %26415 = vmatprep.subr.bf16.mxu1 %v29566_v0 }
 0x74b   :  { %26168 = vmatpush3.bf16.msra.mxu0 %v28826_v27  ;;  %v28840_v27 = vld [vmem:[%s37142_s10 + $0x5a8] sm:$0xff]   ;;  %v7694_v39 = vmax.f32 %v7563_v22, 0.0 }
 0x74c   :  { %26392 = vmatmul.mubr.bf16.vlgmr.msra.gmra.mrb[36].mxu1 %v22630_v57  ;;  %26169 = vmatprep.subr.bf16.mxu0 %v29566_v0  ;;  %v28853_v22 = vld [vmem:[%s37142_s10 + $0x8e8] sm:$0xff]  }
 0x74d   :  { %26416 = vmatpush3.bf16.msra.mxu1 %v28827_v35  ;;  %26431 = vmatprep.mubr.msk.bf16.mxu1 %vm29567_vm0, %v29566_v0 }
 0x74e   :  { %26417 = vmatprep.subr.bf16.mxu1 %v29566_v0 }
 0x74f   :  { %26170 = vmatpush3.bf16.msra.mxu0 %v28828_v23 }
 0x750   :  { %26195 = vmatprep.subr.bf16.mxu0 %v29566_v0 }
 0x751   :  { %26418 = vmatpush3.bf16.msra.mxu1 %v28829_v44  ;;  %v7520_v44 = vadd.f32 %v33571_v18, %v32666_v14  ;;  %v28844_v14 = vld [vmem:[%s37142_s10 + $0x5b8] sm:$0xff]  }
 0x752   :  { %26172 = vmatmul.mubr.bf16.vlgmr.msra.gmra.mrb[16].mxu0 %v22619_v9  ;;  %26419 = vmatprep.subr.bf16.mxu1 %v29566_v0 }
 0x753   :  { %26196 = vmatpush3.bf16.msra.mxu0 %v28830_v16  ;;  %26211 = vmatprep.mubr.msk.bf16.mxu0 %vm29567_vm0, %v29566_v0  ;;  %v13892_v16 = vsel %vm6954_vm2, %v33169_v58, 0.0  ;;  %v28845_v58 = vld [vmem:[%s37142_s10 + $0x8c8] sm:$0xff]  }
 0x754   :  { %26197 = vmatprep.subr.bf16.mxu0 %v29566_v0 }
 0x755   :  { %26420 = vmatpush3.bf16.msra.mxu1 %v28831_v46 }
 0x756   :  { %26421 = vmatprep.subr.bf16.mxu1 %v29566_v0 }
 0x757   :  { %26198 = vmatpush3.bf16.msra.mxu0 %v28832_v60  ;;  %v22632_v60 = vpack.c.bf16 %v7694_v39, %v7694_v39  ;;  %v28855_v39 = vld [vmem:[%s37142_s10 + $0x8f0] sm:$0xff]  }
 0x758   :  { %26199 = vmatprep.subr.bf16.mxu0 %v29566_v0 }
 0x759   :  { %26422 = vmatpush3.bf16.msra.mxu1 %v28833_v51  ;;  %v7683_v51 = vmax.f32 %v7520_v44, 0.0 }
 0x75a   :  { %26423 = vmatprep.subr.bf16.mxu1 %v29566_v0 }
 0x75b   :  { %26200 = vmatpush3.bf16.msra.mxu0 %v28834_v36  ;;  %v28846_v36 = vld [vmem:[%s37142_s10 + $0x600] sm:$0xff]  }
 0x75c   :  { %26201 = vmatprep.subr.bf16.mxu0 %v29566_v0 }
 0x75d   :  { %26424 = vmatpush3.bf16.msra.mxu1 %v28835_v10  ;;  %v22621_v10 = vpack.c.bf16 %v7683_v51, %v7683_v51  ;;  %v13896_v51 = vsel %vm6954_vm2, %v33247_v12, 0.0  ;;  %v28861_v12 = vld [vmem:[%s37142_s10 + $0x948] sm:$0xff]  }
 0x75e   :  { %26425 = vmatprep.subr.bf16.mxu1 %v29566_v0 }
 0x75f   :  { %v33559_v33 = vpop.f32.mrb[12].mxu1  ;;  %26202 = vmatpush3.bf16.msra.mxu0 %v28836_v7  ;;  %v28847_v7 = vld [vmem:[%s37142_s10 + $0x8d0] sm:$0xff]  }
 0x760   :  { %v26153_v20 = vpop.f32.mrb[13].mxu1  ;;  %26203 = vmatprep.subr.bf16.mxu0 %v29566_v0 }
 0x761   :  { %v10616_v54 = vpop.f32.mrb[14].mxu1  ;;  %26426 = vmatpush3.bf16.msra.mxu1 %v28837_v21  ;;  %v28848_v21 = vld [vmem:[%s37142_s10 + $0x608] sm:$0xff]   ;;  %v28850_v20 = vld [vmem:[%s37142_s10 + $0x610] sm:$0xff]  }
 0x762   :  { %v26154_v5 = vpop.f32.mrb[15].mxu1  ;;  %26427 = vmatprep.subr.bf16.mxu1 %v29566_v0  ;;  %v28851_v54 = vld [vmem:[%s37142_s10 + $0x8e0] sm:$0xff]  }
 0x763   :  { %26204 = vmatpush3.bf16.msra.mxu0 %v28838_v59  ;;  %v28849_v59 = vld [vmem:[%s37142_s10 + $0x8d8] sm:$0xff]  }
 0x764   :  { %26205 = vmatprep.subr.bf16.mxu0 %v29566_v0 }
 0x765   :  { %v9645_v41 = vpop.f32.mrb[248].mxu0  ;;  %26428 = vmatpush3.bf16.msra.mxu1 %v28839_v17  ;;  %v28852_v17 = vld [vmem:[%s37142_s10 + $0x618] sm:$0xff]  }
 0x766   :  { %v13890_v35 = vsel %vm6954_vm2, %v9645_v41, 0.0  ;;  %v25933_v30 = vpop.f32.mrb[249].mxu0  ;;  %26429 = vmatprep.subr.bf16.mxu1 %v29566_v0 }
 0x767   :  { %v13891_v57 = vadd.f32 %v13890_v35, %v13889_v62  ;;  %v9648_v23 = vpop.f32.mrb[250].mxu0  ;;  %26206 = vmatpush3.bf16.msra.mxu0 %v28840_v27  ;;  %v28843_v62 = vld [vmem:[%s37142_s10 + $0x8c0] sm:$0xff]   ;;  %v7571_v35 = vadd.f32 %v33571_v18, %v32806_v4 }
 0x768   :  { %v25934_v9 = vpop.f32.mrb[251].mxu0  ;;  %26207 = vmatprep.subr.bf16.mxu0 %v29566_v0  ;;  %v28854_v27 = vld [vmem:[%s37142_s10 + $0x620] sm:$0xff]  }
 0x769   :  { %26430 = vmatpush3.bf16.msra.mxu1 %v28841_v43  ;;  %v13893_v46 = vadd.f32 %v13892_v16, %v13891_v57  ;;  %v28856_v57 = vld [vmem:[%s37142_s10 + $0x628] sm:$0xff]   ;;  %v7696_v44 = vmax.f32 %v7571_v35, 0.0  ;;  %v28870_v35 = vld [vmem:[%s37142_s10 + $0x6a0] sm:$0xff]  }
 0x76a   :  { %26455 = vmatprep.subr.bf16.mxu1 %v29566_v0 }
 0x76b   :  { %26208 = vmatpush3.bf16.msra.mxu0 %v28842_v38  ;;  %v28857_v38 = vld [vmem:[%s37142_s10 + $0x8f8] sm:$0xff]  }
 0x76c   :  { %26432 = vmatmul.mubr.bf16.vlgmr.msra.gmra.mrb[40].mxu1 %v22632_v60  ;;  %26209 = vmatprep.subr.bf16.mxu0 %v29566_v0  ;;  %v28858_v60 = vld [vmem:[%s37142_s10 + $0x630] sm:$0xff]  }
 0x76d   :  { %26456 = vmatpush3.bf16.msra.mxu1 %v28843_v62  ;;  %26471 = vmatprep.mubr.msk.bf16.mxu1 %vm29567_vm0, %v29566_v0 }
 0x76e   :  { %26457 = vmatprep.subr.bf16.mxu1 %v29566_v0 }
 0x76f   :  { %26210 = vmatpush3.bf16.msra.mxu0 %v28844_v14  ;;  %v7528_v14 = vadd.f32 %v33571_v18, %v32688_v37  ;;  %v28860_v37 = vld [vmem:[%s37142_s10 + $0x638] sm:$0xff]  }
 0x770   :  { %26235 = vmatprep.subr.bf16.mxu0 %v29566_v0 }
 0x771   :  { %26458 = vmatpush3.bf16.msra.mxu1 %v28845_v58 }
 0x772   :  { %26212 = vmatmul.mubr.bf16.vlgmr.msra.gmra.mrb[20].mxu0 %v22621_v10  ;;  %26459 = vmatprep.subr.bf16.mxu1 %v29566_v0  ;;  %v22634_v10 = vpack.c.bf16 %v7696_v44, %v7696_v44 }
 0x773   :  { %26236 = vmatpush3.bf16.msra.mxu0 %v28846_v36  ;;  %26251 = vmatprep.mubr.msk.bf16.mxu0 %vm29567_vm0, %v29566_v0 }
 0x774   :  { %26237 = vmatprep.subr.bf16.mxu0 %v29566_v0 }
 0x775   :  { %26460 = vmatpush3.bf16.msra.mxu1 %v28847_v7  ;;  %v7685_v7 = vmax.f32 %v7528_v14, 0.0 }
 0x776   :  { %26461 = vmatprep.subr.bf16.mxu1 %v29566_v0 }
 0x777   :  { %26238 = vmatpush3.bf16.msra.mxu0 %v28848_v21  ;;  %v28862_v21 = vld [vmem:[%s37142_s10 + $0x680] sm:$0xff]  }
 0x778   :  { %26239 = vmatprep.subr.bf16.mxu0 %v29566_v0 }
 0x779   :  { %26462 = vmatpush3.bf16.msra.mxu1 %v28849_v59  ;;  %v22623_v59 = vpack.c.bf16 %v7685_v7, %v7685_v7 }
 0x77a   :  { %26463 = vmatprep.subr.bf16.mxu1 %v29566_v0 }
 0x77b   :  { %26240 = vmatpush3.bf16.msra.mxu0 %v28850_v20  ;;  %v28863_v20 = vld [vmem:[%s37142_s10 + $0x950] sm:$0xff]  }
 0x77c   :  { %26241 = vmatprep.subr.bf16.mxu0 %v29566_v0 }
 0x77d   :  { %26464 = vmatpush3.bf16.msra.mxu1 %v28851_v54  ;;  %v28864_v54 = vld [vmem:[%s37142_s10 + $0x688] sm:$0xff]  }
 0x77e   :  { %26465 = vmatprep.subr.bf16.mxu1 %v29566_v0 }
 0x77f   :  { %v33641_v5 = vpop.f32.mrb[16].mxu1  ;;  %26242 = vmatpush3.bf16.msra.mxu0 %v28852_v17  ;;  %v28865_v17 = vld [vmem:[%s37142_s10 + $0x958] sm:$0xff]  }
 0x780   :  { %v26193_v41 = vpop.f32.mrb[17].mxu1  ;;  %26243 = vmatprep.subr.bf16.mxu0 %v29566_v0 }
 0x781   :  { %v10792_v43 = vpop.f32.mrb[18].mxu1  ;;  %26466 = vmatpush3.bf16.msra.mxu1 %v28853_v22  ;;  %v28866_v22 = vld [vmem:[%s37142_s10 + $0x690] sm:$0xff]   ;;  %v28868_v41 = vld [vmem:[%s37142_s10 + $0x698] sm:$0xff]  }
 0x782   :  { %v26194_v30 = vpop.f32.mrb[19].mxu1  ;;  %26467 = vmatprep.subr.bf16.mxu1 %v29566_v0  ;;  %v28869_v43 = vld [vmem:[%s37142_s10 + $0x968] sm:$0xff]  }
 0x783   :  { %26244 = vmatpush3.bf16.msra.mxu0 %v28854_v27  ;;  %v28867_v27 = vld [vmem:[%s37142_s10 + $0x960] sm:$0xff]  }
 0x784   :  { %26245 = vmatprep.subr.bf16.mxu0 %v29566_v0 }
 0x785   :  { %v9821_v23 = vpop.f32.mrb[252].mxu0  ;;  %26468 = vmatpush3.bf16.msra.mxu1 %v28855_v39 }
 0x786   :  { %v13894_v16 = vsel %vm6954_vm2, %v9821_v23, 0.0  ;;  %v25973_v4 = vpop.f32.mrb[253].mxu0  ;;  %26469 = vmatprep.subr.bf16.mxu1 %v29566_v0  ;;  %v28871_v23 = vld [vmem:[%s37142_s10 + $0x970] sm:$0xff]  }
 0x787   :  { %v13895_v9 = vadd.f32 %v13894_v16, %v13893_v46  ;;  %v9824_v62 = vpop.f32.mrb[254].mxu0  ;;  %26246 = vmatpush3.bf16.msra.mxu0 %v28856_v57  ;;  %v28859_v46 = vld [vmem:[%s37142_s10 + $0x940] sm:$0xff]   ;;  %v28872_v16 = vld [vmem:[%s37142_s10 + $0x6a8] sm:$0xff]  }
 0x788   :  { %v25974_v58 = vpop.f32.mrb[255].mxu0  ;;  %26247 = vmatprep.subr.bf16.mxu0 %v29566_v0 }
 0x789   :  { %26470 = vmatpush3.bf16.msra.mxu1 %v28857_v38  ;;  %v13897_v36 = vadd.f32 %v13896_v51, %v13895_v9  ;;  %v7579_v38 = vadd.f32 %v33571_v18, %v32826_v42  ;;  %v28873_v9 = vld [vmem:[%s37142_s10 + $0x978] sm:$0xff]   ;;  %v28874_v58 = vld [vmem:[%s37142_s10 + $0x6b0] sm:$0xff]  }
 0x78a   :  { %26495 = vmatprep.subr.bf16.mxu1 %v29566_v0 }
 0x78b   :  { %26248 = vmatpush3.bf16.msra.mxu0 %v28858_v60  ;;  %v7698_v62 = vmax.f32 %v7579_v38, 0.0 }
 0x78c   :  { %26472 = vmatmul.mubr.bf16.vlgmr.msra.gmra.mrb[44].mxu1 %v22634_v10  ;;  %26249 = vmatprep.subr.bf16.mxu0 %v29566_v0  ;;  %v13900_v10 = vsel %vm6954_vm2, %v33325_v31, 0.0  ;;  %v28877_v31 = vld [vmem:[%s37142_s10 + $0x9c8] sm:$0xff]  }
 0x78d   :  { %26496 = vmatpush3.bf16.msra.mxu1 %v28859_v46  ;;  %26511 = vmatprep.mubr.msk.bf16.mxu1 %vm29567_vm0, %v29566_v0  ;;  %v7536_v46 = vadd.f32 %v33571_v18, %v32710_v25  ;;  %v28876_v25 = vld [vmem:[%s37142_s10 + $0x6b8] sm:$0xff]  }
 0x78e   :  { %26497 = vmatprep.subr.bf16.mxu1 %v29566_v0 }
 0x78f   :  { %26250 = vmatpush3.bf16.msra.mxu0 %v28860_v37 }
 0x790   :  { %26275 = vmatprep.subr.bf16.mxu0 %v29566_v0 }
 0x791   :  { %26498 = vmatpush3.bf16.msra.mxu1 %v28861_v12  ;;  %v22636_v12 = vpack.c.bf16 %v7698_v62, %v7698_v62 }
 0x792   :  { %26252 = vmatmul.mubr.bf16.vlgmr.msra.gmra.mrb[24].mxu0 %v22623_v59  ;;  %26499 = vmatprep.subr.bf16.mxu1 %v29566_v0  ;;  %v28878_v59 = vld [vmem:[%s37142_s10 + $0x700] sm:$0xff]  }
 0x793   :  { %26276 = vmatpush3.bf16.msra.mxu0 %v28862_v21  ;;  %26291 = vmatprep.mubr.msk.bf16.mxu0 %vm29567_vm0, %v29566_v0  ;;  %v7687_v21 = vmax.f32 %v7536_v46, 0.0  ;;  %v28890_v46 = vld [vmem:[%s37142_s10 + $0x730] sm:$0xff]  }
 0x794   :  { %26277 = vmatprep.subr.bf16.mxu0 %v29566_v0 }
 0x795   :  { %26500 = vmatpush3.bf16.msra.mxu1 %v28863_v20  ;;  %v22625_v20 = vpack.c.bf16 %v7687_v21, %v7687_v21 }
 0x796   :  { %26501 = vmatprep.subr.bf16.mxu1 %v29566_v0 }
 0x797   :  { %26278 = vmatpush3.bf16.msra.mxu0 %v28864_v54  ;;  %v28879_v54 = vld [vmem:[%s37142_s10 + $0x9d0] sm:$0xff]  }
 0x798   :  { %26279 = vmatprep.subr.bf16.mxu0 %v29566_v0 }
 0x799   :  { %26502 = vmatpush3.bf16.msra.mxu1 %v28865_v17  ;;  %v28880_v17 = vld [vmem:[%s37142_s10 + $0x708] sm:$0xff]  }
 0x79a   :  { %26503 = vmatprep.subr.bf16.mxu1 %v29566_v0 }
 0x79b   :  { %26280 = vmatpush3.bf16.msra.mxu0 %v28866_v22  ;;  %v28881_v22 = vld [vmem:[%s37142_s10 + $0x9d8] sm:$0xff]  }
 0x79c   :  { %26281 = vmatprep.subr.bf16.mxu0 %v29566_v0 }
 0x79d   :  { %26504 = vmatpush3.bf16.msra.mxu1 %v28867_v27  ;;  %v28882_v27 = vld [vmem:[%s37142_s10 + $0x710] sm:$0xff]  }
 0x79e   :  { %26505 = vmatprep.subr.bf16.mxu1 %v29566_v0 }
 0x79f   :  { %v33718_v39 = vpop.f32.mrb[20].mxu1  ;;  %26282 = vmatpush3.bf16.msra.mxu0 %v28868_v41  ;;  %v28883_v41 = vld [vmem:[%s37142_s10 + $0x9e0] sm:$0xff]  }
 0x7a0   :  { %v26233_v30 = vpop.f32.mrb[21].mxu1  ;;  %26283 = vmatprep.subr.bf16.mxu0 %v29566_v0 }
 0x7a1   :  { %v10968_v57 = vpop.f32.mrb[22].mxu1  ;;  %26506 = vmatpush3.bf16.msra.mxu1 %v28869_v43  ;;  %v28884_v43 = vld [vmem:[%s37142_s10 + $0x718] sm:$0xff]  }
 0x7a2   :  { %v26234_v44 = vpop.f32.mrb[23].mxu1  ;;  %26507 = vmatprep.subr.bf16.mxu1 %v29566_v0  ;;  %v28886_v57 = vld [vmem:[%s37142_s10 + $0x720] sm:$0xff]  }
 0x7a3   :  { %26284 = vmatpush3.bf16.msra.mxu0 %v28870_v35  ;;  %v28885_v35 = vld [vmem:[%s37142_s10 + $0x9e8] sm:$0xff]   ;;  %v28887_v44 = vld [vmem:[%s37142_s10 + $0x9f0] sm:$0xff]  }
 0x7a4   :  { %26285 = vmatprep.subr.bf16.mxu0 %v29566_v0 }
 0x7a5   :  { %v9997_v4 = vpop.f32.mrb[0].mxu0  ;;  %26508 = vmatpush3.bf16.msra.mxu1 %v28871_v23 }
 0x7a6   :  { %v13898_v60 = vsel %vm6954_vm2, %v9997_v4, 0.0  ;;  %v26013_v42 = vpop.f32.mrb[1].mxu0  ;;  %26509 = vmatprep.subr.bf16.mxu1 %v29566_v0 }
 0x7a7   :  { %v13899_v14 = vadd.f32 %v13898_v60, %v13897_v36  ;;  %v10000_v51 = vpop.f32.mrb[2].mxu0  ;;  %26286 = vmatpush3.bf16.msra.mxu0 %v28872_v16  ;;  %v28875_v36 = vld [vmem:[%s37142_s10 + $0x9c0] sm:$0xff]   ;;  %v7587_v16 = vadd.f32 %v33571_v18, %v32848_v6  ;;  %v28889_v60 = vld [vmem:[%s37142_s10 + $0x9f8] sm:$0xff]  }
 0x7a8   :  { %v26014_v37 = vpop.f32.mrb[3].mxu0  ;;  %26287 = vmatprep.subr.bf16.mxu0 %v29566_v0 }
 0x7a9   :  { %26510 = vmatpush3.bf16.msra.mxu1 %v28873_v9  ;;  %v13901_v7 = vadd.f32 %v13900_v10, %v13899_v14  ;;  %v28888_v9 = vld [vmem:[%s37142_s10 + $0x728] sm:$0xff]   ;;  %v7700_v42 = vmax.f32 %v7587_v16, 0.0  ;;  %v7544_v10 = vadd.f32 %v33571_v18, %v32732_v53  ;;  %v13904_v37 = vsel %vm6954_vm2, %v33403_v29, 0.0  ;;  %v28892_v53 = vld [vmem:[%s37142_s10 + $0x738] sm:$0xff]  }
 0x7aa   :  { %26535 = vmatprep.subr.bf16.mxu1 %v29566_v0  ;;  %v28893_v29 = vld [vmem:[%s37142_s10 + $0xa48] sm:$0xff]   ;;  %v7595_v16 = vadd.f32 %v33571_v18, %v32870_v63 }
 0x7ab   :  { %26288 = vmatpush3.bf16.msra.mxu0 %v28874_v58  ;;  %v7689_v21 = vmax.f32 %v7544_v10, 0.0  ;;  %v13908_v10 = vsel %vm6954_vm2, %v33481_v40, 0.0  ;;  %v28909_v40 = vld [vmem:[%s37142_s10 + $0xac8] sm:$0xff]  }
 0x7ac   :  { %26512 = vmatmul.mubr.bf16.vlgmr.msra.gmra.mrb[48].mxu1 %v22636_v12  ;;  %26289 = vmatprep.subr.bf16.mxu0 %v29566_v0 }
 0x7ad   :  { %26536 = vmatpush3.bf16.msra.mxu1 %v28875_v36  ;;  %26551 = vmatprep.mubr.msk.bf16.mxu1 %vm29567_vm0, %v29566_v0 }
 0x7ae   :  { %26537 = vmatprep.subr.bf16.mxu1 %v29566_v0 }
 0x7af   :  { %26290 = vmatpush3.bf16.msra.mxu0 %v28876_v25  ;;  %v22638_v25 = vpack.c.bf16 %v7700_v42, %v7700_v42  ;;  %v7702_v42 = vmax.f32 %v7595_v16, 0.0  ;;  %v28920_v16 = vld [vmem:[%s37142_s10 + $0x828] sm:$0xff]  }
 0x7b0   :  { %26315 = vmatprep.subr.bf16.mxu0 %v29566_v0 }
 0x7b1   :  { %26538 = vmatpush3.bf16.msra.mxu1 %v28877_v31  ;;  %v28894_v31 = vld [vmem:[%s37142_s10 + $0x780] sm:$0xff]  }
 0x7b2   :  { %26292 = vmatmul.mubr.bf16.vlgmr.msra.gmra.mrb[28].mxu0 %v22625_v20  ;;  %26539 = vmatprep.subr.bf16.mxu1 %v29566_v0  ;;  %v28895_v20 = vld [vmem:[%s37142_s10 + $0xa50] sm:$0xff]  }
 0x7b3   :  { %26316 = vmatpush3.bf16.msra.mxu0 %v28878_v59  ;;  %26331 = vmatprep.mubr.msk.bf16.mxu0 %vm29567_vm0, %v29566_v0  ;;  %v22627_v59 = vpack.c.bf16 %v7689_v21, %v7689_v21 }
 0x7b4   :  { %26317 = vmatprep.subr.bf16.mxu0 %v29566_v0 }
 0x7b5   :  { %26540 = vmatpush3.bf16.msra.mxu1 %v28879_v54  ;;  %v28896_v54 = vld [vmem:[%s37142_s10 + $0x788] sm:$0xff]  }
 0x7b6   :  { %26541 = vmatprep.subr.bf16.mxu1 %v29566_v0 }
 0x7b7   :  { %26318 = vmatpush3.bf16.msra.mxu0 %v28880_v17  ;;  %v28897_v17 = vld [vmem:[%s37142_s10 + $0xa58] sm:$0xff]  }
 0x7b8   :  { %26319 = vmatprep.subr.bf16.mxu0 %v29566_v0 }
 0x7b9   :  { %26542 = vmatpush3.bf16.msra.mxu1 %v28881_v22  ;;  %v28898_v22 = vld [vmem:[%s37142_s10 + $0x790] sm:$0xff]  }
 0x7ba   :  { %26543 = vmatprep.subr.bf16.mxu1 %v29566_v0 }
 0x7bb   :  { %26320 = vmatpush3.bf16.msra.mxu0 %v28882_v27  ;;  %v28899_v27 = vld [vmem:[%s37142_s10 + $0xa60] sm:$0xff]  }
 0x7bc   :  { %26321 = vmatprep.subr.bf16.mxu0 %v29566_v0 }
 0x7bd   :  { %26544 = vmatpush3.bf16.msra.mxu1 %v28883_v41  ;;  %v28900_v41 = vld [vmem:[%s37142_s10 + $0x798] sm:$0xff]  }
 0x7be   :  { %26545 = vmatprep.subr.bf16.mxu1 %v29566_v0 }
 0x7bf   :  { %v33795_v30 = vpop.f32.mrb[24].mxu1  ;;  %26322 = vmatpush3.bf16.msra.mxu0 %v28884_v43  ;;  %v28901_v43 = vld [vmem:[%s37142_s10 + $0xa68] sm:$0xff]  }
 0x7c0   :  { %v26273_v23 = vpop.f32.mrb[25].mxu1  ;;  %26323 = vmatprep.subr.bf16.mxu0 %v29566_v0 }
 0x7c1   :  { %v11144_v38 = vpop.f32.mrb[26].mxu1  ;;  %26546 = vmatpush3.bf16.msra.mxu1 %v28885_v35 }
 0x7c2   :  { %v26274_v4 = vpop.f32.mrb[27].mxu1  ;;  %26547 = vmatprep.subr.bf16.mxu1 %v29566_v0 }
 0x7c3   :  { %26324 = vmatpush3.bf16.msra.mxu0 %v28886_v57  ;;  %v28902_v57 = vld [vmem:[%s37142_s10 + $0x7a0] sm:$0xff]  }
 0x7c4   :  { %26325 = vmatprep.subr.bf16.mxu0 %v29566_v0 }
 0x7c5   :  { %v10173_v62 = vpop.f32.mrb[4].mxu0  ;;  %26548 = vmatpush3.bf16.msra.mxu1 %v28887_v44  ;;  %v28903_v44 = vld [vmem:[%s37142_s10 + $0xa70] sm:$0xff]  }
 0x7c6   :  { %v13902_v14 = vsel %vm6954_vm2, %v10173_v62, 0.0  ;;  %v26053_v6 = vpop.f32.mrb[5].mxu0  ;;  %26549 = vmatprep.subr.bf16.mxu1 %v29566_v0 }
 0x7c7   :  { %v13903_v51 = vadd.f32 %v13902_v14, %v13901_v7  ;;  %v10176_v58 = vpop.f32.mrb[6].mxu0  ;;  %26326 = vmatpush3.bf16.msra.mxu0 %v28888_v9  ;;  %v28891_v7 = vld [vmem:[%s37142_s10 + $0xa40] sm:$0xff]   ;;  %v28904_v9 = vld [vmem:[%s37142_s10 + $0x7a8] sm:$0xff]  }
 0x7c8   :  { %v26054_v36 = vpop.f32.mrb[7].mxu0  ;;  %26327 = vmatprep.subr.bf16.mxu0 %v29566_v0  ;;  %v28906_v58 = vld [vmem:[%s37142_s10 + $0x7b0] sm:$0xff]  }
 0x7c9   :  { %26550 = vmatpush3.bf16.msra.mxu1 %v28889_v60  ;;  %v13905_v12 = vadd.f32 %v13904_v37, %v13903_v51  ;;  %v28905_v60 = vld [vmem:[%s37142_s10 + $0xa78] sm:$0xff]   ;;  %v28907_v36 = vld [vmem:[%s37142_s10 + $0xac0] sm:$0xff]  }
 0x7ca   :  { %26575 = vmatprep.subr.bf16.mxu1 %v29566_v0 }
 0x7cb   :  { %26328 = vmatpush3.bf16.msra.mxu0 %v28890_v46  ;;  %v7552_v46 = vadd.f32 %v33571_v18, %v32754_v55  ;;  %v28908_v55 = vld [vmem:[%s37142_s10 + $0x7b8] sm:$0xff]  }
 0x7cc   :  { %26552 = vmatmul.mubr.bf16.vlgmr.msra.gmra.mrb[52].mxu1 %v22638_v25  ;;  %26329 = vmatprep.subr.bf16.mxu0 %v29566_v0 }
 0x7cd   :  { %26576 = vmatpush3.bf16.msra.mxu1 %v28891_v7  ;;  %26591 = vmatprep.mubr.msk.bf16.mxu1 %vm29567_vm0, %v29566_v0  ;;  %v7691_v25 = vmax.f32 %v7552_v46, 0.0  ;;  %v28923_v46 = vld [vmem:[%s37142_s10 + $0xb40] sm:$0xff]  }
 0x7ce   :  { %26577 = vmatprep.subr.bf16.mxu1 %v29566_v0 }
 0x7cf   :  { %26330 = vmatpush3.bf16.msra.mxu0 %v28892_v53  ;;  %v28910_v53 = vld [vmem:[%s37142_s10 + $0x800] sm:$0xff]   ;;  %v22629_v21 = vpack.c.bf16 %v7691_v25, %v7691_v25  ;;  %v28928_v25 = vld [vmem:[%s37142_s10 + $0x888] sm:$0xff]  }
 0x7d0   :  { %26355 = vmatprep.subr.bf16.mxu0 %v29566_v0 }
 0x7d1   :  { %26578 = vmatpush3.bf16.msra.mxu1 %v28893_v29  ;;  %v28911_v29 = vld [vmem:[%s37142_s10 + $0xad0] sm:$0xff]  }
 0x7d2   :  { %26332 = vmatmul.mubr.bf16.vlgmr.msra.gmra.mrb[32].mxu0 %v22627_v59  ;;  %26579 = vmatprep.subr.bf16.mxu1 %v29566_v0  ;;  %v28913_v59 = vld [vmem:[%s37142_s10 + $0xad8] sm:$0xff]  }
 0x7d3   :  { %26356 = vmatpush3.bf16.msra.mxu0 %v28894_v31  ;;  %26371 = vmatprep.mubr.msk.bf16.mxu0 %vm29567_vm0, %v29566_v0  ;;  %v28912_v31 = vld [vmem:[%s37142_s10 + $0x808] sm:$0xff]  }
 0x7d4   :  { %26357 = vmatprep.subr.bf16.mxu0 %v29566_v0 }
 0x7d5   :  { %26580 = vmatpush3.bf16.msra.mxu1 %v28895_v20  ;;  %v28914_v20 = vld [vmem:[%s37142_s10 + $0x810] sm:$0xff]  }
 0x7d6   :  { %26581 = vmatprep.subr.bf16.mxu1 %v29566_v0 }
 0x7d7   :  { %26358 = vmatpush3.bf16.msra.mxu0 %v28896_v54  ;;  %v28915_v54 = vld [vmem:[%s37142_s10 + $0xae0] sm:$0xff]  }
 0x7d8   :  { %26359 = vmatprep.subr.bf16.mxu0 %v29566_v0 }
 0x7d9   :  { %26582 = vmatpush3.bf16.msra.mxu1 %v28897_v17  ;;  %v28916_v17 = vld [vmem:[%s37142_s10 + $0x818] sm:$0xff]  }
 0x7da   :  { %26583 = vmatprep.subr.bf16.mxu1 %v29566_v0 }
 0x7db   :  { %26360 = vmatpush3.bf16.msra.mxu0 %v28898_v22  ;;  %v28917_v22 = vld [vmem:[%s37142_s10 + $0xae8] sm:$0xff]  }
 0x7dc   :  { %26361 = vmatprep.subr.bf16.mxu0 %v29566_v0 }
 0x7dd   :  { %26584 = vmatpush3.bf16.msra.mxu1 %v28899_v27 }
 0x7de   :  { %26585 = vmatprep.subr.bf16.mxu1 %v29566_v0 }
 0x7df   :  { %v33872_v35 = vpop.f32.mrb[28].mxu1  ;;  %26362 = vmatpush3.bf16.msra.mxu0 %v28900_v41  ;;  %v28918_v41 = vld [vmem:[%s37142_s10 + $0x820] sm:$0xff]  }
 0x7e0   :  { %v26313_v23 = vpop.f32.mrb[29].mxu1  ;;  %26363 = vmatprep.subr.bf16.mxu0 %v29566_v0 }
 0x7e1   :  { %v11320_v38 = vpop.f32.mrb[30].mxu1  ;;  %26586 = vmatpush3.bf16.msra.mxu1 %v28901_v43  ;;  %v28919_v23 = vld [vmem:[%s37142_s10 + $0xaf0] sm:$0xff]  }
 0x7e2   :  { %v26314_v4 = vpop.f32.mrb[31].mxu1  ;;  %26587 = vmatprep.subr.bf16.mxu1 %v29566_v0  ;;  %v7603_v38 = vadd.f32 %v33571_v18, %v32894_v52 }
 0x7e3   :  { %26364 = vmatpush3.bf16.msra.mxu0 %v28902_v57 }
 0x7e4   :  { %26365 = vmatprep.subr.bf16.mxu0 %v29566_v0 }
 0x7e5   :  { %v10349_v62 = vpop.f32.mrb[8].mxu0  ;;  %26588 = vmatpush3.bf16.msra.mxu1 %v28903_v44 }
 0x7e6   :  { %v13906_v14 = vsel %vm6954_vm2, %v10349_v62, 0.0  ;;  %v26093_v63 = vpop.f32.mrb[9].mxu0  ;;  %26589 = vmatprep.subr.bf16.mxu1 %v29566_v0  ;;  %v7704_v62 = vmax.f32 %v7603_v38, 0.0  ;;  %v28937_v38 = vld [vmem:[%s37142_s10 + $0xb78] sm:$0xff]  }
 0x7e7   :  { %v13907_v6 = vadd.f32 %v13906_v14, %v13905_v12  ;;  %v10352_v51 = vpop.f32.mrb[10].mxu0  ;;  %26366 = vmatpush3.bf16.msra.mxu0 %v28904_v9  ;;  %v22640_v12 = vpack.c.bf16 %v7702_v42, %v7702_v42  ;;  %v28921_v9 = vld [vmem:[%s37142_s10 + $0xaf8] sm:$0xff]   ;;  %v28922_v63 = vld [vmem:[%s37142_s10 + $0x830] sm:$0xff]  }
 0x7e8   :  { %v26094_v37 = vpop.f32.mrb[11].mxu0  ;;  %26367 = vmatprep.subr.bf16.mxu0 %v29566_v0  ;;  %v13912_v51 = vsel %vm6954_vm2, %v33559_v33, 0.0  ;;  %v28925_v33 = vld [vmem:[%s37142_s10 + $0xb48] sm:$0xff]  }
 0x7e9   :  { %26590 = vmatpush3.bf16.msra.mxu1 %v28905_v60  ;;  %v13909_v7 = vadd.f32 %v13908_v10, %v13907_v6  ;;  %v7560_v6 = vadd.f32 %v33571_v18, %v32776_v19  ;;  %v22642_v37 = vpack.c.bf16 %v7704_v62, %v7704_v62  ;;  %v28924_v19 = vld [vmem:[%s37142_s10 + $0x838] sm:$0xff]   ;;  %v28938_v62 = vld [vmem:[%s37142_s10 + $0x8b0] sm:$0xff]  }
 0x7ea   :  { %26615 = vmatprep.subr.bf16.mxu1 %v29566_v0 }
 0x7eb   :  { %26368 = vmatpush3.bf16.msra.mxu0 %v28906_v58 }
 0x7ec   :  { %26592 = vmatmul.mubr.bf16.vlgmr.msra.gmra.mrb[56].mxu1 %v22640_v12  ;;  %26369 = vmatprep.subr.bf16.mxu0 %v29566_v0 }
 0x7ed   :  { %26616 = vmatpush3.bf16.msra.mxu1 %v28907_v36  ;;  %26631 = vmatprep.mubr.msk.bf16.mxu1 %vm29567_vm0, %v29566_v0  ;;  %v7693_v36 = vmax.f32 %v7560_v6, 0.0 }
 0x7ee   :  { %26617 = vmatprep.subr.bf16.mxu1 %v29566_v0 }
 0x7ef   :  { %26370 = vmatpush3.bf16.msra.mxu0 %v28908_v55  ;;  %v22631_v12 = vpack.c.bf16 %v7693_v36, %v7693_v36  ;;  %v28927_v55 = vld [vmem:[%s37142_s10 + $0xb50] sm:$0xff]  }
 0x7f0   :  { %26395 = vmatprep.subr.bf16.mxu0 %v29566_v0  ;;  %v28946_v36 = vld [vmem:[%s37142_s10 + $0x910] sm:$0xff]  }
 0x7f1   :  { %26618 = vmatpush3.bf16.msra.mxu1 %v28909_v40  ;;  %v28929_v40 = vld [vmem:[%s37142_s10 + $0xb58] sm:$0xff]  }
 0x7f2   :  { %26372 = vmatmul.mubr.bf16.vlgmr.msra.gmra.mrb[36].mxu0 %v22629_v21  ;;  %26619 = vmatprep.subr.bf16.mxu1 %v29566_v0  ;;  %v28931_v21 = vld [vmem:[%s37142_s10 + $0xb60] sm:$0xff]  }
 0x7f3   :  { %26396 = vmatpush3.bf16.msra.mxu0 %v28910_v53  ;;  %26411 = vmatprep.mubr.msk.bf16.mxu0 %vm29567_vm0, %v29566_v0  ;;  %v28930_v53 = vld [vmem:[%s37142_s10 + $0x890] sm:$0xff]  }
 0x7f4   :  { %26397 = vmatprep.subr.bf16.mxu0 %v29566_v0 }
 0x7f5   :  { %26620 = vmatpush3.bf16.msra.mxu1 %v28911_v29  ;;  %v28932_v29 = vld [vmem:[%s37142_s10 + $0x898] sm:$0xff]  }
 0x7f6   :  { %26621 = vmatprep.subr.bf16.mxu1 %v29566_v0 }
 0x7f7   :  { %26398 = vmatpush3.bf16.msra.mxu0 %v28912_v31  ;;  %v28933_v31 = vld [vmem:[%s37142_s10 + $0xb68] sm:$0xff]  }
 0x7f8   :  { %26399 = vmatprep.subr.bf16.mxu0 %v29566_v0 }
 0x7f9   :  { %26622 = vmatpush3.bf16.msra.mxu1 %v28913_v59 }
 0x7fa   :  { %26623 = vmatprep.subr.bf16.mxu1 %v29566_v0 }
 0x7fb   :  { %26400 = vmatpush3.bf16.msra.mxu0 %v28914_v20  ;;  %v28934_v20 = vld [vmem:[%s37142_s10 + $0x8a0] sm:$0xff]  }
 0x7fc   :  { %26401 = vmatprep.subr.bf16.mxu0 %v29566_v0 }
 0x7fd   :  { %26624 = vmatpush3.bf16.msra.mxu1 %v28915_v54 }
 0x7fe   :  { %26625 = vmatprep.subr.bf16.mxu1 %v29566_v0 }
 0x7ff   :  { %v33949_v27 = vpop.f32.mrb[32].mxu1  ;;  %26402 = vmatpush3.bf16.msra.mxu0 %v28916_v17 }
 0x800   :  { %v26353_v43 = vpop.f32.mrb[33].mxu1  ;;  %26403 = vmatprep.subr.bf16.mxu0 %v29566_v0 }
 0x801   :  { %v11496_v57 = vpop.f32.mrb[34].mxu1  ;;  %26626 = vmatpush3.bf16.msra.mxu1 %v28917_v22  ;;  %v28935_v22 = vld [vmem:[%s37142_s10 + $0xb70] sm:$0xff]  }
 0x802   :  { %v26354_v44 = vpop.f32.mrb[35].mxu1  ;;  %26627 = vmatprep.subr.bf16.mxu1 %v29566_v0  ;;  %v28936_v57 = vld [vmem:[%s37142_s10 + $0x8a8] sm:$0xff]  }
 0x803   :  { %26404 = vmatpush3.bf16.msra.mxu0 %v28918_v41  ;;  %v7611_v41 = vadd.f32 %v33571_v18, %v32914_v11 }
 0x804   :  { %26405 = vmatprep.subr.bf16.mxu0 %v29566_v0 }
 0x805   :  { %v10525_v4 = vpop.f32.mrb[12].mxu0  ;;  %26628 = vmatpush3.bf16.msra.mxu1 %v28919_v23  ;;  %v7706_v44 = vmax.f32 %v7611_v41, 0.0 }
 0x806   :  { %v13910_v60 = vsel %vm6954_vm2, %v10525_v4, 0.0  ;;  %v26133_v52 = vpop.f32.mrb[13].mxu0  ;;  %26629 = vmatprep.subr.bf16.mxu1 %v29566_v0 }
 0x807   :  { %v13911_v42 = vadd.f32 %v13910_v60, %v13909_v7  ;;  %v10528_v14 = vpop.f32.mrb[14].mxu0  ;;  %26406 = vmatpush3.bf16.msra.mxu0 %v28920_v16  ;;  %v28926_v7 = vld [vmem:[%s37142_s10 + $0x880] sm:$0xff]   ;;  %v7568_v60 = vadd.f32 %v33571_v18, %v32798_v48  ;;  %v13916_v52 = vsel %vm6954_vm2, %v33641_v5, 0.0  ;;  %v22644_v6 = vpack.c.bf16 %v7706_v44, %v7706_v44  ;;  %v28940_v48 = vld [vmem:[%s37142_s10 + $0x8b8] sm:$0xff]   ;;  %v28941_v5 = vld [vmem:[%s37142_s10 + $0xbc8] sm:$0xff]  }
 0x808   :  { %v26134_v58 = vpop.f32.mrb[15].mxu0  ;;  %26407 = vmatprep.subr.bf16.mxu0 %v29566_v0  ;;  %v28939_v14 = vld [vmem:[%s37142_s10 + $0xbc0] sm:$0xff]   ;;  %v13920_v44 = vsel %vm6954_vm2, %v33718_v39, 0.0  ;;  %v28957_v39 = vld [vmem:[%s37142_s10 + $0xc48] sm:$0xff]  }
 0x809   :  { %26630 = vmatpush3.bf16.msra.mxu1 %v28921_v9  ;;  %v13913_v10 = vadd.f32 %v13912_v51, %v13911_v42  ;;  %v7695_v51 = vmax.f32 %v7568_v60, 0.0  ;;  %v28942_v58 = vld [vmem:[%s37142_s10 + $0x900] sm:$0xff]  }
 0x80a   :  { %26655 = vmatprep.subr.bf16.mxu1 %v29566_v0 }
 0x80b   :  { %26408 = vmatpush3.bf16.msra.mxu0 %v28922_v63 }
 0x80c   :  { %26632 = vmatmul.mubr.bf16.vlgmr.msra.gmra.mrb[60].mxu1 %v22642_v37  ;;  %26409 = vmatprep.subr.bf16.mxu0 %v29566_v0  ;;  %v28944_v37 = vld [vmem:[%s37142_s10 + $0x908] sm:$0xff]  }
 0x80d   :  { %26656 = vmatpush3.bf16.msra.mxu1 %v28923_v46  ;;  %26671 = vmatprep.mubr.msk.bf16.mxu1 %vm29567_vm0, %v29566_v0  ;;  %v22633_v46 = vpack.c.bf16 %v7695_v51, %v7695_v51 }
 0x80e   :  { %26657 = vmatprep.subr.bf16.mxu1 %v29566_v0 }
 0x80f   :  { %26410 = vmatpush3.bf16.msra.mxu0 %v28924_v19  ;;  %v28945_v19 = vld [vmem:[%s37142_s10 + $0xbd8] sm:$0xff]  }
 0x810   :  { %26435 = vmatprep.subr.bf16.mxu0 %v29566_v0 }
 0x811   :  { %26658 = vmatpush3.bf16.msra.mxu1 %v28925_v33  ;;  %v28947_v33 = vld [vmem:[%s37142_s10 + $0xbe0] sm:$0xff]  }
 0x812   :  { %26412 = vmatmul.mubr.bf16.vlgmr.msra.gmra.mrb[40].mxu0 %v22631_v12  ;;  %26659 = vmatprep.subr.bf16.mxu1 %v29566_v0  ;;  %v28949_v12 = vld [vmem:[%s37142_s10 + $0xbe8] sm:$0xff]  }
 0x813   :  { %26436 = vmatpush3.bf16.msra.mxu0 %v28926_v7  ;;  %26451 = vmatprep.mubr.msk.bf16.mxu0 %vm29567_vm0, %v29566_v0  ;;  %v28948_v7 = vld [vmem:[%s37142_s10 + $0x918] sm:$0xff]  }
 0x814   :  { %26437 = vmatprep.subr.bf16.mxu0 %v29566_v0 }
 0x815   :  { %26660 = vmatpush3.bf16.msra.mxu1 %v28927_v55 }
 0x816   :  { %26661 = vmatprep.subr.bf16.mxu1 %v29566_v0 }
 0x817   :  { %26438 = vmatpush3.bf16.msra.mxu0 %v28928_v25  ;;  %v28950_v25 = vld [vmem:[%s37142_s10 + $0x920] sm:$0xff]  }
 0x818   :  { %26439 = vmatprep.subr.bf16.mxu0 %v29566_v0 }
 0x819   :  { %26662 = vmatpush3.bf16.msra.mxu1 %v28929_v40 }
 0x81a   :  { %26663 = vmatprep.subr.bf16.mxu1 %v29566_v0 }
 0x81b   :  { %26440 = vmatpush3.bf16.msra.mxu0 %v28930_v53 }
 0x81c   :  { %26441 = vmatprep.subr.bf16.mxu0 %v29566_v0 }
 0x81d   :  { %26664 = vmatpush3.bf16.msra.mxu1 %v28931_v21  ;;  %v28951_v21 = vld [vmem:[%s37142_s10 + $0xbf0] sm:$0xff]  }
 0x81e   :  { %26665 = vmatprep.subr.bf16.mxu1 %v29566_v0 }
 0x81f   :  { %v34026_v59 = vpop.f32.mrb[36].mxu1  ;;  %26442 = vmatpush3.bf16.msra.mxu0 %v28932_v29  ;;  %v7619_v29 = vadd.f32 %v33571_v18, %v32936_v47 }
 0x820   :  { %v26393_v54 = vpop.f32.mrb[37].mxu1  ;;  %26443 = vmatprep.subr.bf16.mxu0 %v29566_v0 }
 0x821   :  { %v11672_v17 = vpop.f32.mrb[38].mxu1  ;;  %26666 = vmatpush3.bf16.msra.mxu1 %v28933_v31  ;;  %v7708_v47 = vmax.f32 %v7619_v29, 0.0 }
 0x822   :  { %v26394_v43 = vpop.f32.mrb[39].mxu1  ;;  %26667 = vmatprep.subr.bf16.mxu1 %v29566_v0  ;;  %v28953_v17 = vld [vmem:[%s37142_s10 + $0xbf8] sm:$0xff]  }
 0x823   :  { %26444 = vmatpush3.bf16.msra.mxu0 %v28934_v20  ;;  %v28952_v20 = vld [vmem:[%s37142_s10 + $0x928] sm:$0xff]  }
 0x824   :  { %26445 = vmatprep.subr.bf16.mxu0 %v29566_v0 }
 0x825   :  { %v10701_v23 = vpop.f32.mrb[16].mxu0  ;;  %26668 = vmatpush3.bf16.msra.mxu1 %v28935_v22  ;;  %v7576_v22 = vadd.f32 %v33571_v18, %v32820_v15  ;;  %v28955_v15 = vld [vmem:[%s37142_s10 + $0xc40] sm:$0xff]  }
 0x826   :  { %v13914_v16 = vsel %vm6954_vm2, %v10701_v23, 0.0  ;;  %v26173_v11 = vpop.f32.mrb[17].mxu0  ;;  %26669 = vmatprep.subr.bf16.mxu1 %v29566_v0 }
 0x827   :  { %v13915_v4 = vadd.f32 %v13914_v16, %v13913_v10  ;;  %v10704_v9 = vpop.f32.mrb[18].mxu0  ;;  %26446 = vmatpush3.bf16.msra.mxu0 %v28936_v57  ;;  %v28943_v10 = vld [vmem:[%s37142_s10 + $0xbd0] sm:$0xff]   ;;  %v7697_v11 = vmax.f32 %v7576_v22, 0.0  ;;  %v28972_v22 = vld [vmem:[%s37142_s10 + $0x9b8] sm:$0xff]  }
 0x828   :  { %v26174_v42 = vpop.f32.mrb[19].mxu0  ;;  %26447 = vmatprep.subr.bf16.mxu0 %v29566_v0  ;;  %v28956_v9 = vld [vmem:[%s37142_s10 + $0x938] sm:$0xff]  }
 0x829   :  { %26670 = vmatpush3.bf16.msra.mxu1 %v28937_v38  ;;  %v13917_v63 = vadd.f32 %v13916_v52, %v13915_v4  ;;  %v28954_v38 = vld [vmem:[%s37142_s10 + $0x930] sm:$0xff]   ;;  %v22646_v4 = vpack.c.bf16 %v7708_v47, %v7708_v47  ;;  %v22635_v60 = vpack.c.bf16 %v7697_v11, %v7697_v11  ;;  %v28960_v42 = vld [vmem:[%s37142_s10 + $0x988] sm:$0xff]   ;;  %v28980_v11 = vld [vmem:[%s37142_s10 + $0xa18] sm:$0xff]  }
 0x82a   :  { %26695 = vmatprep.subr.bf16.mxu1 %v29566_v0  ;;  %v28959_v52 = vld [vmem:[%s37142_s10 + $0xc50] sm:$0xff]  }
 0x82b   :  { %26448 = vmatpush3.bf16.msra.mxu0 %v28938_v62  ;;  %v28958_v62 = vld [vmem:[%s37142_s10 + $0x980] sm:$0xff]  }
 0x82c   :  { %26672 = vmatmul.mubr.bf16.vlgmr.msra.gmra.mrb[64].mxu1 %v22644_v6  ;;  %26449 = vmatprep.subr.bf16.mxu0 %v29566_v0  ;;  %v28963_v6 = vld [vmem:[%s37142_s10 + $0xc60] sm:$0xff]  }
 0x82d   :  { %26696 = vmatpush3.bf16.msra.mxu1 %v28939_v14  ;;  %26711 = vmatprep.mubr.msk.bf16.mxu1 %vm29567_vm0, %v29566_v0  ;;  %v28961_v14 = vld [vmem:[%s37142_s10 + $0xc58] sm:$0xff]  }
 0x82e   :  { %26697 = vmatprep.subr.bf16.mxu1 %v29566_v0 }
 0x82f   :  { %26450 = vmatpush3.bf16.msra.mxu0 %v28940_v48  ;;  %v34176_v48 = vld [vmem:[%s37143_s6] ss:$0 sm:$0xff] }
 0x830   :  { %26475 = vmatprep.subr.bf16.mxu0 %v29566_v0  ;;  %v7627_v51 = vadd.f32 %v34176_v48, %v32963_v50  ;;  %v28966_v50 = vld [vmem:[%s37142_s10 + $0x9a0] sm:$0xff]  }
 0x831   :  { %26698 = vmatpush3.bf16.msra.mxu1 %v28941_v5  ;;  %v28964_v5 = vld [vmem:[%s37142_s10 + $0x998] sm:$0xff]  }
 0x832   :  { %26452 = vmatmul.mubr.bf16.vlgmr.msra.gmra.mrb[44].mxu0 %v22633_v46  ;;  %26699 = vmatprep.subr.bf16.mxu1 %v29566_v0  ;;  %v7710_v46 = vmax.f32 %v7627_v51, 0.0  ;;  %v28985_v51 = vld [vmem:[%s37142_s10 + $0xcf8] sm:$0xff]  }
 0x833   :  { %26476 = vmatpush3.bf16.msra.mxu0 %v28942_v58  ;;  %26491 = vmatprep.mubr.msk.bf16.mxu0 %vm29567_vm0, %v29566_v0  ;;  %v28965_v58 = vld [vmem:[%s37142_s10 + $0xc68] sm:$0xff]  }
 0x834   :  { %26477 = vmatprep.subr.bf16.mxu0 %v29566_v0 }
 0x835   :  { %26700 = vmatpush3.bf16.msra.mxu1 %v28943_v10 }
 0x836   :  { %26701 = vmatprep.subr.bf16.mxu1 %v29566_v0 }
 0x837   :  { %26478 = vmatpush3.bf16.msra.mxu0 %v28944_v37  ;;  %v13924_v37 = vsel %vm6954_vm2, %v33795_v30, 0.0 }
 0x838   :  { %26479 = vmatprep.subr.bf16.mxu0 %v29566_v0 }
 0x839   :  { %26702 = vmatpush3.bf16.msra.mxu1 %v28945_v19 }
 0x83a   :  { %26703 = vmatprep.subr.bf16.mxu1 %v29566_v0 }
 0x83b   :  { %26480 = vmatpush3.bf16.msra.mxu0 %v28946_v36 }
 0x83c   :  { %26481 = vmatprep.subr.bf16.mxu0 %v29566_v0 }
 0x83d   :  { %26704 = vmatpush3.bf16.msra.mxu1 %v28947_v33  ;;  %v28967_v33 = vld [vmem:[%s37142_s10 + $0xc70] sm:$0xff]  }
 0x83e   :  { %26705 = vmatprep.subr.bf16.mxu1 %v29566_v0 }
 0x83f   :  { %v34103_v55 = vpop.f32.mrb[40].mxu1  ;;  %26482 = vmatpush3.bf16.msra.mxu0 %v28948_v7 }
 0x840   :  { %v26433_v40 = vpop.f32.mrb[41].mxu1  ;;  %26483 = vmatprep.subr.bf16.mxu0 %v29566_v0 }
 0x841   :  { %v11848_v53 = vpop.f32.mrb[42].mxu1  ;;  %26706 = vmatpush3.bf16.msra.mxu1 %v28949_v12  ;;  %v28968_v12 = vld [vmem:[%s37142_s10 + $0x9a8] sm:$0xff]  }
 0x842   :  { %v26434_v31 = vpop.f32.mrb[43].mxu1  ;;  %26707 = vmatprep.subr.bf16.mxu1 %v29566_v0 }
 0x843   :  { %26484 = vmatpush3.bf16.msra.mxu0 %v28950_v25  ;;  %v28969_v25 = vld [vmem:[%s37142_s10 + $0xc78] sm:$0xff]   ;;  %v28970_v31 = vld [vmem:[%s37142_s10 + $0x9b0] sm:$0xff]  }
 0x844   :  { %26485 = vmatprep.subr.bf16.mxu0 %v29566_v0 }
 0x845   :  { %v10877_v54 = vpop.f32.mrb[20].mxu0  ;;  %26708 = vmatpush3.bf16.msra.mxu1 %v28951_v21 }
 0x846   :  { %v13918_v41 = vsel %vm6954_vm2, %v10877_v54, 0.0  ;;  %v26213_v43 = vpop.f32.mrb[21].mxu0  ;;  %26709 = vmatprep.subr.bf16.mxu1 %v29566_v0 }
 0x847   :  { %v13919_v57 = vadd.f32 %v13918_v41, %v13917_v63  ;;  %v10880_v23 = vpop.f32.mrb[22].mxu0  ;;  %26486 = vmatpush3.bf16.msra.mxu0 %v28952_v20  ;;  %v28962_v63 = vld [vmem:[%s37142_s10 + $0x990] sm:$0xff]   ;;  %v7584_v20 = vadd.f32 %v34176_v48, %v32842_v49  ;;  %v22648_v41 = vpack.c.bf16 %v7710_v46, %v7710_v46  ;;  %v28973_v49 = vld [vmem:[%s37142_s10 + $0xcc8] sm:$0xff]  }
 0x848   :  { %v26214_v16 = vpop.f32.mrb[23].mxu0  ;;  %26487 = vmatprep.subr.bf16.mxu0 %v29566_v0 }
 0x849   :  { %26710 = vmatpush3.bf16.msra.mxu1 %v28953_v17  ;;  %v34135_v18 = vadd.f32 %v13920_v44, %v13919_v57  ;;  %v28971_v17 = vld [vmem:[%s37142_s10 + $0xcc0] sm:$0xff]   ;;  %v7699_v43 = vmax.f32 %v7584_v20, 0.0  ;;  %v28976_v44 = vld [vmem:[%s37142_s10 + $0xa08] sm:$0xff]   ;;  %v28977_v16 = vld [vmem:[%s37142_s10 + $0xcd8] sm:$0xff]  }
 0x84a   :  { %26735 = vmatprep.subr.bf16.mxu1 %v29566_v0  ;;  %v28974_v57 = vld [vmem:[%s37142_s10 + $0xa00] sm:$0xff]   ;;  %v28994_v20 = vld [vmem:[%s37142_s10 + $0xa90] sm:$0xff]  }
 0x84b   :  { %26488 = vmatpush3.bf16.msra.mxu0 %v28954_v38  ;;  %v22637_v23 = vpack.c.bf16 %v7699_v43, %v7699_v43  ;;  %v28975_v38 = vld [vmem:[%s37142_s10 + $0xcd0] sm:$0xff]  }
 0x84c   :  { %26712 = vmatmul.mubr.bf16.vlgmr.msra.gmra.mrb[68].mxu1 %v22646_v4  ;;  %26489 = vmatprep.subr.bf16.mxu0 %v29566_v0  ;;  %v28981_v4 = vld [vmem:[%s37142_s10 + $0xce8] sm:$0xff]  }
 0x84d   :  { %26736 = vmatpush3.bf16.msra.mxu1 %v28955_v15  ;;  %26751 = vmatprep.mubr.msk.bf16.mxu1 %vm29567_vm0, %v29566_v0  ;;  %v28978_v15 = vld [vmem:[%s37142_s10 + $0xa10] sm:$0xff]  }
 0x84e   :  { %26737 = vmatprep.subr.bf16.mxu1 %v29566_v0 }
 0x84f   :  { %26490 = vmatpush3.bf16.msra.mxu0 %v28956_v9 }
 0x850   :  { %26515 = vmatprep.subr.bf16.mxu0 %v29566_v0 }
 0x851   :  { %26738 = vmatpush3.bf16.msra.mxu1 %v28957_v39  ;;  %v28982_v39 = vld [vmem:[%s37142_s10 + $0xa20] sm:$0xff]  }
 0x852   :  { %26492 = vmatmul.mubr.bf16.vlgmr.msra.gmra.mrb[48].mxu0 %v22635_v60  ;;  %26739 = vmatprep.subr.bf16.mxu1 %v29566_v0 }
 0x853   :  { %26516 = vmatpush3.bf16.msra.mxu0 %v28958_v62  ;;  %26531 = vmatprep.mubr.msk.bf16.mxu0 %vm29567_vm0, %v29566_v0 }
 0x854   :  { %26517 = vmatprep.subr.bf16.mxu0 %v29566_v0 }
 0x855   :  { %26740 = vmatpush3.bf16.msra.mxu1 %v28959_v52  ;;  %v28983_v52 = vld [vmem:[%s37142_s10 + $0xcf0] sm:$0xff]  }
 0x856   :  { %26741 = vmatprep.subr.bf16.mxu1 %v29566_v0 }
 0x857   :  { %26518 = vmatpush3.bf16.msra.mxu0 %v28960_v42  ;;  %v7635_v42 = vadd.f32 %v34176_v48, %v32987_v8 }
 0x858   :  { %26519 = vmatprep.subr.bf16.mxu0 %v29566_v0 }
 0x859   :  { %26742 = vmatpush3.bf16.msra.mxu1 %v28961_v14 }
 0x85a   :  { %26743 = vmatprep.subr.bf16.mxu1 %v29566_v0 }
 0x85b   :  { %26520 = vmatpush3.bf16.msra.mxu0 %v28962_v63  ;;  %v28984_v63 = vld [vmem:[%s37142_s10 + $0xa28] sm:$0xff]  }
 0x85c   :  { %26521 = vmatprep.subr.bf16.mxu0 %v29566_v0 }
 0x85d   :  { %26744 = vmatpush3.bf16.msra.mxu1 %v28963_v6 }
 0x85e   :  { %26745 = vmatprep.subr.bf16.mxu1 %v29566_v0 }
 0x85f   :  { %v34189_v10 = vpop.f32.mrb[44].mxu1  ;;  %26522 = vmatpush3.bf16.msra.mxu0 %v28964_v5  ;;  %v7712_v5 = vmax.f32 %v7635_v42, 0.0 }
 0x860   :  { %v26473_v19 = vpop.f32.mrb[45].mxu1  ;;  %26523 = vmatprep.subr.bf16.mxu0 %v29566_v0 }
 0x861   :  { %v12024_v36 = vpop.f32.mrb[46].mxu1  ;;  %26746 = vmatpush3.bf16.msra.mxu1 %v28965_v58  ;;  %v7592_v19 = vadd.f32 %v34176_v48, %v32864_v45  ;;  %v28988_v45 = vld [vmem:[%s37142_s10 + $0xa38] sm:$0xff]  }
 0x862   :  { %v26474_v7 = vpop.f32.mrb[47].mxu1  ;;  %26747 = vmatprep.subr.bf16.mxu1 %v29566_v0  ;;  %v13928_v36 = vsel %vm6954_vm2, %v33872_v35, 0.0  ;;  %v28989_v35 = vld [vmem:[%s37142_s10 + $0xd48] sm:$0xff]  }
 0x863   :  { %26524 = vmatpush3.bf16.msra.mxu0 %v28966_v50  ;;  %v28987_v7 = vld [vmem:[%s37142_s10 + $0xd40] sm:$0xff]  }
 0x864   :  { %26525 = vmatprep.subr.bf16.mxu0 %v29566_v0 }
 0x865   :  { %v11053_v30 = vpop.f32.mrb[24].mxu0  ;;  %26748 = vmatpush3.bf16.msra.mxu1 %v28967_v33 }
 0x866   :  { %v13922_v40 = vsel %vm6954_vm2, %v11053_v30, 0.0  ;;  %v26253_v53 = vpop.f32.mrb[25].mxu0  ;;  %26749 = vmatprep.subr.bf16.mxu1 %v29566_v0  ;;  %v22650_v30 = vpack.c.bf16 %v7712_v5, %v7712_v5  ;;  %v29006_v5 = vld [vmem:[%s37142_s10 + $0xb00] sm:$0xff]  }
 0x867   :  { %v13923_v21 = vadd.f32 %v13922_v40, %v34135_v18  ;;  %v11056_v29 = vpop.f32.mrb[26].mxu0  ;;  %26526 = vmatpush3.bf16.msra.mxu0 %v28968_v12  ;;  %v28979_v18 = vld [vmem:[%s37142_s10 + $0xce0] sm:$0xff]  }
 0x868   :  { %v26254_v54 = vpop.f32.mrb[27].mxu0  ;;  %26527 = vmatprep.subr.bf16.mxu0 %v29566_v0  ;;  %v28990_v40 = vld [vmem:[%s37142_s10 + $0xa80] sm:$0xff]   ;;  %v28992_v29 = vld [vmem:[%s37142_s10 + $0xa88] sm:$0xff]  }
 0x869   :  { %26750 = vmatpush3.bf16.msra.mxu1 %v28969_v25  ;;  %v13925_v47 = vadd.f32 %v13924_v37, %v13923_v21  ;;  %v28986_v37 = vld [vmem:[%s37142_s10 + $0xa30] sm:$0xff]   ;;  %v7701_v25 = vmax.f32 %v7592_v19, 0.0  ;;  %v28995_v54 = vld [vmem:[%s37142_s10 + $0xd60] sm:$0xff]  }
 0x86a   :  { %26775 = vmatprep.subr.bf16.mxu1 %v29566_v0  ;;  %v28991_v21 = vld [vmem:[%s37142_s10 + $0xd50] sm:$0xff]   ;;  %v29011_v19 = vld [vmem:[%s37142_s10 + $0xde0] sm:$0xff]  }
 0x86b   :  { %26528 = vmatpush3.bf16.msra.mxu0 %v28970_v31  ;;  %v22639_v53 = vpack.c.bf16 %v7701_v25, %v7701_v25  ;;  %v28993_v31 = vld [vmem:[%s37142_s10 + $0xd58] sm:$0xff]   ;;  %v29015_v25 = vld [vmem:[%s37142_s10 + $0xdf0] sm:$0xff]  }
 0x86c   :  { %26752 = vmatmul.mubr.bf16.vlgmr.msra.gmra.mrb[72].mxu1 %v22648_v41  ;;  %26529 = vmatprep.subr.bf16.mxu0 %v29566_v0  ;;  %v28998_v41 = vld [vmem:[%s37142_s10 + $0xaa0] sm:$0xff]  }
 0x86d   :  { %26776 = vmatpush3.bf16.msra.mxu1 %v28971_v17  ;;  %26791 = vmatprep.mubr.msk.bf16.mxu1 %vm29567_vm0, %v29566_v0  ;;  %v28996_v17 = vld [vmem:[%s37142_s10 + $0xa98] sm:$0xff]  }
 0x86e   :  { %26777 = vmatprep.subr.bf16.mxu1 %v29566_v0 }
 0x86f   :  { %26530 = vmatpush3.bf16.msra.mxu0 %v28972_v22  ;;  %v28997_v22 = vld [vmem:[%s37142_s10 + $0xd68] sm:$0xff]  }
 0x870   :  { %26555 = vmatprep.subr.bf16.mxu0 %v29566_v0 }
 0x871   :  { %26778 = vmatpush3.bf16.msra.mxu1 %v28973_v49 }
 0x872   :  { %26532 = vmatmul.mubr.bf16.vlgmr.msra.gmra.mrb[52].mxu0 %v22637_v23  ;;  %26779 = vmatprep.subr.bf16.mxu1 %v29566_v0  ;;  %v7643_v23 = vadd.f32 %v34176_v48, %v33007_v28 }
 0x873   :  { %26556 = vmatpush3.bf16.msra.mxu0 %v28974_v57  ;;  %26571 = vmatprep.mubr.msk.bf16.mxu0 %vm29567_vm0, %v29566_v0  ;;  %v28999_v57 = vld [vmem:[%s37142_s10 + $0xd70] sm:$0xff]  }
 0x874   :  { %26557 = vmatprep.subr.bf16.mxu0 %v29566_v0 }
 0x875   :  { %26780 = vmatpush3.bf16.msra.mxu1 %v28975_v38 }
 0x876   :  { %26781 = vmatprep.subr.bf16.mxu1 %v29566_v0 }
 0x877   :  { %26558 = vmatpush3.bf16.msra.mxu0 %v28976_v44  ;;  %v29000_v44 = vld [vmem:[%s37142_s10 + $0xaa8] sm:$0xff]  }
 0x878   :  { %26559 = vmatprep.subr.bf16.mxu0 %v29566_v0 }
 0x879   :  { %26782 = vmatpush3.bf16.msra.mxu1 %v28977_v16 }
 0x87a   :  { %26783 = vmatprep.subr.bf16.mxu1 %v29566_v0 }
 0x87b   :  { %26560 = vmatpush3.bf16.msra.mxu0 %v28978_v15  ;;  %v29001_v15 = vld [vmem:[%s37142_s10 + $0xd78] sm:$0xff]  }
 0x87c   :  { %26561 = vmatprep.subr.bf16.mxu0 %v29566_v0 }
 0x87d   :  { %26784 = vmatpush3.bf16.msra.mxu1 %v28979_v18  ;;  %v7714_v18 = vmax.f32 %v7643_v23, 0.0  ;;  %v29029_v23 = vld [vmem:[%s37145_s2] sm:$0xff]  }
 0x87e   :  { %26785 = vmatprep.subr.bf16.mxu1 %v29566_v0 }
 0x87f   :  { %v34265_v9 = vpop.f32.mrb[48].mxu1  ;;  %26562 = vmatpush3.bf16.msra.mxu0 %v28980_v11 }
 0x880   :  { %v26513_v62 = vpop.f32.mrb[49].mxu1  ;;  %26563 = vmatprep.subr.bf16.mxu0 %v29566_v0 }
 0x881   :  { %v12200_v60 = vpop.f32.mrb[50].mxu1  ;;  %26786 = vmatpush3.bf16.msra.mxu1 %v28981_v4  ;;  %v29002_v62 = vld [vmem:[%s37142_s10 + $0xab0] sm:$0xff]  }
 0x882   :  { %v26514_v14 = vpop.f32.mrb[51].mxu1  ;;  %26787 = vmatprep.subr.bf16.mxu1 %v29566_v0  ;;  %v7600_v60 = vadd.f32 %v34176_v48, %v32886_v1  ;;  %v29004_v1 = vld [vmem:[%s37142_s10 + $0xab8] sm:$0xff]  }
 0x883   :  { %26564 = vmatpush3.bf16.msra.mxu0 %v28982_v39  ;;  %v29003_v14 = vld [vmem:[%s37142_s10 + $0xdc0] sm:$0xff]  }
 0x884   :  { %26565 = vmatprep.subr.bf16.mxu0 %v29566_v0 }
 0x885   :  { %v11229_v6 = vpop.f32.mrb[28].mxu0  ;;  %26788 = vmatpush3.bf16.msra.mxu1 %v28983_v52  ;;  %v13932_v52 = vsel %vm6954_vm2, %v33949_v27, 0.0  ;;  %v29005_v27 = vld [vmem:[%s37142_s10 + $0xdc8] sm:$0xff]  }
 0x886   :  { %v13926_v58 = vsel %vm6954_vm2, %v11229_v6, 0.0  ;;  %v26293_v8 = vpop.f32.mrb[29].mxu0  ;;  %26789 = vmatprep.subr.bf16.mxu1 %v29566_v0  ;;  %v22652_v6 = vpack.c.bf16 %v7714_v18, %v7714_v18  ;;  %v29022_v18 = vld [vmem:[%s37142_s10 + $0xb80] sm:$0xff]  }
 0x887   :  { %v13927_v46 = vadd.f32 %v13926_v58, %v13925_v47  ;;  %v11232_v50 = vpop.f32.mrb[30].mxu0  ;;  %26566 = vmatpush3.bf16.msra.mxu0 %v28984_v63  ;;  %v29007_v8 = vld [vmem:[%s37142_s10 + $0xdd0] sm:$0xff]  }
 0x888   :  { %v26294_v33 = vpop.f32.mrb[31].mxu0  ;;  %26567 = vmatprep.subr.bf16.mxu0 %v29566_v0  ;;  %v29009_v50 = vld [vmem:[%s37142_s10 + $0xdd8] sm:$0xff]  }
 0x889   :  { %26790 = vmatpush3.bf16.msra.mxu1 %v28985_v51  ;;  %v13929_v12 = vadd.f32 %v13928_v36, %v13927_v46  ;;  %v7703_v51 = vmax.f32 %v7600_v60, 0.0  ;;  %v29008_v46 = vld [vmem:[%s37142_s10 + $0xb08] sm:$0xff]   ;;  %v29012_v36 = vld [vmem:[%s37142_s10 + $0xb18] sm:$0xff]  }
 0x88a   :  { %26815 = vmatprep.subr.bf16.mxu1 %v29566_v0  ;;  %v29013_v33 = vld [vmem:[%s37142_s10 + $0xde8] sm:$0xff]   ;;  %v29028_v60 = vld [vmem:[%s37142_s10 + $0xb98] sm:$0xff]  }
 0x88b   :  { %26568 = vmatpush3.bf16.msra.mxu0 %v28986_v37  ;;  %v22641_v58 = vpack.c.bf16 %v7703_v51, %v7703_v51  ;;  %v29010_v37 = vld [vmem:[%s37142_s10 + $0xb10] sm:$0xff]  }
 0x88c   :  { %26792 = vmatmul.mubr.bf16.vlgmr.msra.gmra.mrb[76].mxu1 %v22650_v30  ;;  %26569 = vmatprep.subr.bf16.mxu0 %v29566_v0 }
 0x88d   :  { %26816 = vmatpush3.bf16.msra.mxu1 %v28987_v7  ;;  %26831 = vmatprep.mubr.msk.bf16.mxu1 %vm29567_vm0, %v29566_v0 }
 0x88e   :  { %26817 = vmatprep.subr.bf16.mxu1 %v29566_v0 }
 0x88f   :  { %26570 = vmatpush3.bf16.msra.mxu0 %v28988_v45 }
 0x890   :  { %26595 = vmatprep.subr.bf16.mxu0 %v29566_v0 }
 0x891   :  { %26818 = vmatpush3.bf16.msra.mxu1 %v28989_v35  ;;  %v7651_v35 = vadd.f32 %v34176_v48, %v33031_v2 }
 0x892   :  { %26572 = vmatmul.mubr.bf16.vlgmr.msra.gmra.mrb[56].mxu0 %v22639_v53  ;;  %26819 = vmatprep.subr.bf16.mxu1 %v29566_v0  ;;  %v29016_v53 = vld [vmem:[%s37142_s10 + $0xb28] sm:$0xff]  }
 0x893   :  { %26596 = vmatpush3.bf16.msra.mxu0 %v28990_v40  ;;  %26611 = vmatprep.mubr.msk.bf16.mxu0 %vm29567_vm0, %v29566_v0 }
 0x894   :  { %26597 = vmatprep.subr.bf16.mxu0 %v29566_v0 }
 0x895   :  { %26820 = vmatpush3.bf16.msra.mxu1 %v28991_v21 }
 0x896   :  { %26821 = vmatprep.subr.bf16.mxu1 %v29566_v0 }
 0x897   :  { %26598 = vmatpush3.bf16.msra.mxu0 %v28992_v29  ;;  %v29017_v29 = vld [vmem:[%s37142_s10 + $0xdf8] sm:$0xff]  }
 0x898   :  { %26599 = vmatprep.subr.bf16.mxu0 %v29566_v0 }
 0x899   :  { %26822 = vmatpush3.bf16.msra.mxu1 %v28993_v31  ;;  %v7716_v31 = vmax.f32 %v7651_v35, 0.0 }
 0x89a   :  { %26823 = vmatprep.subr.bf16.mxu1 %v29566_v0 }
 0x89b   :  { %26600 = vmatpush3.bf16.msra.mxu0 %v28994_v20 }
 0x89c   :  { %26601 = vmatprep.subr.bf16.mxu0 %v29566_v0 }
 0x89d   :  { %26824 = vmatpush3.bf16.msra.mxu1 %v28995_v54  ;;  %v29019_v54 = vld [vmem:[%s37144_s7] sm:$0xff]  }
 0x89e   :  { %26825 = vmatprep.subr.bf16.mxu1 %v29566_v0 }
 0x89f   :  { %v34342_v47 = vpop.f32.mrb[52].mxu1  ;;  %26602 = vmatpush3.bf16.msra.mxu0 %v28996_v17 }
 0x8a0   :  { %v26553_v43 = vpop.f32.mrb[53].mxu1  ;;  %26603 = vmatprep.subr.bf16.mxu0 %v29566_v0 }
 0x8a1   :  { %v12376_v49 = vpop.f32.mrb[54].mxu1  ;;  %26826 = vmatpush3.bf16.msra.mxu1 %v28997_v22  ;;  %v7608_v43 = vadd.f32 %v34176_v48, %v32908_v56  ;;  %v29020_v56 = vld [vmem:[%s37142_s10 + $0xb38] sm:$0xff]  }
 0x8a2   :  { %v26554_v38 = vpop.f32.mrb[55].mxu1  ;;  %26827 = vmatprep.subr.bf16.mxu1 %v29566_v0  ;;  %v13936_v49 = vsel %vm6954_vm2, %v34026_v59, 0.0 }
 0x8a3   :  { %26604 = vmatpush3.bf16.msra.mxu0 %v28998_v41  ;;  %v29018_v41 = vld [vmem:[%s37142_s10 + $0xb30] sm:$0xff]   ;;  %v7705_v59 = vmax.f32 %v7608_v43, 0.0 }
 0x8a4   :  { %26605 = vmatprep.subr.bf16.mxu0 %v29566_v0 }
 0x8a5   :  { %v11405_v16 = vpop.f32.mrb[32].mxu0  ;;  %26828 = vmatpush3.bf16.msra.mxu1 %v28999_v57 }
 0x8a6   :  { %v13930_v11 = vsel %vm6954_vm2, %v11405_v16, 0.0  ;;  %v26333_v28 = vpop.f32.mrb[33].mxu0  ;;  %26829 = vmatprep.subr.bf16.mxu1 %v29566_v0  ;;  %v29021_v16 = vld [vmem:[%s37144_s7 + $0x8] sm:$0xff]  }
 0x8a7   :  { %v13931_v4 = vadd.f32 %v13930_v11, %v13929_v12  ;;  %v11408_v39 = vpop.f32.mrb[34].mxu0  ;;  %26606 = vmatpush3.bf16.msra.mxu0 %v29000_v44  ;;  %v29014_v12 = vld [vmem:[%s37142_s10 + $0xb20] sm:$0xff]   ;;  %v22654_v44 = vpack.c.bf16 %v7716_v31, %v7716_v31  ;;  %v22643_v11 = vpack.c.bf16 %v7705_v59, %v7705_v59  ;;  %v29025_v28 = vld [vmem:[%s37144_s7 + $0x18] sm:$0xff]  }
 0x8a8   :  { %v26334_v42 = vpop.f32.mrb[35].mxu0  ;;  %26607 = vmatprep.subr.bf16.mxu0 %v29566_v0  ;;  %v29027_v39 = vld [vmem:[%s37144_s7 + $0x20] sm:$0xff]  }
 0x8a9   :  { %26830 = vmatpush3.bf16.msra.mxu1 %v29001_v15  ;;  %v13933_v63 = vadd.f32 %v13932_v52, %v13931_v4  ;;  %v29023_v15 = vld [vmem:[%s37144_s7 + $0x10] sm:$0xff]   ;;  %v29024_v4 = vld [vmem:[%s37142_s10 + $0xb88] sm:$0xff]   ;;  %v29072_v31 = vld [vmem:[%s37145_s2 + $0x40] sm:$0xff]  }
 0x8aa   :  { %26855 = vmatprep.subr.bf16.mxu1 %v29566_v0  ;;  %v29030_v52 = vld [vmem:[%s37145_s2 + $0x8] sm:$0xff]   ;;  %v29038_v42 = vld [vmem:[%s37145_s2 + $0x10] sm:$0xff]  }
 0x8ab   :  { %26608 = vmatpush3.bf16.msra.mxu0 %v29002_v62  ;;  %v29026_v62 = vld [vmem:[%s37142_s10 + $0xb90] sm:$0xff]  }
 0x8ac   :  { %26832 = vmatmul.mubr.bf16.vlgmr.msra.gmra.mrb[80].mxu1 %v22652_v6  ;;  %26609 = vmatprep.subr.bf16.mxu0 %v29566_v0 }
 0x8ad   :  { %26856 = vmatpush3.bf16.msra.mxu1 %v29003_v14  ;;  %26871 = vmatprep.mubr.msk.bf16.mxu1 %vm29567_vm0, %v29566_v0 }
 0x8ae   :  { %26857 = vmatprep.subr.bf16.mxu1 %v29566_v0 }
 0x8af   :  { %26610 = vmatpush3.bf16.msra.mxu0 %v29004_v1 }
 0x8b0   :  { %26635 = vmatprep.subr.bf16.mxu0 %v29566_v0 }
 0x8b1   :  { %26858 = vmatpush3.bf16.msra.mxu1 %v29005_v27  ;;  %v29032_v27 = vld [vmem:[%s37142_s10 + $0xba8] sm:$0xff]  }
 0x8b2   :  { %26612 = vmatmul.mubr.bf16.vlgmr.msra.gmra.mrb[60].mxu0 %v22641_v58  ;;  %26859 = vmatprep.subr.bf16.mxu1 %v29566_v0 }
 0x8b3   :  { %26636 = vmatpush3.bf16.msra.mxu0 %v29006_v5  ;;  %26651 = vmatprep.mubr.msk.bf16.mxu0 %vm29567_vm0, %v29566_v0  ;;  %v29040_v5 = vld [vmem:[%s37145_s2 + $0x18] sm:$0xff]  }
 0x8b4   :  { %26637 = vmatprep.subr.bf16.mxu0 %v29566_v0 }
 0x8b5   :  { %26860 = vmatpush3.bf16.msra.mxu1 %v29007_v8  ;;  %v29056_v8 = vld [vmem:[%s37145_s2 + $0x20] sm:$0xff]  }
 0x8b6   :  { %26861 = vmatprep.subr.bf16.mxu1 %v29566_v0 }
 0x8b7   :  { %26638 = vmatpush3.bf16.msra.mxu0 %v29008_v46 }
 0x8b8   :  { %26639 = vmatprep.subr.bf16.mxu0 %v29566_v0 }
 0x8b9   :  { %26862 = vmatpush3.bf16.msra.mxu1 %v29009_v50 }
 0x8ba   :  { %26863 = vmatprep.subr.bf16.mxu1 %v29566_v0 }
 0x8bb   :  { %26640 = vmatpush3.bf16.msra.mxu0 %v29010_v37 }
 0x8bc   :  { %26641 = vmatprep.subr.bf16.mxu0 %v29566_v0 }
 0x8bd   :  { %26864 = vmatpush3.bf16.msra.mxu1 %v29011_v19 }
 0x8be   :  { %26865 = vmatprep.subr.bf16.mxu1 %v29566_v0 }
 0x8bf   :  { %v34419_v7 = vpop.f32.mrb[56].mxu1  ;;  %26642 = vmatpush3.bf16.msra.mxu0 %v29012_v36  ;;  %v29033_v36 = vld [vmem:[%s37142_s10 + $0xbb0] sm:$0xff]  }
 0x8c0   :  { %v26593_v30 = vpop.f32.mrb[57].mxu1  ;;  %26643 = vmatprep.subr.bf16.mxu0 %v29566_v0 }
 0x8c1   :  { %v12552_v45 = vpop.f32.mrb[58].mxu1  ;;  %26866 = vmatpush3.bf16.msra.mxu1 %v29013_v33  ;;  %v7616_v33 = vadd.f32 %v34176_v48, %v32930_v13  ;;  %v29058_v13 = vld [vmem:[%s37145_s2 + $0x28] sm:$0xff]  }
 0x8c2   :  { %v26594_v40 = vpop.f32.mrb[59].mxu1  ;;  %26867 = vmatprep.subr.bf16.mxu1 %v29566_v0 }
 0x8c3   :  { %26644 = vmatpush3.bf16.msra.mxu0 %v29014_v12  ;;  %v13940_v12 = vsel %vm6954_vm2, %v34103_v55, 0.0  ;;  %v7707_v35 = vmax.f32 %v7616_v33, 0.0  ;;  %v29068_v55 = vld [vmem:[%s37145_s2 + $0x30] sm:$0xff]   ;;  %v29035_v40 = vld [vmem:[%s37142_s10 + $0xc00] sm:$0xff]   ;;  %v29050_v33 = vld [vmem:[%s37142_s10 + $0xca8] sm:$0xff]  }
 0x8c4   :  { %26645 = vmatprep.subr.bf16.mxu0 %v29566_v0 }
 0x8c5   :  { %v11581_v21 = vpop.f32.mrb[36].mxu0  ;;  %26868 = vmatpush3.bf16.msra.mxu1 %v29015_v25  ;;  %v29034_v25 = vld [vmem:[%s37142_s10 + $0xbb8] sm:$0xff]  }
 0x8c6   :  { %v13934_v20 = vsel %vm6954_vm2, %v11581_v21, 0.0  ;;  %v26373_v2 = vpop.f32.mrb[37].mxu0  ;;  %26869 = vmatprep.subr.bf16.mxu1 %v29566_v0  ;;  %v29036_v21 = vld [vmem:[%s37142_s10 + $0xc08] sm:$0xff]  }
 0x8c7   :  { %v13935_v17 = vadd.f32 %v13934_v20, %v13933_v63  ;;  %v11584_v22 = vpop.f32.mrb[38].mxu0  ;;  %26646 = vmatpush3.bf16.msra.mxu0 %v29016_v53  ;;  %v29031_v63 = vld [vmem:[%s37142_s10 + $0xba0] sm:$0xff]   ;;  %v22645_v53 = vpack.c.bf16 %v7707_v35, %v7707_v35  ;;  %v29037_v20 = vld [vmem:[%s37142_s10 + $0xc10] sm:$0xff]   ;;  %v29039_v2 = vld [vmem:[%s37142_s10 + $0xc18] sm:$0xff]  }
 0x8c8   :  { %v26374_v57 = vpop.f32.mrb[39].mxu0  ;;  %26647 = vmatprep.subr.bf16.mxu0 %v29566_v0 }
 0x8c9   :  { %26870 = vmatpush3.bf16.msra.mxu1 %v29017_v29  ;;  %v13937_v38 = vadd.f32 %v13936_v49, %v13935_v17  ;;  %v29069_v29 = vld [vmem:[%s37145_s2 + $0x38] sm:$0xff]   ;;  %v29076_v17 = vld [vmem:[%s37145_s2 + $0x50] sm:$0xff]  }
 0x8ca   :  { %26895 = vmatprep.subr.bf16.mxu1 %v29019_v54 }
 0x8cb   :  { %26648 = vmatpush3.bf16.msra.mxu0 %v29018_v41  ;;  %v29041_v41 = vld [vmem:[%s37142_s10 + $0xc20] sm:$0xff]  }
 0x8cc   :  { %26872 = vmatmul.mubr.bf16.vlgmr.msra.gmra.mrb[84].mxu1 %v22654_v44  ;;  %26649 = vmatprep.subr.bf16.mxu0 %v29566_v0 }
 0x8cd   :  { %26896 = vmatpush3.bf16.msra.mxu1 %v29019_v54  ;;  %26905 = vmatprep.mubr.msk.bf16.mxu1 %vm14232_vm4, %v29029_v23  ;;  %v29073_v54 = vld [vmem:[%s37145_s2 + $0x48] sm:$0xff]  }
 0x8ce   :  { %26897 = vmatprep.subr.bf16.mxu1 %v29021_v16  ;;  %v29042_v23 = vld [vmem:[%s37142_s10 + $0xc28] sm:$0xff]  }
 0x8cf   :  { %26650 = vmatpush3.bf16.msra.mxu0 %v29020_v56 }
 0x8d0   :  { %26675 = vmatprep.subr.bf16.mxu0 %v29566_v0 }
 0x8d1   :  { %26898 = vmatpush3.bf16.msra.mxu1 %v29021_v16  ;;  %v29080_v16 = vld [vmem:[%s37145_s2 + $0x60] sm:$0xff]  }
 0x8d2   :  { %26652 = vmatmul.mubr.bf16.vlgmr.msra.gmra.mrb[64].mxu0 %v22643_v11  ;;  %26899 = vmatprep.subr.bf16.mxu1 %v29023_v15  ;;  %v29043_v11 = vld [vmem:[%s37142_s10 + $0xc30] sm:$0xff]  }
 0x8d3   :  { %26676 = vmatpush3.bf16.msra.mxu0 %v29022_v18  ;;  %26691 = vmatprep.mubr.msk.bf16.mxu0 %vm29567_vm0, %v29566_v0 }
 0x8d4   :  { %26677 = vmatprep.subr.bf16.mxu0 %v29566_v0 }
 0x8d5   :  { %26900 = vmatpush3.bf16.msra.mxu1 %v29023_v15 }
 0x8d6   :  { %26901 = vmatprep.subr.bf16.mxu1 %v29025_v28 }
 0x8d7   :  { %26678 = vmatpush3.bf16.msra.mxu0 %v29024_v4  ;;  %v13944_v4 = vsel %vm6954_vm2, %v34189_v10, 0.0  ;;  %v29090_v10 = vld [vmem:[%s37146_s11 + $0xc0] sm:$0xff]  }
 0x8d8   :  { %26679 = vmatprep.subr.bf16.mxu0 %v29566_v0 }
 0x8d9   :  { %26902 = vmatpush3.bf16.msra.mxu1 %v29025_v28  ;;  %v7624_v28 = vadd.f32 %v34176_v48, %v32957_v61  ;;  %v29081_v61 = vld [vmem:[%s37145_s2 + $0x68] sm:$0xff]  }
 0x8da   :  { %26903 = vmatprep.subr.bf16.mxu1 %v29027_v39 }
 0x8db   :  { %26680 = vmatpush3.bf16.msra.mxu0 %v29026_v62  ;;  %v7709_v48 = vmax.f32 %v7624_v28, 0.0  ;;  %v29107_v28 = vld [vmem:[%s37145_s2 + $0xc8] sm:$0xff]  }
 0x8dc   :  { %26681 = vmatprep.subr.bf16.mxu0 %v29566_v0 }
 0x8dd   :  { %26904 = vmatpush3.bf16.msra.mxu1 %v29027_v39 }
 0x8de   :  { %27021 = vmatprep.subr.bf16.mxu1 %v29566_v0 }
 0x8df   :  { %v34496_v14 = vpop.f32.mrb[60].mxu1  ;;  %26682 = vmatpush3.bf16.msra.mxu0 %v29028_v60  ;;  %v29044_v60 = vld [vmem:[%s37142_s10 + $0xc38] sm:$0xff]  }
 0x8e0   :  { %v26633_v6 = vpop.f32.mrb[61].mxu1  ;;  %26906 = vmatmul.mubr.msk.bf16.vlgmr.msra.gmra.mrb[88].mxu1 %vm14232_vm4, %v29030_v52  ;;  %26683 = vmatprep.subr.bf16.mxu0 %v29566_v0  ;;  %v29045_v52 = vld [vmem:[%s37142_s10 + $0xc80] sm:$0xff]  }
 0x8e1   :  { %v12728_v1 = vpop.f32.mrb[62].mxu1  ;;  %26909 = vmatprep.mubr.msk.bf16.mxu1 %vm14232_vm4, %v29038_v42  ;;  %v29084_v42 = vld [vmem:[%s37145_s2 + $0x70] sm:$0xff]   ;;  %27022 = vmatpush3.bf16.msra.mxu1 %v29090_v10  ;;  %v29046_v6 = vld [vmem:[%s37142_s10 + $0xc88] sm:$0xff]  }
 0x8e2   :  { %v26634_v51 = vpop.f32.mrb[63].mxu1  ;;  %27023 = vmatprep.subr.bf16.mxu1 %v29566_v0  ;;  %v29085_v1 = vld [vmem:[%s37145_s2 + $0x78] sm:$0xff]   ;;  %v29060_v10 = vld [vmem:[%s37142_s10 + $0xd28] sm:$0xff]  }
 0x8e3   :  { %26684 = vmatpush3.bf16.msra.mxu0 %v29031_v63  ;;  %v22647_v63 = vpack.c.bf16 %v7709_v48, %v7709_v48  ;;  %v29088_v51 = vld [vmem:[%s37145_s2 + $0x80] sm:$0xff]  }
 0x8e4   :  { %26685 = vmatprep.subr.bf16.mxu0 %v29566_v0 }
 0x8e5   :  { %v11757_v58 = vpop.f32.mrb[40].mxu0 }
 0x8e6   :  { %v13938_v46 = vsel %vm6954_vm2, %v11757_v58, 0.0  ;;  %v26413_v50 = vpop.f32.mrb[41].mxu0  ;;  %v29048_v58 = vld [vmem:[%s37142_s10 + $0xc98] sm:$0xff]  }
 0x8e7   :  { %v13939_v37 = vadd.f32 %v13938_v46, %v13937_v38  ;;  %v11760_v19 = vpop.f32.mrb[42].mxu0  ;;  %26686 = vmatpush3.bf16.msra.mxu0 %v29032_v27  ;;  %v29077_v38 = vld [vmem:[%s37145_s2 + $0x58] sm:$0xff]   ;;  %v29096_v27 = vld [vmem:[%s37146_s11 + $0xc8] sm:$0xff]   ;;  %v29092_v46 = vld [vmem:[%s37145_s2 + $0x90] sm:$0xff]  }
 0x8e8   :  { %v26414_v30 = vpop.f32.mrb[43].mxu0  ;;  %26687 = vmatprep.subr.bf16.mxu0 %v29566_v0  ;;  %26910 = vmatmul.mubr.msk.bf16.gmra.mrb[92].mxu1 %vm14232_vm4, %v29040_v5  ;;  %v29047_v5 = vld [vmem:[%s37142_s10 + $0xc90] sm:$0xff]  }
 0x8e9   :  { %v13941_v45 = vadd.f32 %v13940_v12, %v13939_v37  ;;  %26913 = vmatprep.mubr.msk.bf16.mxu1 %vm14232_vm4, %v29056_v8  ;;  %27024 = vmatpush3.bf16.msra.mxu1 %v29096_v27  ;;  %v29089_v8 = vld [vmem:[%s37145_s2 + $0x88] sm:$0xff]   ;;  %v29049_v37 = vld [vmem:[%s37142_s10 + $0xca0] sm:$0xff]   ;;  %v29093_v30 = vld [vmem:[%s37145_s2 + $0x98] sm:$0xff]  }
 0x8ea   :  { %27025 = vmatprep.subr.bf16.mxu1 %v29566_v0 }
 0x8eb   :  { %26688 = vmatpush3.bf16.msra.mxu0 %v29033_v36 }
 0x8ec   :  { %26689 = vmatprep.subr.bf16.mxu0 %v29566_v0 }
 0x8ef   :  { %26690 = vmatpush3.bf16.msra.mxu0 %v29034_v25  ;;  %v34671_v25 = vld [vmem:[%s37143_s6] ss:$0 sm:$0xff] }
 0x8f0   :  { %26715 = vmatprep.subr.bf16.mxu0 %v29566_v0  ;;  %26914 = vmatmul.mubr.msk.bf16.gmra.mrb[96].mxu1 %vm14232_vm4, %v29058_v13  ;;  %v7632_v35 = vadd.f32 %v34671_v25, %v32979_v3  ;;  %v29051_v3 = vld [vmem:[%s37142_s10 + $0xcb0] sm:$0xff]  }
 0x8f1   :  { %26917 = vmatprep.mubr.msk.bf16.mxu1 %vm14232_vm4, %v29068_v55  ;;  %v29094_v55 = vld [vmem:[%s37145_s2 + $0xa0] sm:$0xff]  }
 0x8f2   :  { %26692 = vmatmul.mubr.bf16.vlgmr.msra.gmra.mrb[68].mxu0 %v22645_v53 }
 0x8f3   :  { %26716 = vmatpush3.bf16.msra.mxu0 %v29035_v40  ;;  %26731 = vmatprep.mubr.msk.bf16.mxu0 %vm29567_vm0, %v29566_v0 }
 0x8f4   :  { %26717 = vmatprep.subr.bf16.mxu0 %v29566_v0 }
 0x8f7   :  { %26718 = vmatpush3.bf16.msra.mxu0 %v29036_v21  ;;  %v29104_v21 = vld [vmem:[%s37146_s11 + $0xd8] sm:$0xff]  }
 0x8f8   :  { %26719 = vmatprep.subr.bf16.mxu0 %v29566_v0  ;;  %26918 = vmatmul.mubr.msk.bf16.gmra.mrb[100].mxu1 %vm14232_vm4, %v29069_v29 }
 0x8f9   :  { %26921 = vmatprep.mubr.msk.bf16.mxu1 %vm14232_vm4, %v29072_v31 }
 0x8fb   :  { %26720 = vmatpush3.bf16.msra.mxu0 %v29037_v20  ;;  %v13948_v20 = vsel %vm6954_vm2, %v34265_v9, 0.0  ;;  %v29097_v9 = vld [vmem:[%s37145_s2 + $0xa8] sm:$0xff]  }
 0x8fc   :  { %26721 = vmatprep.subr.bf16.mxu0 %v29566_v0 }
 0x8ff   :  { %v34569_v22 = vpop.f32.mrb[64].mxu1  ;;  %26722 = vmatpush3.bf16.msra.mxu0 %v29039_v2 }
 0x900   :  { %v26673_v43 = vpop.f32.mrb[65].mxu1  ;;  %26723 = vmatprep.subr.bf16.mxu0 %v29566_v0  ;;  %26922 = vmatmul.mubr.msk.bf16.gmra.mrb[104].mxu1 %vm14232_vm4, %v29073_v54  ;;  %v7711_v54 = vmax.f32 %v7632_v35, 0.0 }
 0x901   :  { %v12904_v49 = vpop.f32.mrb[66].mxu1  ;;  %26925 = vmatprep.mubr.msk.bf16.mxu1 %vm14232_vm4, %v29076_v17  ;;  %v29052_v17 = vld [vmem:[%s37142_s10 + $0xcb8] sm:$0xff]   ;;  %v29108_v43 = vld [vmem:[%s37146_s11 + $0xe0] sm:$0xff]  }
 0x902   :  { %v26674_v57 = vpop.f32.mrb[67].mxu1  ;;  %v29099_v49 = vld [vmem:[%s37145_s2 + $0xb0] sm:$0xff]  }
 0x903   :  { %26724 = vmatpush3.bf16.msra.mxu0 %v29041_v41  ;;  %v29110_v57 = vld [vmem:[%s37146_s11 + $0xe8] sm:$0xff]  }
 0x904   :  { %26725 = vmatprep.subr.bf16.mxu0 %v29566_v0 }
 0x905   :  { %v11933_v44 = vpop.f32.mrb[44].mxu0 }
 0x906   :  { %v13942_v56 = vsel %vm6954_vm2, %v11933_v44, 0.0  ;;  %v26453_v59 = vpop.f32.mrb[45].mxu0  ;;  %v29054_v44 = vld [vmem:[%s37142_s10 + $0xd08] sm:$0xff]  }
 0x907   :  { %v13943_v15 = vadd.f32 %v13942_v56, %v13941_v45  ;;  %v11936_v18 = vpop.f32.mrb[46].mxu0  ;;  %26726 = vmatpush3.bf16.msra.mxu0 %v29042_v23  ;;  %v29102_v45 = vld [vmem:[%s37146_s11 + $0xd0] sm:$0xff]   ;;  %v29053_v23 = vld [vmem:[%s37142_s10 + $0xd00] sm:$0xff]   ;;  %v29101_v56 = vld [vmem:[%s37145_s2 + $0xb8] sm:$0xff]  }
 0x908   :  { %v26454_v39 = vpop.f32.mrb[47].mxu0  ;;  %26727 = vmatprep.subr.bf16.mxu0 %v29566_v0  ;;  %26926 = vmatmul.mubr.msk.bf16.gmra.mrb[108].mxu1 %vm14232_vm4, %v29077_v38  ;;  %v22649_v38 = vpack.c.bf16 %v7711_v54, %v7711_v54  ;;  %v29055_v59 = vld [vmem:[%s37142_s10 + $0xd10] sm:$0xff]   ;;  %v29116_v18 = vld [vmem:[%s37146_s11 + $0xf8] sm:$0xff]   ;;  %v13956_v54 = vsel %vm6954_vm2, %v34419_v7, 0.0  ;;  %v29078_v7 = vld [vmem:[%s37142_s10 + $0xe08] sm:$0xff]  }
 0x909   :  { %v13945_v62 = vadd.f32 %v13944_v4, %v13943_v15  ;;  %26929 = vmatprep.mubr.msk.bf16.mxu1 %vm14232_vm4, %v29080_v16  ;;  %27026 = vmatpush3.bf16.msra.mxu1 %v29102_v45  ;;  %v29114_v16 = vld [vmem:[%s37146_s11 + $0xf0] sm:$0xff]   ;;  %v29105_v15 = vld [vmem:[%s37145_s2 + $0xc0] sm:$0xff]  }
 0x90a   :  { %27027 = vmatprep.subr.bf16.mxu1 %v29566_v0  ;;  %v29111_v4 = vld [vmem:[%s37145_s2 + $0xd0] sm:$0xff]   ;;  %v29067_v45 = vld [vmem:[%s37142_s10 + $0xda0] sm:$0xff]  }
 0x90b   :  { %26728 = vmatpush3.bf16.msra.mxu0 %v29043_v11  ;;  %v29057_v11 = vld [vmem:[%s37142_s10 + $0xd18] sm:$0xff]  }
 0x90c   :  { %26729 = vmatprep.subr.bf16.mxu0 %v29566_v0 }
 0x90d   :  { %27028 = vmatpush3.bf16.msra.mxu1 %v29104_v21 }
 0x90e   :  { %27029 = vmatprep.subr.bf16.mxu1 %v29566_v0 }
 0x90f   :  { %26730 = vmatpush3.bf16.msra.mxu0 %v29044_v60 }
 0x910   :  { %26755 = vmatprep.subr.bf16.mxu0 %v29566_v0  ;;  %26930 = vmatmul.mubr.msk.bf16.gmra.mrb[112].mxu1 %vm14232_vm4, %v29081_v61 }
 0x911   :  { %26933 = vmatprep.mubr.msk.bf16.mxu1 %vm14232_vm4, %v29084_v42  ;;  %27030 = vmatpush3.bf16.msra.mxu1 %v29108_v43 }
 0x912   :  { %26732 = vmatmul.mubr.bf16.vlgmr.msra.gmra.mrb[72].mxu0 %v22647_v63  ;;  %27031 = vmatprep.subr.bf16.mxu1 %v29566_v0 }
 0x913   :  { %26756 = vmatpush3.bf16.msra.mxu0 %v29045_v52  ;;  %26771 = vmatprep.mubr.msk.bf16.mxu0 %vm29567_vm0, %v29566_v0  ;;  %v29113_v52 = vld [vmem:[%s37145_s2 + $0xd8] sm:$0xff]  }
 0x914   :  { %26757 = vmatprep.subr.bf16.mxu0 %v29566_v0 }
 0x915   :  { %27032 = vmatpush3.bf16.msra.mxu1 %v29110_v57  ;;  %v29079_v57 = vld [vmem:[%s37142_s10 + $0xe10] sm:$0xff]  }
 0x916   :  { %27033 = vmatprep.subr.bf16.mxu1 %v29566_v0 }
 0x917   :  { %26758 = vmatpush3.bf16.msra.mxu0 %v29046_v6 }
 0x918   :  { %26759 = vmatprep.subr.bf16.mxu0 %v29566_v0  ;;  %26934 = vmatmul.mubr.msk.bf16.gmra.mrb[116].mxu1 %vm14232_vm4, %v29085_v1  ;;  %v7640_v1 = vadd.f32 %v34671_v25, %v33001_v26 }
 0x919   :  { %26937 = vmatprep.mubr.msk.bf16.mxu1 %vm14232_vm4, %v29088_v51  ;;  %27034 = vmatpush3.bf16.msra.mxu1 %v29114_v16 }
 0x91a   :  { %27035 = vmatprep.subr.bf16.mxu1 %v29566_v0  ;;  %v7713_v26 = vmax.f32 %v7640_v1, 0.0  ;;  %v29103_v1 = vld [vmem:[%s37146_s11 + $0x18] sm:$0xff]  }
 0x91b   :  { %26760 = vmatpush3.bf16.msra.mxu0 %v29047_v5  ;;  %v29061_v5 = vld [vmem:[%s37142_s10 + $0xd30] sm:$0xff]  }
 0x91c   :  { %26761 = vmatprep.subr.bf16.mxu0 %v29566_v0 }
 0x91d   :  { %27036 = vmatpush3.bf16.msra.mxu1 %v29116_v18 }
 0x91e   :  { %27061 = vmatprep.subr.bf16.mxu1 %v29566_v0 }
 0x91f   :  { %v34650_v50 = vpop.f32.mrb[68].mxu1  ;;  %26762 = vmatpush3.bf16.msra.mxu0 %v29048_v58  ;;  %v13952_v58 = vsel %vm6954_vm2, %v34342_v47, 0.0  ;;  %v29063_v47 = vld [vmem:[%s37142_s10 + $0xd80] sm:$0xff]  }
 0x920   :  { %v26713_v19 = vpop.f32.mrb[69].mxu1  ;;  %26763 = vmatprep.subr.bf16.mxu0 %v29566_v0  ;;  %26938 = vmatmul.mubr.msk.bf16.gmra.mrb[120].mxu1 %vm14232_vm4, %v29089_v8 }
 0x921   :  { %v13080_v36 = vpop.f32.mrb[70].mxu1  ;;  %26941 = vmatprep.mubr.msk.bf16.mxu1 %vm14232_vm4, %v29092_v46  ;;  %v22651_v19 = vpack.c.bf16 %v7713_v26, %v7713_v26 }
 0x922   :  { %v26714_v12 = vpop.f32.mrb[71].mxu1  ;;  %v29064_v36 = vld [vmem:[%s37142_s10 + $0xd88] sm:$0xff]  }
 0x923   :  { %26764 = vmatpush3.bf16.msra.mxu0 %v29049_v37  ;;  %v29062_v37 = vld [vmem:[%s37142_s10 + $0xd38] sm:$0xff]  }
 0x924   :  { %26765 = vmatprep.subr.bf16.mxu0 %v29566_v0  ;;  %v29066_v12 = vld [vmem:[%s37142_s10 + $0xd98] sm:$0xff]  }
 0x925   :  { %v12109_v13 = vpop.f32.mrb[48].mxu0 }
 0x926   :  { %v13946_v40 = vsel %vm6954_vm2, %v12109_v13, 0.0  ;;  %v26493_v53 = vpop.f32.mrb[49].mxu0 }
 0x927   :  { %v13947_v29 = vadd.f32 %v13946_v40, %v13945_v62  ;;  %v12112_v31 = vpop.f32.mrb[50].mxu0  ;;  %26766 = vmatpush3.bf16.msra.mxu0 %v29050_v33  ;;  %v29059_v62 = vld [vmem:[%s37142_s10 + $0xd20] sm:$0xff]   ;;  %v29065_v33 = vld [vmem:[%s37142_s10 + $0xd90] sm:$0xff]   ;;  %v29070_v40 = vld [vmem:[%s37142_s10 + $0xda8] sm:$0xff]  }
 0x928   :  { %v26494_v2 = vpop.f32.mrb[51].mxu0  ;;  %26767 = vmatprep.subr.bf16.mxu0 %v29566_v0  ;;  %26942 = vmatmul.mubr.msk.bf16.gmra.mrb[124].mxu1 %vm14232_vm4, %v29093_v30  ;;  %v7648_v31 = vadd.f32 %v34671_v25, %v33023_v34  ;;  %v29074_v34 = vld [vmem:[%s37142_s10 + $0xdb8] sm:$0xff]  }
 0x929   :  { %v13949_v41 = vadd.f32 %v13948_v20, %v13947_v29  ;;  %26945 = vmatprep.mubr.msk.bf16.mxu1 %vm14232_vm4, %v29094_v55  ;;  %v29071_v2 = vld [vmem:[%s37142_s10 + $0xdb0] sm:$0xff]  }
 0x92a   :  { %v7715_v43 = vmax.f32 %v7648_v31, 0.0 }
 0x92b   :  { %26768 = vmatpush3.bf16.msra.mxu0 %v29051_v3 }
 0x92c   :  { %26769 = vmatprep.subr.bf16.mxu0 %v29566_v0 }
 0x92f   :  { %26770 = vmatpush3.bf16.msra.mxu0 %v29052_v17 }
 0x930   :  { %26795 = vmatprep.subr.bf16.mxu0 %v29566_v0  ;;  %26946 = vmatmul.mubr.msk.bf16.gmra.mrb[128].mxu1 %vm14232_vm4, %v29097_v9  ;;  %v29075_v9 = vld [vmem:[%s37142_s10 + $0xe00] sm:$0xff]  }
 0x931   :  { %26949 = vmatprep.mubr.msk.bf16.mxu1 %vm14232_vm4, %v29099_v49  ;;  %v22653_v49 = vpack.c.bf16 %v7715_v43, %v7715_v43 }
 0x932   :  { %26772 = vmatmul.mubr.bf16.vlgmr.msra.gmra.mrb[76].mxu0 %v22649_v38 }
 0x933   :  { %26796 = vmatpush3.bf16.msra.mxu0 %v29053_v23  ;;  %26811 = vmatprep.mubr.msk.bf16.mxu0 %vm29567_vm0, %v29566_v0  ;;  %v29082_v23 = vld [vmem:[%s37142_s10 + $0xe18] sm:$0xff]  }
 0x934   :  { %26797 = vmatprep.subr.bf16.mxu0 %v29566_v0 }
 0x937   :  { %26798 = vmatpush3.bf16.msra.mxu0 %v29054_v44  ;;  %v29083_v44 = vld [vmem:[%s37142_s10 + $0xe20] sm:$0xff]  }
 0x938   :  { %26799 = vmatprep.subr.bf16.mxu0 %v29566_v0  ;;  %26950 = vmatmul.mubr.msk.bf16.gmra.mrb[132].mxu1 %vm14232_vm4, %v29101_v56 }
 0x939   :  { %26953 = vmatprep.mubr.msk.bf16.mxu1 %vm14232_vm4, %v29105_v15  ;;  %v29086_v15 = vld [vmem:[%s37142_s10 + $0xe28] sm:$0xff]  }
 0x93b   :  { %26800 = vmatpush3.bf16.msra.mxu0 %v29055_v59 }
 0x93c   :  { %26801 = vmatprep.subr.bf16.mxu0 %v29566_v0 }
 0x93f   :  { %v34752_v39 = vpop.f32.mrb[72].mxu1  ;;  %26802 = vmatpush3.bf16.msra.mxu0 %v29057_v11 }
 0x940   :  { %v26753_v60 = vpop.f32.mrb[73].mxu1  ;;  %26803 = vmatprep.subr.bf16.mxu0 %v29566_v0  ;;  %26954 = vmatmul.mubr.msk.bf16.gmra.mrb[136].mxu1 %vm14232_vm4, %v29107_v28 }
 0x941   :  { %v13256_v61 = vpop.f32.mrb[74].mxu1  ;;  %26957 = vmatprep.mubr.msk.bf16.mxu1 %vm14232_vm4, %v29111_v4  ;;  %v7656_v4 = vadd.f32 %v34671_v25, %v33047_v24  ;;  %v29091_v24 = vld [vmem:[%s37142_s10 + $0xe38] sm:$0xff]   ;;  %v29095_v25 = vld [vmem:[%s37146_s11] sm:$0xff]  }
 0x942   :  { %v26754_v48 = vpop.f32.mrb[75].mxu1  ;;  %v29087_v61 = vld [vmem:[%s37142_s10 + $0xe30] sm:$0xff]  }
 0x943   :  { %26804 = vmatpush3.bf16.msra.mxu0 %v29059_v62  ;;  %v13960_v48 = vsel %vm6954_vm2, %v34496_v14, 0.0  ;;  %v29098_v14 = vld [vmem:[%s37146_s11 + $0x8] sm:$0xff]  }
 0x944   :  { %26805 = vmatprep.subr.bf16.mxu0 %v29566_v0 }
 0x945   :  { %v12285_v42 = vpop.f32.mrb[52].mxu0 }
 0x946   :  { %v13950_v63 = vsel %vm6954_vm2, %v12285_v42, 0.0  ;;  %v26533_v6 = vpop.f32.mrb[53].mxu0  ;;  %v7717_v42 = vmax.f32 %v7656_v4, 0.0 }
 0x947   :  { %v13951_v51 = vadd.f32 %v13950_v63, %v13949_v41  ;;  %v12288_v27 = vpop.f32.mrb[54].mxu0  ;;  %26806 = vmatpush3.bf16.msra.mxu0 %v29060_v10  ;;  %v29100_v6 = vld [vmem:[%s37146_s11 + $0x10] sm:$0xff]  }
 0x948   :  { %v26534_v8 = vpop.f32.mrb[55].mxu0  ;;  %26807 = vmatprep.subr.bf16.mxu0 %v29566_v0  ;;  %26958 = vmatmul.mubr.msk.bf16.gmra.mrb[140].mxu1 %vm14232_vm4, %v29113_v52  ;;  %v22655_v63 = vpack.c.bf16 %v7717_v42, %v7717_v42  ;;  %v29106_v27 = vld [vmem:[%s37146_s11 + $0x20] sm:$0xff]  }
 0x949   :  { %v13953_v46 = vadd.f32 %v13952_v58, %v13951_v51  ;;  %27037 = vmatprep.mubr.msk.bf16.mxu1 %vm29567_vm0, %v29566_v0  ;;  %v29126_v42 = vld [vmem:[%s37146_s11 + $0x160] sm:$0xff]  }
 0x94b   :  { %26808 = vmatpush3.bf16.msra.mxu0 %v29061_v5 }
 0x94c   :  { %26809 = vmatprep.subr.bf16.mxu0 %v29566_v0 }
 0x94f   :  { %26810 = vmatpush3.bf16.msra.mxu0 %v29062_v37 }
 0x950   :  { %26835 = vmatprep.subr.bf16.mxu0 %v29566_v0 }
 0x952   :  { %26812 = vmatmul.mubr.bf16.vlgmr.msra.gmra.mrb[80].mxu0 %v22651_v19 }
 0x953   :  { %26836 = vmatpush3.bf16.msra.mxu0 %v29063_v47  ;;  %26851 = vmatprep.mubr.msk.bf16.mxu0 %vm29567_vm0, %v29566_v0 }
 0x954   :  { %26837 = vmatprep.subr.bf16.mxu0 %v29566_v0 }
 0x957   :  { %26838 = vmatpush3.bf16.msra.mxu0 %v29064_v36 }
 0x958   :  { %26839 = vmatprep.subr.bf16.mxu0 %v29566_v0 }
 0x95b   :  { %26840 = vmatpush3.bf16.msra.mxu0 %v29065_v33  ;;  %v29112_v33 = vld [vmem:[%s37146_s11 + $0x30] sm:$0xff]  }
 0x95c   :  { %26841 = vmatprep.subr.bf16.mxu0 %v29566_v0 }
 0x95f   :  { %v34801_v30 = vpop.f32.mrb[76].mxu1  ;;  %26842 = vmatpush3.bf16.msra.mxu0 %v29066_v12  ;;  %v13964_v12 = vsel %vm6954_vm2, %v34569_v22, 0.0 }
 0x960   :  { %v26793_v35 = vpop.f32.mrb[77].mxu1  ;;  %26843 = vmatprep.subr.bf16.mxu0 %v29566_v0 }
 0x961   :  { %v13432_v13 = vpop.f32.mrb[78].mxu1 }
 0x962   :  { %v26794_v55 = vpop.f32.mrb[79].mxu1  ;;  %v29115_v13 = vld [vmem:[%s37146_s11 + $0x38] sm:$0xff]  }
 0x963   :  { %26844 = vmatpush3.bf16.msra.mxu0 %v29067_v45  ;;  %v34908_v55 = vld [vmem:[%s37147_s8] ss:$0 sm:$0xff] }
 0x964   :  { %26845 = vmatprep.subr.bf16.mxu0 %v29566_v0 }
 0x965   :  { %v12461_v53 = vpop.f32.mrb[56].mxu0 }
 0x966   :  { %v13954_v21 = vsel %vm6954_vm2, %v12461_v53, 0.0  ;;  %v26573_v29 = vpop.f32.mrb[57].mxu0 }
 0x967   :  { %v13955_v3 = vadd.f32 %v13954_v21, %v13953_v46  ;;  %v12464_v20 = vpop.f32.mrb[58].mxu0  ;;  %26846 = vmatpush3.bf16.msra.mxu0 %v29070_v40  ;;  %v29109_v46 = vld [vmem:[%s37146_s11 + $0x28] sm:$0xff]  }
 0x968   :  { %v26574_v17 = vpop.f32.mrb[59].mxu0  ;;  %26847 = vmatprep.subr.bf16.mxu0 %v29566_v0 }
 0x969   :  { %v13957_v41 = vadd.f32 %v13956_v54, %v13955_v3  ;;  %v29118_v17 = vld [vmem:[%s37146_s11 + $0x140] sm:$0xff]  }
 0x96b   :  { %26848 = vmatpush3.bf16.msra.mxu0 %v29071_v2  ;;  %v29117_v2 = vld [vmem:[%s37146_s11 + $0x40] sm:$0xff]  }
 0x96c   :  { %26849 = vmatprep.subr.bf16.mxu0 %v29566_v0 }
 0x96f   :  { %26850 = vmatpush3.bf16.msra.mxu0 %v29074_v34  ;;  %v29119_v34 = vld [vmem:[%s37146_s11 + $0x48] sm:$0xff]  }
 0x970   :  { %26875 = vmatprep.subr.bf16.mxu0 %v29566_v0 }
 0x972   :  { %26852 = vmatmul.mubr.bf16.vlgmr.msra.gmra.mrb[84].mxu0 %v22653_v49  ;;  %v29120_v49 = vld [vmem:[%s37146_s11 + $0x148] sm:$0xff]  }
 0x973   :  { %26876 = vmatpush3.bf16.msra.mxu0 %v29075_v9  ;;  %26891 = vmatprep.mubr.msk.bf16.mxu0 %vm29567_vm0, %v29566_v0 }
 0x974   :  { %26877 = vmatprep.subr.bf16.mxu0 %v29566_v0 }
 0x977   :  { %26878 = vmatpush3.bf16.msra.mxu0 %v29078_v7 }
 0x978   :  { %26879 = vmatprep.subr.bf16.mxu0 %v29566_v0 }
 0x97b   :  { %26880 = vmatpush3.bf16.msra.mxu0 %v29079_v57 }
 0x97c   :  { %26881 = vmatprep.subr.bf16.mxu0 %v29566_v0 }
 0x97f   :  { %v34842_v38 = vpop.f32.mrb[80].mxu1  ;;  %26882 = vmatpush3.bf16.msra.mxu0 %v29082_v23  ;;  %v29121_v23 = vld [vmem:[%s37146_s11 + $0x50] sm:$0xff]  }
 0x980   :  { %v26833_v16 = vpop.f32.mrb[81].mxu1  ;;  %26883 = vmatprep.subr.bf16.mxu0 %v29566_v0 }
 0x981   :  { %v13608_v56 = vpop.f32.mrb[82].mxu1  ;;  %v29123_v16 = vld [vmem:[%s37146_s11 + $0x58] sm:$0xff]  }
 0x982   :  { %v26834_v59 = vpop.f32.mrb[83].mxu1 }
 0x983   :  { %26884 = vmatpush3.bf16.msra.mxu0 %v29083_v44  ;;  %v29122_v44 = vld [vmem:[%s37146_s11 + $0x150] sm:$0xff]   ;;  %v29124_v59 = vld [vmem:[%s37146_s11 + $0x158] sm:$0xff]  }
 0x984   :  { %26885 = vmatprep.subr.bf16.mxu0 %v29566_v0 }
 0x985   :  { %v12637_v18 = vpop.f32.mrb[60].mxu0 }
 0x986   :  { %v13958_v11 = vsel %vm6954_vm2, %v12637_v18, 0.0  ;;  %v26613_v28 = vpop.f32.mrb[61].mxu0 }
 0x987   :  { %v13959_v62 = vadd.f32 %v13958_v11, %v13957_v41  ;;  %v12640_v60 = vpop.f32.mrb[62].mxu0  ;;  %26886 = vmatpush3.bf16.msra.mxu0 %v29086_v15 }
 0x988   :  { %v26614_v10 = vpop.f32.mrb[63].mxu0  ;;  %26887 = vmatprep.subr.bf16.mxu0 %v29566_v0  ;;  %v13968_v60 = vsel %vm6954_vm2, %v34650_v50, 0.0  ;;  %v29127_v50 = vld [vmem:[%s37146_s11 + $0x68] sm:$0xff]  }
 0x989   :  { %v13961_v52 = vadd.f32 %v13960_v48, %v13959_v62 }
 0x98b   :  { %26888 = vmatpush3.bf16.msra.mxu0 %v29087_v61 }
 0x98c   :  { %26889 = vmatprep.subr.bf16.mxu0 %v29566_v0 }
 0x98f   :  { %26890 = vmatpush3.bf16.msra.mxu0 %v29091_v24 }
 0x990   :  { %26961 = vmatprep.subr.bf16.mxu0 %v29566_v0 }
 0x992   :  { %26892 = vmatmul.mubr.bf16.vlgmr.msra.gmra.mrb[88].mxu0 %v22655_v63  ;;  %v29129_v63 = vld [vmem:[%s37146_s11 + $0x70] sm:$0xff]  }
 0x993   :  { %26962 = vmatpush3.bf16.msra.mxu0 %v29095_v25  ;;  %26977 = vmatprep.mubr.msk.bf16.mxu0 %vm29567_vm0, %v29566_v0  ;;  %v29128_v25 = vld [vmem:[%s37146_s11 + $0x168] sm:$0xff]  }
 0x994   :  { %26963 = vmatprep.subr.bf16.mxu0 %v29566_v0 }
 0x997   :  { %26964 = vmatpush3.bf16.msra.mxu0 %v29098_v14 }
 0x998   :  { %26965 = vmatprep.subr.bf16.mxu0 %v29566_v0 }
 0x99b   :  { %26966 = vmatpush3.bf16.msra.mxu0 %v29100_v6 }
 0x99c   :  { %26967 = vmatprep.subr.bf16.mxu0 %v29566_v0 }
 0x99f   :  { %v34883_v51 = vpop.f32.mrb[84].mxu1  ;;  %26968 = vmatpush3.bf16.msra.mxu0 %v29103_v1  ;;  %v29130_v1 = vld [vmem:[%s37146_s11 + $0x170] sm:$0xff]  }
 0x9a0   :  { %v26873_v5 = vpop.f32.mrb[85].mxu1  ;;  %26969 = vmatprep.subr.bf16.mxu0 %v29566_v0 }
 0x9a1   :  { %v13784_v58 = vpop.f32.mrb[86].mxu1 }
 0x9a2   :  { %v26874_v8 = vpop.f32.mrb[87].mxu1  ;;  %v29131_v58 = vld [vmem:[%s37146_s11 + $0x78] sm:$0xff]  }
 0x9a3   :  { %26970 = vmatpush3.bf16.msra.mxu0 %v29106_v27 }
 0x9a4   :  { %26971 = vmatprep.subr.bf16.mxu0 %v29566_v0 }
 0x9a5   :  { %v12813_v26 = vpop.f32.mrb[64].mxu0 }
 0x9a6   :  { %v13962_v37 = vsel %vm6954_vm2, %v12813_v26, 0.0  ;;  %v26653_v47 = vpop.f32.mrb[65].mxu0 }
 0x9a7   :  { %v13963_v19 = vadd.f32 %v13962_v37, %v13961_v52  ;;  %v12816_v36 = vpop.f32.mrb[66].mxu0  ;;  %26972 = vmatpush3.bf16.msra.mxu0 %v29109_v46  ;;  %v29125_v52 = vld [vmem:[%s37146_s11 + $0x60] sm:$0xff]   ;;  %v29132_v37 = vld [vmem:[%s37146_s11 + $0x178] sm:$0xff]  }
 0x9a8   :  { %v26654_v45 = vpop.f32.mrb[67].mxu0  ;;  %26973 = vmatprep.subr.bf16.mxu0 %v29566_v0 }
 0x9a9   :  { %v13965_v35 = vadd.f32 %v13964_v12, %v13963_v19  ;;  %v29133_v19 = vld [vmem:[%s37146_s11 + $0x80] sm:$0xff]   ;;  %v29135_v45 = vld [vmem:[%s37146_s11 + $0x88] sm:$0xff]  }
 0x9ab   :  { %26974 = vmatpush3.bf16.msra.mxu0 %v29112_v33  ;;  %v29134_v33 = vld [vmem:[%s37146_s11 + $0x1c0] sm:$0xff]  }
 0x9ac   :  { %26975 = vmatprep.subr.bf16.mxu0 %v29566_v0 }
 0x9af   :  { %26976 = vmatpush3.bf16.msra.mxu0 %v29115_v13  ;;  %v29137_v13 = vld [vmem:[%s37146_s11 + $0x90] sm:$0xff]  }
 0x9b0   :  { %26981 = vmatprep.subr.bf16.mxu0 %v29566_v0 }
 0x9b3   :  { %v34910_v22 = vpop.f32.mrb[88].mxu1 }
 0x9b4   :  { %v14351_v40 = vpop.f32.mrb[89].mxu1 }
 0x9b5   :  { %v14352_v53 = vadd.f32 %v34908_v55, %v14351_v40  ;;  %v26908_v21 = vpop.f32.mrb[90].mxu1  ;;  %v29138_v40 = vld [vmem:[%s37146_s11 + $0x1d0] sm:$0xff]  }
 0x9b6   :  { %v14363_v29 = vadd.f32 %v26908_v21, %v34908_v55  ;;  %v14354_v31 = vpop.f32.mrb[91].mxu1 }
 0x9b7   :  { %v14574_v3 = vmax.f32 %v14352_v53, 0.0  ;;  %v14355_v6 = vadd.f32 %v34908_v55, %v14354_v31  ;;  %v29139_v53 = vld [vmem:[%s37146_s11 + $0x98] sm:$0xff]   ;;  %v13972_v31 = vsel %vm6954_vm2, %v34752_v39, 0.0  ;;  %v29142_v39 = vld [vmem:[%s37146_s11 + $0x1e0] sm:$0xff]  }
 0x9b8   :  { %v14577_v20 = vmax.f32 %v14363_v29, 0.0  ;;  %v29140_v29 = vld [vmem:[%s37146_s11 + $0x1d8] sm:$0xff]  }
 0x9b9   :  { %v22656_v54 = vpack.c.bf16 %v14574_v3, %v14574_v3  ;;  %v14575_v26 = vmax.f32 %v14355_v6, 0.0  ;;  %v29148_v6 = vld [vmem:[%s37146_s11 + $0x1f8] sm:$0xff]  }
 0x9ba   :  { %v22659_v41 = vpack.c.bf16 %v14577_v20, %v14577_v20 }
 0x9bb   :  { %26978 = vmatmul.mubr.bf16.vlgmr.msra.gmra.mrb[92].mxu0 %v22656_v54  ;;  %v34920_v43 = vpop.f32.mrb[92].mxu1  ;;  %v22657_v12 = vpack.c.bf16 %v14575_v26, %v14575_v26 }
 0x9bc   :  { %26982 = vmatpush3.bf16.msra.mxu0 %v29117_v2  ;;  %27038 = vmatmul.mubr.bf16.vlgmr.msra.gmra.mrb[144].mxu1 %v22659_v41  ;;  %v34925_v9 = vpop.f32.mrb[93].mxu1 }
 0x9bd   :  { %27062 = vmatpush3.bf16.msra.mxu1 %v29118_v17  ;;  %26983 = vmatprep.subr.bf16.mxu0 %v29566_v0  ;;  %v34931_v7 = vpop.f32.mrb[94].mxu1  ;;  %v29141_v17 = vld [vmem:[%s37146_s11 + $0xa0] sm:$0xff]  }
 0x9be   :  { %27063 = vmatprep.subr.bf16.mxu1 %v29566_v0  ;;  %v14370_v57 = vpop.f32.mrb[95].mxu1  ;;  %26997 = vmatprep.mubr.msk.bf16.mxu0 %vm29567_vm0, %v29566_v0 }
 0x9bf   :  { %27077 = vmatprep.mubr.msk.bf16.mxu1 %vm29567_vm0, %v29566_v0  ;;  %v14371_v14 = vadd.f32 %v34908_v55, %v14370_v57 }
 0x9c0   :  { %26984 = vmatpush3.bf16.msra.mxu0 %v29119_v34 }
 0x9c1   :  { %27064 = vmatpush3.bf16.msra.mxu1 %v29120_v49  ;;  %26985 = vmatprep.subr.bf16.mxu0 %v29566_v0  ;;  %v14579_v8 = vmax.f32 %v14371_v14, 0.0 }
 0x9c2   :  { %27065 = vmatprep.subr.bf16.mxu1 %v29566_v0 }
 0x9c3   :  { %v34949_v56 = vpop.f32.mrb[96].mxu1  ;;  %v22661_v36 = vpack.c.bf16 %v14579_v8, %v14579_v8 }
 0x9c4   :  { %26986 = vmatpush3.bf16.msra.mxu0 %v29121_v23  ;;  %v34954_v15 = vpop.f32.mrb[97].mxu1 }
 0x9c5   :  { %27066 = vmatpush3.bf16.msra.mxu1 %v29122_v44  ;;  %v12989_v18 = vpop.f32.mrb[68].mxu0  ;;  %26987 = vmatprep.subr.bf16.mxu0 %v29566_v0  ;;  %v34957_v11 = vpop.f32.mrb[98].mxu1 }
 0x9c6   :  { %v13966_v28 = vsel %vm6954_vm2, %v12989_v18, 0.0  ;;  %v26693_v4 = vpop.f32.mrb[69].mxu0  ;;  %27067 = vmatprep.subr.bf16.mxu1 %v29566_v0  ;;  %v34961_v62 = vpop.f32.mrb[99].mxu1  ;;  %v29144_v18 = vld [vmem:[%s37146_s11 + $0x1e8] sm:$0xff]  }
 0x9c7   :  { %v13967_v61 = vadd.f32 %v13966_v28, %v13965_v35  ;;  %v12992_v48 = vpop.f32.mrb[70].mxu0  ;;  %v29136_v35 = vld [vmem:[%s37146_s11 + $0x1c8] sm:$0xff]  }
 0x9c8   :  { %26988 = vmatpush3.bf16.msra.mxu0 %v29123_v16  ;;  %v26694_v10 = vpop.f32.mrb[71].mxu0  ;;  %v29143_v16 = vld [vmem:[%s37146_s11 + $0xa8] sm:$0xff]   ;;  %v29145_v48 = vld [vmem:[%s37146_s11 + $0xb0] sm:$0xff]  }
 0x9c9   :  { %27068 = vmatpush3.bf16.msra.mxu1 %v29124_v59  ;;  %26989 = vmatprep.subr.bf16.mxu0 %v29566_v0  ;;  %v13969_v24 = vadd.f32 %v13968_v60, %v13967_v61  ;;  %v14379_v61 = vadd.f32 %v34931_v7, %v34908_v55 }
 0x9ca   :  { %27069 = vmatprep.subr.bf16.mxu1 %v29566_v0 }
 0x9cb   :  { %v34990_v27 = vpop.f32.mrb[100].mxu1 }
 0x9cc   :  { %26990 = vmatpush3.bf16.msra.mxu0 %v29125_v52  ;;  %v34993_v5 = vpop.f32.mrb[101].mxu1  ;;  %v14360_v52 = vadd.f32 %v34910_v22, %v34908_v55  ;;  %v14581_v22 = vmax.f32 %v14379_v61, 0.0 }
 0x9cd   :  { %27070 = vmatpush3.bf16.msra.mxu1 %v29126_v42  ;;  %26991 = vmatprep.subr.bf16.mxu0 %v29566_v0  ;;  %v34998_v46 = vpop.f32.mrb[102].mxu1  ;;  %v29146_v42 = vld [vmem:[%s37146_s11 + $0x1f0] sm:$0xff]  }
 0x9ce   :  { %27071 = vmatprep.subr.bf16.mxu1 %v29566_v0  ;;  %v35004_v47 = vpop.f32.mrb[103].mxu1  ;;  %v14576_v14 = vmax.f32 %v14360_v52, 0.0  ;;  %v22663_v26 = vpack.c.bf16 %v14581_v22, %v14581_v22  ;;  %v13976_v52 = vsel %vm6954_vm2, %v34801_v30, 0.0 }
 0x9d0   :  { %26992 = vmatpush3.bf16.msra.mxu0 %v29127_v50  ;;  %v29147_v50 = vld [vmem:[%s37146_s11 + $0xb8] sm:$0xff]  }
 0x9d1   :  { %27072 = vmatpush3.bf16.msra.mxu1 %v29128_v25  ;;  %26993 = vmatprep.subr.bf16.mxu0 %v29566_v0 }
 0x9d2   :  { %27073 = vmatprep.subr.bf16.mxu1 %v29566_v0 }
 0x9d3   :  { %v35049_v34 = vpop.f32.mrb[104].mxu1 }
 0x9d4   :  { %26994 = vmatpush3.bf16.msra.mxu0 %v29129_v63  ;;  %v35057_v57 = vpop.f32.mrb[105].mxu1 }
 0x9d5   :  { %27074 = vmatpush3.bf16.msra.mxu1 %v29130_v1  ;;  %26995 = vmatprep.subr.bf16.mxu0 %v29566_v0  ;;  %v35060_v23 = vpop.f32.mrb[106].mxu1 }
 0x9d6   :  { %27075 = vmatprep.subr.bf16.mxu1 %v29566_v0  ;;  %v35062_v44 = vpop.f32.mrb[107].mxu1 }
 0x9d8   :  { %26996 = vmatpush3.bf16.msra.mxu0 %v29131_v58 }
 0x9d9   :  { %27076 = vmatpush3.bf16.msra.mxu1 %v29132_v37  ;;  %27001 = vmatprep.subr.bf16.mxu0 %v29566_v0  ;;  %v29149_v37 = vld [vmem:[%s37146_s11 + $0x100] sm:$0xff]  }
 0x9da   :  { %27101 = vmatprep.subr.bf16.mxu1 %v29566_v0 }
 0x9db   :  { %26998 = vmatmul.mubr.bf16.vlgmr.msra.gmra.mrb[96].mxu0 %v22657_v12  ;;  %v35067_v59 = vpop.f32.mrb[108].mxu1 }
 0x9dc   :  { %27002 = vmatpush3.bf16.msra.mxu0 %v29133_v19  ;;  %27078 = vmatmul.mubr.bf16.vlgmr.msra.gmra.mrb[148].mxu1 %v22661_v36  ;;  %v35073_v28 = vpop.f32.mrb[109].mxu1  ;;  %v22658_v36 = vpack.c.bf16 %v14576_v14, %v14576_v14  ;;  %v29157_v14 = vld [vmem:[%s37146_s11 + $0x120] sm:$0xff]  }
 0x9dd   :  { %27102 = vmatpush3.bf16.msra.mxu1 %v29134_v33  ;;  %27003 = vmatprep.subr.bf16.mxu0 %v29566_v0  ;;  %v35076_v4 = vpop.f32.mrb[110].mxu1  ;;  %v29150_v33 = vld [vmem:[%s37146_s11 + $0x240] sm:$0xff]  }
 0x9de   :  { %27103 = vmatprep.subr.bf16.mxu1 %v29566_v0  ;;  %27017 = vmatprep.mubr.msk.bf16.mxu0 %vm29567_vm0, %v29566_v0  ;;  %v35078_v60 = vpop.f32.mrb[111].mxu1 }
 0x9df   :  { %27117 = vmatprep.mubr.msk.bf16.mxu1 %vm29567_vm0, %v29566_v0 }
 0x9e0   :  { %27004 = vmatpush3.bf16.msra.mxu0 %v29135_v45 }
 0x9e1   :  { %27104 = vmatpush3.bf16.msra.mxu1 %v29136_v35  ;;  %27005 = vmatprep.subr.bf16.mxu0 %v29566_v0 }
 0x9e2   :  { %27105 = vmatprep.subr.bf16.mxu1 %v29566_v0 }
 0x9e3   :  { %v35085_v10 = vpop.f32.mrb[112].mxu1 }
 0x9e4   :  { %27006 = vmatpush3.bf16.msra.mxu0 %v29137_v13  ;;  %v29151_v13 = vld [vmem:[%s37146_s11 + $0x108] sm:$0xff]  }
 0x9e5   :  { %27106 = vmatpush3.bf16.msra.mxu1 %v29138_v40  ;;  %v13165_v21 = vpop.f32.mrb[72].mxu0  ;;  %27007 = vmatprep.subr.bf16.mxu0 %v29566_v0 }
 0x9e6   :  { %v13970_v3 = vsel %vm6954_vm2, %v13165_v21, 0.0  ;;  %v26733_v20 = vpop.f32.mrb[73].mxu0  ;;  %27107 = vmatprep.subr.bf16.mxu1 %v29566_v0 }
 0x9e7   :  { %v13971_v2 = vadd.f32 %v13970_v3, %v13969_v24  ;;  %v13168_v54 = vpop.f32.mrb[74].mxu0  ;;  %v35093_v24 = vpop.f32.mrb[113].mxu1  ;;  %v29153_v3 = vld [vmem:[%s37146_s11 + $0x110] sm:$0xff]  }
 0x9e8   :  { %27008 = vmatpush3.bf16.msra.mxu0 %v29139_v53  ;;  %v26734_v41 = vpop.f32.mrb[75].mxu0  ;;  %v35096_v7 = vpop.f32.mrb[114].mxu1  ;;  %v29152_v53 = vld [vmem:[%s37146_s11 + $0x248] sm:$0xff]   ;;  %v29154_v20 = vld [vmem:[%s37146_s11 + $0x250] sm:$0xff]   ;;  %v29155_v54 = vld [vmem:[%s37146_s11 + $0x118] sm:$0xff]  }
 0x9e9   :  { %27108 = vmatpush3.bf16.msra.mxu1 %v29140_v29  ;;  %27009 = vmatprep.subr.bf16.mxu0 %v29566_v0  ;;  %v35055_v49 = vadd.f32 %v13972_v31, %v13971_v2  ;;  %v35101_v25 = vpop.f32.mrb[115].mxu1 }
 0x9ea   :  { %27109 = vmatprep.subr.bf16.mxu1 %v29566_v0 }
 0x9eb   :  { %v35103_v63 = vpop.f32.mrb[116].mxu1 }
 0x9ec   :  { %27010 = vmatpush3.bf16.msra.mxu0 %v29141_v17  ;;  %v35109_v1 = vpop.f32.mrb[117].mxu1 }
 0x9ed   :  { %27110 = vmatpush3.bf16.msra.mxu1 %v29142_v39  ;;  %27011 = vmatprep.subr.bf16.mxu0 %v29566_v0  ;;  %v35112_v58 = vpop.f32.mrb[118].mxu1  ;;  %v29156_v39 = vld [vmem:[%s37146_s11 + $0x258] sm:$0xff]  }
 0x9ee   :  { %27111 = vmatprep.subr.bf16.mxu1 %v29566_v0  ;;  %v35114_v8 = vpop.f32.mrb[119].mxu1 }
 0x9f0   :  { %27012 = vmatpush3.bf16.msra.mxu0 %v29143_v16 }
 0x9f1   :  { %27112 = vmatpush3.bf16.msra.mxu1 %v29144_v18  ;;  %27013 = vmatprep.subr.bf16.mxu0 %v29566_v0 }
 0x9f2   :  { %27113 = vmatprep.subr.bf16.mxu1 %v29566_v0 }
 0x9f3   :  { %v35119_v19 = vpop.f32.mrb[120].mxu1 }
 0x9f4   :  { %27014 = vmatpush3.bf16.msra.mxu0 %v29145_v48  ;;  %v35125_v12 = vpop.f32.mrb[121].mxu1 }
 0x9f5   :  { %27114 = vmatpush3.bf16.msra.mxu1 %v29146_v42  ;;  %27015 = vmatprep.subr.bf16.mxu0 %v29566_v0  ;;  %v35128_v45 = vpop.f32.mrb[122].mxu1 }
 0x9f6   :  { %27115 = vmatprep.subr.bf16.mxu1 %v29566_v0  ;;  %v35130_v35 = vpop.f32.mrb[123].mxu1 }
 0x9f8   :  { %27016 = vmatpush3.bf16.msra.mxu0 %v29147_v50 }
 0x9f9   :  { %27116 = vmatpush3.bf16.msra.mxu1 %v29148_v6  ;;  %27041 = vmatprep.subr.bf16.mxu0 %v29566_v0  ;;  %v29158_v6 = vld [vmem:[%s37146_s11 + $0x260] sm:$0xff]  }
 0x9fa   :  { %27141 = vmatprep.subr.bf16.mxu1 %v29566_v0 }
 0x9fb   :  { %27018 = vmatmul.mubr.bf16.vlgmr.msra.gmra.mrb[100].mxu0 %v22658_v36  ;;  %v35135_v40 = vpop.f32.mrb[124].mxu1  ;;  %v29160_v36 = vld [vmem:[%s37146_s11 + $0x268] sm:$0xff]  }
 0x9fc   :  { %27042 = vmatpush3.bf16.msra.mxu0 %v29149_v37  ;;  %27118 = vmatmul.mubr.bf16.vlgmr.msra.gmra.mrb[152].mxu1 %v22663_v26  ;;  %v35141_v21 = vpop.f32.mrb[125].mxu1 }
 0x9fd   :  { %27142 = vmatpush3.bf16.msra.mxu1 %v29150_v33  ;;  %27043 = vmatprep.subr.bf16.mxu0 %v29566_v0  ;;  %v35146_v29 = vpop.f32.mrb[126].mxu1 }
 0x9fe   :  { %27143 = vmatprep.subr.bf16.mxu1 %v29566_v0  ;;  %27057 = vmatprep.mubr.msk.bf16.mxu0 %vm29567_vm0, %v29566_v0  ;;  %v35150_v31 = vpop.f32.mrb[127].mxu1 }
 0x9ff   :  { %27157 = vmatprep.mubr.msk.bf16.mxu1 %vm29567_vm0, %v29566_v0 }
 0xa00   :  { %27044 = vmatpush3.bf16.msra.mxu0 %v29151_v13 }
 0xa01   :  { %27144 = vmatpush3.bf16.msra.mxu1 %v29152_v53  ;;  %27045 = vmatprep.subr.bf16.mxu0 %v29566_v0  ;;  %v14368_v53 = vadd.f32 %v34908_v55, %v34925_v9  ;;  %v29163_v9 = vld [vmem:[%s37146_s11 + $0x138] sm:$0xff]  }
 0xa02   :  { %27145 = vmatprep.subr.bf16.mxu1 %v29566_v0 }
 0xa03   :  { %v35160_v2 = vpop.f32.mrb[128].mxu1 }
 0xa04   :  { %27046 = vmatpush3.bf16.msra.mxu0 %v29153_v3  ;;  %v35165_v17 = vpop.f32.mrb[129].mxu1  ;;  %v29161_v3 = vld [vmem:[%s37146_s11 + $0x130] sm:$0xff]  }
 0xa05   :  { %27146 = vmatpush3.bf16.msra.mxu1 %v29154_v20  ;;  %v13341_v41 = vpop.f32.mrb[76].mxu0  ;;  %27047 = vmatprep.subr.bf16.mxu0 %v29566_v0  ;;  %v35171_v16 = vpop.f32.mrb[130].mxu1  ;;  %v14387_v20 = vadd.f32 %v34908_v55, %v34961_v62  ;;  %v29164_v55 = vld [vmem:[%s37146_s11 + $0x278] sm:$0xff]  }
 0xa06   :  { %v13974_v18 = vsel %vm6954_vm2, %v13341_v41, 0.0  ;;  %v26773_v61 = vpop.f32.mrb[77].mxu0  ;;  %27147 = vmatprep.subr.bf16.mxu1 %v29566_v0  ;;  %v35175_v48 = vpop.f32.mrb[131].mxu1  ;;  %v14578_v41 = vmax.f32 %v14368_v53, 0.0  ;;  %v29168_v53 = vld [vmem:[%s37146_s11 + $0x2c8] sm:$0xff]  }
 0xa07   :  { %v13975_v42 = vadd.f32 %v13974_v18, %v35055_v49  ;;  %v13344_v50 = vpop.f32.mrb[78].mxu0  ;;  %v29159_v49 = vld [vmem:[%s37146_s11 + $0x128] sm:$0xff]   ;;  %v14583_v18 = vmax.f32 %v14387_v20, 0.0 }
 0xa08   :  { %27048 = vmatpush3.bf16.msra.mxu0 %v29155_v54  ;;  %v26774_v22 = vpop.f32.mrb[79].mxu0  ;;  %v29162_v54 = vld [vmem:[%s37146_s11 + $0x270] sm:$0xff]  }
 0xa09   :  { %27148 = vmatpush3.bf16.msra.mxu1 %v29156_v39  ;;  %27049 = vmatprep.subr.bf16.mxu0 %v29566_v0  ;;  %v35187_v26 = vadd.f32 %v13976_v52, %v13975_v42  ;;  %v22660_v42 = vpack.c.bf16 %v14578_v41, %v14578_v41  ;;  %v22665_v50 = vpack.c.bf16 %v14583_v18, %v14583_v18  ;;  %v29165_v22 = vld [vmem:[%s37146_s11 + $0x180] sm:$0xff]   ;;  %v29171_v41 = vld [vmem:[%s37146_s11 + $0x198] sm:$0xff]  }
 0xa0a   :  { %27149 = vmatprep.subr.bf16.mxu1 %v29566_v0 }
 0xa0b   :  { %v35190_v30 = vpop.f32.mrb[132].mxu1 }
 0xa0c   :  { %27050 = vmatpush3.bf16.msra.mxu0 %v29157_v14  ;;  %v35195_v37 = vpop.f32.mrb[133].mxu1  ;;  %v29166_v14 = vld [vmem:[%s37146_s11 + $0x2c0] sm:$0xff]  }
 0xa0d   :  { %27150 = vmatpush3.bf16.msra.mxu1 %v29158_v6  ;;  %27051 = vmatprep.subr.bf16.mxu0 %v29566_v0  ;;  %v35201_v33 = vpop.f32.mrb[134].mxu1 }
 0xa0e   :  { %27151 = vmatprep.subr.bf16.mxu1 %v29566_v0  ;;  %v35204_v13 = vpop.f32.mrb[135].mxu1 }
 0xa10   :  { %27052 = vmatpush3.bf16.msra.mxu0 %v29159_v49  ;;  %v29167_v49 = vld [vmem:[%s37146_s11 + $0x188] sm:$0xff]  }
 0xa11   :  { %27152 = vmatpush3.bf16.msra.mxu1 %v29160_v36  ;;  %27053 = vmatprep.subr.bf16.mxu0 %v29566_v0 }
 0xa12   :  { %27153 = vmatprep.subr.bf16.mxu1 %v29566_v0 }
 0xa13   :  { %v35221_v39 = vpop.f32.mrb[136].mxu1 }
 0xa14   :  { %27054 = vmatpush3.bf16.msra.mxu0 %v29161_v3  ;;  %v35223_v61 = vpop.f32.mrb[137].mxu1 }
 0xa15   :  { %27154 = vmatpush3.bf16.msra.mxu1 %v29162_v54  ;;  %27055 = vmatprep.subr.bf16.mxu0 %v29566_v0  ;;  %v35229_v62 = vpop.f32.mrb[138].mxu1  ;;  %v29169_v54 = vld [vmem:[%s37146_s11 + $0x190] sm:$0xff]  }
 0xa16   :  { %27155 = vmatprep.subr.bf16.mxu1 %v29566_v0  ;;  %v35232_v52 = vpop.f32.mrb[139].mxu1 }
 0xa18   :  { %27056 = vmatpush3.bf16.msra.mxu0 %v29163_v9  ;;  %v29170_v9 = vld [vmem:[%s37146_s11 + $0x2d0] sm:$0xff]  }
 0xa19   :  { %27156 = vmatpush3.bf16.msra.mxu1 %v29164_v55  ;;  %27081 = vmatprep.subr.bf16.mxu0 %v29566_v0  ;;  %v29172_v55 = vld [vmem:[%s37146_s11 + $0x2d8] sm:$0xff]  }
 0xa1a   :  { %27181 = vmatprep.subr.bf16.mxu1 %v29566_v0 }
 0xa1b   :  { %27058 = vmatmul.mubr.bf16.vlgmr.msra.gmra.mrb[104].mxu0 %v22660_v42  ;;  %v35242_v6 = vpop.f32.mrb[140].mxu1 }
 0xa1c   :  { %27082 = vmatpush3.bf16.msra.mxu0 %v29165_v22  ;;  %27158 = vmatmul.mubr.bf16.vlgmr.msra.gmra.mrb[156].mxu1 %v22665_v50  ;;  %v35247_v36 = vpop.f32.mrb[141].mxu1  ;;  %v13980_v22 = vsel %vm6954_vm2, %v34842_v38, 0.0  ;;  %v29175_v38 = vld [vmem:[%s37146_s11 + $0x1a8] sm:$0xff]  }
 0xa1d   :  { %27182 = vmatpush3.bf16.msra.mxu1 %v29166_v14  ;;  %27083 = vmatprep.subr.bf16.mxu0 %v29566_v0  ;;  %v35253_v3 = vpop.f32.mrb[142].mxu1 }
 0xa1e   :  { %27183 = vmatprep.subr.bf16.mxu1 %v29566_v0  ;;  %27097 = vmatprep.mubr.msk.bf16.mxu0 %vm29567_vm0, %v29566_v0  ;;  %v35258_v20 = vpop.f32.mrb[143].mxu1 }
 0xa1f   :  { %27197 = vmatprep.mubr.msk.bf16.mxu1 %vm29567_vm0, %v29566_v0 }
 0xa20   :  { %27084 = vmatpush3.bf16.msra.mxu0 %v29167_v49 }
 0xa21   :  { %27184 = vmatpush3.bf16.msra.mxu1 %v29168_v53  ;;  %27085 = vmatprep.subr.bf16.mxu0 %v29566_v0 }
 0xa22   :  { %27185 = vmatprep.subr.bf16.mxu1 %v29566_v0 }
 0xa24   :  { %27086 = vmatpush3.bf16.msra.mxu0 %v29169_v54  ;;  %v29173_v54 = vld [vmem:[%s37146_s11 + $0x1a0] sm:$0xff]  }
 0xa25   :  { %27186 = vmatpush3.bf16.msra.mxu1 %v29170_v9  ;;  %v13517_v18 = vpop.f32.mrb[80].mxu0  ;;  %27087 = vmatprep.subr.bf16.mxu0 %v29566_v0  ;;  %v29174_v9 = vld [vmem:[%s37146_s11 + $0x2e0] sm:$0xff]  }
 0xa26   :  { %v13978_v42 = vsel %vm6954_vm2, %v13517_v18, 0.0  ;;  %v26813_v50 = vpop.f32.mrb[81].mxu0  ;;  %27187 = vmatprep.subr.bf16.mxu1 %v29566_v0 }
 0xa27   :  { %v13979_v14 = vadd.f32 %v13978_v42, %v35187_v26  ;;  %v13520_v49 = vpop.f32.mrb[82].mxu0  ;;  %v29176_v26 = vld [vmem:[%s37146_s11 + $0x2e8] sm:$0xff]   ;;  %v29177_v42 = vld [vmem:[%s37146_s11 + $0x1b0] sm:$0xff]  }
 0xa28   :  { %27088 = vmatpush3.bf16.msra.mxu0 %v29171_v41  ;;  %v26814_v53 = vpop.f32.mrb[83].mxu0  ;;  %v35301_v41 = vld [vmem:[%s37147_s8] ss:$0 sm:$0xff] }
 0xa29   :  { %27188 = vmatpush3.bf16.msra.mxu1 %v29172_v55  ;;  %27089 = vmatprep.subr.bf16.mxu0 %v29566_v0  ;;  %v13981_v18 = vadd.f32 %v13980_v22, %v13979_v14  ;;  %v14395_v55 = vadd.f32 %v35301_v41, %v34957_v11  ;;  %v14376_v50 = vadd.f32 %v35301_v41, %v34920_v43  ;;  %v29178_v22 = vld [vmem:[%s37146_s11 + $0x2f0] sm:$0xff]   ;;  %v29179_v11 = vld [vmem:[%s37146_s11 + $0x1b8] sm:$0xff]   ;;  %v29181_v53 = vld [vmem:[%s37146_s11 + $0x200] sm:$0xff]  }
 0xa2a   :  { %27189 = vmatprep.subr.bf16.mxu1 %v29566_v0  ;;  %v29180_v43 = vld [vmem:[%s37146_s11 + $0x2f8] sm:$0xff]  }
 0xa2b   :  { %v14585_v14 = vmax.f32 %v14395_v55, 0.0  ;;  %v14580_v49 = vmax.f32 %v14376_v50, 0.0  ;;  %v29184_v55 = vld [vmem:[%s37146_s11 + $0x348] sm:$0xff]   ;;  %v29186_v50 = vld [vmem:[%s37146_s11 + $0x350] sm:$0xff]  }
 0xa2c   :  { %27090 = vmatpush3.bf16.msra.mxu0 %v29173_v54  ;;  %v29182_v54 = vld [vmem:[%s37146_s11 + $0x340] sm:$0xff]  }
 0xa2d   :  { %27190 = vmatpush3.bf16.msra.mxu1 %v29174_v9  ;;  %27091 = vmatprep.subr.bf16.mxu0 %v29566_v0  ;;  %v22667_v9 = vpack.c.bf16 %v14585_v14, %v14585_v14 }
 0xa2e   :  { %27191 = vmatprep.subr.bf16.mxu1 %v29566_v0 }
 0xa30   :  { %27092 = vmatpush3.bf16.msra.mxu0 %v29175_v38  ;;  %v22662_v38 = vpack.c.bf16 %v14580_v49, %v14580_v49 }
 0xa31   :  { %27192 = vmatpush3.bf16.msra.mxu1 %v29176_v26  ;;  %27093 = vmatprep.subr.bf16.mxu0 %v29566_v0  ;;  %v29183_v26 = vld [vmem:[%s37146_s11 + $0x208] sm:$0xff]  }
 0xa32   :  { %27193 = vmatprep.subr.bf16.mxu1 %v29566_v0 }
 0xa34   :  { %27094 = vmatpush3.bf16.msra.mxu0 %v29177_v42  ;;  %v29185_v42 = vld [vmem:[%s37146_s11 + $0x210] sm:$0xff]  }
 0xa35   :  { %27194 = vmatpush3.bf16.msra.mxu1 %v29178_v22  ;;  %27095 = vmatprep.subr.bf16.mxu0 %v29566_v0  ;;  %v29187_v22 = vld [vmem:[%s37146_s11 + $0x218] sm:$0xff]  }
 0xa36   :  { %27195 = vmatprep.subr.bf16.mxu1 %v29566_v0 }
 0xa38   :  { %27096 = vmatpush3.bf16.msra.mxu0 %v29179_v11  ;;  %v29188_v11 = vld [vmem:[%s37146_s11 + $0x358] sm:$0xff]  }
 0xa39   :  { %27196 = vmatpush3.bf16.msra.mxu1 %v29180_v43  ;;  %27121 = vmatprep.subr.bf16.mxu0 %v29566_v0 }
 0xa3a   :  { %27221 = vmatprep.subr.bf16.mxu1 %v29566_v0 }
 0xa3b   :  { %27098 = vmatmul.mubr.bf16.vlgmr.msra.gmra.mrb[108].mxu0 %v22662_v38 }
 0xa3c   :  { %27122 = vmatpush3.bf16.msra.mxu0 %v29181_v53  ;;  %27198 = vmatmul.mubr.bf16.vlgmr.msra.gmra.mrb[160].mxu1 %v22667_v9  ;;  %v13984_v53 = vsel %vm6954_vm2, %v34883_v51, 0.0  ;;  %v29191_v51 = vld [vmem:[%s37146_s11 + $0x228] sm:$0xff]  }
 0xa3d   :  { %27222 = vmatpush3.bf16.msra.mxu1 %v29182_v54  ;;  %27123 = vmatprep.subr.bf16.mxu0 %v29566_v0 }
 0xa3e   :  { %27223 = vmatprep.subr.bf16.mxu1 %v29566_v0  ;;  %27137 = vmatprep.mubr.msk.bf16.mxu0 %vm29567_vm0, %v29566_v0 }
 0xa3f   :  { %27237 = vmatprep.mubr.msk.bf16.mxu1 %vm29567_vm0, %v29566_v0 }
 0xa40   :  { %27124 = vmatpush3.bf16.msra.mxu0 %v29183_v26  ;;  %v29189_v26 = vld [vmem:[%s37146_s11 + $0x220] sm:$0xff]  }
 0xa41   :  { %27224 = vmatpush3.bf16.msra.mxu1 %v29184_v55  ;;  %27125 = vmatprep.subr.bf16.mxu0 %v29566_v0  ;;  %v29190_v55 = vld [vmem:[%s37146_s11 + $0x360] sm:$0xff]  }
 0xa42   :  { %27225 = vmatprep.subr.bf16.mxu1 %v29566_v0 }
 0xa44   :  { %27126 = vmatpush3.bf16.msra.mxu0 %v29185_v42 }
 0xa45   :  { %27226 = vmatpush3.bf16.msra.mxu1 %v29186_v50  ;;  %v13693_v14 = vpop.f32.mrb[84].mxu0  ;;  %27127 = vmatprep.subr.bf16.mxu0 %v29566_v0  ;;  %v14384_v50 = vadd.f32 %v35301_v41, %v34954_v15  ;;  %v29194_v15 = vld [vmem:[%s37146_s11 + $0x370] sm:$0xff]  }
 0xa46   :  { %v13982_v49 = vsel %vm6954_vm2, %v13693_v14, 0.0  ;;  %v26853_v43 = vpop.f32.mrb[85].mxu0  ;;  %27227 = vmatprep.subr.bf16.mxu1 %v29566_v0  ;;  %v14403_v14 = vadd.f32 %v35301_v41, %v35004_v47  ;;  %v29196_v47 = vld [vmem:[%s37146_s11 + $0x378] sm:$0xff]  }
 0xa47   :  { %v13983_v54 = vadd.f32 %v13982_v49, %v13981_v18  ;;  %v13696_v9 = vpop.f32.mrb[86].mxu0  ;;  %v29192_v18 = vld [vmem:[%s37146_s11 + $0x368] sm:$0xff]   ;;  %v29195_v43 = vld [vmem:[%s37146_s11 + $0x238] sm:$0xff]  }
 0xa48   :  { %27128 = vmatpush3.bf16.msra.mxu0 %v29187_v22  ;;  %v26854_v38 = vpop.f32.mrb[87].mxu0  ;;  %v29193_v22 = vld [vmem:[%s37146_s11 + $0x230] sm:$0xff]   ;;  %v14587_v49 = vmax.f32 %v14403_v14, 0.0  ;;  %v29198_v9 = vld [vmem:[%s37146_s11 + $0x3c0] sm:$0xff]   ;;  %v29204_v14 = vld [vmem:[%s37146_s11 + $0x3d8] sm:$0xff]  }
 0xa49   :  { %27228 = vmatpush3.bf16.msra.mxu1 %v29188_v11  ;;  %27129 = vmatprep.subr.bf16.mxu0 %v29566_v0  ;;  %v13985_v42 = vadd.f32 %v13984_v53, %v13983_v54  ;;  %v14582_v11 = vmax.f32 %v14384_v50, 0.0  ;;  %v29197_v53 = vld [vmem:[%s37146_s11 + $0x280] sm:$0xff]   ;;  %v29203_v50 = vld [vmem:[%s37146_s11 + $0x298] sm:$0xff]  }
 0xa4a   :  { %27229 = vmatprep.subr.bf16.mxu1 %v29566_v0  ;;  %v22669_v38 = vpack.c.bf16 %v14587_v49, %v14587_v49 }
 0xa4b   :  { %v22664_v54 = vpack.c.bf16 %v14582_v11, %v14582_v11 }
 0xa4c   :  { %27130 = vmatpush3.bf16.msra.mxu0 %v29189_v26  ;;  %v29199_v26 = vld [vmem:[%s37146_s11 + $0x288] sm:$0xff]  }
 0xa4d   :  { %27230 = vmatpush3.bf16.msra.mxu1 %v29190_v55  ;;  %27131 = vmatprep.subr.bf16.mxu0 %v29566_v0  ;;  %v29200_v55 = vld [vmem:[%s37146_s11 + $0x3c8] sm:$0xff]  }
 0xa4e   :  { %27231 = vmatprep.subr.bf16.mxu1 %v29566_v0 }
 0xa50   :  { %27132 = vmatpush3.bf16.msra.mxu0 %v29191_v51  ;;  %v29201_v51 = vld [vmem:[%s37146_s11 + $0x290] sm:$0xff]  }
 0xa51   :  { %27232 = vmatpush3.bf16.msra.mxu1 %v29192_v18  ;;  %27133 = vmatprep.subr.bf16.mxu0 %v29566_v0  ;;  %v29202_v18 = vld [vmem:[%s37146_s11 + $0x3d0] sm:$0xff]  }
 0xa52   :  { %27233 = vmatprep.subr.bf16.mxu1 %v29566_v0 }
 0xa54   :  { %27134 = vmatpush3.bf16.msra.mxu0 %v29193_v22 }
 0xa55   :  { %27234 = vmatpush3.bf16.msra.mxu1 %v29194_v15  ;;  %27135 = vmatprep.subr.bf16.mxu0 %v29566_v0 }
 0xa56   :  { %27235 = vmatprep.subr.bf16.mxu1 %v29566_v0 }
 0xa58   :  { %27136 = vmatpush3.bf16.msra.mxu0 %v29195_v43 }
 0xa59   :  { %27236 = vmatpush3.bf16.msra.mxu1 %v29196_v47  ;;  %27161 = vmatprep.subr.bf16.mxu0 %v29566_v0 }
 0xa5a   :  { %27261 = vmatprep.subr.bf16.mxu1 %v29566_v0 }
 0xa5b   :  { %27138 = vmatmul.mubr.bf16.vlgmr.msra.gmra.mrb[112].mxu0 %v22664_v54 }
 0xa5c   :  { %27162 = vmatpush3.bf16.msra.mxu0 %v29197_v53  ;;  %27238 = vmatmul.mubr.bf16.vlgmr.msra.gmra.mrb[164].mxu1 %v22669_v38  ;;  %v29205_v53 = vld [vmem:[%s37146_s11 + $0x2a0] sm:$0xff]   ;;  %v29208_v38 = vld [vmem:[%s37146_s11 + $0x3e8] sm:$0xff]  }
 0xa5d   :  { %27262 = vmatpush3.bf16.msra.mxu1 %v29198_v9  ;;  %27163 = vmatprep.subr.bf16.mxu0 %v29566_v0  ;;  %v29206_v9 = vld [vmem:[%s37146_s11 + $0x3e0] sm:$0xff]  }
 0xa5e   :  { %27263 = vmatprep.subr.bf16.mxu1 %v29566_v0  ;;  %27177 = vmatprep.mubr.msk.bf16.mxu0 %vm29567_vm0, %v29566_v0 }
 0xa5f   :  { %27277 = vmatprep.mubr.msk.bf16.mxu1 %vm29567_vm0, %v29566_v0 }
 0xa60   :  { %27164 = vmatpush3.bf16.msra.mxu0 %v29199_v26  ;;  %v29209_v26 = vld [vmem:[%s37146_s11 + $0x2b0] sm:$0xff]  }
 0xa61   :  { %27264 = vmatpush3.bf16.msra.mxu1 %v29200_v55  ;;  %27165 = vmatprep.subr.bf16.mxu0 %v29566_v0  ;;  %v14392_v55 = vadd.f32 %v35301_v41, %v34949_v56  ;;  %v29212_v56 = vld [vmem:[%s37146_s11 + $0x3f8] sm:$0xff]  }
 0xa62   :  { %27265 = vmatprep.subr.bf16.mxu1 %v29566_v0 }
 0xa64   :  { %27166 = vmatpush3.bf16.msra.mxu0 %v29201_v51  ;;  %v29210_v51 = vld [vmem:[%s37146_s11 + $0x3f0] sm:$0xff]  }
 0xa65   :  { %27266 = vmatpush3.bf16.msra.mxu1 %v29202_v18  ;;  %v13869_v22 = vpop.f32.mrb[88].mxu0  ;;  %27167 = vmatprep.subr.bf16.mxu0 %v29566_v0 }
 0xa66   :  { %v13986_v11 = vsel %vm6954_vm2, %v13869_v22, 0.0  ;;  %v26893_v15 = vpop.f32.mrb[89].mxu0  ;;  %27267 = vmatprep.subr.bf16.mxu1 %v29566_v0  ;;  %v29213_v22 = vld [vmem:[%s37146_s11 + $0x300] sm:$0xff]  }
 0xa67   :  { %v13987_v49 = vadd.f32 %v13986_v11, %v13985_v42  ;;  %v13872_v43 = vpop.f32.mrb[90].mxu0  ;;  %v29207_v42 = vld [vmem:[%s37146_s11 + $0x2a8] sm:$0xff]  }
 0xa68   :  { %27168 = vmatpush3.bf16.msra.mxu0 %v29203_v50  ;;  %v26894_v47 = vpop.f32.mrb[91].mxu0  ;;  %v14584_v50 = vmax.f32 %v14392_v55, 0.0  ;;  %v29216_v43 = vld [vmem:[%s37146_s11 + $0x448] sm:$0xff]  }
 0xa69   :  { %v35439_v54 = vadd.f32 %v13987_v49, %v32439_v32  ;;  %27268 = vmatpush3.bf16.msra.mxu1 %v29204_v14  ;;  %27169 = vmatprep.subr.bf16.mxu0 %v29566_v0  ;;  %v14411_v32 = vadd.f32 %v35301_v41, %v34998_v46  ;;  %v29211_v46 = vld [vmem:[%s37146_s11 + $0x2b8] sm:$0xff]   ;;  %v29214_v14 = vld [vmem:[%s37146_s11 + $0x440] sm:$0xff]   ;;  %v29215_v49 = vld [vmem:[%s37146_s11 + $0x308] sm:$0xff]  }
 0xa6a   :  { %27269 = vmatprep.subr.bf16.mxu1 %v29566_v0  ;;  %v22666_v15 = vpack.c.bf16 %v14584_v50, %v14584_v50  ;;  %v29217_v47 = vld [vmem:[%s37146_s11 + $0x310] sm:$0xff]   ;;  %v29224_v55 = vld [vmem:[%s37146_s11 + $0x468] sm:$0xff]  }
 0xa6b   :  { %v14589_v18 = vmax.f32 %v14411_v32, 0.0  ;;  %v29222_v32 = vld [vmem:[%s37146_s11 + $0x460] sm:$0xff]  }
 0xa6c   :  { %27170 = vmatpush3.bf16.msra.mxu0 %v29205_v53  ;;  %v29218_v53 = vld [vmem:[%s37146_s11 + $0x450] sm:$0xff]  }
 0xa6d   :  { %27270 = vmatpush3.bf16.msra.mxu1 %v29206_v9  ;;  %27171 = vmatprep.subr.bf16.mxu0 %v29566_v0  ;;  %v22671_v11 = vpack.c.bf16 %v14589_v18, %v14589_v18  ;;  %v29219_v9 = vld [vmem:[%s37146_s11 + $0x318] sm:$0xff]   ;;  %v14400_v18 = vadd.f32 %v35301_v41, %v34993_v5  ;;  %v29226_v5 = vld [vmem:[%s37146_s11 + $0x470] sm:$0xff]  }
 0xa6e   :  { %27271 = vmatprep.subr.bf16.mxu1 %v29566_v0 }
 0xa70   :  { %27172 = vmatpush3.bf16.msra.mxu0 %v29207_v42  ;;  %v29220_v42 = vld [vmem:[%s37146_s11 + $0x458] sm:$0xff]  }
 0xa71   :  { %27272 = vmatpush3.bf16.msra.mxu1 %v29208_v38  ;;  %27173 = vmatprep.subr.bf16.mxu0 %v29566_v0  ;;  %v29221_v38 = vld [vmem:[%s37146_s11 + $0x320] sm:$0xff]  }
 0xa72   :  { %27273 = vmatprep.subr.bf16.mxu1 %v29566_v0 }
 0xa74   :  { %27174 = vmatpush3.bf16.msra.mxu0 %v29209_v26  ;;  %v29223_v26 = vld [vmem:[%s37146_s11 + $0x328] sm:$0xff]  }
 0xa75   :  { %27274 = vmatpush3.bf16.msra.mxu1 %v29210_v51  ;;  %27175 = vmatprep.subr.bf16.mxu0 %v29566_v0 }
 0xa76   :  { %27275 = vmatprep.subr.bf16.mxu1 %v29566_v0 }
 0xa78   :  { %27176 = vmatpush3.bf16.msra.mxu0 %v29211_v46 }
 0xa79   :  { %27276 = vmatpush3.bf16.msra.mxu1 %v29212_v56  ;;  %27201 = vmatprep.subr.bf16.mxu0 %v29566_v0 }
 0xa7a   :  { %27301 = vmatprep.subr.bf16.mxu1 %v29566_v0 }
 0xa7b   :  { %27178 = vmatmul.mubr.bf16.vlgmr.msra.gmra.mrb[116].mxu0 %v22666_v15 }
 0xa7c   :  { %27202 = vmatpush3.bf16.msra.mxu0 %v29213_v22  ;;  %27278 = vmatmul.mubr.bf16.vlgmr.msra.gmra.mrb[168].mxu1 %v22671_v11  ;;  %v14419_v11 = vadd.f32 %v35301_v41, %v35062_v44  ;;  %v29228_v44 = vld [vmem:[%s37146_s11 + $0x478] sm:$0xff]   ;;  %v29229_v41 = vld [vmem:[%s37146_s11 + $0x380] sm:$0xff]  }
 0xa7d   :  { %27302 = vmatpush3.bf16.msra.mxu1 %v29214_v14  ;;  %27203 = vmatprep.subr.bf16.mxu0 %v29566_v0  ;;  %v29225_v14 = vld [vmem:[%s37146_s11 + $0x330] sm:$0xff]  }
 0xa7e   :  { %27303 = vmatprep.subr.bf16.mxu1 %v29566_v0  ;;  %27217 = vmatprep.mubr.msk.bf16.mxu0 %vm29567_vm0, %v29566_v0 }
 0xa7f   :  { %27317 = vmatprep.mubr.msk.bf16.mxu1 %vm29567_vm0, %v29566_v0 }
 0xa80   :  { %27204 = vmatpush3.bf16.msra.mxu0 %v29215_v49 }
 0xa81   :  { %27304 = vmatpush3.bf16.msra.mxu1 %v29216_v43  ;;  %27205 = vmatprep.subr.bf16.mxu0 %v29566_v0 }
 0xa82   :  { %27305 = vmatprep.subr.bf16.mxu1 %v29566_v0 }
 0xa84   :  { %27206 = vmatpush3.bf16.msra.mxu0 %v29217_v47  ;;  %v14586_v47 = vmax.f32 %v14400_v18, 0.0  ;;  %v29233_v18 = vld [vmem:[%s37146_s11 + $0x390] sm:$0xff]  }
 0xa85   :  { %27306 = vmatpush3.bf16.msra.mxu1 %v29218_v53  ;;  %27207 = vmatprep.subr.bf16.mxu0 %v29566_v0  ;;  %v29227_v53 = vld [vmem:[%s37146_s11 + $0x338] sm:$0xff]  }
 0xa86   :  { %27307 = vmatprep.subr.bf16.mxu1 %v29566_v0 }
 0xa88   :  { %27208 = vmatpush3.bf16.msra.mxu0 %v29219_v9  ;;  %v14591_v9 = vmax.f32 %v14419_v11, 0.0  ;;  %v29238_v11 = vld [vmem:[%s37146_s11 + $0x4e0] sm:$0xff]  }
 0xa89   :  { %27308 = vmatpush3.bf16.msra.mxu1 %v29220_v42  ;;  %27209 = vmatprep.subr.bf16.mxu0 %v29566_v0  ;;  %v29230_v42 = vld [vmem:[%s37146_s11 + $0x4c0] sm:$0xff]  }
 0xa8a   :  { %27309 = vmatprep.subr.bf16.mxu1 %v29566_v0 }
 0xa8c   :  { %27210 = vmatpush3.bf16.msra.mxu0 %v29221_v38  ;;  %v22668_v38 = vpack.c.bf16 %v14586_v47, %v14586_v47 }
 0xa8d   :  { %27310 = vmatpush3.bf16.msra.mxu1 %v29222_v32  ;;  %27211 = vmatprep.subr.bf16.mxu0 %v29566_v0  ;;  %v22673_v32 = vpack.c.bf16 %v14591_v9, %v14591_v9 }
 0xa8e   :  { %v35525_v51 = vpop.f32.mrb[92].mxu0  ;;  %27311 = vmatprep.subr.bf16.mxu1 %v29566_v0 }
 0xa8f   :  { %v26979_v46 = vpop.f32.mrb[93].mxu0  ;;  %v35530_v50 = vpop.f32.mrb[144].mxu1 }
 0xa90   :  { %27212 = vmatpush3.bf16.msra.mxu0 %v29223_v26  ;;  %v15835_v56 = vpop.f32.mrb[94].mxu0  ;;  %v27039_v22 = vpop.f32.mrb[145].mxu1  ;;  %v29231_v26 = vld [vmem:[%s37146_s11 + $0x388] sm:$0xff]   ;;  %v29234_v46 = vld [vmem:[%s37146_s11 + $0x4d0] sm:$0xff]  }
 0xa91   :  { %27312 = vmatpush3.bf16.msra.mxu1 %v29224_v55  ;;  %v26980_v15 = vpop.f32.mrb[95].mxu0  ;;  %v16099_v49 = vpop.f32.mrb[146].mxu1  ;;  %27213 = vmatprep.subr.bf16.mxu0 %v29566_v0  ;;  %v29232_v55 = vld [vmem:[%s37146_s11 + $0x4c8] sm:$0xff]   ;;  %v29235_v56 = vld [vmem:[%s37146_s11 + $0x398] sm:$0xff]  }
 0xa92   :  { %v27040_v43 = vpop.f32.mrb[147].mxu1  ;;  %27313 = vmatprep.subr.bf16.mxu1 %v29566_v0  ;;  %v29236_v22 = vld [vmem:[%s37146_s11 + $0x4d8] sm:$0xff]   ;;  %v29239_v15 = vld [vmem:[%s37146_s11 + $0x3a8] sm:$0xff]  }
 0xa93   :  { %v29240_v49 = vld [vmem:[%s37146_s11 + $0x4e8] sm:$0xff]   ;;  %v20678_v43 = vsel %vm6954_vm2, %v35525_v51, 0.0 }
 0xa94   :  { %27214 = vmatpush3.bf16.msra.mxu0 %v29225_v14  ;;  %v29237_v14 = vld [vmem:[%s37146_s11 + $0x3a0] sm:$0xff]  }
 0xa95   :  { %27314 = vmatpush3.bf16.msra.mxu1 %v29226_v5  ;;  %27215 = vmatprep.subr.bf16.mxu0 %v29566_v0 }
 0xa96   :  { %27315 = vmatprep.subr.bf16.mxu1 %v29566_v0 }
 0xa98   :  { %27216 = vmatpush3.bf16.msra.mxu0 %v29227_v53 }
 0xa99   :  { %27316 = vmatpush3.bf16.msra.mxu1 %v29228_v44  ;;  %27241 = vmatprep.subr.bf16.mxu0 %v29566_v0 }
 0xa9a   :  { %27341 = vmatprep.subr.bf16.mxu1 %v29566_v0 }
 0xa9b   :  { %27218 = vmatmul.mubr.bf16.vlgmr.msra.gmra.mrb[120].mxu0 %v22668_v38 }
 0xa9c   :  { %27242 = vmatpush3.bf16.msra.mxu0 %v29229_v41  ;;  %27318 = vmatmul.mubr.bf16.vlgmr.msra.gmra.mrb[172].mxu1 %v22673_v32  ;;  %v35615_v32 = vld [vmem:[%s37147_s8] ss:$0 sm:$0xff] }
 0xa9d   :  { %27342 = vmatpush3.bf16.msra.mxu1 %v29230_v42  ;;  %27243 = vmatprep.subr.bf16.mxu0 %v29566_v0  ;;  %v29241_v42 = vld [vmem:[%s37146_s11 + $0x3b0] sm:$0xff]   ;;  %v14408_v51 = vadd.f32 %v35615_v32, %v34990_v27  ;;  %v29243_v27 = vld [vmem:[%s37146_s11 + $0x3b8] sm:$0xff]  }
 0xa9e   :  { %27343 = vmatprep.subr.bf16.mxu1 %v29566_v0  ;;  %27257 = vmatprep.mubr.msk.bf16.mxu0 %vm29567_vm0, %v29566_v0 }
 0xa9f   :  { %27357 = vmatprep.mubr.msk.bf16.mxu1 %vm29567_vm0, %v29566_v0 }
 0xaa0   :  { %27244 = vmatpush3.bf16.msra.mxu0 %v29231_v26 }
 0xaa1   :  { %27344 = vmatpush3.bf16.msra.mxu1 %v29232_v55  ;;  %27245 = vmatprep.subr.bf16.mxu0 %v29566_v0  ;;  %v29242_v55 = vld [vmem:[%s37146_s11 + $0x4f0] sm:$0xff]  }
 0xaa2   :  { %27345 = vmatprep.subr.bf16.mxu1 %v29566_v0 }
 0xaa4   :  { %27246 = vmatpush3.bf16.msra.mxu0 %v29233_v18 }
 0xaa5   :  { %27346 = vmatpush3.bf16.msra.mxu1 %v29234_v46  ;;  %27247 = vmatprep.subr.bf16.mxu0 %v29566_v0  ;;  %v14427_v46 = vadd.f32 %v35615_v32, %v35060_v23  ;;  %v29245_v23 = vld [vmem:[%s37146_s11 + $0x400] sm:$0xff]  }
 0xaa6   :  { %27347 = vmatprep.subr.bf16.mxu1 %v29566_v0 }
 0xaa8   :  { %27248 = vmatpush3.bf16.msra.mxu0 %v29235_v56 }
 0xaa9   :  { %27348 = vmatpush3.bf16.msra.mxu1 %v29236_v22  ;;  %27249 = vmatprep.subr.bf16.mxu0 %v29566_v0  ;;  %v14588_v22 = vmax.f32 %v14408_v51, 0.0  ;;  %v29253_v51 = vld [vmem:[%s37146_s11 + $0x420] sm:$0xff]  }
 0xaaa   :  { %27349 = vmatprep.subr.bf16.mxu1 %v29566_v0 }
 0xaac   :  { %27250 = vmatpush3.bf16.msra.mxu0 %v29237_v14  ;;  %v29244_v14 = vld [vmem:[%s37146_s11 + $0x4f8] sm:$0xff]  }
 0xaad   :  { %27350 = vmatpush3.bf16.msra.mxu1 %v29238_v11  ;;  %27251 = vmatprep.subr.bf16.mxu0 %v29566_v0  ;;  %v14593_v11 = vmax.f32 %v14427_v46, 0.0 }
 0xaae   :  { %v15920_v5 = vpop.f32.mrb[96].mxu0  ;;  %27351 = vmatprep.subr.bf16.mxu1 %v29566_v0 }
 0xaaf   :  { %v20679_v47 = vsel %vm6954_vm2, %v15920_v5, 0.0  ;;  %v26999_v53 = vpop.f32.mrb[97].mxu0  ;;  %v35605_v9 = vpop.f32.mrb[148].mxu1  ;;  %v22675_v5 = vpack.c.bf16 %v14593_v11, %v14593_v11 }
 0xab0   :  { %v35607_v44 = vadd.f32 %v20679_v47, %v20678_v43  ;;  %v15923_v41 = vpop.f32.mrb[98].mxu0  ;;  %27252 = vmatpush3.bf16.msra.mxu0 %v29239_v15  ;;  %v27079_v38 = vpop.f32.mrb[149].mxu1  ;;  %v22670_v15 = vpack.c.bf16 %v14588_v22, %v14588_v22  ;;  %v29247_v43 = vld [vmem:[%s37146_s11 + $0x408] sm:$0xff]   ;;  %v29249_v53 = vld [vmem:[%s37146_s11 + $0x410] sm:$0xff]  }
 0xab1   :  { %v27000_v26 = vpop.f32.mrb[99].mxu0  ;;  %27352 = vmatpush3.bf16.msra.mxu1 %v29240_v49  ;;  %27253 = vmatprep.subr.bf16.mxu0 %v29566_v0  ;;  %v16275_v18 = vpop.f32.mrb[150].mxu1  ;;  %v29246_v49 = vld [vmem:[%s37146_s11 + $0x540] sm:$0xff]   ;;  %v29248_v47 = vld [vmem:[%s37146_s11 + $0x548] sm:$0xff]   ;;  %v29250_v41 = vld [vmem:[%s37146_s11 + $0x550] sm:$0xff]  }
 0xab2   :  { %27353 = vmatprep.subr.bf16.mxu1 %v29566_v0  ;;  %v27080_v56 = vpop.f32.mrb[151].mxu1  ;;  %v29252_v38 = vld [vmem:[%s37146_s11 + $0x558] sm:$0xff]   ;;  %v29254_v26 = vld [vmem:[%s37146_s11 + $0x560] sm:$0xff]   ;;  %v29256_v18 = vld [vmem:[%s37146_s11 + $0x568] sm:$0xff]  }
 0xab4   :  { %27254 = vmatpush3.bf16.msra.mxu0 %v29241_v42  ;;  %v29251_v42 = vld [vmem:[%s37146_s11 + $0x418] sm:$0xff]  }
 0xab5   :  { %27354 = vmatpush3.bf16.msra.mxu1 %v29242_v55  ;;  %27255 = vmatprep.subr.bf16.mxu0 %v29566_v0  ;;  %v29255_v55 = vld [vmem:[%s37146_s11 + $0x428] sm:$0xff]  }
 0xab6   :  { %27355 = vmatprep.subr.bf16.mxu1 %v29566_v0 }
 0xab8   :  { %27256 = vmatpush3.bf16.msra.mxu0 %v29243_v27 }
 0xab9   :  { %27356 = vmatpush3.bf16.msra.mxu1 %v29244_v14  ;;  %27281 = vmatprep.subr.bf16.mxu0 %v29566_v0 }
 0xaba   :  { %27381 = vmatprep.subr.bf16.mxu1 %v29566_v0 }
 0xabb   :  { %27258 = vmatmul.mubr.bf16.vlgmr.msra.gmra.mrb[124].mxu0 %v22670_v15 }
 0xabc   :  { %27282 = vmatpush3.bf16.msra.mxu0 %v29245_v23  ;;  %27358 = vmatmul.mubr.bf16.vlgmr.msra.gmra.mrb[176].mxu1 %v22675_v5  ;;  %v29257_v23 = vld [vmem:[%s37146_s11 + $0x430] sm:$0xff]   ;;  %v20683_v5 = vsel %vm6954_vm2, %v35530_v50, 0.0 }
 0xabd   :  { %27382 = vmatpush3.bf16.msra.mxu1 %v29246_v49  ;;  %27283 = vmatprep.subr.bf16.mxu0 %v29566_v0  ;;  %v14416_v49 = vadd.f32 %v35615_v32, %v35057_v57  ;;  %v29259_v57 = vld [vmem:[%s37146_s11 + $0x438] sm:$0xff]  }
 0xabe   :  { %27383 = vmatprep.subr.bf16.mxu1 %v29566_v0  ;;  %27297 = vmatprep.mubr.msk.bf16.mxu0 %vm29567_vm0, %v29566_v0 }
 0xabf   :  { %27397 = vmatprep.mubr.msk.bf16.mxu1 %vm29567_vm0, %v29566_v0  ;;  %v14590_v50 = vmax.f32 %v14416_v49, 0.0  ;;  %v29270_v49 = vld [vmem:[%s37146_s11 + $0x5e0] sm:$0xff]  }
 0xac0   :  { %27284 = vmatpush3.bf16.msra.mxu0 %v29247_v43 }
 0xac1   :  { %27384 = vmatpush3.bf16.msra.mxu1 %v29248_v47  ;;  %27285 = vmatprep.subr.bf16.mxu0 %v29566_v0 }
 0xac2   :  { %27385 = vmatprep.subr.bf16.mxu1 %v29566_v0 }
 0xac4   :  { %27286 = vmatpush3.bf16.msra.mxu0 %v29249_v53  ;;  %v14435_v53 = vadd.f32 %v35615_v32, %v35078_v60  ;;  %v29261_v60 = vld [vmem:[%s37146_s11 + $0x480] sm:$0xff]  }
 0xac5   :  { %27386 = vmatpush3.bf16.msra.mxu1 %v29250_v41  ;;  %27287 = vmatprep.subr.bf16.mxu0 %v29566_v0 }
 0xac6   :  { %27387 = vmatprep.subr.bf16.mxu1 %v29566_v0 }
 0xac8   :  { %27288 = vmatpush3.bf16.msra.mxu0 %v29251_v42 }
 0xac9   :  { %27388 = vmatpush3.bf16.msra.mxu1 %v29252_v38  ;;  %27289 = vmatprep.subr.bf16.mxu0 %v29566_v0  ;;  %v29260_v38 = vld [vmem:[%s37146_s11 + $0x578] sm:$0xff]  }
 0xaca   :  { %27389 = vmatprep.subr.bf16.mxu1 %v29566_v0 }
 0xacc   :  { %27290 = vmatpush3.bf16.msra.mxu0 %v29253_v51  ;;  %v14595_v51 = vmax.f32 %v14435_v53, 0.0 }
 0xacd   :  { %27390 = vmatpush3.bf16.msra.mxu1 %v29254_v26  ;;  %27291 = vmatprep.subr.bf16.mxu0 %v29566_v0  ;;  %v22672_v26 = vpack.c.bf16 %v14590_v50, %v14590_v50 }
 0xace   :  { %v16008_v46 = vpop.f32.mrb[100].mxu0  ;;  %27391 = vmatprep.subr.bf16.mxu1 %v29566_v0 }
 0xacf   :  { %v20681_v56 = vsel %vm6954_vm2, %v16008_v46, 0.0  ;;  %v27019_v27 = vpop.f32.mrb[101].mxu0  ;;  %v35687_v22 = vpop.f32.mrb[152].mxu1  ;;  %v29263_v46 = vld [vmem:[%s37146_s11 + $0x488] sm:$0xff]  }
 0xad0   :  { %v20682_v14 = vadd.f32 %v20681_v56, %v35607_v44  ;;  %v16011_v11 = vpop.f32.mrb[102].mxu0  ;;  %27292 = vmatpush3.bf16.msra.mxu0 %v29255_v55  ;;  %v27119_v15 = vpop.f32.mrb[153].mxu1  ;;  %v29258_v44 = vld [vmem:[%s37146_s11 + $0x570] sm:$0xff]   ;;  %v29262_v55 = vld [vmem:[%s37146_s11 + $0x5c0] sm:$0xff]   ;;  %v29264_v56 = vld [vmem:[%s37146_s11 + $0x5c8] sm:$0xff]  }
 0xad1   :  { %v27020_v43 = vpop.f32.mrb[103].mxu0  ;;  %27392 = vmatpush3.bf16.msra.mxu1 %v29256_v18  ;;  %27293 = vmatprep.subr.bf16.mxu0 %v29566_v0  ;;  %v16451_v47 = vpop.f32.mrb[154].mxu1  ;;  %v22677_v18 = vpack.c.bf16 %v14595_v51, %v14595_v51  ;;  %v29265_v27 = vld [vmem:[%s37146_s11 + $0x490] sm:$0xff]   ;;  %v29267_v11 = vld [vmem:[%s37146_s11 + $0x498] sm:$0xff]   ;;  %v29269_v15 = vld [vmem:[%s37146_s11 + $0x4a0] sm:$0xff]  }
 0xad2   :  { %27393 = vmatprep.subr.bf16.mxu1 %v29566_v0  ;;  %v20684_v41 = vadd.f32 %v20683_v5, %v20682_v14  ;;  %v27120_v42 = vpop.f32.mrb[155].mxu1  ;;  %v29266_v14 = vld [vmem:[%s37146_s11 + $0x5d0] sm:$0xff]   ;;  %v29271_v5 = vld [vmem:[%s37146_s11 + $0x4a8] sm:$0xff]  }
 0xad3   :  { %v29272_v43 = vld [vmem:[%s37146_s11 + $0x5e8] sm:$0xff]  }
 0xad4   :  { %27294 = vmatpush3.bf16.msra.mxu0 %v29257_v23  ;;  %v29268_v23 = vld [vmem:[%s37146_s11 + $0x5d8] sm:$0xff]  }
 0xad5   :  { %27394 = vmatpush3.bf16.msra.mxu1 %v29258_v44  ;;  %27295 = vmatprep.subr.bf16.mxu0 %v29566_v0 }
 0xad6   :  { %27395 = vmatprep.subr.bf16.mxu1 %v29566_v0 }
 0xad8   :  { %27296 = vmatpush3.bf16.msra.mxu0 %v29259_v57 }
 0xad9   :  { %27396 = vmatpush3.bf16.msra.mxu1 %v29260_v38  ;;  %27321 = vmatprep.subr.bf16.mxu0 %v29566_v0  ;;  %v29273_v38 = vld [vmem:[%s37146_s11 + $0x4b0] sm:$0xff]  }
 0xada   :  { %27421 = vmatprep.subr.bf16.mxu1 %v29566_v0 }
 0xadb   :  { %27298 = vmatmul.mubr.bf16.vlgmr.msra.gmra.mrb[128].mxu0 %v22672_v26  ;;  %v20687_v26 = vsel %vm6954_vm2, %v35605_v9, 0.0 }
 0xadc   :  { %27322 = vmatpush3.bf16.msra.mxu0 %v29261_v60  ;;  %27398 = vmatmul.mubr.bf16.vlgmr.msra.gmra.mrb[180].mxu1 %v22677_v18  ;;  %v14424_v60 = vadd.f32 %v35615_v32, %v35049_v34  ;;  %v29275_v34 = vld [vmem:[%s37146_s11 + $0x4b8] sm:$0xff]  }
 0xadd   :  { %27422 = vmatpush3.bf16.msra.mxu1 %v29262_v55  ;;  %27323 = vmatprep.subr.bf16.mxu0 %v29566_v0 }
 0xade   :  { %27423 = vmatprep.subr.bf16.mxu1 %v29566_v0  ;;  %27337 = vmatprep.mubr.msk.bf16.mxu0 %vm29567_vm0, %v29566_v0  ;;  %v14592_v9 = vmax.f32 %v14424_v60, 0.0  ;;  %v29288_v60 = vld [vmem:[%s37146_s11 + $0x668] sm:$0xff]  }
 0xadf   :  { %27437 = vmatprep.mubr.msk.bf16.mxu1 %vm29567_vm0, %v29566_v0 }
 0xae0   :  { %27324 = vmatpush3.bf16.msra.mxu0 %v29263_v46  ;;  %v14443_v46 = vadd.f32 %v35615_v32, %v35076_v4  ;;  %v29277_v4 = vld [vmem:[%s37146_s11 + $0x500] sm:$0xff]  }
 0xae1   :  { %27424 = vmatpush3.bf16.msra.mxu1 %v29264_v56  ;;  %27325 = vmatprep.subr.bf16.mxu0 %v29566_v0 }
 0xae2   :  { %27425 = vmatprep.subr.bf16.mxu1 %v29566_v0 }
 0xae4   :  { %27326 = vmatpush3.bf16.msra.mxu0 %v29265_v27 }
 0xae5   :  { %27426 = vmatpush3.bf16.msra.mxu1 %v29266_v14  ;;  %27327 = vmatprep.subr.bf16.mxu0 %v29566_v0  ;;  %v29276_v14 = vld [vmem:[%s37146_s11 + $0x5f8] sm:$0xff]  }
 0xae6   :  { %27427 = vmatprep.subr.bf16.mxu1 %v29566_v0 }
 0xae8   :  { %27328 = vmatpush3.bf16.msra.mxu0 %v29267_v11  ;;  %v14597_v11 = vmax.f32 %v14443_v46, 0.0 }
 0xae9   :  { %27428 = vmatpush3.bf16.msra.mxu1 %v29268_v23  ;;  %27329 = vmatprep.subr.bf16.mxu0 %v29566_v0  ;;  %v22674_v23 = vpack.c.bf16 %v14592_v9, %v14592_v9 }
 0xaea   :  { %27429 = vmatprep.subr.bf16.mxu1 %v29566_v0 }
 0xaec   :  { %27330 = vmatpush3.bf16.msra.mxu0 %v29269_v15  ;;  %v29278_v15 = vld [vmem:[%s37146_s11 + $0x640] sm:$0xff]  }
 0xaed   :  { %27430 = vmatpush3.bf16.msra.mxu1 %v29270_v49  ;;  %27331 = vmatprep.subr.bf16.mxu0 %v29566_v0  ;;  %v22679_v49 = vpack.c.bf16 %v14597_v11, %v14597_v11  ;;  %v20691_v11 = vsel %vm6954_vm2, %v35687_v22, 0.0 }
 0xaee   :  { %v16184_v44 = vpop.f32.mrb[104].mxu0  ;;  %27431 = vmatprep.subr.bf16.mxu1 %v29566_v0 }
 0xaef   :  { %v20685_v47 = vsel %vm6954_vm2, %v16184_v44, 0.0  ;;  %v27059_v53 = vpop.f32.mrb[105].mxu0  ;;  %v35765_v42 = vpop.f32.mrb[156].mxu1  ;;  %v29281_v44 = vld [vmem:[%s37146_s11 + $0x510] sm:$0xff]  }
 0xaf0   :  { %v20686_v57 = vadd.f32 %v20685_v47, %v20684_v41  ;;  %v16187_v50 = vpop.f32.mrb[106].mxu0  ;;  %27332 = vmatpush3.bf16.msra.mxu0 %v29271_v5  ;;  %v27159_v51 = vpop.f32.mrb[157].mxu1  ;;  %v29274_v41 = vld [vmem:[%s37146_s11 + $0x5f0] sm:$0xff]   ;;  %v29279_v5 = vld [vmem:[%s37146_s11 + $0x508] sm:$0xff]   ;;  %v29283_v53 = vld [vmem:[%s37146_s11 + $0x518] sm:$0xff]  }
 0xaf1   :  { %v27060_v55 = vpop.f32.mrb[107].mxu0  ;;  %27432 = vmatpush3.bf16.msra.mxu1 %v29272_v43  ;;  %27333 = vmatprep.subr.bf16.mxu0 %v29566_v0  ;;  %v16627_v18 = vpop.f32.mrb[158].mxu1  ;;  %v29280_v43 = vld [vmem:[%s37146_s11 + $0x648] sm:$0xff]   ;;  %v29282_v47 = vld [vmem:[%s37146_s11 + $0x650] sm:$0xff]   ;;  %v29285_v50 = vld [vmem:[%s37146_s11 + $0x520] sm:$0xff]  }
 0xaf2   :  { %27433 = vmatprep.subr.bf16.mxu1 %v29566_v0  ;;  %v20688_v56 = vadd.f32 %v20687_v26, %v20686_v57  ;;  %v27160_v27 = vpop.f32.mrb[159].mxu1  ;;  %v29284_v57 = vld [vmem:[%s37146_s11 + $0x658] sm:$0xff]   ;;  %v29287_v51 = vld [vmem:[%s37146_s11 + $0x528] sm:$0xff]  }
 0xaf4   :  { %27334 = vmatpush3.bf16.msra.mxu0 %v29273_v38  ;;  %v29286_v38 = vld [vmem:[%s37146_s11 + $0x660] sm:$0xff]  }
 0xaf5   :  { %27434 = vmatpush3.bf16.msra.mxu1 %v29274_v41  ;;  %27335 = vmatprep.subr.bf16.mxu0 %v29566_v0 }
 0xaf6   :  { %27435 = vmatprep.subr.bf16.mxu1 %v29566_v0 }
 0xaf8   :  { %27336 = vmatpush3.bf16.msra.mxu0 %v29275_v34  ;;  %v29289_v34 = vld [vmem:[%s37146_s11 + $0x530] sm:$0xff]  }
 0xaf9   :  { %27436 = vmatpush3.bf16.msra.mxu1 %v29276_v14  ;;  %27361 = vmatprep.subr.bf16.mxu0 %v29566_v0  ;;  %v14432_v14 = vadd.f32 %v35615_v32, %v35073_v28  ;;  %v29291_v28 = vld [vmem:[%s37146_s11 + $0x538] sm:$0xff]  }
 0xafa   :  { %27461 = vmatprep.subr.bf16.mxu1 %v29566_v0 }
 0xafb   :  { %27338 = vmatmul.mubr.bf16.vlgmr.msra.gmra.mrb[132].mxu0 %v22674_v23  ;;  %v14594_v22 = vmax.f32 %v14432_v14, 0.0 }
 0xafc   :  { %27362 = vmatpush3.bf16.msra.mxu0 %v29277_v4  ;;  %27438 = vmatmul.mubr.bf16.vlgmr.msra.gmra.mrb[184].mxu1 %v22679_v49 }
 0xafd   :  { %27462 = vmatpush3.bf16.msra.mxu1 %v29278_v15  ;;  %27363 = vmatprep.subr.bf16.mxu0 %v29566_v0  ;;  %v14451_v15 = vadd.f32 %v35615_v32, %v35101_v25  ;;  %v29293_v25 = vld [vmem:[%s37146_s11 + $0x580] sm:$0xff]  }
 0xafe   :  { %27463 = vmatprep.subr.bf16.mxu1 %v29566_v0  ;;  %27377 = vmatprep.mubr.msk.bf16.mxu0 %vm29567_vm0, %v29566_v0 }
 0xaff   :  { %27477 = vmatprep.mubr.msk.bf16.mxu1 %vm29567_vm0, %v29566_v0 }
 0xb00   :  { %27364 = vmatpush3.bf16.msra.mxu0 %v29279_v5 }
 0xb01   :  { %27464 = vmatpush3.bf16.msra.mxu1 %v29280_v43  ;;  %27365 = vmatprep.subr.bf16.mxu0 %v29566_v0  ;;  %v29292_v43 = vld [vmem:[%s37146_s11 + $0x678] sm:$0xff]  }
 0xb02   :  { %27465 = vmatprep.subr.bf16.mxu1 %v29566_v0 }
 0xb04   :  { %27366 = vmatpush3.bf16.msra.mxu0 %v29281_v44  ;;  %v14599_v44 = vmax.f32 %v14451_v15, 0.0  ;;  %v29305_v15 = vld [vmem:[%s37146_s11 + $0x5b0] sm:$0xff]  }
 0xb05   :  { %27466 = vmatpush3.bf16.msra.mxu1 %v29282_v47  ;;  %27367 = vmatprep.subr.bf16.mxu0 %v29566_v0  ;;  %v22676_v47 = vpack.c.bf16 %v14594_v22, %v14594_v22  ;;  %v20695_v22 = vsel %vm6954_vm2, %v35765_v42, 0.0 }
 0xb06   :  { %27467 = vmatprep.subr.bf16.mxu1 %v29566_v0 }
 0xb08   :  { %27368 = vmatpush3.bf16.msra.mxu0 %v29283_v53  ;;  %v29294_v53 = vld [vmem:[%s37146_s11 + $0x6c0] sm:$0xff]  }
 0xb09   :  { %27468 = vmatpush3.bf16.msra.mxu1 %v29284_v57  ;;  %27369 = vmatprep.subr.bf16.mxu0 %v29566_v0  ;;  %v22681_v57 = vpack.c.bf16 %v14599_v44, %v14599_v44 }
 0xb0a   :  { %27469 = vmatprep.subr.bf16.mxu1 %v29566_v0 }
 0xb0c   :  { %27370 = vmatpush3.bf16.msra.mxu0 %v29285_v50  ;;  %v29295_v50 = vld [vmem:[%s37146_s11 + $0x588] sm:$0xff]  }
 0xb0d   :  { %27470 = vmatpush3.bf16.msra.mxu1 %v29286_v38  ;;  %27371 = vmatprep.subr.bf16.mxu0 %v29566_v0  ;;  %v29296_v38 = vld [vmem:[%s37146_s11 + $0x6c8] sm:$0xff]  }
 0xb0e   :  { %v16360_v26 = vpop.f32.mrb[108].mxu0  ;;  %27471 = vmatprep.subr.bf16.mxu1 %v29566_v0 }
 0xb0f   :  { %v20689_v55 = vsel %vm6954_vm2, %v16360_v26, 0.0  ;;  %v27099_v41 = vpop.f32.mrb[109].mxu0  ;;  %v35842_v18 = vpop.f32.mrb[160].mxu1  ;;  %v29299_v26 = vld [vmem:[%s37146_s11 + $0x598] sm:$0xff]  }
 0xb10   :  { %v20690_v46 = vadd.f32 %v20689_v55, %v20688_v56  ;;  %v16363_v27 = vpop.f32.mrb[110].mxu0  ;;  %27372 = vmatpush3.bf16.msra.mxu0 %v29287_v51  ;;  %v27199_v9 = vpop.f32.mrb[161].mxu1  ;;  %v29290_v56 = vld [vmem:[%s37146_s11 + $0x670] sm:$0xff]   ;;  %v29300_v55 = vld [vmem:[%s37146_s11 + $0x6d8] sm:$0xff]   ;;  %v29301_v41 = vld [vmem:[%s37146_s11 + $0x5a0] sm:$0xff]  }
 0xb11   :  { %v27100_v4 = vpop.f32.mrb[111].mxu0  ;;  %27472 = vmatpush3.bf16.msra.mxu1 %v29288_v60  ;;  %27373 = vmatprep.subr.bf16.mxu0 %v29566_v0  ;;  %v16803_v23 = vpop.f32.mrb[162].mxu1  ;;  %v29297_v51 = vld [vmem:[%s37146_s11 + $0x590] sm:$0xff]   ;;  %v29303_v27 = vld [vmem:[%s37146_s11 + $0x5a8] sm:$0xff]  }
 0xb12   :  { %27473 = vmatprep.subr.bf16.mxu1 %v29566_v0  ;;  %v20692_v49 = vadd.f32 %v20691_v11, %v20690_v46  ;;  %v27200_v5 = vpop.f32.mrb[163].mxu1  ;;  %v29298_v60 = vld [vmem:[%s37146_s11 + $0x6d0] sm:$0xff]   ;;  %v29302_v46 = vld [vmem:[%s37146_s11 + $0x6e0] sm:$0xff]  }
 0xb14   :  { %27374 = vmatpush3.bf16.msra.mxu0 %v29289_v34  ;;  %v29304_v34 = vld [vmem:[%s37146_s11 + $0x6e8] sm:$0xff]  }
 0xb15   :  { %27474 = vmatpush3.bf16.msra.mxu1 %v29290_v56  ;;  %27375 = vmatprep.subr.bf16.mxu0 %v29566_v0 }
 0xb16   :  { %27475 = vmatprep.subr.bf16.mxu1 %v29566_v0 }
 0xb18   :  { %27376 = vmatpush3.bf16.msra.mxu0 %v29291_v28  ;;  %v14440_v28 = vadd.f32 %v35615_v32, %v35067_v59  ;;  %v29307_v59 = vld [vmem:[%s37146_s11 + $0x5b8] sm:$0xff]  }
 0xb19   :  { %27476 = vmatpush3.bf16.msra.mxu1 %v29292_v43  ;;  %27401 = vmatprep.subr.bf16.mxu0 %v29566_v0 }
 0xb1a   :  { %27501 = vmatprep.subr.bf16.mxu1 %v29566_v0  ;;  %v14596_v42 = vmax.f32 %v14440_v28, 0.0 }
 0xb1b   :  { %27378 = vmatmul.mubr.bf16.vlgmr.msra.gmra.mrb[136].mxu0 %v22676_v47 }
 0xb1c   :  { %27402 = vmatpush3.bf16.msra.mxu0 %v29293_v25  ;;  %27478 = vmatmul.mubr.bf16.vlgmr.msra.gmra.mrb[188].mxu1 %v22681_v57  ;;  %v14459_v25 = vadd.f32 %v35615_v32, %v35096_v7  ;;  %v29308_v57 = vld [vmem:[%s37146_s11 + $0x6f8] sm:$0xff]   ;;  %v29309_v7 = vld [vmem:[%s37146_s11 + $0x600] sm:$0xff]  }
 0xb1d   :  { %27502 = vmatpush3.bf16.msra.mxu1 %v29294_v53  ;;  %27403 = vmatprep.subr.bf16.mxu0 %v29566_v0 }
 0xb1e   :  { %27503 = vmatprep.subr.bf16.mxu1 %v29566_v0  ;;  %27417 = vmatprep.mubr.msk.bf16.mxu0 %vm29567_vm0, %v29566_v0 }
 0xb1f   :  { %27517 = vmatprep.mubr.msk.bf16.mxu1 %vm29567_vm0, %v29566_v0 }
 0xb20   :  { %27404 = vmatpush3.bf16.msra.mxu0 %v29295_v50  ;;  %v14601_v50 = vmax.f32 %v14459_v25, 0.0  ;;  %v14448_v25 = vadd.f32 %v35615_v32, %v35093_v24  ;;  %v29323_v24 = vld [vmem:[%s37146_s11 + $0x638] sm:$0xff]  }
 0xb21   :  { %27504 = vmatpush3.bf16.msra.mxu1 %v29296_v38  ;;  %27405 = vmatprep.subr.bf16.mxu0 %v29566_v0  ;;  %v22678_v38 = vpack.c.bf16 %v14596_v42, %v14596_v42 }
 0xb22   :  { %27505 = vmatprep.subr.bf16.mxu1 %v29566_v0 }
 0xb24   :  { %27406 = vmatpush3.bf16.msra.mxu0 %v29297_v51  ;;  %v29310_v51 = vld [vmem:[%s37146_s11 + $0x740] sm:$0xff]  }
 0xb25   :  { %27506 = vmatpush3.bf16.msra.mxu1 %v29298_v60  ;;  %27407 = vmatprep.subr.bf16.mxu0 %v29566_v0  ;;  %v22683_v60 = vpack.c.bf16 %v14601_v50, %v14601_v50 }
 0xb26   :  { %27507 = vmatprep.subr.bf16.mxu1 %v29566_v0 }
 0xb28   :  { %27408 = vmatpush3.bf16.msra.mxu0 %v29299_v26  ;;  %v29311_v26 = vld [vmem:[%s37146_s11 + $0x608] sm:$0xff]  }
 0xb29   :  { %27508 = vmatpush3.bf16.msra.mxu1 %v29300_v55  ;;  %27409 = vmatprep.subr.bf16.mxu0 %v29566_v0  ;;  %v29312_v55 = vld [vmem:[%s37146_s11 + $0x748] sm:$0xff]  }
 0xb2a   :  { %27509 = vmatprep.subr.bf16.mxu1 %v29566_v0 }
 0xb2c   :  { %27410 = vmatpush3.bf16.msra.mxu0 %v29301_v41  ;;  %v29313_v41 = vld [vmem:[%s37146_s11 + $0x610] sm:$0xff]  }
 0xb2d   :  { %27510 = vmatpush3.bf16.msra.mxu1 %v29302_v46  ;;  %27411 = vmatprep.subr.bf16.mxu0 %v29566_v0  ;;  %v29314_v46 = vld [vmem:[%s37146_s11 + $0x750] sm:$0xff]  }
 0xb2e   :  { %v16536_v9 = vpop.f32.mrb[112].mxu0  ;;  %27511 = vmatprep.subr.bf16.mxu1 %v29566_v0 }
 0xb2f   :  { %v20693_v14 = vsel %vm6954_vm2, %v16536_v9, 0.0  ;;  %v27139_v11 = vpop.f32.mrb[113].mxu0  ;;  %v35919_v4 = vpop.f32.mrb[164].mxu1  ;;  %v29317_v9 = vld [vmem:[%s37146_s11 + $0x620] sm:$0xff]  }
 0xb30   :  { %v20694_v56 = vadd.f32 %v20693_v14, %v20692_v49  ;;  %v16539_v23 = vpop.f32.mrb[114].mxu0  ;;  %27412 = vmatpush3.bf16.msra.mxu0 %v29303_v27  ;;  %v27239_v5 = vpop.f32.mrb[165].mxu1  ;;  %v29306_v49 = vld [vmem:[%s37146_s11 + $0x6f0] sm:$0xff]   ;;  %v29315_v27 = vld [vmem:[%s37146_s11 + $0x618] sm:$0xff]   ;;  %v29318_v14 = vld [vmem:[%s37146_s11 + $0x760] sm:$0xff]  }
 0xb31   :  { %v27140_v43 = vpop.f32.mrb[115].mxu0  ;;  %27512 = vmatpush3.bf16.msra.mxu1 %v29304_v34  ;;  %27413 = vmatprep.subr.bf16.mxu0 %v29566_v0  ;;  %v16979_v44 = vpop.f32.mrb[166].mxu1  ;;  %v29316_v34 = vld [vmem:[%s37146_s11 + $0x758] sm:$0xff]   ;;  %v29319_v11 = vld [vmem:[%s37146_s11 + $0x628] sm:$0xff]  }
 0xb32   :  { %27513 = vmatprep.subr.bf16.mxu1 %v29566_v0  ;;  %v20696_v47 = vadd.f32 %v20695_v22, %v20694_v56  ;;  %v27240_v53 = vpop.f32.mrb[167].mxu1  ;;  %v29320_v56 = vld [vmem:[%s37146_s11 + $0x768] sm:$0xff]   ;;  %v29321_v44 = vld [vmem:[%s37146_s11 + $0x630] sm:$0xff]  }
 0xb33   :  { %v20699_v53 = vsel %vm6954_vm2, %v35842_v18, 0.0  ;;  %v14598_v18 = vmax.f32 %v14448_v25, 0.0 }
 0xb34   :  { %27414 = vmatpush3.bf16.msra.mxu0 %v29305_v15 }
 0xb35   :  { %27514 = vmatpush3.bf16.msra.mxu1 %v29306_v49  ;;  %27415 = vmatprep.subr.bf16.mxu0 %v29566_v0 }
 0xb36   :  { %27515 = vmatprep.subr.bf16.mxu1 %v29566_v0 }
 0xb38   :  { %27416 = vmatpush3.bf16.msra.mxu0 %v29307_v59 }
 0xb39   :  { %27516 = vmatpush3.bf16.msra.mxu1 %v29308_v57  ;;  %27441 = vmatprep.subr.bf16.mxu0 %v29566_v0  ;;  %v14467_v57 = vadd.f32 %v35615_v32, %v35114_v8  ;;  %v29325_v8 = vld [vmem:[%s37146_s11 + $0x680] sm:$0xff]  }
 0xb3a   :  { %27541 = vmatprep.subr.bf16.mxu1 %v29566_v0 }
 0xb3b   :  { %27418 = vmatmul.mubr.bf16.vlgmr.msra.gmra.mrb[140].mxu0 %v22678_v38  ;;  %v29324_v38 = vld [vmem:[%s37146_s11 + $0x778] sm:$0xff]  }
 0xb3c   :  { %27442 = vmatpush3.bf16.msra.mxu0 %v29309_v7  ;;  %27518 = vmatmul.mubr.bf16.vlgmr.msra.gmra.mrb[192].mxu1 %v22683_v60  ;;  %v22680_v60 = vpack.c.bf16 %v14598_v18, %v14598_v18 }
 0xb3d   :  { %27542 = vmatpush3.bf16.msra.mxu1 %v29310_v51  ;;  %27443 = vmatprep.subr.bf16.mxu0 %v29566_v0  ;;  %v14603_v51 = vmax.f32 %v14467_v57, 0.0 }
 0xb3e   :  { %27543 = vmatprep.subr.bf16.mxu1 %v29566_v0  ;;  %27457 = vmatprep.mubr.msk.bf16.mxu0 %vm29567_vm0, %v29566_v0 }
 0xb3f   :  { %27557 = vmatprep.mubr.msk.bf16.mxu1 %vm29567_vm0, %v29566_v0 }
 0xb40   :  { %27444 = vmatpush3.bf16.msra.mxu0 %v29311_v26  ;;  %v29326_v26 = vld [vmem:[%s37146_s11 + $0x7c0] sm:$0xff]  }
 0xb41   :  { %27544 = vmatpush3.bf16.msra.mxu1 %v29312_v55  ;;  %27445 = vmatprep.subr.bf16.mxu0 %v29566_v0  ;;  %v22685_v55 = vpack.c.bf16 %v14603_v51, %v14603_v51  ;;  %v29340_v51 = vld [vmem:[%s37146_s11 + $0x7f8] sm:$0xff]  }
 0xb42   :  { %27545 = vmatprep.subr.bf16.mxu1 %v29566_v0 }
 0xb44   :  { %27446 = vmatpush3.bf16.msra.mxu0 %v29313_v41  ;;  %v29327_v41 = vld [vmem:[%s37146_s11 + $0x688] sm:$0xff]  }
 0xb45   :  { %27546 = vmatpush3.bf16.msra.mxu1 %v29314_v46  ;;  %27447 = vmatprep.subr.bf16.mxu0 %v29566_v0  ;;  %v29328_v46 = vld [vmem:[%s37146_s11 + $0x7c8] sm:$0xff]  }
 0xb46   :  { %27547 = vmatprep.subr.bf16.mxu1 %v29566_v0 }
 0xb48   :  { %27448 = vmatpush3.bf16.msra.mxu0 %v29315_v27  ;;  %v29329_v27 = vld [vmem:[%s37146_s11 + $0x690] sm:$0xff]  }
 0xb49   :  { %27548 = vmatpush3.bf16.msra.mxu1 %v29316_v34  ;;  %27449 = vmatprep.subr.bf16.mxu0 %v29566_v0  ;;  %v29330_v34 = vld [vmem:[%s37146_s11 + $0x7d0] sm:$0xff]  }
 0xb4a   :  { %27549 = vmatprep.subr.bf16.mxu1 %v29566_v0 }
 0xb4c   :  { %27450 = vmatpush3.bf16.msra.mxu0 %v29317_v9  ;;  %v29331_v9 = vld [vmem:[%s37146_s11 + $0x698] sm:$0xff]  }
 0xb4d   :  { %27550 = vmatpush3.bf16.msra.mxu1 %v29318_v14  ;;  %27451 = vmatprep.subr.bf16.mxu0 %v29566_v0  ;;  %v29332_v14 = vld [vmem:[%s37146_s11 + $0x7d8] sm:$0xff]  }
 0xb4e   :  { %v16712_v23 = vpop.f32.mrb[116].mxu0  ;;  %27551 = vmatprep.subr.bf16.mxu1 %v29566_v0 }
 0xb4f   :  { %v20697_v15 = vsel %vm6954_vm2, %v16712_v23, 0.0  ;;  %v27179_v5 = vpop.f32.mrb[117].mxu0  ;;  %v35996_v28 = vpop.f32.mrb[168].mxu1  ;;  %v29335_v23 = vld [vmem:[%s37146_s11 + $0x6a8] sm:$0xff]  }
 0xb50   :  { %v20698_v22 = vadd.f32 %v20697_v15, %v20696_v47  ;;  %v16715_v43 = vpop.f32.mrb[118].mxu0  ;;  %27452 = vmatpush3.bf16.msra.mxu0 %v29319_v11  ;;  %v27279_v49 = vpop.f32.mrb[169].mxu1  ;;  %v29322_v47 = vld [vmem:[%s37146_s11 + $0x770] sm:$0xff]   ;;  %v29333_v11 = vld [vmem:[%s37146_s11 + $0x6a0] sm:$0xff]   ;;  %v29336_v15 = vld [vmem:[%s37146_s11 + $0x7e8] sm:$0xff]  }
 0xb51   :  { %v27180_v59 = vpop.f32.mrb[119].mxu0  ;;  %27552 = vmatpush3.bf16.msra.mxu1 %v29320_v56  ;;  %v17155_v42 = vpop.f32.mrb[170].mxu1  ;;  %27453 = vmatprep.subr.bf16.mxu0 %v29566_v0  ;;  %v29334_v56 = vld [vmem:[%s37146_s11 + $0x7e0] sm:$0xff]  }
 0xb52   :  { %v27280_v50 = vpop.f32.mrb[171].mxu1  ;;  %27553 = vmatprep.subr.bf16.mxu1 %v29566_v0  ;;  %v20700_v7 = vadd.f32 %v20699_v53, %v20698_v22  ;;  %v29337_v59 = vld [vmem:[%s37146_s11 + $0x6b0] sm:$0xff]   ;;  %v14456_v42 = vadd.f32 %v35615_v32, %v35085_v10  ;;  %v29339_v10 = vld [vmem:[%s37146_s11 + $0x6b8] sm:$0xff]  }
 0xb54   :  { %27454 = vmatpush3.bf16.msra.mxu0 %v29321_v44 }
 0xb55   :  { %27554 = vmatpush3.bf16.msra.mxu1 %v29322_v47  ;;  %27455 = vmatprep.subr.bf16.mxu0 %v29566_v0  ;;  %v20703_v47 = vsel %vm6954_vm2, %v35919_v4, 0.0  ;;  %v14600_v4 = vmax.f32 %v14456_v42, 0.0  ;;  %v29353_v42 = vld [vmem:[%s37146_s11 + $0x730] sm:$0xff]  }
 0xb56   :  { %27555 = vmatprep.subr.bf16.mxu1 %v29566_v0 }
 0xb58   :  { %27456 = vmatpush3.bf16.msra.mxu0 %v29323_v24  ;;  %v14475_v24 = vadd.f32 %v35615_v32, %v35112_v58  ;;  %v29341_v58 = vld [vmem:[%s37146_s11 + $0x700] sm:$0xff]  }
 0xb59   :  { %27556 = vmatpush3.bf16.msra.mxu1 %v29324_v38  ;;  %27481 = vmatprep.subr.bf16.mxu0 %v29566_v0 }
 0xb5a   :  { %27581 = vmatprep.subr.bf16.mxu1 %v29566_v0 }
 0xb5b   :  { %27458 = vmatmul.mubr.bf16.vlgmr.msra.gmra.mrb[144].mxu0 %v22680_v60  ;;  %v22682_v60 = vpack.c.bf16 %v14600_v4, %v14600_v4  ;;  %v29356_v4 = vld [vmem:[%s37146_s11 + $0x878] sm:$0xff]  }
 0xb5c   :  { %27482 = vmatpush3.bf16.msra.mxu0 %v29325_v8  ;;  %27558 = vmatmul.mubr.bf16.vlgmr.msra.gmra.mrb[196].mxu1 %v22685_v55  ;;  %v14605_v8 = vmax.f32 %v14475_v24, 0.0  ;;  %v29354_v24 = vld [vmem:[%s37146_s11 + $0x870] sm:$0xff]  }
 0xb5d   :  { %27582 = vmatpush3.bf16.msra.mxu1 %v29326_v26  ;;  %27483 = vmatprep.subr.bf16.mxu0 %v29566_v0  ;;  %v29342_v26 = vld [vmem:[%s37146_s11 + $0x840] sm:$0xff]  }
 0xb5e   :  { %27583 = vmatprep.subr.bf16.mxu1 %v29566_v0  ;;  %27497 = vmatprep.mubr.msk.bf16.mxu0 %vm29567_vm0, %v29566_v0  ;;  %v22687_v55 = vpack.c.bf16 %v14605_v8, %v14605_v8  ;;  %v29358_v8 = vld [vmem:[%s37146_s11 + $0x8c0] sm:$0xff]  }
 0xb5f   :  { %27597 = vmatprep.mubr.msk.bf16.mxu1 %vm29567_vm0, %v29566_v0 }
 0xb60   :  { %27484 = vmatpush3.bf16.msra.mxu0 %v29327_v41  ;;  %v29343_v41 = vld [vmem:[%s37146_s11 + $0x708] sm:$0xff]  }
 0xb61   :  { %27584 = vmatpush3.bf16.msra.mxu1 %v29328_v46  ;;  %27485 = vmatprep.subr.bf16.mxu0 %v29566_v0  ;;  %v29344_v46 = vld [vmem:[%s37146_s11 + $0x848] sm:$0xff]  }
 0xb62   :  { %27585 = vmatprep.subr.bf16.mxu1 %v29566_v0 }
 0xb64   :  { %27486 = vmatpush3.bf16.msra.mxu0 %v29329_v27  ;;  %v29345_v27 = vld [vmem:[%s37146_s11 + $0x710] sm:$0xff]  }
 0xb65   :  { %27586 = vmatpush3.bf16.msra.mxu1 %v29330_v34  ;;  %27487 = vmatprep.subr.bf16.mxu0 %v29566_v0  ;;  %v29346_v34 = vld [vmem:[%s37146_s11 + $0x850] sm:$0xff]  }
 0xb66   :  { %27587 = vmatprep.subr.bf16.mxu1 %v29566_v0 }
 0xb68   :  { %27488 = vmatpush3.bf16.msra.mxu0 %v29331_v9  ;;  %v29347_v9 = vld [vmem:[%s37146_s11 + $0x718] sm:$0xff]  }
 0xb69   :  { %27588 = vmatpush3.bf16.msra.mxu1 %v29332_v14  ;;  %27489 = vmatprep.subr.bf16.mxu0 %v29566_v0  ;;  %v29348_v14 = vld [vmem:[%s37146_s11 + $0x858] sm:$0xff]  }
 0xb6a   :  { %27589 = vmatprep.subr.bf16.mxu1 %v29566_v0 }
 0xb6c   :  { %27490 = vmatpush3.bf16.msra.mxu0 %v29333_v11  ;;  %v29349_v11 = vld [vmem:[%s37146_s11 + $0x720] sm:$0xff]  }
 0xb6d   :  { %27590 = vmatpush3.bf16.msra.mxu1 %v29334_v56  ;;  %27491 = vmatprep.subr.bf16.mxu0 %v29566_v0  ;;  %v29350_v56 = vld [vmem:[%s37146_s11 + $0x860] sm:$0xff]  }
 0xb6e   :  { %v16888_v5 = vpop.f32.mrb[120].mxu0  ;;  %27591 = vmatprep.subr.bf16.mxu1 %v29566_v0 }
 0xb6f   :  { %v20701_v22 = vsel %vm6954_vm2, %v16888_v5, 0.0  ;;  %v27219_v43 = vpop.f32.mrb[121].mxu0  ;;  %v36073_v49 = vpop.f32.mrb[172].mxu1 }
 0xb70   :  { %v20702_v44 = vadd.f32 %v20701_v22, %v20700_v7  ;;  %v16891_v25 = vpop.f32.mrb[122].mxu0  ;;  %v27319_v53 = vpop.f32.mrb[173].mxu1  ;;  %27492 = vmatpush3.bf16.msra.mxu0 %v29335_v23  ;;  %v29338_v7 = vld [vmem:[%s37146_s11 + $0x7f0] sm:$0xff]   ;;  %v29351_v23 = vld [vmem:[%s37146_s11 + $0x728] sm:$0xff]  }
 0xb71   :  { %v27220_v57 = vpop.f32.mrb[123].mxu0  ;;  %v17331_v50 = vpop.f32.mrb[174].mxu1  ;;  %27592 = vmatpush3.bf16.msra.mxu1 %v29336_v15  ;;  %27493 = vmatprep.subr.bf16.mxu0 %v29566_v0  ;;  %v29352_v15 = vld [vmem:[%s37146_s11 + $0x868] sm:$0xff]  }
 0xb72   :  { %v27320_v18 = vpop.f32.mrb[175].mxu1  ;;  %27593 = vmatprep.subr.bf16.mxu1 %v29566_v0  ;;  %v20704_v38 = vadd.f32 %v20703_v47, %v20702_v44  ;;  %v14464_v47 = vadd.f32 %v35615_v32, %v35109_v1  ;;  %v20707_v57 = vsel %vm6954_vm2, %v35996_v28, 0.0  ;;  %v29355_v1 = vld [vmem:[%s37146_s11 + $0x738] sm:$0xff]  }
 0xb73   :  { %v14483_v18 = vadd.f32 %v35615_v32, %v35130_v35  ;;  %v29357_v35 = vld [vmem:[%s37146_s11 + $0x780] sm:$0xff]  }
 0xb74   :  { %27494 = vmatpush3.bf16.msra.mxu0 %v29337_v59  ;;  %v14602_v28 = vmax.f32 %v14464_v47, 0.0  ;;  %v20711_v47 = vsel %vm6954_vm2, %v36073_v49, 0.0 }
 0xb75   :  { %27594 = vmatpush3.bf16.msra.mxu1 %v29338_v7  ;;  %27495 = vmatprep.subr.bf16.mxu0 %v29566_v0 }
 0xb76   :  { %27595 = vmatprep.subr.bf16.mxu1 %v29566_v0  ;;  %v22684_v32 = vpack.c.bf16 %v14602_v28, %v14602_v28 }
 0xb78   :  { %27496 = vmatpush3.bf16.msra.mxu0 %v29339_v10 }
 0xb79   :  { %27596 = vmatpush3.bf16.msra.mxu1 %v29340_v51  ;;  %27521 = vmatprep.subr.bf16.mxu0 %v29566_v0  ;;  %v14607_v51 = vmax.f32 %v14483_v18, 0.0 }
 0xb7a   :  { %27621 = vmatprep.subr.bf16.mxu1 %v29566_v0 }
 0xb7b   :  { %27498 = vmatmul.mubr.bf16.vlgmr.msra.gmra.mrb[148].mxu0 %v22682_v60  ;;  %v29359_v60 = vld [vmem:[%s37146_s11 + $0x788] sm:$0xff]  }
 0xb7c   :  { %27522 = vmatpush3.bf16.msra.mxu0 %v29341_v58  ;;  %27598 = vmatmul.mubr.bf16.vlgmr.msra.gmra.mrb[200].mxu1 %v22687_v55  ;;  %v22689_v58 = vpack.c.bf16 %v14607_v51, %v14607_v51  ;;  %v29361_v55 = vld [vmem:[%s37146_s11 + $0x790] sm:$0xff]  }
 0xb7d   :  { %27622 = vmatpush3.bf16.msra.mxu1 %v29342_v26  ;;  %27523 = vmatprep.subr.bf16.mxu0 %v29566_v0  ;;  %v29360_v26 = vld [vmem:[%s37146_s11 + $0x8c8] sm:$0xff]  }
 0xb7e   :  { %27623 = vmatprep.subr.bf16.mxu1 %v29566_v0  ;;  %27537 = vmatprep.mubr.msk.bf16.mxu0 %vm29567_vm0, %v29566_v0 }
 0xb7f   :  { %27637 = vmatprep.mubr.msk.bf16.mxu1 %vm29567_vm0, %v29566_v0 }
 0xb80   :  { %27524 = vmatpush3.bf16.msra.mxu0 %v29343_v41  ;;  %v29362_v41 = vld [vmem:[%s37146_s11 + $0x8d0] sm:$0xff]  }
 0xb81   :  { %27624 = vmatpush3.bf16.msra.mxu1 %v29344_v46  ;;  %27525 = vmatprep.subr.bf16.mxu0 %v29566_v0  ;;  %v29363_v46 = vld [vmem:[%s37146_s11 + $0x798] sm:$0xff]  }
 0xb82   :  { %27625 = vmatprep.subr.bf16.mxu1 %v29566_v0 }
 0xb84   :  { %27526 = vmatpush3.bf16.msra.mxu0 %v29345_v27  ;;  %v29364_v27 = vld [vmem:[%s37146_s11 + $0x8d8] sm:$0xff]  }
 0xb85   :  { %27626 = vmatpush3.bf16.msra.mxu1 %v29346_v34  ;;  %27527 = vmatprep.subr.bf16.mxu0 %v29566_v0  ;;  %v29365_v34 = vld [vmem:[%s37146_s11 + $0x7a0] sm:$0xff]  }
 0xb86   :  { %27627 = vmatprep.subr.bf16.mxu1 %v29566_v0 }
 0xb88   :  { %27528 = vmatpush3.bf16.msra.mxu0 %v29347_v9  ;;  %v29366_v9 = vld [vmem:[%s37146_s11 + $0x8e0] sm:$0xff]  }
 0xb89   :  { %27628 = vmatpush3.bf16.msra.mxu1 %v29348_v14  ;;  %27529 = vmatprep.subr.bf16.mxu0 %v29566_v0  ;;  %v29367_v14 = vld [vmem:[%s37146_s11 + $0x7a8] sm:$0xff]  }
 0xb8a   :  { %27629 = vmatprep.subr.bf16.mxu1 %v29566_v0 }
 0xb8c   :  { %27530 = vmatpush3.bf16.msra.mxu0 %v29349_v11  ;;  %v29368_v11 = vld [vmem:[%s37146_s11 + $0x8e8] sm:$0xff]  }
 0xb8d   :  { %27630 = vmatpush3.bf16.msra.mxu1 %v29350_v56  ;;  %27531 = vmatprep.subr.bf16.mxu0 %v29566_v0 }
 0xb8e   :  { %v17064_v5 = vpop.f32.mrb[124].mxu0  ;;  %27631 = vmatprep.subr.bf16.mxu1 %v29566_v0 }
 0xb8f   :  { %v20705_v22 = vsel %vm6954_vm2, %v17064_v5, 0.0  ;;  %v27259_v43 = vpop.f32.mrb[125].mxu0  ;;  %v36150_v44 = vpop.f32.mrb[176].mxu1 }
 0xb90   :  { %v20706_v25 = vadd.f32 %v20705_v22, %v20704_v38  ;;  %v17067_v53 = vpop.f32.mrb[126].mxu0  ;;  %v27359_v59 = vpop.f32.mrb[177].mxu1  ;;  %27532 = vmatpush3.bf16.msra.mxu0 %v29351_v23 }
 0xb91   :  { %v27260_v50 = vpop.f32.mrb[127].mxu0  ;;  %v17507_v7 = vpop.f32.mrb[178].mxu1  ;;  %27632 = vmatpush3.bf16.msra.mxu1 %v29352_v15  ;;  %27533 = vmatprep.subr.bf16.mxu0 %v29566_v0  ;;  %v29369_v53 = vld [vmem:[%s37146_s11 + $0x7b0] sm:$0xff]   ;;  %v36235_v59 = vld [vmem:[%s37147_s8] ss:$0 sm:$0xff] }
 0xb92   :  { %v27360_v38 = vpop.f32.mrb[179].mxu1  ;;  %27633 = vmatprep.subr.bf16.mxu1 %v29566_v0  ;;  %v20708_v10 = vadd.f32 %v20707_v57, %v20706_v25  ;;  %v29370_v7 = vld [vmem:[%s37146_s11 + $0x8f0] sm:$0xff]  }
 0xb94   :  { %27534 = vmatpush3.bf16.msra.mxu0 %v29353_v42  ;;  %v14472_v42 = vadd.f32 %v36235_v59, %v35103_v63  ;;  %v29371_v63 = vld [vmem:[%s37146_s11 + $0x7b8] sm:$0xff]  }
 0xb95   :  { %27634 = vmatpush3.bf16.msra.mxu1 %v29354_v24  ;;  %27535 = vmatprep.subr.bf16.mxu0 %v29566_v0  ;;  %v14491_v24 = vadd.f32 %v36235_v59, %v35128_v45  ;;  %v29373_v45 = vld [vmem:[%s37146_s11 + $0x800] sm:$0xff]  }
 0xb96   :  { %27635 = vmatprep.subr.bf16.mxu1 %v29566_v0  ;;  %v14604_v49 = vmax.f32 %v14472_v42, 0.0 }
 0xb98   :  { %27536 = vmatpush3.bf16.msra.mxu0 %v29355_v1  ;;  %v14609_v1 = vmax.f32 %v14491_v24, 0.0  ;;  %v22686_v28 = vpack.c.bf16 %v14604_v49, %v14604_v49  ;;  %v29388_v24 = vld [vmem:[%s37146_s11 + $0x978] sm:$0xff]  }
 0xb99   :  { %27636 = vmatpush3.bf16.msra.mxu1 %v29356_v4  ;;  %27561 = vmatprep.subr.bf16.mxu0 %v29566_v0  ;;  %v29374_v4 = vld [vmem:[%s37146_s11 + $0x940] sm:$0xff]  }
 0xb9a   :  { %27661 = vmatprep.subr.bf16.mxu1 %v29566_v0  ;;  %v22691_v51 = vpack.c.bf16 %v14609_v1, %v14609_v1  ;;  %v29392_v1 = vld [vmem:[%s37146_s11 + $0x9c8] sm:$0xff]  }
 0xb9b   :  { %27538 = vmatmul.mubr.bf16.vlgmr.msra.gmra.mrb[152].mxu0 %v22684_v32  ;;  %v29376_v32 = vld [vmem:[%s37146_s11 + $0x948] sm:$0xff]  }
 0xb9c   :  { %27562 = vmatpush3.bf16.msra.mxu0 %v29357_v35  ;;  %27638 = vmatmul.mubr.bf16.vlgmr.msra.gmra.mrb[204].mxu1 %v22689_v58  ;;  %v29375_v35 = vld [vmem:[%s37146_s11 + $0x808] sm:$0xff]   ;;  %v29378_v58 = vld [vmem:[%s37146_s11 + $0x950] sm:$0xff]  }
 0xb9d   :  { %27662 = vmatpush3.bf16.msra.mxu1 %v29358_v8  ;;  %27563 = vmatprep.subr.bf16.mxu0 %v29566_v0  ;;  %v29377_v8 = vld [vmem:[%s37146_s11 + $0x810] sm:$0xff]  }
 0xb9e   :  { %27663 = vmatprep.subr.bf16.mxu1 %v29566_v0  ;;  %27577 = vmatprep.mubr.msk.bf16.mxu0 %vm29567_vm0, %v29566_v0 }
 0xb9f   :  { %27677 = vmatprep.mubr.msk.bf16.mxu1 %vm29567_vm0, %v29566_v0 }
 0xba0   :  { %27564 = vmatpush3.bf16.msra.mxu0 %v29359_v60  ;;  %v29379_v60 = vld [vmem:[%s37146_s11 + $0x818] sm:$0xff]  }
 0xba1   :  { %27664 = vmatpush3.bf16.msra.mxu1 %v29360_v26  ;;  %27565 = vmatprep.subr.bf16.mxu0 %v29566_v0  ;;  %v29380_v26 = vld [vmem:[%s37146_s11 + $0x958] sm:$0xff]  }
 0xba2   :  { %27665 = vmatprep.subr.bf16.mxu1 %v29566_v0 }
 0xba4   :  { %27566 = vmatpush3.bf16.msra.mxu0 %v29361_v55  ;;  %v29381_v55 = vld [vmem:[%s37146_s11 + $0x820] sm:$0xff]  }
 0xba5   :  { %27666 = vmatpush3.bf16.msra.mxu1 %v29362_v41  ;;  %27567 = vmatprep.subr.bf16.mxu0 %v29566_v0  ;;  %v29382_v41 = vld [vmem:[%s37146_s11 + $0x960] sm:$0xff]  }
 0xba6   :  { %27667 = vmatprep.subr.bf16.mxu1 %v29566_v0 }
 0xba8   :  { %27568 = vmatpush3.bf16.msra.mxu0 %v29363_v46  ;;  %v29383_v46 = vld [vmem:[%s37146_s11 + $0x828] sm:$0xff]  }
 0xba9   :  { %27668 = vmatpush3.bf16.msra.mxu1 %v29364_v27  ;;  %27569 = vmatprep.subr.bf16.mxu0 %v29566_v0  ;;  %v29384_v27 = vld [vmem:[%s37146_s11 + $0x968] sm:$0xff]  }
 0xbaa   :  { %27669 = vmatprep.subr.bf16.mxu1 %v29566_v0 }
 0xbac   :  { %27570 = vmatpush3.bf16.msra.mxu0 %v29365_v34 }
 0xbad   :  { %27670 = vmatpush3.bf16.msra.mxu1 %v29366_v9  ;;  %27571 = vmatprep.subr.bf16.mxu0 %v29566_v0 }
 0xbae   :  { %v17240_v56 = vpop.f32.mrb[128].mxu0  ;;  %27671 = vmatprep.subr.bf16.mxu1 %v29566_v0 }
 0xbaf   :  { %v20709_v23 = vsel %vm6954_vm2, %v17240_v56, 0.0  ;;  %v27299_v15 = vpop.f32.mrb[129].mxu0  ;;  %v36227_v5 = vpop.f32.mrb[180].mxu1 }
 0xbb0   :  { %v20710_v22 = vadd.f32 %v20709_v23, %v20708_v10  ;;  %v17243_v43 = vpop.f32.mrb[130].mxu0  ;;  %v27399_v25 = vpop.f32.mrb[181].mxu1  ;;  %27572 = vmatpush3.bf16.msra.mxu0 %v29367_v14  ;;  %v29372_v10 = vld [vmem:[%s37146_s11 + $0x8f8] sm:$0xff]  }
 0xbb1   :  { %v27300_v57 = vpop.f32.mrb[131].mxu0  ;;  %v17683_v50 = vpop.f32.mrb[182].mxu1  ;;  %27672 = vmatpush3.bf16.msra.mxu1 %v29368_v11  ;;  %27573 = vmatprep.subr.bf16.mxu0 %v29566_v0  ;;  %v14480_v43 = vadd.f32 %v36235_v59, %v35125_v12  ;;  %v20715_v25 = vsel %vm6954_vm2, %v36150_v44, 0.0  ;;  %v29387_v12 = vld [vmem:[%s37146_s11 + $0x838] sm:$0xff]  }
 0xbb2   :  { %v27400_v18 = vpop.f32.mrb[183].mxu1  ;;  %27673 = vmatprep.subr.bf16.mxu1 %v29566_v0  ;;  %v20712_v38 = vadd.f32 %v20711_v47, %v20710_v22  ;;  %v29385_v22 = vld [vmem:[%s37146_s11 + $0x830] sm:$0xff]   ;;  %v14499_v57 = vadd.f32 %v36235_v59, %v35150_v31  ;;  %v29389_v31 = vld [vmem:[%s37146_s11 + $0x880] sm:$0xff]  }
 0xbb3   :  { %v29386_v47 = vld [vmem:[%s37146_s11 + $0x970] sm:$0xff]   ;;  %v14606_v44 = vmax.f32 %v14480_v43, 0.0  ;;  %v14507_v43 = vadd.f32 %v36235_v59, %v35146_v29  ;;  %v29405_v29 = vld [vmem:[%s37146_s11 + $0x900] sm:$0xff]  }
 0xbb4   :  { %27574 = vmatpush3.bf16.msra.mxu0 %v29369_v53  ;;  %v14611_v18 = vmax.f32 %v14499_v57, 0.0 }
 0xbb5   :  { %27674 = vmatpush3.bf16.msra.mxu1 %v29370_v7  ;;  %27575 = vmatprep.subr.bf16.mxu0 %v29566_v0 }
 0xbb6   :  { %27675 = vmatprep.subr.bf16.mxu1 %v29566_v0  ;;  %v22693_v49 = vpack.c.bf16 %v14611_v18, %v14611_v18  ;;  %v29410_v18 = vld [vmem:[%s37146_s11 + $0xa50] sm:$0xff]  }
 0xbb8   :  { %27576 = vmatpush3.bf16.msra.mxu0 %v29371_v63  ;;  %v29390_v63 = vld [vmem:[%s37146_s11 + $0x9c0] sm:$0xff]  }
 0xbb9   :  { %27676 = vmatpush3.bf16.msra.mxu1 %v29372_v10  ;;  %27601 = vmatprep.subr.bf16.mxu0 %v29566_v0  ;;  %v29391_v10 = vld [vmem:[%s37146_s11 + $0x888] sm:$0xff]  }
 0xbba   :  { %27701 = vmatprep.subr.bf16.mxu1 %v29566_v0 }
 0xbbb   :  { %27578 = vmatmul.mubr.bf16.vlgmr.msra.gmra.mrb[156].mxu0 %v22686_v28  ;;  %v29394_v28 = vld [vmem:[%s37146_s11 + $0x9d0] sm:$0xff]  }
 0xbbc   :  { %27602 = vmatpush3.bf16.msra.mxu0 %v29373_v45  ;;  %27678 = vmatmul.mubr.bf16.vlgmr.msra.gmra.mrb[208].mxu1 %v22691_v51  ;;  %v29393_v45 = vld [vmem:[%s37146_s11 + $0x890] sm:$0xff]   ;;  %v29396_v51 = vld [vmem:[%s37146_s11 + $0x9d8] sm:$0xff]  }
 0xbbd   :  { %27702 = vmatpush3.bf16.msra.mxu1 %v29374_v4  ;;  %27603 = vmatprep.subr.bf16.mxu0 %v29566_v0  ;;  %v29395_v4 = vld [vmem:[%s37146_s11 + $0x898] sm:$0xff]  }
 0xbbe   :  { %27703 = vmatprep.subr.bf16.mxu1 %v29566_v0  ;;  %27617 = vmatprep.mubr.msk.bf16.mxu0 %vm29567_vm0, %v29566_v0 }
 0xbbf   :  { %27717 = vmatprep.mubr.msk.bf16.mxu1 %vm29567_vm0, %v29566_v0 }
 0xbc0   :  { %27604 = vmatpush3.bf16.msra.mxu0 %v29375_v35  ;;  %v29397_v35 = vld [vmem:[%s37146_s11 + $0x8a0] sm:$0xff]  }
 0xbc1   :  { %27704 = vmatpush3.bf16.msra.mxu1 %v29376_v32  ;;  %27605 = vmatprep.subr.bf16.mxu0 %v29566_v0  ;;  %v29398_v32 = vld [vmem:[%s37146_s11 + $0x9e0] sm:$0xff]  }
 0xbc2   :  { %27705 = vmatprep.subr.bf16.mxu1 %v29566_v0 }
 0xbc4   :  { %27606 = vmatpush3.bf16.msra.mxu0 %v29377_v8  ;;  %v29399_v8 = vld [vmem:[%s37146_s11 + $0x8a8] sm:$0xff]  }
 0xbc5   :  { %27706 = vmatpush3.bf16.msra.mxu1 %v29378_v58  ;;  %27607 = vmatprep.subr.bf16.mxu0 %v29566_v0  ;;  %v29400_v58 = vld [vmem:[%s37146_s11 + $0x9e8] sm:$0xff]  }
 0xbc6   :  { %27707 = vmatprep.subr.bf16.mxu1 %v29566_v0 }
 0xbc8   :  { %27608 = vmatpush3.bf16.msra.mxu0 %v29379_v60 }
 0xbc9   :  { %27708 = vmatpush3.bf16.msra.mxu1 %v29380_v26  ;;  %27609 = vmatprep.subr.bf16.mxu0 %v29566_v0 }
 0xbca   :  { %27709 = vmatprep.subr.bf16.mxu1 %v29566_v0 }
 0xbcc   :  { %27610 = vmatpush3.bf16.msra.mxu0 %v29381_v55 }
 0xbcd   :  { %27710 = vmatpush3.bf16.msra.mxu1 %v29382_v41  ;;  %27611 = vmatprep.subr.bf16.mxu0 %v29566_v0 }
 0xbce   :  { %v17416_v34 = vpop.f32.mrb[132].mxu0  ;;  %27711 = vmatprep.subr.bf16.mxu1 %v29566_v0 }
 0xbcf   :  { %v20713_v9 = vsel %vm6954_vm2, %v17416_v34, 0.0  ;;  %v27339_v14 = vpop.f32.mrb[133].mxu0  ;;  %v36309_v11 = vpop.f32.mrb[184].mxu1 }
 0xbd0   :  { %v20714_v56 = vadd.f32 %v20713_v9, %v20712_v38  ;;  %v17419_v23 = vpop.f32.mrb[134].mxu0  ;;  %v27439_v15 = vpop.f32.mrb[185].mxu1  ;;  %27612 = vmatpush3.bf16.msra.mxu0 %v29383_v46  ;;  %v22688_v38 = vpack.c.bf16 %v14606_v44, %v14606_v44  ;;  %v29401_v9 = vld [vmem:[%s37146_s11 + $0x8b0] sm:$0xff]   ;;  %v14488_v14 = vadd.f32 %v36235_v59, %v35119_v19  ;;  %v29403_v19 = vld [vmem:[%s37146_s11 + $0x8b8] sm:$0xff]   ;;  %v29408_v44 = vld [vmem:[%s37146_s11 + $0xa48] sm:$0xff]  }
 0xbd1   :  { %v27340_v53 = vpop.f32.mrb[135].mxu0  ;;  %v17859_v42 = vpop.f32.mrb[186].mxu1  ;;  %27712 = vmatpush3.bf16.msra.mxu1 %v29384_v27  ;;  %27613 = vmatprep.subr.bf16.mxu0 %v29566_v0 }
 0xbd2   :  { %v27440_v50 = vpop.f32.mrb[187].mxu1  ;;  %27713 = vmatprep.subr.bf16.mxu1 %v29566_v0  ;;  %v20716_v7 = vadd.f32 %v20715_v25, %v20714_v56  ;;  %v20719_v56 = vsel %vm6954_vm2, %v36227_v5, 0.0  ;;  %v14608_v5 = vmax.f32 %v14488_v14, 0.0  ;;  %v29404_v42 = vld [vmem:[%s37146_s11 + $0x9f8] sm:$0xff]  }
 0xbd3   :  { %v29406_v50 = vld [vmem:[%s37146_s11 + $0xa40] sm:$0xff]  }
 0xbd4   :  { %27614 = vmatpush3.bf16.msra.mxu0 %v29385_v22  ;;  %v29402_v22 = vld [vmem:[%s37146_s11 + $0x9f0] sm:$0xff]   ;;  %v22690_v57 = vpack.c.bf16 %v14608_v5, %v14608_v5 }
 0xbd5   :  { %27714 = vmatpush3.bf16.msra.mxu1 %v29386_v47  ;;  %27615 = vmatprep.subr.bf16.mxu0 %v29566_v0  ;;  %v14613_v47 = vmax.f32 %v14507_v43, 0.0  ;;  %v29426_v5 = vld [vmem:[%s37146_s11 + $0xad0] sm:$0xff]  }
 0xbd6   :  { %27715 = vmatprep.subr.bf16.mxu1 %v29566_v0 }
 0xbd8   :  { %27616 = vmatpush3.bf16.msra.mxu0 %v29387_v12  ;;  %v29407_v12 = vld [vmem:[%s37146_s11 + $0x908] sm:$0xff]  }
 0xbd9   :  { %27716 = vmatpush3.bf16.msra.mxu1 %v29388_v24  ;;  %27641 = vmatprep.subr.bf16.mxu0 %v29566_v0  ;;  %v29409_v24 = vld [vmem:[%s37146_s11 + $0x910] sm:$0xff]  }
 0xbda   :  { %27741 = vmatprep.subr.bf16.mxu1 %v29566_v0 }
 0xbdb   :  { %27618 = vmatmul.mubr.bf16.vlgmr.msra.gmra.mrb[160].mxu0 %v22688_v38  ;;  %v29412_v38 = vld [vmem:[%s37146_s11 + $0xa58] sm:$0xff]  }
 0xbdc   :  { %27642 = vmatpush3.bf16.msra.mxu0 %v29389_v31  ;;  %27718 = vmatmul.mubr.bf16.vlgmr.msra.gmra.mrb[212].mxu1 %v22693_v49  ;;  %v29411_v31 = vld [vmem:[%s37146_s11 + $0x918] sm:$0xff]   ;;  %v29414_v49 = vld [vmem:[%s37146_s11 + $0xa60] sm:$0xff]  }
 0xbdd   :  { %27742 = vmatpush3.bf16.msra.mxu1 %v29390_v63  ;;  %27643 = vmatprep.subr.bf16.mxu0 %v29566_v0  ;;  %v29413_v63 = vld [vmem:[%s37146_s11 + $0x920] sm:$0xff]  }
 0xbde   :  { %27743 = vmatprep.subr.bf16.mxu1 %v29566_v0  ;;  %27657 = vmatprep.mubr.msk.bf16.mxu0 %vm29567_vm0, %v29566_v0 }
 0xbdf   :  { %27757 = vmatprep.mubr.msk.bf16.mxu1 %vm29567_vm0, %v29566_v0 }
 0xbe0   :  { %27644 = vmatpush3.bf16.msra.mxu0 %v29391_v10  ;;  %v29415_v10 = vld [vmem:[%s37146_s11 + $0x928] sm:$0xff]  }
 0xbe1   :  { %27744 = vmatpush3.bf16.msra.mxu1 %v29392_v1  ;;  %27645 = vmatprep.subr.bf16.mxu0 %v29566_v0  ;;  %v29416_v1 = vld [vmem:[%s37146_s11 + $0xa68] sm:$0xff]  }
 0xbe2   :  { %27745 = vmatprep.subr.bf16.mxu1 %v29566_v0 }
 0xbe4   :  { %27646 = vmatpush3.bf16.msra.mxu0 %v29393_v45 }
 0xbe5   :  { %27746 = vmatpush3.bf16.msra.mxu1 %v29394_v28  ;;  %27647 = vmatprep.subr.bf16.mxu0 %v29566_v0 }
 0xbe6   :  { %27747 = vmatprep.subr.bf16.mxu1 %v29566_v0 }
 0xbe8   :  { %27648 = vmatpush3.bf16.msra.mxu0 %v29395_v4 }
 0xbe9   :  { %27748 = vmatpush3.bf16.msra.mxu1 %v29396_v51  ;;  %27649 = vmatprep.subr.bf16.mxu0 %v29566_v0 }
 0xbea   :  { %27749 = vmatprep.subr.bf16.mxu1 %v29566_v0 }
 0xbec   :  { %27650 = vmatpush3.bf16.msra.mxu0 %v29397_v35 }
 0xbed   :  { %27750 = vmatpush3.bf16.msra.mxu1 %v29398_v32  ;;  %27651 = vmatprep.subr.bf16.mxu0 %v29566_v0 }
 0xbee   :  { %v17592_v60 = vpop.f32.mrb[136].mxu0  ;;  %27751 = vmatprep.subr.bf16.mxu1 %v29566_v0 }
 0xbef   :  { %v20717_v26 = vsel %vm6954_vm2, %v17592_v60, 0.0  ;;  %v27379_v55 = vpop.f32.mrb[137].mxu0  ;;  %v36386_v41 = vpop.f32.mrb[188].mxu1  ;;  %v14496_v60 = vadd.f32 %v36235_v59, %v35141_v21  ;;  %v29419_v21 = vld [vmem:[%s37146_s11 + $0x938] sm:$0xff]  }
 0xbf0   :  { %v20718_v46 = vadd.f32 %v20717_v26, %v20716_v7  ;;  %v17595_v27 = vpop.f32.mrb[138].mxu0  ;;  %v27479_v34 = vpop.f32.mrb[189].mxu1  ;;  %27652 = vmatpush3.bf16.msra.mxu0 %v29399_v8  ;;  %v22695_v7 = vpack.c.bf16 %v14613_v47, %v14613_v47  ;;  %v20723_v26 = vsel %vm6954_vm2, %v36309_v11, 0.0  ;;  %v29428_v47 = vld [vmem:[%s37146_s11 + $0xad8] sm:$0xff]  }
 0xbf1   :  { %v27380_v23 = vpop.f32.mrb[139].mxu0  ;;  %v18035_v15 = vpop.f32.mrb[190].mxu1  ;;  %27752 = vmatpush3.bf16.msra.mxu1 %v29400_v58  ;;  %27653 = vmatprep.subr.bf16.mxu0 %v29566_v0  ;;  %v29417_v58 = vld [vmem:[%s37146_s11 + $0x930] sm:$0xff]   ;;  %v14515_v34 = vadd.f32 %v36235_v59, %v35175_v48  ;;  %v14610_v11 = vmax.f32 %v14496_v60, 0.0  ;;  %v29421_v48 = vld [vmem:[%s37146_s11 + $0x980] sm:$0xff]  }
 0xbf2   :  { %v27480_v25 = vpop.f32.mrb[191].mxu1  ;;  %27753 = vmatprep.subr.bf16.mxu1 %v29566_v0  ;;  %v20720_v53 = vadd.f32 %v20719_v56, %v20718_v46  ;;  %v29418_v27 = vld [vmem:[%s37146_s11 + $0xa70] sm:$0xff]   ;;  %v29420_v56 = vld [vmem:[%s37146_s11 + $0xa78] sm:$0xff]  }
 0xbf3   :  { %v14615_v23 = vmax.f32 %v14515_v34, 0.0  ;;  %v22692_v15 = vpack.c.bf16 %v14610_v11, %v14610_v11  ;;  %v29423_v25 = vld [vmem:[%s37146_s11 + $0x988] sm:$0xff]   ;;  %v29444_v11 = vld [vmem:[%s37146_s11 + $0xb58] sm:$0xff]  }
 0xbf4   :  { %27654 = vmatpush3.bf16.msra.mxu0 %v29401_v9  ;;  %v29440_v34 = vld [vmem:[%s37146_s11 + $0xb48] sm:$0xff]  }
 0xbf5   :  { %27754 = vmatpush3.bf16.msra.mxu1 %v29402_v22  ;;  %27655 = vmatprep.subr.bf16.mxu0 %v29566_v0  ;;  %v29422_v22 = vld [vmem:[%s37146_s11 + $0xac0] sm:$0xff]   ;;  %v22697_v43 = vpack.c.bf16 %v14615_v23, %v14615_v23 }
 0xbf6   :  { %27755 = vmatprep.subr.bf16.mxu1 %v29566_v0  ;;  %v29446_v23 = vld [vmem:[%s37146_s11 + $0xb60] sm:$0xff]  }
 0xbf8   :  { %27656 = vmatpush3.bf16.msra.mxu0 %v29403_v19  ;;  %v29425_v19 = vld [vmem:[%s37146_s11 + $0x990] sm:$0xff]  }
 0xbf9   :  { %27756 = vmatpush3.bf16.msra.mxu1 %v29404_v42  ;;  %27681 = vmatprep.subr.bf16.mxu0 %v29566_v0  ;;  %v29427_v42 = vld [vmem:[%s37146_s11 + $0x998] sm:$0xff]  }
 0xbfa   :  { %27781 = vmatprep.subr.bf16.mxu1 %v29566_v0 }
 0xbfb   :  { %27658 = vmatmul.mubr.bf16.vlgmr.msra.gmra.mrb[164].mxu0 %v22690_v57  ;;  %v29430_v57 = vld [vmem:[%s37146_s11 + $0xae0] sm:$0xff]  }
 0xbfc   :  { %27682 = vmatpush3.bf16.msra.mxu0 %v29405_v29  ;;  %27758 = vmatmul.mubr.bf16.vlgmr.msra.gmra.mrb[216].mxu1 %v22695_v7  ;;  %v29429_v29 = vld [vmem:[%s37146_s11 + $0x9a0] sm:$0xff]   ;;  %v29432_v7 = vld [vmem:[%s37146_s11 + $0xae8] sm:$0xff]  }
 0xbfd   :  { %27782 = vmatpush3.bf16.msra.mxu1 %v29406_v50  ;;  %27683 = vmatprep.subr.bf16.mxu0 %v29566_v0  ;;  %v29431_v50 = vld [vmem:[%s37146_s11 + $0x9a8] sm:$0xff]  }
 0xbfe   :  { %27783 = vmatprep.subr.bf16.mxu1 %v29566_v0  ;;  %27697 = vmatprep.mubr.msk.bf16.mxu0 %vm29567_vm0, %v29566_v0 }
 0xbff   :  { %27797 = vmatprep.mubr.msk.bf16.mxu1 %vm29567_vm0, %v29566_v0 }
 0xc00   :  { %27684 = vmatpush3.bf16.msra.mxu0 %v29407_v12 }
 0xc01   :  { %27784 = vmatpush3.bf16.msra.mxu1 %v29408_v44  ;;  %27685 = vmatprep.subr.bf16.mxu0 %v29566_v0 }
 0xc02   :  { %27785 = vmatprep.subr.bf16.mxu1 %v29566_v0 }
 0xc04   :  { %27686 = vmatpush3.bf16.msra.mxu0 %v29409_v24 }
 0xc05   :  { %27786 = vmatpush3.bf16.msra.mxu1 %v29410_v18  ;;  %27687 = vmatprep.subr.bf16.mxu0 %v29566_v0 }
 0xc06   :  { %27787 = vmatprep.subr.bf16.mxu1 %v29566_v0 }
 0xc08   :  { %27688 = vmatpush3.bf16.msra.mxu0 %v29411_v31 }
 0xc09   :  { %27788 = vmatpush3.bf16.msra.mxu1 %v29412_v38  ;;  %27689 = vmatprep.subr.bf16.mxu0 %v29566_v0 }
 0xc0a   :  { %27789 = vmatprep.subr.bf16.mxu1 %v29566_v0 }
 0xc0c   :  { %27690 = vmatpush3.bf16.msra.mxu0 %v29413_v63 }
 0xc0d   :  { %27790 = vmatpush3.bf16.msra.mxu1 %v29414_v49  ;;  %27691 = vmatprep.subr.bf16.mxu0 %v29566_v0  ;;  %v29433_v49 = vld [vmem:[%s37146_s11 + $0x9b0] sm:$0xff]  }
 0xc0e   :  { %v17768_v45 = vpop.f32.mrb[140].mxu0  ;;  %27791 = vmatprep.subr.bf16.mxu1 %v29566_v0 }
 0xc0f   :  { %v20721_v28 = vsel %vm6954_vm2, %v17768_v45, 0.0  ;;  %v27419_v4 = vpop.f32.mrb[141].mxu0  ;;  %v36463_v51 = vpop.f32.mrb[192].mxu1 }
 0xc10   :  { %v20722_v35 = vadd.f32 %v20721_v28, %v20720_v53  ;;  %v17771_v32 = vpop.f32.mrb[142].mxu0  ;;  %v27519_v8 = vpop.f32.mrb[193].mxu1  ;;  %27692 = vmatpush3.bf16.msra.mxu0 %v29415_v10  ;;  %v29424_v53 = vld [vmem:[%s37146_s11 + $0xac8] sm:$0xff]   ;;  %v14504_v10 = vadd.f32 %v36235_v59, %v35135_v40  ;;  %v29434_v4 = vld [vmem:[%s37146_s11 + $0xaf0] sm:$0xff]   ;;  %v29435_v40 = vld [vmem:[%s37146_s11 + $0x9b8] sm:$0xff]  }
 0xc11   :  { %v27420_v55 = vpop.f32.mrb[143].mxu0  ;;  %v18211_v46 = vpop.f32.mrb[194].mxu1  ;;  %27792 = vmatpush3.bf16.msra.mxu1 %v29416_v1  ;;  %27693 = vmatprep.subr.bf16.mxu0 %v29566_v0  ;;  %v20727_v1 = vsel %vm6954_vm2, %v36386_v41, 0.0 }
 0xc12   :  { %v27520_v9 = vpop.f32.mrb[195].mxu1  ;;  %27793 = vmatprep.subr.bf16.mxu1 %v29566_v0  ;;  %v20724_v14 = vadd.f32 %v20723_v26, %v20722_v35  ;;  %v14523_v35 = vadd.f32 %v36235_v59, %v35171_v16  ;;  %v14612_v41 = vmax.f32 %v14504_v10, 0.0  ;;  %v29437_v16 = vld [vmem:[%s37146_s11 + $0xa00] sm:$0xff]  }
 0xc13   :  { %v29438_v55 = vld [vmem:[%s37146_s11 + $0xb40] sm:$0xff]   ;;  %v29441_v9 = vld [vmem:[%s37146_s11 + $0xa10] sm:$0xff]  }
 0xc14   :  { %27694 = vmatpush3.bf16.msra.mxu0 %v29417_v58  ;;  %v29436_v58 = vld [vmem:[%s37146_s11 + $0xaf8] sm:$0xff]   ;;  %v14617_v60 = vmax.f32 %v14523_v35, 0.0  ;;  %v22694_v26 = vpack.c.bf16 %v14612_v41, %v14612_v41  ;;  %v29454_v10 = vld [vmem:[%s37146_s11 + $0xbc0] sm:$0xff]   ;;  %v29458_v35 = vld [vmem:[%s37146_s11 + $0xbd0] sm:$0xff]  }
 0xc15   :  { %27794 = vmatpush3.bf16.msra.mxu1 %v29418_v27  ;;  %27695 = vmatprep.subr.bf16.mxu0 %v29566_v0  ;;  %v29439_v27 = vld [vmem:[%s37146_s11 + $0xa08] sm:$0xff]   ;;  %v29462_v41 = vld [vmem:[%s37146_s11 + $0xbe0] sm:$0xff]  }
 0xc16   :  { %27795 = vmatprep.subr.bf16.mxu1 %v29566_v0  ;;  %v22699_v46 = vpack.c.bf16 %v14617_v60, %v14617_v60  ;;  %v29464_v60 = vld [vmem:[%s37146_s11 + $0xbe8] sm:$0xff]  }
 0xc18   :  { %27696 = vmatpush3.bf16.msra.mxu0 %v29419_v21  ;;  %v29443_v21 = vld [vmem:[%s37146_s11 + $0xa18] sm:$0xff]  }
 0xc19   :  { %27796 = vmatpush3.bf16.msra.mxu1 %v29420_v56  ;;  %27721 = vmatprep.subr.bf16.mxu0 %v29566_v0  ;;  %v29445_v56 = vld [vmem:[%s37146_s11 + $0xa20] sm:$0xff]  }
 0xc1a   :  { %27821 = vmatprep.subr.bf16.mxu1 %v29566_v0 }
 0xc1b   :  { %27698 = vmatmul.mubr.bf16.vlgmr.msra.gmra.mrb[168].mxu0 %v22692_v15  ;;  %v29448_v15 = vld [vmem:[%s37146_s11 + $0xb68] sm:$0xff]  }
 0xc1c   :  { %27722 = vmatpush3.bf16.msra.mxu0 %v29421_v48  ;;  %27798 = vmatmul.mubr.bf16.vlgmr.msra.gmra.mrb[220].mxu1 %v22697_v43  ;;  %v29447_v48 = vld [vmem:[%s37146_s11 + $0xa28] sm:$0xff]  }
 0xc1d   :  { %27822 = vmatpush3.bf16.msra.mxu1 %v29422_v22  ;;  %27723 = vmatprep.subr.bf16.mxu0 %v29566_v0 }
 0xc1e   :  { %27823 = vmatprep.subr.bf16.mxu1 %v29566_v0  ;;  %27737 = vmatprep.mubr.msk.bf16.mxu0 %vm29567_vm0, %v29566_v0 }
 0xc1f   :  { %27837 = vmatprep.mubr.msk.bf16.mxu1 %vm29567_vm0, %v29566_v0 }
 0xc20   :  { %27724 = vmatpush3.bf16.msra.mxu0 %v29423_v25 }
 0xc21   :  { %27824 = vmatpush3.bf16.msra.mxu1 %v29424_v53  ;;  %27725 = vmatprep.subr.bf16.mxu0 %v29566_v0 }
 0xc22   :  { %27825 = vmatprep.subr.bf16.mxu1 %v29566_v0 }
 0xc24   :  { %27726 = vmatpush3.bf16.msra.mxu0 %v29425_v19 }
 0xc25   :  { %27826 = vmatpush3.bf16.msra.mxu1 %v29426_v5  ;;  %27727 = vmatprep.subr.bf16.mxu0 %v29566_v0 }
 0xc26   :  { %27827 = vmatprep.subr.bf16.mxu1 %v29566_v0 }
 0xc28   :  { %27728 = vmatpush3.bf16.msra.mxu0 %v29427_v42 }
 0xc29   :  { %27828 = vmatpush3.bf16.msra.mxu1 %v29428_v47  ;;  %27729 = vmatprep.subr.bf16.mxu0 %v29566_v0  ;;  %v29449_v47 = vld [vmem:[%s37146_s11 + $0xa30] sm:$0xff]  }
 0xc2a   :  { %27829 = vmatprep.subr.bf16.mxu1 %v29566_v0 }
 0xc2c   :  { %27730 = vmatpush3.bf16.msra.mxu0 %v29429_v29  ;;  %v14512_v29 = vadd.f32 %v36235_v59, %v35165_v17  ;;  %v29451_v17 = vld [vmem:[%s37146_s11 + $0xa38] sm:$0xff]  }
 0xc2d   :  { %27830 = vmatpush3.bf16.msra.mxu1 %v29430_v57  ;;  %27731 = vmatprep.subr.bf16.mxu0 %v29566_v0  ;;  %v20731_v57 = vsel %vm6954_vm2, %v36463_v51, 0.0 }
 0xc2e   :  { %v17944_v12 = vpop.f32.mrb[144].mxu0  ;;  %27831 = vmatprep.subr.bf16.mxu1 %v29566_v0  ;;  %v14614_v51 = vmax.f32 %v14512_v29, 0.0  ;;  %v29471_v29 = vld [vmem:[%s37146_s11 + $0xb08] sm:$0xff]  }
 0xc2f   :  { %v20725_v44 = vsel %vm6954_vm2, %v17944_v12, 0.0  ;;  %v27459_v24 = vpop.f32.mrb[145].mxu0  ;;  %v36540_v18 = vpop.f32.mrb[196].mxu1  ;;  %v29450_v12 = vld [vmem:[%s37146_s11 + $0xb70] sm:$0xff]  }
 0xc30   :  { %v20726_v31 = vadd.f32 %v20725_v44, %v20724_v14  ;;  %v17947_v38 = vpop.f32.mrb[146].mxu0  ;;  %v27559_v63 = vpop.f32.mrb[197].mxu1  ;;  %27732 = vmatpush3.bf16.msra.mxu0 %v29431_v50  ;;  %v29442_v14 = vld [vmem:[%s37146_s11 + $0xb50] sm:$0xff]   ;;  %v14531_v44 = vadd.f32 %v36235_v59, %v35204_v13  ;;  %v29453_v13 = vld [vmem:[%s37146_s11 + $0xa80] sm:$0xff]  }
 0xc31   :  { %v27460_v45 = vpop.f32.mrb[147].mxu0  ;;  %v18387_v28 = vpop.f32.mrb[198].mxu1  ;;  %27832 = vmatpush3.bf16.msra.mxu1 %v29432_v7  ;;  %27733 = vmatprep.subr.bf16.mxu0 %v29566_v0  ;;  %v29452_v38 = vld [vmem:[%s37146_s11 + $0xb78] sm:$0xff]  }
 0xc32   :  { %v27560_v32 = vpop.f32.mrb[199].mxu1  ;;  %27833 = vmatprep.subr.bf16.mxu1 %v29566_v0  ;;  %v20728_v8 = vadd.f32 %v20727_v1, %v20726_v31  ;;  %v14619_v63 = vmax.f32 %v14531_v44, 0.0  ;;  %v29455_v45 = vld [vmem:[%s37146_s11 + $0xa88] sm:$0xff]   ;;  %v29476_v44 = vld [vmem:[%s37146_s11 + $0xc58] sm:$0xff]  }
 0xc33   :  { %v29456_v28 = vld [vmem:[%s37146_s11 + $0xbc8] sm:$0xff]   ;;  %v29459_v32 = vld [vmem:[%s37146_s11 + $0xa98] sm:$0xff]  }
 0xc34   :  { %27734 = vmatpush3.bf16.msra.mxu0 %v29433_v49  ;;  %v22696_v49 = vpack.c.bf16 %v14614_v51, %v14614_v51  ;;  %v22701_v1 = vpack.c.bf16 %v14619_v63, %v14619_v63  ;;  %v29480_v51 = vld [vmem:[%s37146_s11 + $0xc68] sm:$0xff]  }
 0xc35   :  { %27834 = vmatpush3.bf16.msra.mxu1 %v29434_v4  ;;  %27735 = vmatprep.subr.bf16.mxu0 %v29566_v0  ;;  %v29457_v4 = vld [vmem:[%s37146_s11 + $0xa90] sm:$0xff]  }
 0xc36   :  { %27835 = vmatprep.subr.bf16.mxu1 %v29566_v0 }
 0xc38   :  { %27736 = vmatpush3.bf16.msra.mxu0 %v29435_v40  ;;  %v29461_v40 = vld [vmem:[%s37146_s11 + $0xaa0] sm:$0xff]  }
 0xc39   :  { %27836 = vmatpush3.bf16.msra.mxu1 %v29436_v58  ;;  %27761 = vmatprep.subr.bf16.mxu0 %v29566_v0  ;;  %v29463_v58 = vld [vmem:[%s37146_s11 + $0xaa8] sm:$0xff]  }
 0xc3a   :  { %27861 = vmatprep.subr.bf16.mxu1 %v29566_v0 }
 0xc3b   :  { %27738 = vmatmul.mubr.bf16.vlgmr.msra.gmra.mrb[172].mxu0 %v22694_v26 }
 0xc3c   :  { %27762 = vmatpush3.bf16.msra.mxu0 %v29437_v16  ;;  %27838 = vmatmul.mubr.bf16.vlgmr.msra.gmra.mrb[224].mxu1 %v22699_v46 }
 0xc3d   :  { %27862 = vmatpush3.bf16.msra.mxu1 %v29438_v55  ;;  %27763 = vmatprep.subr.bf16.mxu0 %v29566_v0 }
 0xc3e   :  { %27863 = vmatprep.subr.bf16.mxu1 %v29566_v0  ;;  %27777 = vmatprep.mubr.msk.bf16.mxu0 %vm29567_vm0, %v29566_v0 }
 0xc3f   :  { %27877 = vmatprep.mubr.msk.bf16.mxu1 %vm29567_vm0, %v29566_v0 }
 0xc40   :  { %27764 = vmatpush3.bf16.msra.mxu0 %v29439_v27 }
 0xc41   :  { %27864 = vmatpush3.bf16.msra.mxu1 %v29440_v34  ;;  %27765 = vmatprep.subr.bf16.mxu0 %v29566_v0 }
 0xc42   :  { %27865 = vmatprep.subr.bf16.mxu1 %v29566_v0 }
 0xc44   :  { %27766 = vmatpush3.bf16.msra.mxu0 %v29441_v9 }
 0xc45   :  { %27866 = vmatpush3.bf16.msra.mxu1 %v29442_v14  ;;  %27767 = vmatprep.subr.bf16.mxu0 %v29566_v0  ;;  %v29465_v14 = vld [vmem:[%s37146_s11 + $0xab0] sm:$0xff]  }
 0xc46   :  { %27867 = vmatprep.subr.bf16.mxu1 %v29566_v0 }
 0xc48   :  { %27768 = vmatpush3.bf16.msra.mxu0 %v29443_v21  ;;  %v14520_v21 = vadd.f32 %v36235_v59, %v35160_v2  ;;  %v29467_v2 = vld [vmem:[%s37146_s11 + $0xab8] sm:$0xff]  }
 0xc49   :  { %27868 = vmatpush3.bf16.msra.mxu1 %v29444_v11  ;;  %27769 = vmatprep.subr.bf16.mxu0 %v29566_v0  ;;  %v20735_v11 = vsel %vm6954_vm2, %v36540_v18, 0.0 }
 0xc4a   :  { %27869 = vmatprep.subr.bf16.mxu1 %v29566_v0  ;;  %v14616_v18 = vmax.f32 %v14520_v21, 0.0  ;;  %v29490_v21 = vld [vmem:[%s37146_s11 + $0xcd0] sm:$0xff]  }
 0xc4c   :  { %27770 = vmatpush3.bf16.msra.mxu0 %v29445_v56 }
 0xc4d   :  { %27870 = vmatpush3.bf16.msra.mxu1 %v29446_v23  ;;  %27771 = vmatprep.subr.bf16.mxu0 %v29566_v0 }
 0xc4e   :  { %v18120_v22 = vpop.f32.mrb[148].mxu0  ;;  %27871 = vmatprep.subr.bf16.mxu1 %v29566_v0 }
 0xc4f   :  { %v20729_v43 = vsel %vm6954_vm2, %v18120_v22, 0.0  ;;  %v27499_v25 = vpop.f32.mrb[149].mxu0  ;;  %v36617_v53 = vpop.f32.mrb[200].mxu1 }
 0xc50   :  { %v20730_v19 = vadd.f32 %v20729_v43, %v20728_v8  ;;  %v18123_v5 = vpop.f32.mrb[150].mxu0  ;;  %v27599_v42 = vpop.f32.mrb[201].mxu1  ;;  %27772 = vmatpush3.bf16.msra.mxu0 %v29447_v48  ;;  %v29460_v8 = vld [vmem:[%s37146_s11 + $0xbd8] sm:$0xff]   ;;  %v29466_v48 = vld [vmem:[%s37146_s11 + $0xbf0] sm:$0xff]  }
 0xc51   :  { %v27500_v50 = vpop.f32.mrb[151].mxu0  ;;  %v18563_v7 = vpop.f32.mrb[202].mxu1  ;;  %27872 = vmatpush3.bf16.msra.mxu1 %v29448_v15  ;;  %27773 = vmatprep.subr.bf16.mxu0 %v29566_v0  ;;  %v14539_v15 = vadd.f32 %v36235_v59, %v35201_v33  ;;  %v29468_v25 = vld [vmem:[%s37146_s11 + $0xbf8] sm:$0xff]   ;;  %v29469_v33 = vld [vmem:[%s37146_s11 + $0xb00] sm:$0xff]   ;;  %v22698_v5 = vpack.c.bf16 %v14616_v18, %v14616_v18 }
 0xc52   :  { %v27600_v24 = vpop.f32.mrb[203].mxu1  ;;  %27873 = vmatprep.subr.bf16.mxu1 %v29566_v0  ;;  %v20732_v31 = vadd.f32 %v20731_v57, %v20730_v19  ;;  %v29470_v42 = vld [vmem:[%s37146_s11 + $0xc40] sm:$0xff]   ;;  %v29472_v57 = vld [vmem:[%s37146_s11 + $0xc48] sm:$0xff]   ;;  %v29473_v50 = vld [vmem:[%s37146_s11 + $0xb10] sm:$0xff]  }
 0xc53   :  { %v14621_v19 = vmax.f32 %v14539_v15, 0.0  ;;  %v29474_v7 = vld [vmem:[%s37146_s11 + $0xc50] sm:$0xff]   ;;  %v29477_v24 = vld [vmem:[%s37146_s11 + $0xb20] sm:$0xff]   ;;  %v29495_v15 = vld [vmem:[%s37146_s11 + $0xba8] sm:$0xff]  }
 0xc54   :  { %27774 = vmatpush3.bf16.msra.mxu0 %v29449_v47 }
 0xc55   :  { %27874 = vmatpush3.bf16.msra.mxu1 %v29450_v12  ;;  %27775 = vmatprep.subr.bf16.mxu0 %v29566_v0  ;;  %v22703_v47 = vpack.c.bf16 %v14621_v19, %v14621_v19  ;;  %v29475_v12 = vld [vmem:[%s37146_s11 + $0xb18] sm:$0xff]  }
 0xc56   :  { %27875 = vmatprep.subr.bf16.mxu1 %v29566_v0 }
 0xc58   :  { %27776 = vmatpush3.bf16.msra.mxu0 %v29451_v17  ;;  %v29479_v17 = vld [vmem:[%s37146_s11 + $0xb28] sm:$0xff]  }
 0xc59   :  { %27876 = vmatpush3.bf16.msra.mxu1 %v29452_v38  ;;  %27801 = vmatprep.subr.bf16.mxu0 %v29566_v0 }
 0xc5a   :  { %27901 = vmatprep.subr.bf16.mxu1 %v29566_v0 }
 0xc5b   :  { %27778 = vmatmul.mubr.bf16.vlgmr.msra.gmra.mrb[176].mxu0 %v22696_v49 }
 0xc5c   :  { %27802 = vmatpush3.bf16.msra.mxu0 %v29453_v13  ;;  %27878 = vmatmul.mubr.bf16.vlgmr.msra.gmra.mrb[228].mxu1 %v22701_v1 }
 0xc5d   :  { %27902 = vmatpush3.bf16.msra.mxu1 %v29454_v10  ;;  %27803 = vmatprep.subr.bf16.mxu0 %v29566_v0 }
 0xc5e   :  { %27903 = vmatprep.subr.bf16.mxu1 %v29566_v0  ;;  %27817 = vmatprep.mubr.msk.bf16.mxu0 %vm29567_vm0, %v29566_v0 }
 0xc5f   :  { %27917 = vmatprep.mubr.msk.bf16.mxu1 %vm29567_vm0, %v29566_v0 }
 0xc60   :  { %27804 = vmatpush3.bf16.msra.mxu0 %v29455_v45 }
 0xc61   :  { %27904 = vmatpush3.bf16.msra.mxu1 %v29456_v28  ;;  %27805 = vmatprep.subr.bf16.mxu0 %v29566_v0  ;;  %v29481_v28 = vld [vmem:[%s37146_s11 + $0xb30] sm:$0xff]  }
 0xc62   :  { %27905 = vmatprep.subr.bf16.mxu1 %v29566_v0 }
 0xc64   :  { %27806 = vmatpush3.bf16.msra.mxu0 %v29457_v4  ;;  %v14528_v4 = vadd.f32 %v36235_v59, %v35195_v37  ;;  %v29483_v37 = vld [vmem:[%s37146_s11 + $0xb38] sm:$0xff]  }
 0xc65   :  { %27906 = vmatpush3.bf16.msra.mxu1 %v29458_v35  ;;  %27807 = vmatprep.subr.bf16.mxu0 %v29566_v0  ;;  %v20739_v35 = vsel %vm6954_vm2, %v36617_v53, 0.0 }
 0xc66   :  { %27907 = vmatprep.subr.bf16.mxu1 %v29566_v0  ;;  %v14618_v53 = vmax.f32 %v14528_v4, 0.0  ;;  %v29507_v4 = vld [vmem:[%s37146_s11 + $0xc18] sm:$0xff]  }
 0xc68   :  { %27808 = vmatpush3.bf16.msra.mxu0 %v29459_v32 }
 0xc69   :  { %27908 = vmatpush3.bf16.msra.mxu1 %v29460_v8  ;;  %27809 = vmatprep.subr.bf16.mxu0 %v29566_v0 }
 0xc6a   :  { %27909 = vmatprep.subr.bf16.mxu1 %v29566_v0 }
 0xc6c   :  { %27810 = vmatpush3.bf16.msra.mxu0 %v29461_v40  ;;  %v29482_v40 = vld [vmem:[%s37146_s11 + $0xc70] sm:$0xff]  }
 0xc6d   :  { %27910 = vmatpush3.bf16.msra.mxu1 %v29462_v41  ;;  %27811 = vmatprep.subr.bf16.mxu0 %v29566_v0  ;;  %v14547_v41 = vadd.f32 %v36235_v59, %v35232_v52  ;;  %v29485_v52 = vld [vmem:[%s37146_s11 + $0xb80] sm:$0xff]   ;;  %v22700_v59 = vpack.c.bf16 %v14618_v53, %v14618_v53 }
 0xc6e   :  { %v18296_v16 = vpop.f32.mrb[152].mxu0  ;;  %27911 = vmatprep.subr.bf16.mxu1 %v29566_v0 }
 0xc6f   :  { %v20733_v26 = vsel %vm6954_vm2, %v18296_v16, 0.0  ;;  %v27539_v55 = vpop.f32.mrb[153].mxu0  ;;  %v36694_v46 = vpop.f32.mrb[204].mxu1  ;;  %v29484_v16 = vld [vmem:[%s37146_s11 + $0xc78] sm:$0xff]  }
 0xc70   :  { %v20734_v27 = vadd.f32 %v20733_v26, %v20732_v31  ;;  %v18299_v34 = vpop.f32.mrb[154].mxu0  ;;  %v27639_v9 = vpop.f32.mrb[205].mxu1  ;;  %27812 = vmatpush3.bf16.msra.mxu0 %v29463_v58  ;;  %v29478_v31 = vld [vmem:[%s37146_s11 + $0xc60] sm:$0xff]   ;;  %v14623_v26 = vmax.f32 %v14547_v41, 0.0  ;;  %v29512_v41 = vld [vmem:[%s37146_s11 + $0xd68] sm:$0xff]  }
 0xc71   :  { %v27540_v56 = vpop.f32.mrb[155].mxu0  ;;  %v18739_v23 = vpop.f32.mrb[206].mxu1  ;;  %27912 = vmatpush3.bf16.msra.mxu1 %v29464_v60  ;;  %27813 = vmatprep.subr.bf16.mxu0 %v29566_v0  ;;  %v29486_v55 = vld [vmem:[%s37146_s11 + $0xcc0] sm:$0xff]   ;;  %v29487_v34 = vld [vmem:[%s37146_s11 + $0xb88] sm:$0xff]  }
 0xc72   :  { %v27640_v22 = vpop.f32.mrb[207].mxu1  ;;  %27913 = vmatprep.subr.bf16.mxu1 %v29566_v0  ;;  %v20736_v43 = vadd.f32 %v20735_v11, %v20734_v27  ;;  %v22705_v27 = vpack.c.bf16 %v14623_v26, %v14623_v26  ;;  %v29488_v9 = vld [vmem:[%s37146_s11 + $0xcc8] sm:$0xff]   ;;  %v29491_v11 = vld [vmem:[%s37146_s11 + $0xb98] sm:$0xff]   ;;  %v29493_v23 = vld [vmem:[%s37146_s11 + $0xba0] sm:$0xff]  }
 0xc73   :  { %v29492_v56 = vld [vmem:[%s37146_s11 + $0xcd8] sm:$0xff]   ;;  %v29496_v22 = vld [vmem:[%s37146_s11 + $0xce8] sm:$0xff]  }
 0xc74   :  { %27814 = vmatpush3.bf16.msra.mxu0 %v29465_v14  ;;  %v29489_v14 = vld [vmem:[%s37146_s11 + $0xb90] sm:$0xff]  }
 0xc75   :  { %27914 = vmatpush3.bf16.msra.mxu1 %v29466_v48  ;;  %27815 = vmatprep.subr.bf16.mxu0 %v29566_v0  ;;  %v29494_v48 = vld [vmem:[%s37146_s11 + $0xce0] sm:$0xff]  }
 0xc76   :  { %27915 = vmatprep.subr.bf16.mxu1 %v29566_v0 }
 0xc78   :  { %27816 = vmatpush3.bf16.msra.mxu0 %v29467_v2 }
 0xc79   :  { %27916 = vmatpush3.bf16.msra.mxu1 %v29468_v25  ;;  %27841 = vmatprep.subr.bf16.mxu0 %v29566_v0 }
 0xc7a   :  { %27941 = vmatprep.subr.bf16.mxu1 %v29566_v0 }
 0xc7b   :  { %27818 = vmatmul.mubr.bf16.vlgmr.msra.gmra.mrb[180].mxu0 %v22698_v5 }
 0xc7c   :  { %27842 = vmatpush3.bf16.msra.mxu0 %v29469_v33  ;;  %27918 = vmatmul.mubr.bf16.vlgmr.msra.gmra.mrb[232].mxu1 %v22703_v47  ;;  %v36856_v47 = vld [vmem:[%s37147_s8] ss:$0 sm:$0xff] }
 0xc7d   :  { %27942 = vmatpush3.bf16.msra.mxu1 %v29470_v42  ;;  %27843 = vmatprep.subr.bf16.mxu0 %v29566_v0  ;;  %v29497_v42 = vld [vmem:[%s37146_s11 + $0xbb0] sm:$0xff]  }
 0xc7e   :  { %27943 = vmatprep.subr.bf16.mxu1 %v29566_v0  ;;  %27857 = vmatprep.mubr.msk.bf16.mxu0 %vm29567_vm0, %v29566_v0 }
 0xc7f   :  { %27957 = vmatprep.mubr.msk.bf16.mxu1 %vm29567_vm0, %v29566_v0 }
 0xc80   :  { %27844 = vmatpush3.bf16.msra.mxu0 %v29471_v29  ;;  %v14536_v29 = vadd.f32 %v36856_v47, %v35190_v30  ;;  %v29499_v30 = vld [vmem:[%s37146_s11 + $0xbb8] sm:$0xff]  }
 0xc81   :  { %27944 = vmatpush3.bf16.msra.mxu1 %v29472_v57  ;;  %27845 = vmatprep.subr.bf16.mxu0 %v29566_v0  ;;  %v20743_v57 = vsel %vm6954_vm2, %v36694_v46, 0.0 }
 0xc82   :  { %27945 = vmatprep.subr.bf16.mxu1 %v29566_v0  ;;  %v14620_v46 = vmax.f32 %v14536_v29, 0.0  ;;  %v29525_v29 = vld [vmem:[%s37146_s11 + $0xca0] sm:$0xff]  }
 0xc84   :  { %27846 = vmatpush3.bf16.msra.mxu0 %v29473_v50 }
 0xc85   :  { %27946 = vmatpush3.bf16.msra.mxu1 %v29474_v7  ;;  %27847 = vmatprep.subr.bf16.mxu0 %v29566_v0 }
 0xc86   :  { %27947 = vmatprep.subr.bf16.mxu1 %v29566_v0 }
 0xc88   :  { %27848 = vmatpush3.bf16.msra.mxu0 %v29475_v12  ;;  %v29498_v12 = vld [vmem:[%s37146_s11 + $0xcf0] sm:$0xff]  }
 0xc89   :  { %27948 = vmatpush3.bf16.msra.mxu1 %v29476_v44  ;;  %27849 = vmatprep.subr.bf16.mxu0 %v29566_v0  ;;  %v14555_v44 = vadd.f32 %v36856_v47, %v35229_v62  ;;  %v29501_v62 = vld [vmem:[%s37146_s11 + $0xc00] sm:$0xff]  }
 0xc8a   :  { %27949 = vmatprep.subr.bf16.mxu1 %v29566_v0 }
 0xc8c   :  { %27850 = vmatpush3.bf16.msra.mxu0 %v29477_v24 }
 0xc8d   :  { %27950 = vmatpush3.bf16.msra.mxu1 %v29478_v31  ;;  %27851 = vmatprep.subr.bf16.mxu0 %v29566_v0 }
 0xc8e   :  { %v18472_v38 = vpop.f32.mrb[156].mxu0  ;;  %27951 = vmatprep.subr.bf16.mxu1 %v29566_v0 }
 0xc8f   :  { %v20737_v63 = vsel %vm6954_vm2, %v18472_v38, 0.0  ;;  %v27579_v13 = vpop.f32.mrb[157].mxu0  ;;  %v36771_v49 = vpop.f32.mrb[208].mxu1  ;;  %v22702_v38 = vpack.c.bf16 %v14620_v46, %v14620_v46 }
 0xc90   :  { %v20738_v10 = vadd.f32 %v20737_v63, %v20736_v43  ;;  %v18475_v1 = vpop.f32.mrb[158].mxu0  ;;  %v27679_v45 = vpop.f32.mrb[209].mxu1  ;;  %27852 = vmatpush3.bf16.msra.mxu0 %v29479_v17  ;;  %v29500_v17 = vld [vmem:[%s37146_s11 + $0xcf8] sm:$0xff]   ;;  %v29502_v63 = vld [vmem:[%s37146_s11 + $0xd40] sm:$0xff]  }
 0xc91   :  { %v27580_v32 = vpop.f32.mrb[159].mxu0  ;;  %v18915_v8 = vpop.f32.mrb[210].mxu1  ;;  %27952 = vmatpush3.bf16.msra.mxu1 %v29480_v51  ;;  %27853 = vmatprep.subr.bf16.mxu0 %v29566_v0  ;;  %v14625_v51 = vmax.f32 %v14555_v44, 0.0  ;;  %v29504_v1 = vld [vmem:[%s37146_s11 + $0xd48] sm:$0xff]   ;;  %v29505_v45 = vld [vmem:[%s37146_s11 + $0xc10] sm:$0xff]  }
 0xc92   :  { %v27680_v58 = vpop.f32.mrb[211].mxu1  ;;  %27953 = vmatprep.subr.bf16.mxu1 %v29566_v0  ;;  %v20740_v60 = vadd.f32 %v20739_v35, %v20738_v10  ;;  %v29503_v10 = vld [vmem:[%s37146_s11 + $0xc08] sm:$0xff]   ;;  %v29508_v35 = vld [vmem:[%s37146_s11 + $0xd58] sm:$0xff]   ;;  %v29509_v32 = vld [vmem:[%s37146_s11 + $0xc20] sm:$0xff]  }
 0xc93   :  { %v22707_v13 = vpack.c.bf16 %v14625_v51, %v14625_v51  ;;  %v29510_v8 = vld [vmem:[%s37146_s11 + $0xd60] sm:$0xff]   ;;  %v29529_v51 = vld [vmem:[%s37146_s11 + $0xcb0] sm:$0xff]  }
 0xc94   :  { %27854 = vmatpush3.bf16.msra.mxu0 %v29481_v28  ;;  %v29506_v28 = vld [vmem:[%s37146_s11 + $0xd50] sm:$0xff]  }
 0xc95   :  { %27954 = vmatpush3.bf16.msra.mxu1 %v29482_v40  ;;  %27855 = vmatprep.subr.bf16.mxu0 %v29566_v0  ;;  %v29511_v40 = vld [vmem:[%s37146_s11 + $0xc28] sm:$0xff]  }
 0xc96   :  { %27955 = vmatprep.subr.bf16.mxu1 %v29566_v0 }
 0xc98   :  { %27856 = vmatpush3.bf16.msra.mxu0 %v29483_v37 }
 0xc99   :  { %27956 = vmatpush3.bf16.msra.mxu1 %v29484_v16  ;;  %27881 = vmatprep.subr.bf16.mxu0 %v29566_v0 }
 0xc9a   :  { %27981 = vmatprep.subr.bf16.mxu1 %v29566_v0 }
 0xc9b   :  { %27858 = vmatmul.mubr.bf16.vlgmr.msra.gmra.mrb[184].mxu0 %v22700_v59  ;;  %v29513_v59 = vld [vmem:[%s37146_s11 + $0xc30] sm:$0xff]  }
 0xc9c   :  { %27882 = vmatpush3.bf16.msra.mxu0 %v29485_v52  ;;  %27958 = vmatmul.mubr.bf16.vlgmr.msra.gmra.mrb[236].mxu1 %v22705_v27  ;;  %v20747_v27 = vsel %vm6954_vm2, %v36771_v49, 0.0 }
 0xc9d   :  { %27982 = vmatpush3.bf16.msra.mxu1 %v29486_v55  ;;  %27883 = vmatprep.subr.bf16.mxu0 %v29566_v0  ;;  %v14544_v55 = vadd.f32 %v36856_v47, %v35223_v61  ;;  %v29515_v61 = vld [vmem:[%s37146_s11 + $0xc38] sm:$0xff]  }
 0xc9e   :  { %27983 = vmatprep.subr.bf16.mxu1 %v29566_v0  ;;  %27897 = vmatprep.mubr.msk.bf16.mxu0 %vm29567_vm0, %v29566_v0 }
 0xc9f   :  { %27997 = vmatprep.mubr.msk.bf16.mxu1 %vm29567_vm0, %v29566_v0  ;;  %v14622_v49 = vmax.f32 %v14544_v55, 0.0 }
 0xca0   :  { %27884 = vmatpush3.bf16.msra.mxu0 %v29487_v34 }
 0xca1   :  { %27984 = vmatpush3.bf16.msra.mxu1 %v29488_v9  ;;  %27885 = vmatprep.subr.bf16.mxu0 %v29566_v0 }
 0xca2   :  { %27985 = vmatprep.subr.bf16.mxu1 %v29566_v0 }
 0xca4   :  { %27886 = vmatpush3.bf16.msra.mxu0 %v29489_v14  ;;  %v29514_v14 = vld [vmem:[%s37146_s11 + $0xd70] sm:$0xff]  }
 0xca5   :  { %27986 = vmatpush3.bf16.msra.mxu1 %v29490_v21  ;;  %27887 = vmatprep.subr.bf16.mxu0 %v29566_v0  ;;  %v14563_v21 = vadd.f32 %v36856_v47, %v35258_v20  ;;  %v29517_v20 = vld [vmem:[%s37146_s11 + $0xc80] sm:$0xff]  }
 0xca6   :  { %27987 = vmatprep.subr.bf16.mxu1 %v29566_v0 }
 0xca8   :  { %27888 = vmatpush3.bf16.msra.mxu0 %v29491_v11 }
 0xca9   :  { %27988 = vmatpush3.bf16.msra.mxu1 %v29492_v56  ;;  %27889 = vmatprep.subr.bf16.mxu0 %v29566_v0 }
 0xcaa   :  { %27989 = vmatprep.subr.bf16.mxu1 %v29566_v0 }
 0xcac   :  { %27890 = vmatpush3.bf16.msra.mxu0 %v29493_v23  ;;  %v29516_v23 = vld [vmem:[%s37146_s11 + $0xd78] sm:$0xff]  }
 0xcad   :  { %27990 = vmatpush3.bf16.msra.mxu1 %v29494_v48  ;;  %27891 = vmatprep.subr.bf16.mxu0 %v29566_v0  ;;  %v14627_v48 = vmax.f32 %v14563_v21, 0.0 }
 0xcae   :  { %v18648_v43 = vpop.f32.mrb[160].mxu0  ;;  %27991 = vmatprep.subr.bf16.mxu1 %v29566_v0 }
 0xcaf   :  { %v20741_v2 = vsel %vm6954_vm2, %v18648_v43, 0.0  ;;  %v27619_v18 = vpop.f32.mrb[161].mxu0  ;;  %v36848_v25 = vpop.f32.mrb[212].mxu1  ;;  %v22709_v43 = vpack.c.bf16 %v14627_v48, %v14627_v48 }
 0xcb0   :  { %v20742_v19 = vadd.f32 %v20741_v2, %v20740_v60  ;;  %v18651_v33 = vpop.f32.mrb[162].mxu0  ;;  %v27719_v5 = vpop.f32.mrb[213].mxu1  ;;  %27892 = vmatpush3.bf16.msra.mxu0 %v29495_v15  ;;  %v22704_v15 = vpack.c.bf16 %v14622_v49, %v14622_v49  ;;  %v29519_v2 = vld [vmem:[%s37146_s11 + $0xc88] sm:$0xff]  }
 0xcb1   :  { %v27620_v50 = vpop.f32.mrb[163].mxu0  ;;  %v19091_v7 = vpop.f32.mrb[214].mxu1  ;;  %27992 = vmatpush3.bf16.msra.mxu1 %v29496_v22  ;;  %27893 = vmatprep.subr.bf16.mxu0 %v29566_v0  ;;  %v29518_v22 = vld [vmem:[%s37146_s11 + $0xdc0] sm:$0xff]   ;;  %v29520_v18 = vld [vmem:[%s37146_s11 + $0xdc8] sm:$0xff]   ;;  %v29522_v33 = vld [vmem:[%s37146_s11 + $0xdd0] sm:$0xff]  }
 0xcb2   :  { %v27720_v24 = vpop.f32.mrb[215].mxu1  ;;  %27993 = vmatprep.subr.bf16.mxu1 %v29566_v0  ;;  %v20744_v31 = vadd.f32 %v20743_v57, %v20742_v19  ;;  %v29521_v19 = vld [vmem:[%s37146_s11 + $0xc90] sm:$0xff]   ;;  %v29523_v5 = vld [vmem:[%s37146_s11 + $0xc98] sm:$0xff]   ;;  %v29526_v57 = vld [vmem:[%s37146_s11 + $0xde0] sm:$0xff]  }
 0xcb3   :  { %v29527_v50 = vld [vmem:[%s37146_s11 + $0xca8] sm:$0xff]  }
 0xcb4   :  { %27894 = vmatpush3.bf16.msra.mxu0 %v29497_v42  ;;  %v29524_v42 = vld [vmem:[%s37146_s11 + $0xdd8] sm:$0xff]   ;;  %v29528_v7 = vld [vmem:[%s37146_s11 + $0xde8] sm:$0xff]  }
 0xcb5   :  { %27994 = vmatpush3.bf16.msra.mxu1 %v29498_v12  ;;  %27895 = vmatprep.subr.bf16.mxu0 %v29566_v0 }
 0xcb6   :  { %27995 = vmatprep.subr.bf16.mxu1 %v29566_v0 }
 0xcb8   :  { %27896 = vmatpush3.bf16.msra.mxu0 %v29499_v30 }
 0xcb9   :  { %27996 = vmatpush3.bf16.msra.mxu1 %v29500_v17  ;;  %27921 = vmatprep.subr.bf16.mxu0 %v29566_v0 }
 0xcba   :  { %28021 = vmatprep.subr.bf16.mxu1 %v29566_v0 }
 0xcbb   :  { %27898 = vmatmul.mubr.bf16.vlgmr.msra.gmra.mrb[188].mxu0 %v22702_v38  ;;  %v20751_v38 = vsel %vm6954_vm2, %v36848_v25, 0.0 }
 0xcbc   :  { %27922 = vmatpush3.bf16.msra.mxu0 %v29501_v62  ;;  %27998 = vmatmul.mubr.bf16.vlgmr.msra.gmra.mrb[240].mxu1 %v22707_v13  ;;  %v14552_v62 = vadd.f32 %v36856_v47, %v35221_v39  ;;  %v29531_v39 = vld [vmem:[%s37146_s11 + $0xcb8] sm:$0xff]  }
 0xcbd   :  { %28022 = vmatpush3.bf16.msra.mxu1 %v29502_v63  ;;  %27923 = vmatprep.subr.bf16.mxu0 %v29566_v0 }
 0xcbe   :  { %28023 = vmatprep.subr.bf16.mxu1 %v29566_v0  ;;  %27937 = vmatprep.mubr.msk.bf16.mxu0 %vm29567_vm0, %v29566_v0  ;;  %v14624_v25 = vmax.f32 %v14552_v62, 0.0 }
 0xcbf   :  { %28037 = vmatprep.mubr.msk.bf16.mxu1 %vm29567_vm0, %v29566_v0 }
 0xcc0   :  { %27924 = vmatpush3.bf16.msra.mxu0 %v29503_v10  ;;  %v29530_v10 = vld [vmem:[%s37146_s11 + $0xdf0] sm:$0xff]  }
 0xcc1   :  { %28024 = vmatpush3.bf16.msra.mxu1 %v29504_v1  ;;  %27925 = vmatprep.subr.bf16.mxu0 %v29566_v0  ;;  %v14571_v1 = vadd.f32 %v36856_v47, %v35253_v3  ;;  %v29533_v3 = vld [vmem:[%s37146_s11 + $0xd00] sm:$0xff]  }
 0xcc2   :  { %28025 = vmatprep.subr.bf16.mxu1 %v29566_v0 }
 0xcc4   :  { %27926 = vmatpush3.bf16.msra.mxu0 %v29505_v45 }
 0xcc5   :  { %28026 = vmatpush3.bf16.msra.mxu1 %v29506_v28  ;;  %27927 = vmatprep.subr.bf16.mxu0 %v29566_v0 }
 0xcc6   :  { %28027 = vmatprep.subr.bf16.mxu1 %v29566_v0 }
 0xcc8   :  { %27928 = vmatpush3.bf16.msra.mxu0 %v29507_v4  ;;  %v29532_v4 = vld [vmem:[%s37146_s11 + $0xdf8] sm:$0xff]  }
 0xcc9   :  { %28028 = vmatpush3.bf16.msra.mxu1 %v29508_v35  ;;  %27929 = vmatprep.subr.bf16.mxu0 %v29566_v0  ;;  %v14629_v35 = vmax.f32 %v14571_v1, 0.0 }
 0xcca   :  { %28029 = vmatprep.subr.bf16.mxu1 %v29566_v0 }
 0xccc   :  { %27930 = vmatpush3.bf16.msra.mxu0 %v29509_v32  ;;  %v22706_v32 = vpack.c.bf16 %v14624_v25, %v14624_v25 }
 0xccd   :  { %28030 = vmatpush3.bf16.msra.mxu1 %v29510_v8  ;;  %27931 = vmatprep.subr.bf16.mxu0 %v29566_v0  ;;  %v22711_v8 = vpack.c.bf16 %v14629_v35, %v14629_v35 }
 0xcce   :  { %v18824_v58 = vpop.f32.mrb[164].mxu0  ;;  %28031 = vmatprep.subr.bf16.mxu1 %v29566_v0 }
 0xccf   :  { %v20745_v60 = vsel %vm6954_vm2, %v18824_v58, 0.0  ;;  %v27659_v37 = vpop.f32.mrb[165].mxu0  ;;  %v36930_v53 = vpop.f32.mrb[216].mxu1  ;;  %v29536_v58 = vld [vmem:[%s37146_s11 + $0xd18] sm:$0xff]  }
 0xcd0   :  { %v20746_v16 = vadd.f32 %v20745_v60, %v20744_v31  ;;  %v18827_v26 = vpop.f32.mrb[166].mxu0  ;;  %v27759_v52 = vpop.f32.mrb[217].mxu1  ;;  %27932 = vmatpush3.bf16.msra.mxu0 %v29511_v40  ;;  %v29534_v40 = vld [vmem:[%s37146_s11 + $0xd08] sm:$0xff]   ;;  %v29537_v60 = vld [vmem:[%s37146_s11 + $0xd20] sm:$0xff]   ;;  %v20755_v21 = vsel %vm6954_vm2, %v36930_v53, 0.0 }
 0xcd1   :  { %v27660_v34 = vpop.f32.mrb[167].mxu0  ;;  %v19267_v9 = vpop.f32.mrb[218].mxu1  ;;  %28032 = vmatpush3.bf16.msra.mxu1 %v29512_v41  ;;  %27933 = vmatprep.subr.bf16.mxu0 %v29566_v0  ;;  %v29535_v41 = vld [vmem:[%s37146_s11 + $0xd10] sm:$0xff]   ;;  %v29538_v37 = vld [vmem:[%s37146_s11 + $0xd28] sm:$0xff]  }
 0xcd2   :  { %v27760_v11 = vpop.f32.mrb[219].mxu1  ;;  %28033 = vmatprep.subr.bf16.mxu1 %v29566_v0  ;;  %v20748_v56 = vadd.f32 %v20747_v27, %v20746_v16  ;;  %v29539_v9 = vld [vmem:[%s37146_s11 + $0xd30] sm:$0xff]  }
 0xcd4   :  { %27934 = vmatpush3.bf16.msra.mxu0 %v29513_v59 }
 0xcd5   :  { %28034 = vmatpush3.bf16.msra.mxu1 %v29514_v14  ;;  %27935 = vmatprep.subr.bf16.mxu0 %v29566_v0  ;;  %v14560_v14 = vadd.f32 %v36856_v47, %v35247_v36  ;;  %v29541_v36 = vld [vmem:[%s37146_s11 + $0xd80] sm:$0xff]  }
 0xcd6   :  { %28035 = vmatprep.subr.bf16.mxu1 %v29566_v0 }
 0xcd7   :  { %v14626_v48 = vmax.f32 %v14560_v14, 0.0 }
 0xcd8   :  { %27936 = vmatpush3.bf16.msra.mxu0 %v29515_v61 }
 0xcd9   :  { %28036 = vmatpush3.bf16.msra.mxu1 %v29516_v23  ;;  %27961 = vmatprep.subr.bf16.mxu0 %v29566_v0  ;;  %v29540_v23 = vld [vmem:[%s37146_s11 + $0xd38] sm:$0xff]   ;;  %v22708_v53 = vpack.c.bf16 %v14626_v48, %v14626_v48 }
 0xcda   :  { %28061 = vmatprep.subr.bf16.mxu1 %v29566_v0 }
 0xcdb   :  { %27938 = vmatmul.mubr.bf16.vlgmr.msra.gmra.mrb[192].mxu0 %v22704_v15  ;;  %v29543_v15 = vld [vmem:[%s37146_s11 + $0xd90] sm:$0xff]  }
 0xcdc   :  { %27962 = vmatpush3.bf16.msra.mxu0 %v29517_v20  ;;  %28038 = vmatmul.mubr.bf16.vlgmr.msra.gmra.mrb[244].mxu1 %v22709_v43  ;;  %v29542_v20 = vld [vmem:[%s37146_s11 + $0xd88] sm:$0xff]   ;;  %v29545_v43 = vld [vmem:[%s37146_s11 + $0xda0] sm:$0xff]  }
 0xcdd   :  { %28062 = vmatpush3.bf16.msra.mxu1 %v29518_v22  ;;  %27963 = vmatprep.subr.bf16.mxu0 %v29566_v0  ;;  %v29544_v22 = vld [vmem:[%s37146_s11 + $0xd98] sm:$0xff]  }
 0xcde   :  { %28063 = vmatprep.subr.bf16.mxu1 %v29566_v0  ;;  %27977 = vmatprep.mubr.msk.bf16.mxu0 %vm29567_vm0, %v29566_v0 }
 0xcdf   :  { %28077 = vmatprep.mubr.msk.bf16.mxu1 %vm29567_vm0, %v29566_v0 }
 0xce0   :  { %27964 = vmatpush3.bf16.msra.mxu0 %v29519_v2  ;;  %v29546_v2 = vld [vmem:[%s37146_s11 + $0xda8] sm:$0xff]  }
 0xce1   :  { %28064 = vmatpush3.bf16.msra.mxu1 %v29520_v18  ;;  %27965 = vmatprep.subr.bf16.mxu0 %v29566_v0 }
 0xce2   :  { %28065 = vmatprep.subr.bf16.mxu1 %v29566_v0 }
 0xce4   :  { %27966 = vmatpush3.bf16.msra.mxu0 %v29521_v19 }
 0xce5   :  { %28066 = vmatpush3.bf16.msra.mxu1 %v29522_v33  ;;  %27967 = vmatprep.subr.bf16.mxu0 %v29566_v0 }
 0xce6   :  { %28067 = vmatprep.subr.bf16.mxu1 %v29566_v0 }
 0xce8   :  { %27968 = vmatpush3.bf16.msra.mxu0 %v29523_v5 }
 0xce9   :  { %28068 = vmatpush3.bf16.msra.mxu1 %v29524_v42  ;;  %27969 = vmatprep.subr.bf16.mxu0 %v29566_v0 }
 0xcea   :  { %28069 = vmatprep.subr.bf16.mxu1 %v29566_v0 }
 0xcec   :  { %27970 = vmatpush3.bf16.msra.mxu0 %v29525_v29 }
 0xced   :  { %28070 = vmatpush3.bf16.msra.mxu1 %v29526_v57  ;;  %27971 = vmatprep.subr.bf16.mxu0 %v29566_v0 }
 0xcee   :  { %v19000_v12 = vpop.f32.mrb[168].mxu0  ;;  %28071 = vmatprep.subr.bf16.mxu1 %v29566_v0 }
 0xcef   :  { %v20749_v44 = vsel %vm6954_vm2, %v19000_v12, 0.0  ;;  %v27699_v24 = vpop.f32.mrb[169].mxu0  ;;  %v37007_v31 = vpop.f32.mrb[220].mxu1 }
 0xcf0   :  { %v20750_v30 = vadd.f32 %v20749_v44, %v20748_v56  ;;  %v19003_v46 = vpop.f32.mrb[170].mxu0  ;;  %v27799_v17 = vpop.f32.mrb[221].mxu1  ;;  %27972 = vmatpush3.bf16.msra.mxu0 %v29527_v50  ;;  %v29547_v50 = vld [vmem:[%s37146_s11 + $0xdb0] sm:$0xff]   ;;  %v20759_v12 = vsel %vm6954_vm2, %v37007_v31, 0.0 }
 0xcf1   :  { %v27700_v63 = vpop.f32.mrb[171].mxu0  ;;  %v19443_v13 = vpop.f32.mrb[222].mxu1  ;;  %28072 = vmatpush3.bf16.msra.mxu1 %v29528_v7  ;;  %27973 = vmatprep.subr.bf16.mxu0 %v29566_v0  ;;  %v14568_v7 = vadd.f32 %v36856_v47, %v35242_v6  ;;  %v29548_v17 = vld [vmem:[%s37146_s11 + $0xdb8] sm:$0xff]  }
 0xcf2   :  { %v27800_v45 = vpop.f32.mrb[223].mxu1  ;;  %28073 = vmatprep.subr.bf16.mxu1 %v29566_v0  ;;  %v20752_v28 = vadd.f32 %v20751_v38, %v20750_v30 }
 0xcf4   :  { %27974 = vmatpush3.bf16.msra.mxu0 %v29529_v51  ;;  %v14628_v51 = vmax.f32 %v14568_v7, 0.0 }
 0xcf5   :  { %28074 = vmatpush3.bf16.msra.mxu1 %v29530_v10  ;;  %27975 = vmatprep.subr.bf16.mxu0 %v29566_v0 }
 0xcf6   :  { %28075 = vmatprep.subr.bf16.mxu1 %v29566_v0  ;;  %v22710_v62 = vpack.c.bf16 %v14628_v51, %v14628_v51 }
 0xcf8   :  { %27976 = vmatpush3.bf16.msra.mxu0 %v29531_v39 }
 0xcf9   :  { %28076 = vmatpush3.bf16.msra.mxu1 %v29532_v4  ;;  %28001 = vmatprep.subr.bf16.mxu0 %v29566_v0 }
 0xcfb   :  { %27978 = vmatmul.mubr.bf16.vlgmr.msra.gmra.mrb[196].mxu0 %v22706_v32 }
 0xcfc   :  { %28002 = vmatpush3.bf16.msra.mxu0 %v29533_v3  ;;  %28078 = vmatmul.mubr.bf16.vlgmr.msra.gmra.mrb[248].mxu1 %v22711_v8 }
 0xcfd   :  { %28003 = vmatprep.subr.bf16.mxu0 %v29566_v0  ;;  %28017 = vmatprep.mubr.msk.bf16.mxu0 %vm29567_vm0, %v29566_v0 }
 0xd00   :  { %28004 = vmatpush3.bf16.msra.mxu0 %v29534_v40 }
 0xd01   :  { %28005 = vmatprep.subr.bf16.mxu0 %v29566_v0 }
 0xd04   :  { %28006 = vmatpush3.bf16.msra.mxu0 %v29535_v41 }
 0xd05   :  { %28007 = vmatprep.subr.bf16.mxu0 %v29566_v0 }
 0xd08   :  { %28008 = vmatpush3.bf16.msra.mxu0 %v29536_v58 }
 0xd09   :  { %28009 = vmatprep.subr.bf16.mxu0 %v29566_v0 }
 0xd0c   :  { %28010 = vmatpush3.bf16.msra.mxu0 %v29537_v60 }
 0xd0d   :  { %28011 = vmatprep.subr.bf16.mxu0 %v29566_v0 }
 0xd0e   :  { %v19176_v16 = vpop.f32.mrb[172].mxu0 }
 0xd0f   :  { %v20753_v26 = vsel %vm6954_vm2, %v19176_v16, 0.0  ;;  %v27739_v52 = vpop.f32.mrb[173].mxu0  ;;  %v37058_v59 = vpop.f32.mrb[224].mxu1 }
 0xd10   :  { %v20754_v55 = vadd.f32 %v20753_v26, %v20752_v28  ;;  %v19179_v27 = vpop.f32.mrb[174].mxu0  ;;  %v27839_v34 = vpop.f32.mrb[225].mxu1  ;;  %28012 = vmatpush3.bf16.msra.mxu0 %v29538_v37  ;;  %v20763_v1 = vsel %vm6954_vm2, %v37058_v59, 0.0 }
 0xd11   :  { %v27740_v11 = vpop.f32.mrb[175].mxu0  ;;  %v19619_v56 = vpop.f32.mrb[226].mxu1  ;;  %28013 = vmatprep.subr.bf16.mxu0 %v29566_v0 }
 0xd12   :  { %v27840_v61 = vpop.f32.mrb[227].mxu1  ;;  %v20756_v49 = vadd.f32 %v20755_v21, %v20754_v55 }
 0xd14   :  { %28014 = vmatpush3.bf16.msra.mxu0 %v29539_v9 }
 0xd15   :  { %28015 = vmatprep.subr.bf16.mxu0 %v29566_v0 }
 0xd18   :  { %28016 = vmatpush3.bf16.msra.mxu0 %v29540_v23 }
 0xd19   :  { %28041 = vmatprep.subr.bf16.mxu0 %v29566_v0 }
 0xd1b   :  { %28018 = vmatmul.mubr.bf16.vlgmr.msra.gmra.mrb[200].mxu0 %v22708_v53 }
 0xd1c   :  { %28042 = vmatpush3.bf16.msra.mxu0 %v29541_v36  ;;  %28057 = vmatprep.mubr.msk.bf16.mxu0 %vm29567_vm0, %v29566_v0 }
 0xd1d   :  { %28043 = vmatprep.subr.bf16.mxu0 %v29566_v0 }
 0xd20   :  { %28044 = vmatpush3.bf16.msra.mxu0 %v29542_v20 }
 0xd21   :  { %28045 = vmatprep.subr.bf16.mxu0 %v29566_v0 }
 0xd24   :  { %28046 = vmatpush3.bf16.msra.mxu0 %v29543_v15 }
 0xd25   :  { %28047 = vmatprep.subr.bf16.mxu0 %v29566_v0 }
 0xd28   :  { %28048 = vmatpush3.bf16.msra.mxu0 %v29544_v22 }
 0xd29   :  { %28049 = vmatprep.subr.bf16.mxu0 %v29566_v0 }
 0xd2c   :  { %28050 = vmatpush3.bf16.msra.mxu0 %v29545_v43 }
 0xd2d   :  { %28051 = vmatprep.subr.bf16.mxu0 %v29566_v0 }
 0xd2e   :  { %v19352_v18 = vpop.f32.mrb[176].mxu0 }
 0xd2f   :  { %v20757_v19 = vsel %vm6954_vm2, %v19352_v18, 0.0  ;;  %v27779_v33 = vpop.f32.mrb[177].mxu0  ;;  %v19792_v5 = vpop.f32.mrb[228].mxu1 }
 0xd30   :  { %v20758_v42 = vadd.f32 %v20757_v19, %v20756_v49  ;;  %v19355_v29 = vpop.f32.mrb[178].mxu0  ;;  %v27879_v57 = vpop.f32.mrb[229].mxu1  ;;  %28052 = vmatpush3.bf16.msra.mxu0 %v29546_v2  ;;  %v20767_v41 = vsel %vm6954_vm2, %v19792_v5, 0.0 }
 0xd31   :  { %v27780_v44 = vpop.f32.mrb[179].mxu0  ;;  %v19795_v24 = vpop.f32.mrb[230].mxu1  ;;  %28053 = vmatprep.subr.bf16.mxu0 %v29566_v0 }
 0xd32   :  { %v27880_v30 = vpop.f32.mrb[231].mxu1  ;;  %v20760_v46 = vadd.f32 %v20759_v12, %v20758_v42 }
 0xd34   :  { %28054 = vmatpush3.bf16.msra.mxu0 %v29547_v50 }
 0xd35   :  { %28055 = vmatprep.subr.bf16.mxu0 %v29566_v0 }
 0xd38   :  { %28056 = vmatpush3.bf16.msra.mxu0 %v29548_v17 }
 0xd3b   :  { %28058 = vmatmul.mubr.bf16.vlgmr.msra.gmra.mrb[204].mxu0 %v22710_v62 }
 0xd4e   :  { %v19528_v6 = vpop.f32.mrb[180].mxu0 }
 0xd4f   :  { %v20761_v47 = vsel %vm6954_vm2, %v19528_v6, 0.0  ;;  %v27819_v31 = vpop.f32.mrb[181].mxu0  ;;  %v19968_v38 = vpop.f32.mrb[232].mxu1 }
 0xd50   :  { %v20762_v63 = vadd.f32 %v20761_v47, %v20760_v46  ;;  %v19531_v13 = vpop.f32.mrb[182].mxu0  ;;  %v27919_v10 = vpop.f32.mrb[233].mxu1  ;;  %v20771_v14 = vsel %vm6954_vm2, %v19968_v38, 0.0 }
 0xd51   :  { %v27820_v45 = vpop.f32.mrb[183].mxu0  ;;  %v19971_v28 = vpop.f32.mrb[234].mxu1 }
 0xd52   :  { %v27920_v39 = vpop.f32.mrb[235].mxu1  ;;  %v20764_v25 = vadd.f32 %v20763_v1, %v20762_v63 }
 0xd6e   :  { %v19704_v4 = vpop.f32.mrb[184].mxu0 }
 0xd6f   :  { %v20765_v0 = vsel %vm6954_vm2, %v19704_v4, 0.0  ;;  %v27859_v35 = vpop.f32.mrb[185].mxu0  ;;  %v20144_v3 = vpop.f32.mrb[236].mxu1 }
 0xd70   :  { %v20766_v32 = vadd.f32 %v20765_v0, %v20764_v25  ;;  %v19707_v8 = vpop.f32.mrb[186].mxu0  ;;  %v27959_v40 = vpop.f32.mrb[237].mxu1  ;;  %v20775_v22 = vsel %vm6954_vm2, %v20144_v3, 0.0  ;;  %v22540_v0 = vld [vmem:[%s37148_s12] ss:$0 sm:$0xff] }
 0xd71   :  { %v27860_v58 = vpop.f32.mrb[187].mxu0  ;;  %v20147_v60 = vpop.f32.mrb[238].mxu1 }
 0xd72   :  { %v27960_v37 = vpop.f32.mrb[239].mxu1  ;;  %v20768_v16 = vadd.f32 %v20767_v41, %v20766_v32 }
 0xd8e   :  { %v19880_v26 = vpop.f32.mrb[188].mxu0 }
 0xd8f   :  { %v20769_v52 = vsel %vm6954_vm2, %v19880_v26, 0.0  ;;  %v27899_v59 = vpop.f32.mrb[189].mxu0  ;;  %v20320_v55 = vpop.f32.mrb[240].mxu1 }
 0xd90   :  { %v20770_v27 = vadd.f32 %v20769_v52, %v20768_v16  ;;  %v19883_v34 = vpop.f32.mrb[190].mxu0  ;;  %v27999_v9 = vpop.f32.mrb[241].mxu1  ;;  %v20779_v12 = vsel %vm6954_vm2, %v20320_v55, 0.0 }
 0xd91   :  { %v27900_v21 = vpop.f32.mrb[191].mxu0  ;;  %v20323_v11 = vpop.f32.mrb[242].mxu1 }
 0xd92   :  { %v28000_v56 = vpop.f32.mrb[243].mxu1  ;;  %v20772_v61 = vadd.f32 %v20771_v14, %v20770_v27 }
 0xdae   :  { %v20056_v49 = vpop.f32.mrb[192].mxu0 }
 0xdaf   :  { %v20773_v23 = vsel %vm6954_vm2, %v20056_v49, 0.0  ;;  %v27939_v48 = vpop.f32.mrb[193].mxu0  ;;  %v20496_v36 = vpop.f32.mrb[244].mxu1 }
 0xdb0   :  { %v20774_v53 = vadd.f32 %v20773_v23, %v20772_v61  ;;  %v20059_v20 = vpop.f32.mrb[194].mxu0  ;;  %v28039_v15 = vpop.f32.mrb[245].mxu1  ;;  %v20783_v31 = vsel %vm6954_vm2, %v20496_v36, 0.0 }
 0xdb1   :  { %v27940_v43 = vpop.f32.mrb[195].mxu0  ;;  %v20499_v2 = vpop.f32.mrb[246].mxu1 }
 0xdb2   :  { %v28040_v18 = vpop.f32.mrb[247].mxu1  ;;  %v20776_v19 = vadd.f32 %v20775_v22, %v20774_v53 }
 0xdce   :  { %v20232_v33 = vpop.f32.mrb[196].mxu0 }
 0xdcf   :  { %v20777_v5 = vsel %vm6954_vm2, %v20232_v33, 0.0  ;;  %v27979_v42 = vpop.f32.mrb[197].mxu0  ;;  %v20672_v29 = vpop.f32.mrb[248].mxu1 }
 0xdd0   :  { %v20778_v57 = vadd.f32 %v20777_v5, %v20776_v19  ;;  %v20235_v50 = vpop.f32.mrb[198].mxu0  ;;  %v28079_v7 = vpop.f32.mrb[249].mxu1  ;;  %v20787_v39 = vsel %vm6954_vm2, %v20672_v29, 0.0 }
 0xdd1   :  { %v27980_v44 = vpop.f32.mrb[199].mxu0  ;;  %v20675_v24 = vpop.f32.mrb[250].mxu1 }
 0xdd2   :  { %v28080_v30 = vpop.f32.mrb[251].mxu1  ;;  %v20780_v46 = vadd.f32 %v20779_v12, %v20778_v57 }
 0xdee   :  { %v20408_v17 = vpop.f32.mrb[200].mxu0 }
 0xdef   :  { %v20781_v51 = vsel %vm6954_vm2, %v20408_v17, 0.0  ;;  %v28019_v62 = vpop.f32.mrb[201].mxu0 }
 0xdf0   :  { %v20782_v6 = vadd.f32 %v20781_v51, %v20780_v46  ;;  %v20411_v47 = vpop.f32.mrb[202].mxu0 }
 0xdf1   :  { %v28020_v38 = vpop.f32.mrb[203].mxu0 }
 0xdf2   :  { %v20784_v63 = vadd.f32 %v20783_v31, %v20782_v6 }
 0xe0e   :  { %v20584_v13 = vpop.f32.mrb[204].mxu0 }
 0xe0f   :  { %v20785_v10 = vsel %vm6954_vm2, %v20584_v13, 0.0  ;;  %v28059_v1 = vpop.f32.mrb[205].mxu0 }
 0xe10   :  { %v20786_v45 = vadd.f32 %v20785_v10, %v20784_v63  ;;  %v20587_v28 = vpop.f32.mrb[206].mxu0 }
 0xe11   :  { %v28060_v25 = vpop.f32.mrb[207].mxu0 }
 0xe12   :  { %v20788_v4 = vadd.f32 %v20787_v39, %v20786_v45 }
 0xe14   :  { %v20789_v35 = vadd.f32 %v20788_v4, %v35439_v54 }
 0xe16   :  { %v20797_v3 = vadd.f32 %v22540_v0, %v20789_v35 }
 0xe18   :  { %v20798_v32 = vsel %vm6954_vm2, %v20797_v3, -inf }
 0xe19   :  { %20799 = vmax.xlane.f32.xlu0 %v20798_v32 }
 0xea6   :  { %v20800_v8 = vpop.xlane.xlu0 %20799 }
 0xea7   :  { %v20801_v40 = vsub.f32 %v20797_v3, %v20800_v8 }
 0xea9   :  { %v20802_v41 = vmul.f32 1.442695, %v20801_v40 }
 0xeab   :  { %29549 = vpow2.f32 %v20802_v41 }
 0xeb5   :  { %v29550_v58 = vpop.eup %29549 }
 0xeb6   :  { %v20804_v60 = vsel %vm6954_vm2, %v29550_v58, 0.0 }
 0xeb7   :  { %20805 = vadd.xlane.f32.xlu0 %v20804_v60 }
 0xf44   :  { %v20806_v37 = vpop.xlane.xlu0 %20805 }
 0xf45   :  { %29551 = vrcp.f32 %v20806_v37 }
 0xf4f   :  { %v29552_v16 = vpop.eup %29551 }
 0xf50   :  { %v20808_v26 = vmul.f32 %v29552_v16, %v29550_v58 }
 0xf52   :  { %20809 = vst.msk [vmem:[%s37149_s13] sm:$0xff] %vm6954_vm2, %v20808_v26 }

</bundles_post_ra>
